<compile_context>
chip_gen: v7x
topology: tpu7x:2x2x1
jax: 0.10.0
libtpu: 0.0.40
codegen_flags: <defaults>
</compile_context>

<pallas_src>
import functools

import jax
import jax.numpy as jnp
import numpy as np
from jax.experimental import pallas as pl
from jax.experimental.pallas import tpu as pltpu


# ----------------------------------------------------------------------------
# Fused HQCFN kernel: 3x (linear + ReLU + unimodal circuit) + 3-qubit fusion
# ----------------------------------------------------------------------------
def _hqcfn_kernel(
    x_ref,      # (max_D, T, 3, B)   packed modality features (batch on lanes)
    u_ref,      # (R_u, 3, B)        packed unimodal params: lin w rows, bias row,
                #                    then 4 Rot-product rows per time step (trig baked in)
    f_ref,      # (4*n_gates, 1, B)  packed fusion Rot-product rows (trig baked in)
    out_ref,    # (1, B)             <Z_0> of the fusion circuit (lane-dense)
    *,
    n_ansatz_layers,
    n_fusion_layers,
):
    max_d = x_ref.shape[0]
    T = x_ref.shape[1]
    B = x_ref.shape[3]

    # ---------------- classical linear (D->1) + ReLU: unrolled over D, lane-dense
    z = x_ref[0] * u_ref[0][None]                       # (T,3,B) * (1,3,B)
    for d in range(1, max_d):
        z = z + x_ref[d] * u_ref[d][None]
    feat = jnp.maximum(z + u_ref[max_d][None], 0.0)     # (T, 3, B)
    # data-dependent RX trig, one batched cos/sin for all time steps / modalities
    hc = jnp.cos(0.5 * feat)                            # (T, 3, B)
    hs = jnp.sin(0.5 * feat)

    # ---------------- unimodal circuits: 3 modalities stacked on sublanes (3, B)
    zeros3 = jnp.zeros((3, B), jnp.float32)
    ar, ai = jnp.ones((3, B), jnp.float32), zeros3      # |psi> = a|0> + b|1>
    br, bi = zeros3, zeros3

    def apply_rot(p, q, r, w, ar, ai, br, bi):
        # Rot = [[p - i q, -r - i w], [r - i w, p + i q]]
        nar = p * ar + q * ai - r * br + w * bi
        nai = p * ai - q * ar - r * bi - w * br
        nbr = r * ar + w * ai + p * br - q * bi
        nbi = r * ai - w * ar + p * bi + q * br
        return nar, nai, nbr, nbi

    def apply_rx(c, s, ar, ai, br, bi):
        # RX = [[c, -i s], [-i s, c]]
        return c * ar + s * bi, c * ai - s * br, c * br + s * ai, c * bi - s * ar

    # TODO(synk): if T grows large, switch this unrolled loop to
    # lax.fori_loop(..., unroll=True) over the precomputed table rows.
    L0 = max_d + 1
    for t in range(T):
        base = L0 + 4 * t
        ar, ai, br, bi = apply_rot(
            u_ref[base], u_ref[base + 1], u_ref[base + 2], u_ref[base + 3],
            ar, ai, br, bi)
        ar, ai, br, bi = apply_rx(hc[t], hs[t], ar, ai, br, bi)
    base = L0 + 4 * T
    ar, ai, br, bi = apply_rot(
        u_ref[base], u_ref[base + 1], u_ref[base + 2], u_ref[base + 3],
        ar, ai, br, bi)

    ev = ar * ar + ai * ai - br * br - bi * bi          # (3, B)  <Z> per modality

    # fusion data-encoding RX trig (same values reused in every fusion layer)
    rxc = jnp.cos(0.5 * ev)                             # (3, B)
    rxs = jnp.sin(0.5 * ev)
    rx_c = [rxc[m:m + 1] for m in range(3)]             # (1, B) each
    rx_s = [rxs[m:m + 1] for m in range(3)]

    # ---------------- 3-qubit multimodal fusion circuit
    z1 = jnp.zeros((1, B), jnp.float32)
    o1 = jnp.ones((1, B), jnp.float32)
    # 8 amplitudes, PennyLane ordering: index = 4*q0 + 2*q1 + q2 (wire 0 = MSB)
    state = [(o1, z1)] + [(z1, z1) for _ in range(7)]

    def rot_pair(p, q, r, w, a, b):
        arr, aii = a
        brr, bii = b
        na = (p * arr + q * aii - r * brr + w * bii,
              p * aii - q * arr - r * bii - w * brr)
        nb = (r * arr + w * aii + p * brr - q * bii,
              r * aii - w * arr + p * bii + q * brr)
        return na, nb

    def rx_pair(c, s, a, b):
        arr, aii = a
        brr, bii = b
        return ((c * arr + s * bii, c * aii - s * brr),
                (c * brr + s * aii, c * bii - s * arr))

    def apply_rot_1q(st, g, wire):
        # gate entries read ONCE per gate as (1, B) rows (already amplitude-shaped)
        p, q, r, w = f_ref[4 * g], f_ref[4 * g + 1], f_ref[4 * g + 2], f_ref[4 * g + 3]
        pbit = 2 - wire
        new = list(st)
        for idx in range(8):
            if (idx >> pbit) & 1:
                continue
            j = idx | (1 << pbit)
            new[idx], new[j] = rot_pair(p, q, r, w, st[idx], st[j])
        return new

    def apply_rx_1q(st, c, s, wire):
        pbit = 2 - wire
        new = list(st)
        for idx in range(8):
            if (idx >> pbit) & 1:
                continue
            j = idx | (1 << pbit)
            new[idx], new[j] = rx_pair(c, s, st[idx], st[j])
        return new

    def apply_cnot(st, control, target):
        pc, pt = 2 - control, 2 - target
        new = list(st)
        for idx in range(8):
            if (idx >> pc) & 1:
                new[idx] = st[idx ^ (1 << pt)]
        return new

    def strongly_entangling(st, block):
        for al in range(n_ansatz_layers):
            for wire in range(3):
                g = (block * n_ansatz_layers + al) * 3 + wire
                st = apply_rot_1q(st, g, wire)
            rng = (al % 2) + 1  # PennyLane default ranges for 3 wires
            for wire in range(3):
                st = apply_cnot(st, wire, (wire + rng) % 3)
        return st

    for layer in range(n_fusion_layers):
        state = strongly_entangling(state, layer)
        for wire in range(3):
            state = apply_rx_1q(state, rx_c[wire], rx_s[wire], wire)
    state = strongly_entangling(state, n_fusion_layers)

    # <Z_0>: +|amp|^2 for wire-0 bit = 0 (idx < 4), - otherwise
    out = z1
    for idx in range(8):
        re, im = state[idx]
        prob = re * re + im * im
        out = out + prob if idx < 4 else out - prob
    out_ref[...] = out  # (1, B) lane-dense store


# ----------------------------------------------------------------------------
# wrapper: pack data + parameters (trig baked in) and launch one pallas_call
# ----------------------------------------------------------------------------
def _rot_products(angles):
    """(..., 3) Rot(phi,theta,omega) angles -> (..., 4) products [c*cosA, c*sinA, s*cosB, s*sinB]."""
    phi, theta, omega = angles[..., 0], angles[..., 1], angles[..., 2]
    c = jnp.cos(0.5 * theta)
    s = jnp.sin(0.5 * theta)
    alpha = 0.5 * (phi + omega)
    beta = 0.5 * (phi - omega)
    return jnp.stack([c * jnp.cos(alpha), c * jnp.sin(alpha),
                      s * jnp.cos(beta), s * jnp.sin(beta)], axis=-1)


def hqcfn_forward(xs, params, *, n_ansatz_layers, n_fusion_layers):
    B, T, _ = xs[0].shape
    dims = tuple(int(x.shape[2]) for x in xs)
    max_d = max(dims)
    n_gates = (n_fusion_layers + 1) * n_ansatz_layers * 3

    # ---- layout plumbing (XLA, outside the kernel) ----
    # data: (max_D, T, 3, B), zero-padded along D
    xpack = jnp.stack(
        [jnp.pad(jnp.transpose(x, (2, 1, 0)).astype(jnp.float32),
                 ((0, max_d - d), (0, 0), (0, 0)))
         for x, d in zip(xs, dims)],
        axis=2,
    )

    # unimodal parameter table: [lin-weight rows | bias row | 4 Rot-product rows per t]
    wpad = jnp.stack(
        [jnp.pad(params[f"lin_w_{m}"][0], (0, max_d - dims[m])) for m in range(3)],
        axis=1,
    )                                                              # (max_D, 3)
    brow = jnp.stack([params[f"lin_b_{m}"][0, 0] for m in range(3)])[None, :]  # (1, 3)
    uni_rot = jnp.stack(
        [_rot_products(params[f"q_w_{m}"]) for m in range(3)], axis=-1
    ).reshape((T + 1) * 4, 3)                                      # ((T+1)*4, 3)
    uni_2d = jnp.concatenate([wpad, brow, uni_rot], axis=0)        # (R_u, 3)
    r_u = uni_2d.shape[0]
    uni_tab = jnp.broadcast_to(uni_2d[:, :, None], (r_u, 3, B)).astype(jnp.float32)

    # fusion parameter table: 4 Rot-product rows per gate, pre-broadcast over lanes
    fus_prod = _rot_products(params["fusion_w"].reshape(n_gates, 3)).reshape(-1)
    fus_tab = jnp.broadcast_to(fus_prod[:, None, None],
                               (4 * n_gates, 1, B)).astype(jnp.float32)

    kernel = functools.partial(
        _hqcfn_kernel,
        n_ansatz_layers=n_ansatz_layers,
        n_fusion_layers=n_fusion_layers,
    )
    out = pl.pallas_call(
        kernel,
        out_shape=jax.ShapeDtypeStruct((1, B), jnp.float32),
        grid=(1,),
        in_specs=[
            pl.BlockSpec((max_d, T, 3, B), lambda i: (0, 0, 0, 0)),
            pl.BlockSpec((r_u, 3, B), lambda i: (0, 0, 0)),
            pl.BlockSpec((4 * n_gates, 1, B), lambda i: (0, 0, 0)),
        ],
        out_specs=pl.BlockSpec((1, B), lambda i: (0, 0)),
        compiler_params=pltpu.CompilerParams(dimension_semantics=("arbitrary",)),
    )(xpack, uni_tab, fus_tab)
    # TODO(synk): for large B, add a lane-dense (multiple of 128) batch grid axis
    # marked "parallel" (tile ~128-256 lanes per step to respect the 16-amplitude
    # vreg budget) so v7x's two TensorCores split the work; at B=8 one step is optimal.
    return out[0]


def init_params(key, n_time_step, input_dims, n_ansatz_layers, n_fusion_layers):
    params = {}
    keys = jax.random.split(key, 10)
    for m, dim in enumerate(input_dims):
        bound = 1.0 / np.sqrt(dim)
        params[f"lin_w_{m}"] = jax.random.uniform(
            keys[m], (1, dim), jnp.float32, -bound, bound
        )
        params[f"lin_b_{m}"] = jax.random.uniform(
            keys[3 + m], (1, 1), jnp.float32, -bound, bound
        )
        params[f"q_w_{m}"] = jax.random.uniform(
            keys[6 + m], (n_time_step + 1, 3), jnp.float32, 0.0, 2.0 * np.pi
        )
    params["fusion_w"] = jax.random.uniform(
        keys[9],
        (n_fusion_layers + 1, n_ansatz_layers, 3, 3),
        jnp.float32,
        0.0,
        2.0 * np.pi,
    )
    return params


# ----------------------------------------------------------------------------
# pure numpy reference (same gate conventions as PennyLane default.qubit)
# ----------------------------------------------------------------------------
def _np_rot(phi, theta, omega):
    rz = lambda a: np.array([[np.exp(-1j * a / 2), 0], [0, np.exp(1j * a / 2)]])
    ry = lambda a: np.array(
        [[np.cos(a / 2), -np.sin(a / 2)], [np.sin(a / 2), np.cos(a / 2)]]
    )
    return rz(omega) @ ry(theta) @ rz(phi)


def _np_rx(x):
    return np.array(
        [[np.cos(x / 2), -1j * np.sin(x / 2)], [-1j * np.sin(x / 2), np.cos(x / 2)]]
    )


def _np_embed(u, wire):
    ops = [np.eye(2, dtype=complex)] * 3
    ops[wire] = u
    return np.kron(np.kron(ops[0], ops[1]), ops[2])


def _np_cnot(control, target):
    m = np.zeros((8, 8))
    for idx in range(8):
        bits = [(idx >> 2) & 1, (idx >> 1) & 1, idx & 1]
        if bits[control]:
            bits[target] ^= 1
        j = bits[0] * 4 + bits[1] * 2 + bits[2]
        m[j, idx] = 1.0
    return m


def reference_forward(xs, params, n_time_step, n_ansatz_layers, n_fusion_layers):
    T = n_time_step
    evs = []
    for m in range(3):
        x = np.asarray(xs[m], dtype=np.float64)
        w = np.asarray(params[f"lin_w_{m}"], dtype=np.float64)
        b = np.asarray(params[f"lin_b_{m}"], dtype=np.float64)
        qw = np.asarray(params[f"q_w_{m}"], dtype=np.float64)
        feat = np.maximum((x @ w.T)[..., 0] + b[0, 0], 0.0)  # (B, T)
        B = feat.shape[0]
        ev = np.zeros(B)
        for bi in range(B):
            psi = np.array([1.0 + 0j, 0.0 + 0j])
            for t in range(T):
                psi = _np_rot(qw[t, 0], qw[t, 1], qw[t, 2]) @ psi
                psi = _np_rx(feat[bi, t]) @ psi
            psi = _np_rot(qw[T, 0], qw[T, 1], qw[T, 2]) @ psi
            ev[bi] = abs(psi[0]) ** 2 - abs(psi[1]) ** 2
        evs.append(ev)
    evs = np.stack(evs, axis=1)  # (B, 3)

    fw = np.asarray(params["fusion_w"], dtype=np.float64)
    B = evs.shape[0]
    preds = np.zeros(B)
    for bi in range(B):
        psi = np.zeros(8, dtype=complex)
        psi[0] = 1.0

        def wm(theta, psi):
            for al in range(n_ansatz_layers):
                for wire in range(3):
                    psi = _np_embed(_np_rot(*theta[al, wire]), wire) @ psi
                r = (al % 2) + 1
                for wire in range(3):
                    psi = _np_cnot(wire, (wire + r) % 3) @ psi
            return psi

        for layer in range(n_fusion_layers):
            psi = wm(fw[layer], psi)
            for wire in range(3):
                psi = _np_embed(_np_rx(evs[bi, wire]), wire) @ psi
        psi = wm(fw[-1], psi)
        preds[bi] = np.sum(np.abs(psi[:4]) ** 2) - np.sum(np.abs(psi[4:]) ** 2)
    return preds


# ----------------------------------------------------------------------------
if __name__ == "__main__":
    B = 8
    n_time_step = 6
    input_dims = (5, 4, 3)
    n_ansatz_layers = 2
    n_fusion_layers = 2

    key = jax.random.PRNGKey(0)
    k_x, k_p = jax.random.split(key)
    xkeys = jax.random.split(k_x, 3)
    xs = [
        jax.random.normal(xkeys[m], (B, n_time_step, input_dims[m]), jnp.float32)
        for m in range(3)
    ]
    params = init_params(k_p, n_time_step, input_dims, n_ansatz_layers, n_fusion_layers)

    pred = hqcfn_forward(
        xs, params, n_ansatz_layers=n_ansatz_layers, n_fusion_layers=n_fusion_layers
    )
    pred = jax.block_until_ready(pred)

    assert pred.shape == (B,)
    ref = reference_forward(xs, params, n_time_step, n_ansatz_layers, n_fusion_layers)
    np.testing.assert_allclose(np.asarray(pred), ref, atol=1e-3, rtol=0.0)

    print("KERNEL_OK")
</pallas_src>

<mosaic_0001>
module attributes {stable_mosaic.version = 11 : i64} {
  func.func @_hqcfn_kernel(%arg0: i32, %arg1: memref<5x6x3x8xf32, #tpu.memory_space<vmem>>, %arg2: memref<34x3x8xf32, #tpu.memory_space<vmem>>, %arg3: memref<72x1x8xf32, #tpu.memory_space<vmem>>, %arg4: memref<1x8xf32, #tpu.memory_space<vmem>>) attributes {dimension_semantics = [#tpu.dimension_semantics<arbitrary>], iteration_bounds = array<i64: 1>, scalar_prefetch = 0 : i64, scratch_operands = 0 : i64, tpu.core_type = #tpu.core_type<tc>, window_params = [{pipeline_mode = #tpu.pipeline_mode<synchronous>, transform_indices = @transform_0, window_bounds = array<i64: 5, 6, 3, 8>}, {pipeline_mode = #tpu.pipeline_mode<synchronous>, transform_indices = @transform_1, window_bounds = array<i64: 34, 3, 8>}, {pipeline_mode = #tpu.pipeline_mode<synchronous>, transform_indices = @transform_2, window_bounds = array<i64: 72, 1, 8>}, {pipeline_mode = #tpu.pipeline_mode<synchronous>, transform_indices = @transform_3, window_bounds = array<i64: 1, 8>}]} {
    %c0 = arith.constant 0 : index
    %c0_0 = arith.constant 0 : index
    %c0_1 = arith.constant 0 : index
    %c0_2 = arith.constant 0 : index
    %0 = vector.load %arg1[%c0, %c0_0, %c0_1, %c0_2] : memref<5x6x3x8xf32, #tpu.memory_space<vmem>>, vector<1x6x3x8xf32>
    %1 = vector.shape_cast %0 : vector<1x6x3x8xf32> to vector<6x3x8xf32>
    %c0_3 = arith.constant 0 : index
    %c0_4 = arith.constant 0 : index
    %c0_5 = arith.constant 0 : index
    %2 = vector.load %arg2[%c0_3, %c0_4, %c0_5] : memref<34x3x8xf32, #tpu.memory_space<vmem>>, vector<1x3x8xf32>
    %3 = vector.shape_cast %2 : vector<1x3x8xf32> to vector<3x8xf32>
    %4 = vector.shape_cast %3 : vector<3x8xf32> to vector<1x3x8xf32>
    %5 = vector.broadcast %4 : vector<1x3x8xf32> to vector<6x3x8xf32>
    %6 = arith.mulf %1, %5 : vector<6x3x8xf32>
    %c1 = arith.constant 1 : index
    %c0_6 = arith.constant 0 : index
    %c0_7 = arith.constant 0 : index
    %c0_8 = arith.constant 0 : index
    %7 = vector.load %arg1[%c1, %c0_6, %c0_7, %c0_8] : memref<5x6x3x8xf32, #tpu.memory_space<vmem>>, vector<1x6x3x8xf32>
    %8 = vector.shape_cast %7 : vector<1x6x3x8xf32> to vector<6x3x8xf32>
    %c1_9 = arith.constant 1 : index
    %c0_10 = arith.constant 0 : index
    %c0_11 = arith.constant 0 : index
    %9 = vector.load %arg2[%c1_9, %c0_10, %c0_11] : memref<34x3x8xf32, #tpu.memory_space<vmem>>, vector<1x3x8xf32>
    %10 = vector.shape_cast %9 : vector<1x3x8xf32> to vector<3x8xf32>
    %11 = vector.shape_cast %10 : vector<3x8xf32> to vector<1x3x8xf32>
    %12 = vector.broadcast %11 : vector<1x3x8xf32> to vector<6x3x8xf32>
    %13 = arith.mulf %8, %12 : vector<6x3x8xf32>
    %14 = arith.addf %6, %13 : vector<6x3x8xf32>
    %c2 = arith.constant 2 : index
    %c0_12 = arith.constant 0 : index
    %c0_13 = arith.constant 0 : index
    %c0_14 = arith.constant 0 : index
    %15 = vector.load %arg1[%c2, %c0_12, %c0_13, %c0_14] : memref<5x6x3x8xf32, #tpu.memory_space<vmem>>, vector<1x6x3x8xf32>
    %16 = vector.shape_cast %15 : vector<1x6x3x8xf32> to vector<6x3x8xf32>
    %c2_15 = arith.constant 2 : index
    %c0_16 = arith.constant 0 : index
    %c0_17 = arith.constant 0 : index
    %17 = vector.load %arg2[%c2_15, %c0_16, %c0_17] : memref<34x3x8xf32, #tpu.memory_space<vmem>>, vector<1x3x8xf32>
    %18 = vector.shape_cast %17 : vector<1x3x8xf32> to vector<3x8xf32>
    %19 = vector.shape_cast %18 : vector<3x8xf32> to vector<1x3x8xf32>
    %20 = vector.broadcast %19 : vector<1x3x8xf32> to vector<6x3x8xf32>
    %21 = arith.mulf %16, %20 : vector<6x3x8xf32>
    %22 = arith.addf %14, %21 : vector<6x3x8xf32>
    %c3 = arith.constant 3 : index
    %c0_18 = arith.constant 0 : index
    %c0_19 = arith.constant 0 : index
    %c0_20 = arith.constant 0 : index
    %23 = vector.load %arg1[%c3, %c0_18, %c0_19, %c0_20] : memref<5x6x3x8xf32, #tpu.memory_space<vmem>>, vector<1x6x3x8xf32>
    %24 = vector.shape_cast %23 : vector<1x6x3x8xf32> to vector<6x3x8xf32>
    %c3_21 = arith.constant 3 : index
    %c0_22 = arith.constant 0 : index
    %c0_23 = arith.constant 0 : index
    %25 = vector.load %arg2[%c3_21, %c0_22, %c0_23] : memref<34x3x8xf32, #tpu.memory_space<vmem>>, vector<1x3x8xf32>
    %26 = vector.shape_cast %25 : vector<1x3x8xf32> to vector<3x8xf32>
    %27 = vector.shape_cast %26 : vector<3x8xf32> to vector<1x3x8xf32>
    %28 = vector.broadcast %27 : vector<1x3x8xf32> to vector<6x3x8xf32>
    %29 = arith.mulf %24, %28 : vector<6x3x8xf32>
    %30 = arith.addf %22, %29 : vector<6x3x8xf32>
    %c4 = arith.constant 4 : index
    %c0_24 = arith.constant 0 : index
    %c0_25 = arith.constant 0 : index
    %c0_26 = arith.constant 0 : index
    %31 = vector.load %arg1[%c4, %c0_24, %c0_25, %c0_26] : memref<5x6x3x8xf32, #tpu.memory_space<vmem>>, vector<1x6x3x8xf32>
    %32 = vector.shape_cast %31 : vector<1x6x3x8xf32> to vector<6x3x8xf32>
    %c4_27 = arith.constant 4 : index
    %c0_28 = arith.constant 0 : index
    %c0_29 = arith.constant 0 : index
    %33 = vector.load %arg2[%c4_27, %c0_28, %c0_29] : memref<34x3x8xf32, #tpu.memory_space<vmem>>, vector<1x3x8xf32>
    %34 = vector.shape_cast %33 : vector<1x3x8xf32> to vector<3x8xf32>
    %35 = vector.shape_cast %34 : vector<3x8xf32> to vector<1x3x8xf32>
    %36 = vector.broadcast %35 : vector<1x3x8xf32> to vector<6x3x8xf32>
    %37 = arith.mulf %32, %36 : vector<6x3x8xf32>
    %38 = arith.addf %30, %37 : vector<6x3x8xf32>
    %c5 = arith.constant 5 : index
    %c0_30 = arith.constant 0 : index
    %c0_31 = arith.constant 0 : index
    %39 = vector.load %arg2[%c5, %c0_30, %c0_31] : memref<34x3x8xf32, #tpu.memory_space<vmem>>, vector<1x3x8xf32>
    %40 = vector.shape_cast %39 : vector<1x3x8xf32> to vector<3x8xf32>
    %41 = vector.shape_cast %40 : vector<3x8xf32> to vector<1x3x8xf32>
    %42 = vector.broadcast %41 : vector<1x3x8xf32> to vector<6x3x8xf32>
    %43 = arith.addf %38, %42 : vector<6x3x8xf32>
    %cst = arith.constant 0.000000e+00 : f32
    %44 = vector.broadcast %cst : f32 to vector<6x3x8xf32>
    %45 = arith.maximumf %43, %44 : vector<6x3x8xf32>
    %cst_32 = arith.constant 5.000000e-01 : f32
    %46 = vector.broadcast %cst_32 : f32 to vector<6x3x8xf32>
    %47 = arith.mulf %46, %45 : vector<6x3x8xf32>
    %48 = math.cos %47 : vector<6x3x8xf32>
    %cst_33 = arith.constant 5.000000e-01 : f32
    %49 = vector.broadcast %cst_33 : f32 to vector<6x3x8xf32>
    %50 = arith.mulf %49, %45 : vector<6x3x8xf32>
    %51 = math.sin %50 : vector<6x3x8xf32>
    %cst_34 = arith.constant 0.000000e+00 : f32
    %52 = vector.broadcast %cst_34 : f32 to vector<3x8xf32>
    %cst_35 = arith.constant 1.000000e+00 : f32
    %53 = vector.broadcast %cst_35 : f32 to vector<3x8xf32>
    %c6 = arith.constant 6 : index
    %c0_36 = arith.constant 0 : index
    %c0_37 = arith.constant 0 : index
    %54 = vector.load %arg2[%c6, %c0_36, %c0_37] : memref<34x3x8xf32, #tpu.memory_space<vmem>>, vector<1x3x8xf32>
    %55 = vector.shape_cast %54 : vector<1x3x8xf32> to vector<3x8xf32>
    %c7 = arith.constant 7 : index
    %c0_38 = arith.constant 0 : index
    %c0_39 = arith.constant 0 : index
    %56 = vector.load %arg2[%c7, %c0_38, %c0_39] : memref<34x3x8xf32, #tpu.memory_space<vmem>>, vector<1x3x8xf32>
    %57 = vector.shape_cast %56 : vector<1x3x8xf32> to vector<3x8xf32>
    %c8 = arith.constant 8 : index
    %c0_40 = arith.constant 0 : index
    %c0_41 = arith.constant 0 : index
    %58 = vector.load %arg2[%c8, %c0_40, %c0_41] : memref<34x3x8xf32, #tpu.memory_space<vmem>>, vector<1x3x8xf32>
    %59 = vector.shape_cast %58 : vector<1x3x8xf32> to vector<3x8xf32>
    %c9 = arith.constant 9 : index
    %c0_42 = arith.constant 0 : index
    %c0_43 = arith.constant 0 : index
    %60 = vector.load %arg2[%c9, %c0_42, %c0_43] : memref<34x3x8xf32, #tpu.memory_space<vmem>>, vector<1x3x8xf32>
    %61 = vector.shape_cast %60 : vector<1x3x8xf32> to vector<3x8xf32>
    %62 = arith.mulf %55, %53 : vector<3x8xf32>
    %63 = arith.mulf %57, %52 : vector<3x8xf32>
    %64 = arith.addf %62, %63 : vector<3x8xf32>
    %65 = arith.mulf %59, %52 : vector<3x8xf32>
    %66 = arith.subf %64, %65 : vector<3x8xf32>
    %67 = arith.mulf %61, %52 : vector<3x8xf32>
    %68 = arith.addf %66, %67 : vector<3x8xf32>
    %69 = arith.mulf %55, %52 : vector<3x8xf32>
    %70 = arith.mulf %57, %53 : vector<3x8xf32>
    %71 = arith.subf %69, %70 : vector<3x8xf32>
    %72 = arith.mulf %59, %52 : vector<3x8xf32>
    %73 = arith.subf %71, %72 : vector<3x8xf32>
    %74 = arith.mulf %61, %52 : vector<3x8xf32>
    %75 = arith.subf %73, %74 : vector<3x8xf32>
    %76 = arith.mulf %59, %53 : vector<3x8xf32>
    %77 = arith.mulf %61, %52 : vector<3x8xf32>
    %78 = arith.addf %76, %77 : vector<3x8xf32>
    %79 = arith.mulf %55, %52 : vector<3x8xf32>
    %80 = arith.addf %78, %79 : vector<3x8xf32>
    %81 = arith.mulf %57, %52 : vector<3x8xf32>
    %82 = arith.subf %80, %81 : vector<3x8xf32>
    %83 = arith.mulf %59, %52 : vector<3x8xf32>
    %84 = arith.mulf %61, %53 : vector<3x8xf32>
    %85 = arith.subf %83, %84 : vector<3x8xf32>
    %86 = arith.mulf %55, %52 : vector<3x8xf32>
    %87 = arith.addf %85, %86 : vector<3x8xf32>
    %88 = arith.mulf %57, %52 : vector<3x8xf32>
    %89 = arith.addf %87, %88 : vector<3x8xf32>
    %90 = vector.extract_strided_slice %48 {offsets = [0, 0, 0], sizes = [1, 3, 8], strides = [1, 1, 1]} : vector<6x3x8xf32> to vector<1x3x8xf32>
    %91 = vector.shape_cast %90 : vector<1x3x8xf32> to vector<3x8xf32>
    %92 = vector.extract_strided_slice %51 {offsets = [0, 0, 0], sizes = [1, 3, 8], strides = [1, 1, 1]} : vector<6x3x8xf32> to vector<1x3x8xf32>
    %93 = vector.shape_cast %92 : vector<1x3x8xf32> to vector<3x8xf32>
    %94 = arith.mulf %91, %68 : vector<3x8xf32>
    %95 = arith.mulf %93, %89 : vector<3x8xf32>
    %96 = arith.addf %94, %95 : vector<3x8xf32>
    %97 = arith.mulf %91, %75 : vector<3x8xf32>
    %98 = arith.mulf %93, %82 : vector<3x8xf32>
    %99 = arith.subf %97, %98 : vector<3x8xf32>
    %100 = arith.mulf %91, %82 : vector<3x8xf32>
    %101 = arith.mulf %93, %75 : vector<3x8xf32>
    %102 = arith.addf %100, %101 : vector<3x8xf32>
    %103 = arith.mulf %91, %89 : vector<3x8xf32>
    %104 = arith.mulf %93, %68 : vector<3x8xf32>
    %105 = arith.subf %103, %104 : vector<3x8xf32>
    %c10 = arith.constant 10 : index
    %c0_44 = arith.constant 0 : index
    %c0_45 = arith.constant 0 : index
    %106 = vector.load %arg2[%c10, %c0_44, %c0_45] : memref<34x3x8xf32, #tpu.memory_space<vmem>>, vector<1x3x8xf32>
    %107 = vector.shape_cast %106 : vector<1x3x8xf32> to vector<3x8xf32>
    %c11 = arith.constant 11 : index
    %c0_46 = arith.constant 0 : index
    %c0_47 = arith.constant 0 : index
    %108 = vector.load %arg2[%c11, %c0_46, %c0_47] : memref<34x3x8xf32, #tpu.memory_space<vmem>>, vector<1x3x8xf32>
    %109 = vector.shape_cast %108 : vector<1x3x8xf32> to vector<3x8xf32>
    %c12 = arith.constant 12 : index
    %c0_48 = arith.constant 0 : index
    %c0_49 = arith.constant 0 : index
    %110 = vector.load %arg2[%c12, %c0_48, %c0_49] : memref<34x3x8xf32, #tpu.memory_space<vmem>>, vector<1x3x8xf32>
    %111 = vector.shape_cast %110 : vector<1x3x8xf32> to vector<3x8xf32>
    %c13 = arith.constant 13 : index
    %c0_50 = arith.constant 0 : index
    %c0_51 = arith.constant 0 : index
    %112 = vector.load %arg2[%c13, %c0_50, %c0_51] : memref<34x3x8xf32, #tpu.memory_space<vmem>>, vector<1x3x8xf32>
    %113 = vector.shape_cast %112 : vector<1x3x8xf32> to vector<3x8xf32>
    %114 = arith.mulf %107, %96 : vector<3x8xf32>
    %115 = arith.mulf %109, %99 : vector<3x8xf32>
    %116 = arith.addf %114, %115 : vector<3x8xf32>
    %117 = arith.mulf %111, %102 : vector<3x8xf32>
    %118 = arith.subf %116, %117 : vector<3x8xf32>
    %119 = arith.mulf %113, %105 : vector<3x8xf32>
    %120 = arith.addf %118, %119 : vector<3x8xf32>
    %121 = arith.mulf %107, %99 : vector<3x8xf32>
    %122 = arith.mulf %109, %96 : vector<3x8xf32>
    %123 = arith.subf %121, %122 : vector<3x8xf32>
    %124 = arith.mulf %111, %105 : vector<3x8xf32>
    %125 = arith.subf %123, %124 : vector<3x8xf32>
    %126 = arith.mulf %113, %102 : vector<3x8xf32>
    %127 = arith.subf %125, %126 : vector<3x8xf32>
    %128 = arith.mulf %111, %96 : vector<3x8xf32>
    %129 = arith.mulf %113, %99 : vector<3x8xf32>
    %130 = arith.addf %128, %129 : vector<3x8xf32>
    %131 = arith.mulf %107, %102 : vector<3x8xf32>
    %132 = arith.addf %130, %131 : vector<3x8xf32>
    %133 = arith.mulf %109, %105 : vector<3x8xf32>
    %134 = arith.subf %132, %133 : vector<3x8xf32>
    %135 = arith.mulf %111, %99 : vector<3x8xf32>
    %136 = arith.mulf %113, %96 : vector<3x8xf32>
    %137 = arith.subf %135, %136 : vector<3x8xf32>
    %138 = arith.mulf %107, %105 : vector<3x8xf32>
    %139 = arith.addf %137, %138 : vector<3x8xf32>
    %140 = arith.mulf %109, %102 : vector<3x8xf32>
    %141 = arith.addf %139, %140 : vector<3x8xf32>
    %142 = vector.extract_strided_slice %48 {offsets = [1, 0, 0], sizes = [1, 3, 8], strides = [1, 1, 1]} : vector<6x3x8xf32> to vector<1x3x8xf32>
    %143 = vector.shape_cast %142 : vector<1x3x8xf32> to vector<3x8xf32>
    %144 = vector.extract_strided_slice %51 {offsets = [1, 0, 0], sizes = [1, 3, 8], strides = [1, 1, 1]} : vector<6x3x8xf32> to vector<1x3x8xf32>
    %145 = vector.shape_cast %144 : vector<1x3x8xf32> to vector<3x8xf32>
    %146 = arith.mulf %143, %120 : vector<3x8xf32>
    %147 = arith.mulf %145, %141 : vector<3x8xf32>
    %148 = arith.addf %146, %147 : vector<3x8xf32>
    %149 = arith.mulf %143, %127 : vector<3x8xf32>
    %150 = arith.mulf %145, %134 : vector<3x8xf32>
    %151 = arith.subf %149, %150 : vector<3x8xf32>
    %152 = arith.mulf %143, %134 : vector<3x8xf32>
    %153 = arith.mulf %145, %127 : vector<3x8xf32>
    %154 = arith.addf %152, %153 : vector<3x8xf32>
    %155 = arith.mulf %143, %141 : vector<3x8xf32>
    %156 = arith.mulf %145, %120 : vector<3x8xf32>
    %157 = arith.subf %155, %156 : vector<3x8xf32>
    %c14 = arith.constant 14 : index
    %c0_52 = arith.constant 0 : index
    %c0_53 = arith.constant 0 : index
    %158 = vector.load %arg2[%c14, %c0_52, %c0_53] : memref<34x3x8xf32, #tpu.memory_space<vmem>>, vector<1x3x8xf32>
    %159 = vector.shape_cast %158 : vector<1x3x8xf32> to vector<3x8xf32>
    %c15 = arith.constant 15 : index
    %c0_54 = arith.constant 0 : index
    %c0_55 = arith.constant 0 : index
    %160 = vector.load %arg2[%c15, %c0_54, %c0_55] : memref<34x3x8xf32, #tpu.memory_space<vmem>>, vector<1x3x8xf32>
    %161 = vector.shape_cast %160 : vector<1x3x8xf32> to vector<3x8xf32>
    %c16 = arith.constant 16 : index
    %c0_56 = arith.constant 0 : index
    %c0_57 = arith.constant 0 : index
    %162 = vector.load %arg2[%c16, %c0_56, %c0_57] : memref<34x3x8xf32, #tpu.memory_space<vmem>>, vector<1x3x8xf32>
    %163 = vector.shape_cast %162 : vector<1x3x8xf32> to vector<3x8xf32>
    %c17 = arith.constant 17 : index
    %c0_58 = arith.constant 0 : index
    %c0_59 = arith.constant 0 : index
    %164 = vector.load %arg2[%c17, %c0_58, %c0_59] : memref<34x3x8xf32, #tpu.memory_space<vmem>>, vector<1x3x8xf32>
    %165 = vector.shape_cast %164 : vector<1x3x8xf32> to vector<3x8xf32>
    %166 = arith.mulf %159, %148 : vector<3x8xf32>
    %167 = arith.mulf %161, %151 : vector<3x8xf32>
    %168 = arith.addf %166, %167 : vector<3x8xf32>
    %169 = arith.mulf %163, %154 : vector<3x8xf32>
    %170 = arith.subf %168, %169 : vector<3x8xf32>
    %171 = arith.mulf %165, %157 : vector<3x8xf32>
    %172 = arith.addf %170, %171 : vector<3x8xf32>
    %173 = arith.mulf %159, %151 : vector<3x8xf32>
    %174 = arith.mulf %161, %148 : vector<3x8xf32>
    %175 = arith.subf %173, %174 : vector<3x8xf32>
    %176 = arith.mulf %163, %157 : vector<3x8xf32>
    %177 = arith.subf %175, %176 : vector<3x8xf32>
    %178 = arith.mulf %165, %154 : vector<3x8xf32>
    %179 = arith.subf %177, %178 : vector<3x8xf32>
    %180 = arith.mulf %163, %148 : vector<3x8xf32>
    %181 = arith.mulf %165, %151 : vector<3x8xf32>
    %182 = arith.addf %180, %181 : vector<3x8xf32>
    %183 = arith.mulf %159, %154 : vector<3x8xf32>
    %184 = arith.addf %182, %183 : vector<3x8xf32>
    %185 = arith.mulf %161, %157 : vector<3x8xf32>
    %186 = arith.subf %184, %185 : vector<3x8xf32>
    %187 = arith.mulf %163, %151 : vector<3x8xf32>
    %188 = arith.mulf %165, %148 : vector<3x8xf32>
    %189 = arith.subf %187, %188 : vector<3x8xf32>
    %190 = arith.mulf %159, %157 : vector<3x8xf32>
    %191 = arith.addf %189, %190 : vector<3x8xf32>
    %192 = arith.mulf %161, %154 : vector<3x8xf32>
    %193 = arith.addf %191, %192 : vector<3x8xf32>
    %194 = vector.extract_strided_slice %48 {offsets = [2, 0, 0], sizes = [1, 3, 8], strides = [1, 1, 1]} : vector<6x3x8xf32> to vector<1x3x8xf32>
    %195 = vector.shape_cast %194 : vector<1x3x8xf32> to vector<3x8xf32>
    %196 = vector.extract_strided_slice %51 {offsets = [2, 0, 0], sizes = [1, 3, 8], strides = [1, 1, 1]} : vector<6x3x8xf32> to vector<1x3x8xf32>
    %197 = vector.shape_cast %196 : vector<1x3x8xf32> to vector<3x8xf32>
    %198 = arith.mulf %195, %172 : vector<3x8xf32>
    %199 = arith.mulf %197, %193 : vector<3x8xf32>
    %200 = arith.addf %198, %199 : vector<3x8xf32>
    %201 = arith.mulf %195, %179 : vector<3x8xf32>
    %202 = arith.mulf %197, %186 : vector<3x8xf32>
    %203 = arith.subf %201, %202 : vector<3x8xf32>
    %204 = arith.mulf %195, %186 : vector<3x8xf32>
    %205 = arith.mulf %197, %179 : vector<3x8xf32>
    %206 = arith.addf %204, %205 : vector<3x8xf32>
    %207 = arith.mulf %195, %193 : vector<3x8xf32>
    %208 = arith.mulf %197, %172 : vector<3x8xf32>
    %209 = arith.subf %207, %208 : vector<3x8xf32>
    %c18 = arith.constant 18 : index
    %c0_60 = arith.constant 0 : index
    %c0_61 = arith.constant 0 : index
    %210 = vector.load %arg2[%c18, %c0_60, %c0_61] : memref<34x3x8xf32, #tpu.memory_space<vmem>>, vector<1x3x8xf32>
    %211 = vector.shape_cast %210 : vector<1x3x8xf32> to vector<3x8xf32>
    %c19 = arith.constant 19 : index
    %c0_62 = arith.constant 0 : index
    %c0_63 = arith.constant 0 : index
    %212 = vector.load %arg2[%c19, %c0_62, %c0_63] : memref<34x3x8xf32, #tpu.memory_space<vmem>>, vector<1x3x8xf32>
    %213 = vector.shape_cast %212 : vector<1x3x8xf32> to vector<3x8xf32>
    %c20 = arith.constant 20 : index
    %c0_64 = arith.constant 0 : index
    %c0_65 = arith.constant 0 : index
    %214 = vector.load %arg2[%c20, %c0_64, %c0_65] : memref<34x3x8xf32, #tpu.memory_space<vmem>>, vector<1x3x8xf32>
    %215 = vector.shape_cast %214 : vector<1x3x8xf32> to vector<3x8xf32>
    %c21 = arith.constant 21 : index
    %c0_66 = arith.constant 0 : index
    %c0_67 = arith.constant 0 : index
    %216 = vector.load %arg2[%c21, %c0_66, %c0_67] : memref<34x3x8xf32, #tpu.memory_space<vmem>>, vector<1x3x8xf32>
    %217 = vector.shape_cast %216 : vector<1x3x8xf32> to vector<3x8xf32>
    %218 = arith.mulf %211, %200 : vector<3x8xf32>
    %219 = arith.mulf %213, %203 : vector<3x8xf32>
    %220 = arith.addf %218, %219 : vector<3x8xf32>
    %221 = arith.mulf %215, %206 : vector<3x8xf32>
    %222 = arith.subf %220, %221 : vector<3x8xf32>
    %223 = arith.mulf %217, %209 : vector<3x8xf32>
    %224 = arith.addf %222, %223 : vector<3x8xf32>
    %225 = arith.mulf %211, %203 : vector<3x8xf32>
    %226 = arith.mulf %213, %200 : vector<3x8xf32>
    %227 = arith.subf %225, %226 : vector<3x8xf32>
    %228 = arith.mulf %215, %209 : vector<3x8xf32>
    %229 = arith.subf %227, %228 : vector<3x8xf32>
    %230 = arith.mulf %217, %206 : vector<3x8xf32>
    %231 = arith.subf %229, %230 : vector<3x8xf32>
    %232 = arith.mulf %215, %200 : vector<3x8xf32>
    %233 = arith.mulf %217, %203 : vector<3x8xf32>
    %234 = arith.addf %232, %233 : vector<3x8xf32>
    %235 = arith.mulf %211, %206 : vector<3x8xf32>
    %236 = arith.addf %234, %235 : vector<3x8xf32>
    %237 = arith.mulf %213, %209 : vector<3x8xf32>
    %238 = arith.subf %236, %237 : vector<3x8xf32>
    %239 = arith.mulf %215, %203 : vector<3x8xf32>
    %240 = arith.mulf %217, %200 : vector<3x8xf32>
    %241 = arith.subf %239, %240 : vector<3x8xf32>
    %242 = arith.mulf %211, %209 : vector<3x8xf32>
    %243 = arith.addf %241, %242 : vector<3x8xf32>
    %244 = arith.mulf %213, %206 : vector<3x8xf32>
    %245 = arith.addf %243, %244 : vector<3x8xf32>
    %246 = vector.extract_strided_slice %48 {offsets = [3, 0, 0], sizes = [1, 3, 8], strides = [1, 1, 1]} : vector<6x3x8xf32> to vector<1x3x8xf32>
    %247 = vector.shape_cast %246 : vector<1x3x8xf32> to vector<3x8xf32>
    %248 = vector.extract_strided_slice %51 {offsets = [3, 0, 0], sizes = [1, 3, 8], strides = [1, 1, 1]} : vector<6x3x8xf32> to vector<1x3x8xf32>
    %249 = vector.shape_cast %248 : vector<1x3x8xf32> to vector<3x8xf32>
    %250 = arith.mulf %247, %224 : vector<3x8xf32>
    %251 = arith.mulf %249, %245 : vector<3x8xf32>
    %252 = arith.addf %250, %251 : vector<3x8xf32>
    %253 = arith.mulf %247, %231 : vector<3x8xf32>
    %254 = arith.mulf %249, %238 : vector<3x8xf32>
    %255 = arith.subf %253, %254 : vector<3x8xf32>
    %256 = arith.mulf %247, %238 : vector<3x8xf32>
    %257 = arith.mulf %249, %231 : vector<3x8xf32>
    %258 = arith.addf %256, %257 : vector<3x8xf32>
    %259 = arith.mulf %247, %245 : vector<3x8xf32>
    %260 = arith.mulf %249, %224 : vector<3x8xf32>
    %261 = arith.subf %259, %260 : vector<3x8xf32>
    %c22 = arith.constant 22 : index
    %c0_68 = arith.constant 0 : index
    %c0_69 = arith.constant 0 : index
    %262 = vector.load %arg2[%c22, %c0_68, %c0_69] : memref<34x3x8xf32, #tpu.memory_space<vmem>>, vector<1x3x8xf32>
    %263 = vector.shape_cast %262 : vector<1x3x8xf32> to vector<3x8xf32>
    %c23 = arith.constant 23 : index
    %c0_70 = arith.constant 0 : index
    %c0_71 = arith.constant 0 : index
    %264 = vector.load %arg2[%c23, %c0_70, %c0_71] : memref<34x3x8xf32, #tpu.memory_space<vmem>>, vector<1x3x8xf32>
    %265 = vector.shape_cast %264 : vector<1x3x8xf32> to vector<3x8xf32>
    %c24 = arith.constant 24 : index
    %c0_72 = arith.constant 0 : index
    %c0_73 = arith.constant 0 : index
    %266 = vector.load %arg2[%c24, %c0_72, %c0_73] : memref<34x3x8xf32, #tpu.memory_space<vmem>>, vector<1x3x8xf32>
    %267 = vector.shape_cast %266 : vector<1x3x8xf32> to vector<3x8xf32>
    %c25 = arith.constant 25 : index
    %c0_74 = arith.constant 0 : index
    %c0_75 = arith.constant 0 : index
    %268 = vector.load %arg2[%c25, %c0_74, %c0_75] : memref<34x3x8xf32, #tpu.memory_space<vmem>>, vector<1x3x8xf32>
    %269 = vector.shape_cast %268 : vector<1x3x8xf32> to vector<3x8xf32>
    %270 = arith.mulf %263, %252 : vector<3x8xf32>
    %271 = arith.mulf %265, %255 : vector<3x8xf32>
    %272 = arith.addf %270, %271 : vector<3x8xf32>
    %273 = arith.mulf %267, %258 : vector<3x8xf32>
    %274 = arith.subf %272, %273 : vector<3x8xf32>
    %275 = arith.mulf %269, %261 : vector<3x8xf32>
    %276 = arith.addf %274, %275 : vector<3x8xf32>
    %277 = arith.mulf %263, %255 : vector<3x8xf32>
    %278 = arith.mulf %265, %252 : vector<3x8xf32>
    %279 = arith.subf %277, %278 : vector<3x8xf32>
    %280 = arith.mulf %267, %261 : vector<3x8xf32>
    %281 = arith.subf %279, %280 : vector<3x8xf32>
    %282 = arith.mulf %269, %258 : vector<3x8xf32>
    %283 = arith.subf %281, %282 : vector<3x8xf32>
    %284 = arith.mulf %267, %252 : vector<3x8xf32>
    %285 = arith.mulf %269, %255 : vector<3x8xf32>
    %286 = arith.addf %284, %285 : vector<3x8xf32>
    %287 = arith.mulf %263, %258 : vector<3x8xf32>
    %288 = arith.addf %286, %287 : vector<3x8xf32>
    %289 = arith.mulf %265, %261 : vector<3x8xf32>
    %290 = arith.subf %288, %289 : vector<3x8xf32>
    %291 = arith.mulf %267, %255 : vector<3x8xf32>
    %292 = arith.mulf %269, %252 : vector<3x8xf32>
    %293 = arith.subf %291, %292 : vector<3x8xf32>
    %294 = arith.mulf %263, %261 : vector<3x8xf32>
    %295 = arith.addf %293, %294 : vector<3x8xf32>
    %296 = arith.mulf %265, %258 : vector<3x8xf32>
    %297 = arith.addf %295, %296 : vector<3x8xf32>
    %298 = vector.extract_strided_slice %48 {offsets = [4, 0, 0], sizes = [1, 3, 8], strides = [1, 1, 1]} : vector<6x3x8xf32> to vector<1x3x8xf32>
    %299 = vector.shape_cast %298 : vector<1x3x8xf32> to vector<3x8xf32>
    %300 = vector.extract_strided_slice %51 {offsets = [4, 0, 0], sizes = [1, 3, 8], strides = [1, 1, 1]} : vector<6x3x8xf32> to vector<1x3x8xf32>
    %301 = vector.shape_cast %300 : vector<1x3x8xf32> to vector<3x8xf32>
    %302 = arith.mulf %299, %276 : vector<3x8xf32>
    %303 = arith.mulf %301, %297 : vector<3x8xf32>
    %304 = arith.addf %302, %303 : vector<3x8xf32>
    %305 = arith.mulf %299, %283 : vector<3x8xf32>
    %306 = arith.mulf %301, %290 : vector<3x8xf32>
    %307 = arith.subf %305, %306 : vector<3x8xf32>
    %308 = arith.mulf %299, %290 : vector<3x8xf32>
    %309 = arith.mulf %301, %283 : vector<3x8xf32>
    %310 = arith.addf %308, %309 : vector<3x8xf32>
    %311 = arith.mulf %299, %297 : vector<3x8xf32>
    %312 = arith.mulf %301, %276 : vector<3x8xf32>
    %313 = arith.subf %311, %312 : vector<3x8xf32>
    %c26 = arith.constant 26 : index
    %c0_76 = arith.constant 0 : index
    %c0_77 = arith.constant 0 : index
    %314 = vector.load %arg2[%c26, %c0_76, %c0_77] : memref<34x3x8xf32, #tpu.memory_space<vmem>>, vector<1x3x8xf32>
    %315 = vector.shape_cast %314 : vector<1x3x8xf32> to vector<3x8xf32>
    %c27 = arith.constant 27 : index
    %c0_78 = arith.constant 0 : index
    %c0_79 = arith.constant 0 : index
    %316 = vector.load %arg2[%c27, %c0_78, %c0_79] : memref<34x3x8xf32, #tpu.memory_space<vmem>>, vector<1x3x8xf32>
    %317 = vector.shape_cast %316 : vector<1x3x8xf32> to vector<3x8xf32>
    %c28 = arith.constant 28 : index
    %c0_80 = arith.constant 0 : index
    %c0_81 = arith.constant 0 : index
    %318 = vector.load %arg2[%c28, %c0_80, %c0_81] : memref<34x3x8xf32, #tpu.memory_space<vmem>>, vector<1x3x8xf32>
    %319 = vector.shape_cast %318 : vector<1x3x8xf32> to vector<3x8xf32>
    %c29 = arith.constant 29 : index
    %c0_82 = arith.constant 0 : index
    %c0_83 = arith.constant 0 : index
    %320 = vector.load %arg2[%c29, %c0_82, %c0_83] : memref<34x3x8xf32, #tpu.memory_space<vmem>>, vector<1x3x8xf32>
    %321 = vector.shape_cast %320 : vector<1x3x8xf32> to vector<3x8xf32>
    %322 = arith.mulf %315, %304 : vector<3x8xf32>
    %323 = arith.mulf %317, %307 : vector<3x8xf32>
    %324 = arith.addf %322, %323 : vector<3x8xf32>
    %325 = arith.mulf %319, %310 : vector<3x8xf32>
    %326 = arith.subf %324, %325 : vector<3x8xf32>
    %327 = arith.mulf %321, %313 : vector<3x8xf32>
    %328 = arith.addf %326, %327 : vector<3x8xf32>
    %329 = arith.mulf %315, %307 : vector<3x8xf32>
    %330 = arith.mulf %317, %304 : vector<3x8xf32>
    %331 = arith.subf %329, %330 : vector<3x8xf32>
    %332 = arith.mulf %319, %313 : vector<3x8xf32>
    %333 = arith.subf %331, %332 : vector<3x8xf32>
    %334 = arith.mulf %321, %310 : vector<3x8xf32>
    %335 = arith.subf %333, %334 : vector<3x8xf32>
    %336 = arith.mulf %319, %304 : vector<3x8xf32>
    %337 = arith.mulf %321, %307 : vector<3x8xf32>
    %338 = arith.addf %336, %337 : vector<3x8xf32>
    %339 = arith.mulf %315, %310 : vector<3x8xf32>
    %340 = arith.addf %338, %339 : vector<3x8xf32>
    %341 = arith.mulf %317, %313 : vector<3x8xf32>
    %342 = arith.subf %340, %341 : vector<3x8xf32>
    %343 = arith.mulf %319, %307 : vector<3x8xf32>
    %344 = arith.mulf %321, %304 : vector<3x8xf32>
    %345 = arith.subf %343, %344 : vector<3x8xf32>
    %346 = arith.mulf %315, %313 : vector<3x8xf32>
    %347 = arith.addf %345, %346 : vector<3x8xf32>
    %348 = arith.mulf %317, %310 : vector<3x8xf32>
    %349 = arith.addf %347, %348 : vector<3x8xf32>
    %350 = vector.extract_strided_slice %48 {offsets = [5, 0, 0], sizes = [1, 3, 8], strides = [1, 1, 1]} : vector<6x3x8xf32> to vector<1x3x8xf32>
    %351 = vector.shape_cast %350 : vector<1x3x8xf32> to vector<3x8xf32>
    %352 = vector.extract_strided_slice %51 {offsets = [5, 0, 0], sizes = [1, 3, 8], strides = [1, 1, 1]} : vector<6x3x8xf32> to vector<1x3x8xf32>
    %353 = vector.shape_cast %352 : vector<1x3x8xf32> to vector<3x8xf32>
    %354 = arith.mulf %351, %328 : vector<3x8xf32>
    %355 = arith.mulf %353, %349 : vector<3x8xf32>
    %356 = arith.addf %354, %355 : vector<3x8xf32>
    %357 = arith.mulf %351, %335 : vector<3x8xf32>
    %358 = arith.mulf %353, %342 : vector<3x8xf32>
    %359 = arith.subf %357, %358 : vector<3x8xf32>
    %360 = arith.mulf %351, %342 : vector<3x8xf32>
    %361 = arith.mulf %353, %335 : vector<3x8xf32>
    %362 = arith.addf %360, %361 : vector<3x8xf32>
    %363 = arith.mulf %351, %349 : vector<3x8xf32>
    %364 = arith.mulf %353, %328 : vector<3x8xf32>
    %365 = arith.subf %363, %364 : vector<3x8xf32>
    %c30 = arith.constant 30 : index
    %c0_84 = arith.constant 0 : index
    %c0_85 = arith.constant 0 : index
    %366 = vector.load %arg2[%c30, %c0_84, %c0_85] : memref<34x3x8xf32, #tpu.memory_space<vmem>>, vector<1x3x8xf32>
    %367 = vector.shape_cast %366 : vector<1x3x8xf32> to vector<3x8xf32>
    %c31 = arith.constant 31 : index
    %c0_86 = arith.constant 0 : index
    %c0_87 = arith.constant 0 : index
    %368 = vector.load %arg2[%c31, %c0_86, %c0_87] : memref<34x3x8xf32, #tpu.memory_space<vmem>>, vector<1x3x8xf32>
    %369 = vector.shape_cast %368 : vector<1x3x8xf32> to vector<3x8xf32>
    %c32 = arith.constant 32 : index
    %c0_88 = arith.constant 0 : index
    %c0_89 = arith.constant 0 : index
    %370 = vector.load %arg2[%c32, %c0_88, %c0_89] : memref<34x3x8xf32, #tpu.memory_space<vmem>>, vector<1x3x8xf32>
    %371 = vector.shape_cast %370 : vector<1x3x8xf32> to vector<3x8xf32>
    %c33 = arith.constant 33 : index
    %c0_90 = arith.constant 0 : index
    %c0_91 = arith.constant 0 : index
    %372 = vector.load %arg2[%c33, %c0_90, %c0_91] : memref<34x3x8xf32, #tpu.memory_space<vmem>>, vector<1x3x8xf32>
    %373 = vector.shape_cast %372 : vector<1x3x8xf32> to vector<3x8xf32>
    %374 = arith.mulf %367, %356 : vector<3x8xf32>
    %375 = arith.mulf %369, %359 : vector<3x8xf32>
    %376 = arith.addf %374, %375 : vector<3x8xf32>
    %377 = arith.mulf %371, %362 : vector<3x8xf32>
    %378 = arith.subf %376, %377 : vector<3x8xf32>
    %379 = arith.mulf %373, %365 : vector<3x8xf32>
    %380 = arith.addf %378, %379 : vector<3x8xf32>
    %381 = arith.mulf %367, %359 : vector<3x8xf32>
    %382 = arith.mulf %369, %356 : vector<3x8xf32>
    %383 = arith.subf %381, %382 : vector<3x8xf32>
    %384 = arith.mulf %371, %365 : vector<3x8xf32>
    %385 = arith.subf %383, %384 : vector<3x8xf32>
    %386 = arith.mulf %373, %362 : vector<3x8xf32>
    %387 = arith.subf %385, %386 : vector<3x8xf32>
    %388 = arith.mulf %371, %356 : vector<3x8xf32>
    %389 = arith.mulf %373, %359 : vector<3x8xf32>
    %390 = arith.addf %388, %389 : vector<3x8xf32>
    %391 = arith.mulf %367, %362 : vector<3x8xf32>
    %392 = arith.addf %390, %391 : vector<3x8xf32>
    %393 = arith.mulf %369, %365 : vector<3x8xf32>
    %394 = arith.subf %392, %393 : vector<3x8xf32>
    %395 = arith.mulf %371, %359 : vector<3x8xf32>
    %396 = arith.mulf %373, %356 : vector<3x8xf32>
    %397 = arith.subf %395, %396 : vector<3x8xf32>
    %398 = arith.mulf %367, %365 : vector<3x8xf32>
    %399 = arith.addf %397, %398 : vector<3x8xf32>
    %400 = arith.mulf %369, %362 : vector<3x8xf32>
    %401 = arith.addf %399, %400 : vector<3x8xf32>
    %402 = arith.mulf %380, %380 : vector<3x8xf32>
    %403 = arith.mulf %387, %387 : vector<3x8xf32>
    %404 = arith.addf %402, %403 : vector<3x8xf32>
    %405 = arith.mulf %394, %394 : vector<3x8xf32>
    %406 = arith.subf %404, %405 : vector<3x8xf32>
    %407 = arith.mulf %401, %401 : vector<3x8xf32>
    %408 = arith.subf %406, %407 : vector<3x8xf32>
    %cst_92 = arith.constant 5.000000e-01 : f32
    %409 = vector.broadcast %cst_92 : f32 to vector<3x8xf32>
    %410 = arith.mulf %409, %408 : vector<3x8xf32>
    %411 = math.cos %410 : vector<3x8xf32>
    %cst_93 = arith.constant 5.000000e-01 : f32
    %412 = vector.broadcast %cst_93 : f32 to vector<3x8xf32>
    %413 = arith.mulf %412, %408 : vector<3x8xf32>
    %414 = math.sin %413 : vector<3x8xf32>
    %415 = vector.extract_strided_slice %411 {offsets = [0, 0], sizes = [1, 8], strides = [1, 1]} : vector<3x8xf32> to vector<1x8xf32>
    %416 = vector.extract_strided_slice %411 {offsets = [1, 0], sizes = [1, 8], strides = [1, 1]} : vector<3x8xf32> to vector<1x8xf32>
    %417 = vector.extract_strided_slice %411 {offsets = [2, 0], sizes = [1, 8], strides = [1, 1]} : vector<3x8xf32> to vector<1x8xf32>
    %418 = vector.extract_strided_slice %414 {offsets = [0, 0], sizes = [1, 8], strides = [1, 1]} : vector<3x8xf32> to vector<1x8xf32>
    %419 = vector.extract_strided_slice %414 {offsets = [1, 0], sizes = [1, 8], strides = [1, 1]} : vector<3x8xf32> to vector<1x8xf32>
    %420 = vector.extract_strided_slice %414 {offsets = [2, 0], sizes = [1, 8], strides = [1, 1]} : vector<3x8xf32> to vector<1x8xf32>
    %cst_94 = arith.constant 0.000000e+00 : f32
    %421 = vector.broadcast %cst_94 : f32 to vector<1x8xf32>
    %cst_95 = arith.constant 1.000000e+00 : f32
    %422 = vector.broadcast %cst_95 : f32 to vector<1x8xf32>
    %c0_96 = arith.constant 0 : index
    %c0_97 = arith.constant 0 : index
    %c0_98 = arith.constant 0 : index
    %423 = vector.load %arg3[%c0_96, %c0_97, %c0_98] : memref<72x1x8xf32, #tpu.memory_space<vmem>>, vector<1x1x8xf32>
    %424 = vector.shape_cast %423 : vector<1x1x8xf32> to vector<1x8xf32>
    %c1_99 = arith.constant 1 : index
    %c0_100 = arith.constant 0 : index
    %c0_101 = arith.constant 0 : index
    %425 = vector.load %arg3[%c1_99, %c0_100, %c0_101] : memref<72x1x8xf32, #tpu.memory_space<vmem>>, vector<1x1x8xf32>
    %426 = vector.shape_cast %425 : vector<1x1x8xf32> to vector<1x8xf32>
    %c2_102 = arith.constant 2 : index
    %c0_103 = arith.constant 0 : index
    %c0_104 = arith.constant 0 : index
    %427 = vector.load %arg3[%c2_102, %c0_103, %c0_104] : memref<72x1x8xf32, #tpu.memory_space<vmem>>, vector<1x1x8xf32>
    %428 = vector.shape_cast %427 : vector<1x1x8xf32> to vector<1x8xf32>
    %c3_105 = arith.constant 3 : index
    %c0_106 = arith.constant 0 : index
    %c0_107 = arith.constant 0 : index
    %429 = vector.load %arg3[%c3_105, %c0_106, %c0_107] : memref<72x1x8xf32, #tpu.memory_space<vmem>>, vector<1x1x8xf32>
    %430 = vector.shape_cast %429 : vector<1x1x8xf32> to vector<1x8xf32>
    %431 = arith.mulf %424, %422 : vector<1x8xf32>
    %432 = arith.mulf %426, %421 : vector<1x8xf32>
    %433 = arith.addf %431, %432 : vector<1x8xf32>
    %434 = arith.mulf %428, %421 : vector<1x8xf32>
    %435 = arith.subf %433, %434 : vector<1x8xf32>
    %436 = arith.mulf %430, %421 : vector<1x8xf32>
    %437 = arith.addf %435, %436 : vector<1x8xf32>
    %438 = arith.mulf %424, %421 : vector<1x8xf32>
    %439 = arith.mulf %426, %422 : vector<1x8xf32>
    %440 = arith.subf %438, %439 : vector<1x8xf32>
    %441 = arith.mulf %428, %421 : vector<1x8xf32>
    %442 = arith.subf %440, %441 : vector<1x8xf32>
    %443 = arith.mulf %430, %421 : vector<1x8xf32>
    %444 = arith.subf %442, %443 : vector<1x8xf32>
    %445 = arith.mulf %428, %422 : vector<1x8xf32>
    %446 = arith.mulf %430, %421 : vector<1x8xf32>
    %447 = arith.addf %445, %446 : vector<1x8xf32>
    %448 = arith.mulf %424, %421 : vector<1x8xf32>
    %449 = arith.addf %447, %448 : vector<1x8xf32>
    %450 = arith.mulf %426, %421 : vector<1x8xf32>
    %451 = arith.subf %449, %450 : vector<1x8xf32>
    %452 = arith.mulf %428, %421 : vector<1x8xf32>
    %453 = arith.mulf %430, %422 : vector<1x8xf32>
    %454 = arith.subf %452, %453 : vector<1x8xf32>
    %455 = arith.mulf %424, %421 : vector<1x8xf32>
    %456 = arith.addf %454, %455 : vector<1x8xf32>
    %457 = arith.mulf %426, %421 : vector<1x8xf32>
    %458 = arith.addf %456, %457 : vector<1x8xf32>
    %459 = arith.mulf %424, %421 : vector<1x8xf32>
    %460 = arith.mulf %426, %421 : vector<1x8xf32>
    %461 = arith.addf %459, %460 : vector<1x8xf32>
    %462 = arith.mulf %428, %421 : vector<1x8xf32>
    %463 = arith.subf %461, %462 : vector<1x8xf32>
    %464 = arith.mulf %430, %421 : vector<1x8xf32>
    %465 = arith.addf %463, %464 : vector<1x8xf32>
    %466 = arith.mulf %424, %421 : vector<1x8xf32>
    %467 = arith.mulf %426, %421 : vector<1x8xf32>
    %468 = arith.subf %466, %467 : vector<1x8xf32>
    %469 = arith.mulf %428, %421 : vector<1x8xf32>
    %470 = arith.subf %468, %469 : vector<1x8xf32>
    %471 = arith.mulf %430, %421 : vector<1x8xf32>
    %472 = arith.subf %470, %471 : vector<1x8xf32>
    %473 = arith.mulf %428, %421 : vector<1x8xf32>
    %474 = arith.mulf %430, %421 : vector<1x8xf32>
    %475 = arith.addf %473, %474 : vector<1x8xf32>
    %476 = arith.mulf %424, %421 : vector<1x8xf32>
    %477 = arith.addf %475, %476 : vector<1x8xf32>
    %478 = arith.mulf %426, %421 : vector<1x8xf32>
    %479 = arith.subf %477, %478 : vector<1x8xf32>
    %480 = arith.mulf %428, %421 : vector<1x8xf32>
    %481 = arith.mulf %430, %421 : vector<1x8xf32>
    %482 = arith.subf %480, %481 : vector<1x8xf32>
    %483 = arith.mulf %424, %421 : vector<1x8xf32>
    %484 = arith.addf %482, %483 : vector<1x8xf32>
    %485 = arith.mulf %426, %421 : vector<1x8xf32>
    %486 = arith.addf %484, %485 : vector<1x8xf32>
    %487 = arith.mulf %424, %421 : vector<1x8xf32>
    %488 = arith.mulf %426, %421 : vector<1x8xf32>
    %489 = arith.addf %487, %488 : vector<1x8xf32>
    %490 = arith.mulf %428, %421 : vector<1x8xf32>
    %491 = arith.subf %489, %490 : vector<1x8xf32>
    %492 = arith.mulf %430, %421 : vector<1x8xf32>
    %493 = arith.addf %491, %492 : vector<1x8xf32>
    %494 = arith.mulf %424, %421 : vector<1x8xf32>
    %495 = arith.mulf %426, %421 : vector<1x8xf32>
    %496 = arith.subf %494, %495 : vector<1x8xf32>
    %497 = arith.mulf %428, %421 : vector<1x8xf32>
    %498 = arith.subf %496, %497 : vector<1x8xf32>
    %499 = arith.mulf %430, %421 : vector<1x8xf32>
    %500 = arith.subf %498, %499 : vector<1x8xf32>
    %501 = arith.mulf %428, %421 : vector<1x8xf32>
    %502 = arith.mulf %430, %421 : vector<1x8xf32>
    %503 = arith.addf %501, %502 : vector<1x8xf32>
    %504 = arith.mulf %424, %421 : vector<1x8xf32>
    %505 = arith.addf %503, %504 : vector<1x8xf32>
    %506 = arith.mulf %426, %421 : vector<1x8xf32>
    %507 = arith.subf %505, %506 : vector<1x8xf32>
    %508 = arith.mulf %428, %421 : vector<1x8xf32>
    %509 = arith.mulf %430, %421 : vector<1x8xf32>
    %510 = arith.subf %508, %509 : vector<1x8xf32>
    %511 = arith.mulf %424, %421 : vector<1x8xf32>
    %512 = arith.addf %510, %511 : vector<1x8xf32>
    %513 = arith.mulf %426, %421 : vector<1x8xf32>
    %514 = arith.addf %512, %513 : vector<1x8xf32>
    %515 = arith.mulf %424, %421 : vector<1x8xf32>
    %516 = arith.mulf %426, %421 : vector<1x8xf32>
    %517 = arith.addf %515, %516 : vector<1x8xf32>
    %518 = arith.mulf %428, %421 : vector<1x8xf32>
    %519 = arith.subf %517, %518 : vector<1x8xf32>
    %520 = arith.mulf %430, %421 : vector<1x8xf32>
    %521 = arith.addf %519, %520 : vector<1x8xf32>
    %522 = arith.mulf %424, %421 : vector<1x8xf32>
    %523 = arith.mulf %426, %421 : vector<1x8xf32>
    %524 = arith.subf %522, %523 : vector<1x8xf32>
    %525 = arith.mulf %428, %421 : vector<1x8xf32>
    %526 = arith.subf %524, %525 : vector<1x8xf32>
    %527 = arith.mulf %430, %421 : vector<1x8xf32>
    %528 = arith.subf %526, %527 : vector<1x8xf32>
    %529 = arith.mulf %428, %421 : vector<1x8xf32>
    %530 = arith.mulf %430, %421 : vector<1x8xf32>
    %531 = arith.addf %529, %530 : vector<1x8xf32>
    %532 = arith.mulf %424, %421 : vector<1x8xf32>
    %533 = arith.addf %531, %532 : vector<1x8xf32>
    %534 = arith.mulf %426, %421 : vector<1x8xf32>
    %535 = arith.subf %533, %534 : vector<1x8xf32>
    %536 = arith.mulf %428, %421 : vector<1x8xf32>
    %537 = arith.mulf %430, %421 : vector<1x8xf32>
    %538 = arith.subf %536, %537 : vector<1x8xf32>
    %539 = arith.mulf %424, %421 : vector<1x8xf32>
    %540 = arith.addf %538, %539 : vector<1x8xf32>
    %541 = arith.mulf %426, %421 : vector<1x8xf32>
    %542 = arith.addf %540, %541 : vector<1x8xf32>
    %c4_108 = arith.constant 4 : index
    %c0_109 = arith.constant 0 : index
    %c0_110 = arith.constant 0 : index
    %543 = vector.load %arg3[%c4_108, %c0_109, %c0_110] : memref<72x1x8xf32, #tpu.memory_space<vmem>>, vector<1x1x8xf32>
    %544 = vector.shape_cast %543 : vector<1x1x8xf32> to vector<1x8xf32>
    %c5_111 = arith.constant 5 : index
    %c0_112 = arith.constant 0 : index
    %c0_113 = arith.constant 0 : index
    %545 = vector.load %arg3[%c5_111, %c0_112, %c0_113] : memref<72x1x8xf32, #tpu.memory_space<vmem>>, vector<1x1x8xf32>
    %546 = vector.shape_cast %545 : vector<1x1x8xf32> to vector<1x8xf32>
    %c6_114 = arith.constant 6 : index
    %c0_115 = arith.constant 0 : index
    %c0_116 = arith.constant 0 : index
    %547 = vector.load %arg3[%c6_114, %c0_115, %c0_116] : memref<72x1x8xf32, #tpu.memory_space<vmem>>, vector<1x1x8xf32>
    %548 = vector.shape_cast %547 : vector<1x1x8xf32> to vector<1x8xf32>
    %c7_117 = arith.constant 7 : index
    %c0_118 = arith.constant 0 : index
    %c0_119 = arith.constant 0 : index
    %549 = vector.load %arg3[%c7_117, %c0_118, %c0_119] : memref<72x1x8xf32, #tpu.memory_space<vmem>>, vector<1x1x8xf32>
    %550 = vector.shape_cast %549 : vector<1x1x8xf32> to vector<1x8xf32>
    %551 = arith.mulf %544, %437 : vector<1x8xf32>
    %552 = arith.mulf %546, %444 : vector<1x8xf32>
    %553 = arith.addf %551, %552 : vector<1x8xf32>
    %554 = arith.mulf %548, %493 : vector<1x8xf32>
    %555 = arith.subf %553, %554 : vector<1x8xf32>
    %556 = arith.mulf %550, %500 : vector<1x8xf32>
    %557 = arith.addf %555, %556 : vector<1x8xf32>
    %558 = arith.mulf %544, %444 : vector<1x8xf32>
    %559 = arith.mulf %546, %437 : vector<1x8xf32>
    %560 = arith.subf %558, %559 : vector<1x8xf32>
    %561 = arith.mulf %548, %500 : vector<1x8xf32>
    %562 = arith.subf %560, %561 : vector<1x8xf32>
    %563 = arith.mulf %550, %493 : vector<1x8xf32>
    %564 = arith.subf %562, %563 : vector<1x8xf32>
    %565 = arith.mulf %548, %437 : vector<1x8xf32>
    %566 = arith.mulf %550, %444 : vector<1x8xf32>
    %567 = arith.addf %565, %566 : vector<1x8xf32>
    %568 = arith.mulf %544, %493 : vector<1x8xf32>
    %569 = arith.addf %567, %568 : vector<1x8xf32>
    %570 = arith.mulf %546, %500 : vector<1x8xf32>
    %571 = arith.subf %569, %570 : vector<1x8xf32>
    %572 = arith.mulf %548, %444 : vector<1x8xf32>
    %573 = arith.mulf %550, %437 : vector<1x8xf32>
    %574 = arith.subf %572, %573 : vector<1x8xf32>
    %575 = arith.mulf %544, %500 : vector<1x8xf32>
    %576 = arith.addf %574, %575 : vector<1x8xf32>
    %577 = arith.mulf %546, %493 : vector<1x8xf32>
    %578 = arith.addf %576, %577 : vector<1x8xf32>
    %579 = arith.mulf %544, %465 : vector<1x8xf32>
    %580 = arith.mulf %546, %472 : vector<1x8xf32>
    %581 = arith.addf %579, %580 : vector<1x8xf32>
    %582 = arith.mulf %548, %521 : vector<1x8xf32>
    %583 = arith.subf %581, %582 : vector<1x8xf32>
    %584 = arith.mulf %550, %528 : vector<1x8xf32>
    %585 = arith.addf %583, %584 : vector<1x8xf32>
    %586 = arith.mulf %544, %472 : vector<1x8xf32>
    %587 = arith.mulf %546, %465 : vector<1x8xf32>
    %588 = arith.subf %586, %587 : vector<1x8xf32>
    %589 = arith.mulf %548, %528 : vector<1x8xf32>
    %590 = arith.subf %588, %589 : vector<1x8xf32>
    %591 = arith.mulf %550, %521 : vector<1x8xf32>
    %592 = arith.subf %590, %591 : vector<1x8xf32>
    %593 = arith.mulf %548, %465 : vector<1x8xf32>
    %594 = arith.mulf %550, %472 : vector<1x8xf32>
    %595 = arith.addf %593, %594 : vector<1x8xf32>
    %596 = arith.mulf %544, %521 : vector<1x8xf32>
    %597 = arith.addf %595, %596 : vector<1x8xf32>
    %598 = arith.mulf %546, %528 : vector<1x8xf32>
    %599 = arith.subf %597, %598 : vector<1x8xf32>
    %600 = arith.mulf %548, %472 : vector<1x8xf32>
    %601 = arith.mulf %550, %465 : vector<1x8xf32>
    %602 = arith.subf %600, %601 : vector<1x8xf32>
    %603 = arith.mulf %544, %528 : vector<1x8xf32>
    %604 = arith.addf %602, %603 : vector<1x8xf32>
    %605 = arith.mulf %546, %521 : vector<1x8xf32>
    %606 = arith.addf %604, %605 : vector<1x8xf32>
    %607 = arith.mulf %544, %451 : vector<1x8xf32>
    %608 = arith.mulf %546, %458 : vector<1x8xf32>
    %609 = arith.addf %607, %608 : vector<1x8xf32>
    %610 = arith.mulf %548, %507 : vector<1x8xf32>
    %611 = arith.subf %609, %610 : vector<1x8xf32>
    %612 = arith.mulf %550, %514 : vector<1x8xf32>
    %613 = arith.addf %611, %612 : vector<1x8xf32>
    %614 = arith.mulf %544, %458 : vector<1x8xf32>
    %615 = arith.mulf %546, %451 : vector<1x8xf32>
    %616 = arith.subf %614, %615 : vector<1x8xf32>
    %617 = arith.mulf %548, %514 : vector<1x8xf32>
    %618 = arith.subf %616, %617 : vector<1x8xf32>
    %619 = arith.mulf %550, %507 : vector<1x8xf32>
    %620 = arith.subf %618, %619 : vector<1x8xf32>
    %621 = arith.mulf %548, %451 : vector<1x8xf32>
    %622 = arith.mulf %550, %458 : vector<1x8xf32>
    %623 = arith.addf %621, %622 : vector<1x8xf32>
    %624 = arith.mulf %544, %507 : vector<1x8xf32>
    %625 = arith.addf %623, %624 : vector<1x8xf32>
    %626 = arith.mulf %546, %514 : vector<1x8xf32>
    %627 = arith.subf %625, %626 : vector<1x8xf32>
    %628 = arith.mulf %548, %458 : vector<1x8xf32>
    %629 = arith.mulf %550, %451 : vector<1x8xf32>
    %630 = arith.subf %628, %629 : vector<1x8xf32>
    %631 = arith.mulf %544, %514 : vector<1x8xf32>
    %632 = arith.addf %630, %631 : vector<1x8xf32>
    %633 = arith.mulf %546, %507 : vector<1x8xf32>
    %634 = arith.addf %632, %633 : vector<1x8xf32>
    %635 = arith.mulf %544, %479 : vector<1x8xf32>
    %636 = arith.mulf %546, %486 : vector<1x8xf32>
    %637 = arith.addf %635, %636 : vector<1x8xf32>
    %638 = arith.mulf %548, %535 : vector<1x8xf32>
    %639 = arith.subf %637, %638 : vector<1x8xf32>
    %640 = arith.mulf %550, %542 : vector<1x8xf32>
    %641 = arith.addf %639, %640 : vector<1x8xf32>
    %642 = arith.mulf %544, %486 : vector<1x8xf32>
    %643 = arith.mulf %546, %479 : vector<1x8xf32>
    %644 = arith.subf %642, %643 : vector<1x8xf32>
    %645 = arith.mulf %548, %542 : vector<1x8xf32>
    %646 = arith.subf %644, %645 : vector<1x8xf32>
    %647 = arith.mulf %550, %535 : vector<1x8xf32>
    %648 = arith.subf %646, %647 : vector<1x8xf32>
    %649 = arith.mulf %548, %479 : vector<1x8xf32>
    %650 = arith.mulf %550, %486 : vector<1x8xf32>
    %651 = arith.addf %649, %650 : vector<1x8xf32>
    %652 = arith.mulf %544, %535 : vector<1x8xf32>
    %653 = arith.addf %651, %652 : vector<1x8xf32>
    %654 = arith.mulf %546, %542 : vector<1x8xf32>
    %655 = arith.subf %653, %654 : vector<1x8xf32>
    %656 = arith.mulf %548, %486 : vector<1x8xf32>
    %657 = arith.mulf %550, %479 : vector<1x8xf32>
    %658 = arith.subf %656, %657 : vector<1x8xf32>
    %659 = arith.mulf %544, %542 : vector<1x8xf32>
    %660 = arith.addf %658, %659 : vector<1x8xf32>
    %661 = arith.mulf %546, %535 : vector<1x8xf32>
    %662 = arith.addf %660, %661 : vector<1x8xf32>
    %c8_120 = arith.constant 8 : index
    %c0_121 = arith.constant 0 : index
    %c0_122 = arith.constant 0 : index
    %663 = vector.load %arg3[%c8_120, %c0_121, %c0_122] : memref<72x1x8xf32, #tpu.memory_space<vmem>>, vector<1x1x8xf32>
    %664 = vector.shape_cast %663 : vector<1x1x8xf32> to vector<1x8xf32>
    %c9_123 = arith.constant 9 : index
    %c0_124 = arith.constant 0 : index
    %c0_125 = arith.constant 0 : index
    %665 = vector.load %arg3[%c9_123, %c0_124, %c0_125] : memref<72x1x8xf32, #tpu.memory_space<vmem>>, vector<1x1x8xf32>
    %666 = vector.shape_cast %665 : vector<1x1x8xf32> to vector<1x8xf32>
    %c10_126 = arith.constant 10 : index
    %c0_127 = arith.constant 0 : index
    %c0_128 = arith.constant 0 : index
    %667 = vector.load %arg3[%c10_126, %c0_127, %c0_128] : memref<72x1x8xf32, #tpu.memory_space<vmem>>, vector<1x1x8xf32>
    %668 = vector.shape_cast %667 : vector<1x1x8xf32> to vector<1x8xf32>
    %c11_129 = arith.constant 11 : index
    %c0_130 = arith.constant 0 : index
    %c0_131 = arith.constant 0 : index
    %669 = vector.load %arg3[%c11_129, %c0_130, %c0_131] : memref<72x1x8xf32, #tpu.memory_space<vmem>>, vector<1x1x8xf32>
    %670 = vector.shape_cast %669 : vector<1x1x8xf32> to vector<1x8xf32>
    %671 = arith.mulf %664, %557 : vector<1x8xf32>
    %672 = arith.mulf %666, %564 : vector<1x8xf32>
    %673 = arith.addf %671, %672 : vector<1x8xf32>
    %674 = arith.mulf %668, %585 : vector<1x8xf32>
    %675 = arith.subf %673, %674 : vector<1x8xf32>
    %676 = arith.mulf %670, %592 : vector<1x8xf32>
    %677 = arith.addf %675, %676 : vector<1x8xf32>
    %678 = arith.mulf %664, %564 : vector<1x8xf32>
    %679 = arith.mulf %666, %557 : vector<1x8xf32>
    %680 = arith.subf %678, %679 : vector<1x8xf32>
    %681 = arith.mulf %668, %592 : vector<1x8xf32>
    %682 = arith.subf %680, %681 : vector<1x8xf32>
    %683 = arith.mulf %670, %585 : vector<1x8xf32>
    %684 = arith.subf %682, %683 : vector<1x8xf32>
    %685 = arith.mulf %668, %557 : vector<1x8xf32>
    %686 = arith.mulf %670, %564 : vector<1x8xf32>
    %687 = arith.addf %685, %686 : vector<1x8xf32>
    %688 = arith.mulf %664, %585 : vector<1x8xf32>
    %689 = arith.addf %687, %688 : vector<1x8xf32>
    %690 = arith.mulf %666, %592 : vector<1x8xf32>
    %691 = arith.subf %689, %690 : vector<1x8xf32>
    %692 = arith.mulf %668, %564 : vector<1x8xf32>
    %693 = arith.mulf %670, %557 : vector<1x8xf32>
    %694 = arith.subf %692, %693 : vector<1x8xf32>
    %695 = arith.mulf %664, %592 : vector<1x8xf32>
    %696 = arith.addf %694, %695 : vector<1x8xf32>
    %697 = arith.mulf %666, %585 : vector<1x8xf32>
    %698 = arith.addf %696, %697 : vector<1x8xf32>
    %699 = arith.mulf %664, %571 : vector<1x8xf32>
    %700 = arith.mulf %666, %578 : vector<1x8xf32>
    %701 = arith.addf %699, %700 : vector<1x8xf32>
    %702 = arith.mulf %668, %599 : vector<1x8xf32>
    %703 = arith.subf %701, %702 : vector<1x8xf32>
    %704 = arith.mulf %670, %606 : vector<1x8xf32>
    %705 = arith.addf %703, %704 : vector<1x8xf32>
    %706 = arith.mulf %664, %578 : vector<1x8xf32>
    %707 = arith.mulf %666, %571 : vector<1x8xf32>
    %708 = arith.subf %706, %707 : vector<1x8xf32>
    %709 = arith.mulf %668, %606 : vector<1x8xf32>
    %710 = arith.subf %708, %709 : vector<1x8xf32>
    %711 = arith.mulf %670, %599 : vector<1x8xf32>
    %712 = arith.subf %710, %711 : vector<1x8xf32>
    %713 = arith.mulf %668, %571 : vector<1x8xf32>
    %714 = arith.mulf %670, %578 : vector<1x8xf32>
    %715 = arith.addf %713, %714 : vector<1x8xf32>
    %716 = arith.mulf %664, %599 : vector<1x8xf32>
    %717 = arith.addf %715, %716 : vector<1x8xf32>
    %718 = arith.mulf %666, %606 : vector<1x8xf32>
    %719 = arith.subf %717, %718 : vector<1x8xf32>
    %720 = arith.mulf %668, %578 : vector<1x8xf32>
    %721 = arith.mulf %670, %571 : vector<1x8xf32>
    %722 = arith.subf %720, %721 : vector<1x8xf32>
    %723 = arith.mulf %664, %606 : vector<1x8xf32>
    %724 = arith.addf %722, %723 : vector<1x8xf32>
    %725 = arith.mulf %666, %599 : vector<1x8xf32>
    %726 = arith.addf %724, %725 : vector<1x8xf32>
    %727 = arith.mulf %664, %613 : vector<1x8xf32>
    %728 = arith.mulf %666, %620 : vector<1x8xf32>
    %729 = arith.addf %727, %728 : vector<1x8xf32>
    %730 = arith.mulf %668, %641 : vector<1x8xf32>
    %731 = arith.subf %729, %730 : vector<1x8xf32>
    %732 = arith.mulf %670, %648 : vector<1x8xf32>
    %733 = arith.addf %731, %732 : vector<1x8xf32>
    %734 = arith.mulf %664, %620 : vector<1x8xf32>
    %735 = arith.mulf %666, %613 : vector<1x8xf32>
    %736 = arith.subf %734, %735 : vector<1x8xf32>
    %737 = arith.mulf %668, %648 : vector<1x8xf32>
    %738 = arith.subf %736, %737 : vector<1x8xf32>
    %739 = arith.mulf %670, %641 : vector<1x8xf32>
    %740 = arith.subf %738, %739 : vector<1x8xf32>
    %741 = arith.mulf %668, %613 : vector<1x8xf32>
    %742 = arith.mulf %670, %620 : vector<1x8xf32>
    %743 = arith.addf %741, %742 : vector<1x8xf32>
    %744 = arith.mulf %664, %641 : vector<1x8xf32>
    %745 = arith.addf %743, %744 : vector<1x8xf32>
    %746 = arith.mulf %666, %648 : vector<1x8xf32>
    %747 = arith.subf %745, %746 : vector<1x8xf32>
    %748 = arith.mulf %668, %620 : vector<1x8xf32>
    %749 = arith.mulf %670, %613 : vector<1x8xf32>
    %750 = arith.subf %748, %749 : vector<1x8xf32>
    %751 = arith.mulf %664, %648 : vector<1x8xf32>
    %752 = arith.addf %750, %751 : vector<1x8xf32>
    %753 = arith.mulf %666, %641 : vector<1x8xf32>
    %754 = arith.addf %752, %753 : vector<1x8xf32>
    %755 = arith.mulf %664, %627 : vector<1x8xf32>
    %756 = arith.mulf %666, %634 : vector<1x8xf32>
    %757 = arith.addf %755, %756 : vector<1x8xf32>
    %758 = arith.mulf %668, %655 : vector<1x8xf32>
    %759 = arith.subf %757, %758 : vector<1x8xf32>
    %760 = arith.mulf %670, %662 : vector<1x8xf32>
    %761 = arith.addf %759, %760 : vector<1x8xf32>
    %762 = arith.mulf %664, %634 : vector<1x8xf32>
    %763 = arith.mulf %666, %627 : vector<1x8xf32>
    %764 = arith.subf %762, %763 : vector<1x8xf32>
    %765 = arith.mulf %668, %662 : vector<1x8xf32>
    %766 = arith.subf %764, %765 : vector<1x8xf32>
    %767 = arith.mulf %670, %655 : vector<1x8xf32>
    %768 = arith.subf %766, %767 : vector<1x8xf32>
    %769 = arith.mulf %668, %627 : vector<1x8xf32>
    %770 = arith.mulf %670, %634 : vector<1x8xf32>
    %771 = arith.addf %769, %770 : vector<1x8xf32>
    %772 = arith.mulf %664, %655 : vector<1x8xf32>
    %773 = arith.addf %771, %772 : vector<1x8xf32>
    %774 = arith.mulf %666, %662 : vector<1x8xf32>
    %775 = arith.subf %773, %774 : vector<1x8xf32>
    %776 = arith.mulf %668, %634 : vector<1x8xf32>
    %777 = arith.mulf %670, %627 : vector<1x8xf32>
    %778 = arith.subf %776, %777 : vector<1x8xf32>
    %779 = arith.mulf %664, %662 : vector<1x8xf32>
    %780 = arith.addf %778, %779 : vector<1x8xf32>
    %781 = arith.mulf %666, %655 : vector<1x8xf32>
    %782 = arith.addf %780, %781 : vector<1x8xf32>
    %c12_132 = arith.constant 12 : index
    %c0_133 = arith.constant 0 : index
    %c0_134 = arith.constant 0 : index
    %783 = vector.load %arg3[%c12_132, %c0_133, %c0_134] : memref<72x1x8xf32, #tpu.memory_space<vmem>>, vector<1x1x8xf32>
    %784 = vector.shape_cast %783 : vector<1x1x8xf32> to vector<1x8xf32>
    %c13_135 = arith.constant 13 : index
    %c0_136 = arith.constant 0 : index
    %c0_137 = arith.constant 0 : index
    %785 = vector.load %arg3[%c13_135, %c0_136, %c0_137] : memref<72x1x8xf32, #tpu.memory_space<vmem>>, vector<1x1x8xf32>
    %786 = vector.shape_cast %785 : vector<1x1x8xf32> to vector<1x8xf32>
    %c14_138 = arith.constant 14 : index
    %c0_139 = arith.constant 0 : index
    %c0_140 = arith.constant 0 : index
    %787 = vector.load %arg3[%c14_138, %c0_139, %c0_140] : memref<72x1x8xf32, #tpu.memory_space<vmem>>, vector<1x1x8xf32>
    %788 = vector.shape_cast %787 : vector<1x1x8xf32> to vector<1x8xf32>
    %c15_141 = arith.constant 15 : index
    %c0_142 = arith.constant 0 : index
    %c0_143 = arith.constant 0 : index
    %789 = vector.load %arg3[%c15_141, %c0_142, %c0_143] : memref<72x1x8xf32, #tpu.memory_space<vmem>>, vector<1x1x8xf32>
    %790 = vector.shape_cast %789 : vector<1x1x8xf32> to vector<1x8xf32>
    %791 = arith.mulf %784, %677 : vector<1x8xf32>
    %792 = arith.mulf %786, %684 : vector<1x8xf32>
    %793 = arith.addf %791, %792 : vector<1x8xf32>
    %794 = arith.mulf %788, %761 : vector<1x8xf32>
    %795 = arith.subf %793, %794 : vector<1x8xf32>
    %796 = arith.mulf %790, %768 : vector<1x8xf32>
    %797 = arith.addf %795, %796 : vector<1x8xf32>
    %798 = arith.mulf %784, %684 : vector<1x8xf32>
    %799 = arith.mulf %786, %677 : vector<1x8xf32>
    %800 = arith.subf %798, %799 : vector<1x8xf32>
    %801 = arith.mulf %788, %768 : vector<1x8xf32>
    %802 = arith.subf %800, %801 : vector<1x8xf32>
    %803 = arith.mulf %790, %761 : vector<1x8xf32>
    %804 = arith.subf %802, %803 : vector<1x8xf32>
    %805 = arith.mulf %788, %677 : vector<1x8xf32>
    %806 = arith.mulf %790, %684 : vector<1x8xf32>
    %807 = arith.addf %805, %806 : vector<1x8xf32>
    %808 = arith.mulf %784, %761 : vector<1x8xf32>
    %809 = arith.addf %807, %808 : vector<1x8xf32>
    %810 = arith.mulf %786, %768 : vector<1x8xf32>
    %811 = arith.subf %809, %810 : vector<1x8xf32>
    %812 = arith.mulf %788, %684 : vector<1x8xf32>
    %813 = arith.mulf %790, %677 : vector<1x8xf32>
    %814 = arith.subf %812, %813 : vector<1x8xf32>
    %815 = arith.mulf %784, %768 : vector<1x8xf32>
    %816 = arith.addf %814, %815 : vector<1x8xf32>
    %817 = arith.mulf %786, %761 : vector<1x8xf32>
    %818 = arith.addf %816, %817 : vector<1x8xf32>
    %819 = arith.mulf %784, %775 : vector<1x8xf32>
    %820 = arith.mulf %786, %782 : vector<1x8xf32>
    %821 = arith.addf %819, %820 : vector<1x8xf32>
    %822 = arith.mulf %788, %691 : vector<1x8xf32>
    %823 = arith.subf %821, %822 : vector<1x8xf32>
    %824 = arith.mulf %790, %698 : vector<1x8xf32>
    %825 = arith.addf %823, %824 : vector<1x8xf32>
    %826 = arith.mulf %784, %782 : vector<1x8xf32>
    %827 = arith.mulf %786, %775 : vector<1x8xf32>
    %828 = arith.subf %826, %827 : vector<1x8xf32>
    %829 = arith.mulf %788, %698 : vector<1x8xf32>
    %830 = arith.subf %828, %829 : vector<1x8xf32>
    %831 = arith.mulf %790, %691 : vector<1x8xf32>
    %832 = arith.subf %830, %831 : vector<1x8xf32>
    %833 = arith.mulf %788, %775 : vector<1x8xf32>
    %834 = arith.mulf %790, %782 : vector<1x8xf32>
    %835 = arith.addf %833, %834 : vector<1x8xf32>
    %836 = arith.mulf %784, %691 : vector<1x8xf32>
    %837 = arith.addf %835, %836 : vector<1x8xf32>
    %838 = arith.mulf %786, %698 : vector<1x8xf32>
    %839 = arith.subf %837, %838 : vector<1x8xf32>
    %840 = arith.mulf %788, %782 : vector<1x8xf32>
    %841 = arith.mulf %790, %775 : vector<1x8xf32>
    %842 = arith.subf %840, %841 : vector<1x8xf32>
    %843 = arith.mulf %784, %698 : vector<1x8xf32>
    %844 = arith.addf %842, %843 : vector<1x8xf32>
    %845 = arith.mulf %786, %691 : vector<1x8xf32>
    %846 = arith.addf %844, %845 : vector<1x8xf32>
    %847 = arith.mulf %784, %719 : vector<1x8xf32>
    %848 = arith.mulf %786, %726 : vector<1x8xf32>
    %849 = arith.addf %847, %848 : vector<1x8xf32>
    %850 = arith.mulf %788, %747 : vector<1x8xf32>
    %851 = arith.subf %849, %850 : vector<1x8xf32>
    %852 = arith.mulf %790, %754 : vector<1x8xf32>
    %853 = arith.addf %851, %852 : vector<1x8xf32>
    %854 = arith.mulf %784, %726 : vector<1x8xf32>
    %855 = arith.mulf %786, %719 : vector<1x8xf32>
    %856 = arith.subf %854, %855 : vector<1x8xf32>
    %857 = arith.mulf %788, %754 : vector<1x8xf32>
    %858 = arith.subf %856, %857 : vector<1x8xf32>
    %859 = arith.mulf %790, %747 : vector<1x8xf32>
    %860 = arith.subf %858, %859 : vector<1x8xf32>
    %861 = arith.mulf %788, %719 : vector<1x8xf32>
    %862 = arith.mulf %790, %726 : vector<1x8xf32>
    %863 = arith.addf %861, %862 : vector<1x8xf32>
    %864 = arith.mulf %784, %747 : vector<1x8xf32>
    %865 = arith.addf %863, %864 : vector<1x8xf32>
    %866 = arith.mulf %786, %754 : vector<1x8xf32>
    %867 = arith.subf %865, %866 : vector<1x8xf32>
    %868 = arith.mulf %788, %726 : vector<1x8xf32>
    %869 = arith.mulf %790, %719 : vector<1x8xf32>
    %870 = arith.subf %868, %869 : vector<1x8xf32>
    %871 = arith.mulf %784, %754 : vector<1x8xf32>
    %872 = arith.addf %870, %871 : vector<1x8xf32>
    %873 = arith.mulf %786, %747 : vector<1x8xf32>
    %874 = arith.addf %872, %873 : vector<1x8xf32>
    %875 = arith.mulf %784, %733 : vector<1x8xf32>
    %876 = arith.mulf %786, %740 : vector<1x8xf32>
    %877 = arith.addf %875, %876 : vector<1x8xf32>
    %878 = arith.mulf %788, %705 : vector<1x8xf32>
    %879 = arith.subf %877, %878 : vector<1x8xf32>
    %880 = arith.mulf %790, %712 : vector<1x8xf32>
    %881 = arith.addf %879, %880 : vector<1x8xf32>
    %882 = arith.mulf %784, %740 : vector<1x8xf32>
    %883 = arith.mulf %786, %733 : vector<1x8xf32>
    %884 = arith.subf %882, %883 : vector<1x8xf32>
    %885 = arith.mulf %788, %712 : vector<1x8xf32>
    %886 = arith.subf %884, %885 : vector<1x8xf32>
    %887 = arith.mulf %790, %705 : vector<1x8xf32>
    %888 = arith.subf %886, %887 : vector<1x8xf32>
    %889 = arith.mulf %788, %733 : vector<1x8xf32>
    %890 = arith.mulf %790, %740 : vector<1x8xf32>
    %891 = arith.addf %889, %890 : vector<1x8xf32>
    %892 = arith.mulf %784, %705 : vector<1x8xf32>
    %893 = arith.addf %891, %892 : vector<1x8xf32>
    %894 = arith.mulf %786, %712 : vector<1x8xf32>
    %895 = arith.subf %893, %894 : vector<1x8xf32>
    %896 = arith.mulf %788, %740 : vector<1x8xf32>
    %897 = arith.mulf %790, %733 : vector<1x8xf32>
    %898 = arith.subf %896, %897 : vector<1x8xf32>
    %899 = arith.mulf %784, %712 : vector<1x8xf32>
    %900 = arith.addf %898, %899 : vector<1x8xf32>
    %901 = arith.mulf %786, %705 : vector<1x8xf32>
    %902 = arith.addf %900, %901 : vector<1x8xf32>
    %c16_144 = arith.constant 16 : index
    %c0_145 = arith.constant 0 : index
    %c0_146 = arith.constant 0 : index
    %903 = vector.load %arg3[%c16_144, %c0_145, %c0_146] : memref<72x1x8xf32, #tpu.memory_space<vmem>>, vector<1x1x8xf32>
    %904 = vector.shape_cast %903 : vector<1x1x8xf32> to vector<1x8xf32>
    %c17_147 = arith.constant 17 : index
    %c0_148 = arith.constant 0 : index
    %c0_149 = arith.constant 0 : index
    %905 = vector.load %arg3[%c17_147, %c0_148, %c0_149] : memref<72x1x8xf32, #tpu.memory_space<vmem>>, vector<1x1x8xf32>
    %906 = vector.shape_cast %905 : vector<1x1x8xf32> to vector<1x8xf32>
    %c18_150 = arith.constant 18 : index
    %c0_151 = arith.constant 0 : index
    %c0_152 = arith.constant 0 : index
    %907 = vector.load %arg3[%c18_150, %c0_151, %c0_152] : memref<72x1x8xf32, #tpu.memory_space<vmem>>, vector<1x1x8xf32>
    %908 = vector.shape_cast %907 : vector<1x1x8xf32> to vector<1x8xf32>
    %c19_153 = arith.constant 19 : index
    %c0_154 = arith.constant 0 : index
    %c0_155 = arith.constant 0 : index
    %909 = vector.load %arg3[%c19_153, %c0_154, %c0_155] : memref<72x1x8xf32, #tpu.memory_space<vmem>>, vector<1x1x8xf32>
    %910 = vector.shape_cast %909 : vector<1x1x8xf32> to vector<1x8xf32>
    %911 = arith.mulf %904, %797 : vector<1x8xf32>
    %912 = arith.mulf %906, %804 : vector<1x8xf32>
    %913 = arith.addf %911, %912 : vector<1x8xf32>
    %914 = arith.mulf %908, %853 : vector<1x8xf32>
    %915 = arith.subf %913, %914 : vector<1x8xf32>
    %916 = arith.mulf %910, %860 : vector<1x8xf32>
    %917 = arith.addf %915, %916 : vector<1x8xf32>
    %918 = arith.mulf %904, %804 : vector<1x8xf32>
    %919 = arith.mulf %906, %797 : vector<1x8xf32>
    %920 = arith.subf %918, %919 : vector<1x8xf32>
    %921 = arith.mulf %908, %860 : vector<1x8xf32>
    %922 = arith.subf %920, %921 : vector<1x8xf32>
    %923 = arith.mulf %910, %853 : vector<1x8xf32>
    %924 = arith.subf %922, %923 : vector<1x8xf32>
    %925 = arith.mulf %908, %797 : vector<1x8xf32>
    %926 = arith.mulf %910, %804 : vector<1x8xf32>
    %927 = arith.addf %925, %926 : vector<1x8xf32>
    %928 = arith.mulf %904, %853 : vector<1x8xf32>
    %929 = arith.addf %927, %928 : vector<1x8xf32>
    %930 = arith.mulf %906, %860 : vector<1x8xf32>
    %931 = arith.subf %929, %930 : vector<1x8xf32>
    %932 = arith.mulf %908, %804 : vector<1x8xf32>
    %933 = arith.mulf %910, %797 : vector<1x8xf32>
    %934 = arith.subf %932, %933 : vector<1x8xf32>
    %935 = arith.mulf %904, %860 : vector<1x8xf32>
    %936 = arith.addf %934, %935 : vector<1x8xf32>
    %937 = arith.mulf %906, %853 : vector<1x8xf32>
    %938 = arith.addf %936, %937 : vector<1x8xf32>
    %939 = arith.mulf %904, %825 : vector<1x8xf32>
    %940 = arith.mulf %906, %832 : vector<1x8xf32>
    %941 = arith.addf %939, %940 : vector<1x8xf32>
    %942 = arith.mulf %908, %881 : vector<1x8xf32>
    %943 = arith.subf %941, %942 : vector<1x8xf32>
    %944 = arith.mulf %910, %888 : vector<1x8xf32>
    %945 = arith.addf %943, %944 : vector<1x8xf32>
    %946 = arith.mulf %904, %832 : vector<1x8xf32>
    %947 = arith.mulf %906, %825 : vector<1x8xf32>
    %948 = arith.subf %946, %947 : vector<1x8xf32>
    %949 = arith.mulf %908, %888 : vector<1x8xf32>
    %950 = arith.subf %948, %949 : vector<1x8xf32>
    %951 = arith.mulf %910, %881 : vector<1x8xf32>
    %952 = arith.subf %950, %951 : vector<1x8xf32>
    %953 = arith.mulf %908, %825 : vector<1x8xf32>
    %954 = arith.mulf %910, %832 : vector<1x8xf32>
    %955 = arith.addf %953, %954 : vector<1x8xf32>
    %956 = arith.mulf %904, %881 : vector<1x8xf32>
    %957 = arith.addf %955, %956 : vector<1x8xf32>
    %958 = arith.mulf %906, %888 : vector<1x8xf32>
    %959 = arith.subf %957, %958 : vector<1x8xf32>
    %960 = arith.mulf %908, %832 : vector<1x8xf32>
    %961 = arith.mulf %910, %825 : vector<1x8xf32>
    %962 = arith.subf %960, %961 : vector<1x8xf32>
    %963 = arith.mulf %904, %888 : vector<1x8xf32>
    %964 = arith.addf %962, %963 : vector<1x8xf32>
    %965 = arith.mulf %906, %881 : vector<1x8xf32>
    %966 = arith.addf %964, %965 : vector<1x8xf32>
    %967 = arith.mulf %904, %811 : vector<1x8xf32>
    %968 = arith.mulf %906, %818 : vector<1x8xf32>
    %969 = arith.addf %967, %968 : vector<1x8xf32>
    %970 = arith.mulf %908, %867 : vector<1x8xf32>
    %971 = arith.subf %969, %970 : vector<1x8xf32>
    %972 = arith.mulf %910, %874 : vector<1x8xf32>
    %973 = arith.addf %971, %972 : vector<1x8xf32>
    %974 = arith.mulf %904, %818 : vector<1x8xf32>
    %975 = arith.mulf %906, %811 : vector<1x8xf32>
    %976 = arith.subf %974, %975 : vector<1x8xf32>
    %977 = arith.mulf %908, %874 : vector<1x8xf32>
    %978 = arith.subf %976, %977 : vector<1x8xf32>
    %979 = arith.mulf %910, %867 : vector<1x8xf32>
    %980 = arith.subf %978, %979 : vector<1x8xf32>
    %981 = arith.mulf %908, %811 : vector<1x8xf32>
    %982 = arith.mulf %910, %818 : vector<1x8xf32>
    %983 = arith.addf %981, %982 : vector<1x8xf32>
    %984 = arith.mulf %904, %867 : vector<1x8xf32>
    %985 = arith.addf %983, %984 : vector<1x8xf32>
    %986 = arith.mulf %906, %874 : vector<1x8xf32>
    %987 = arith.subf %985, %986 : vector<1x8xf32>
    %988 = arith.mulf %908, %818 : vector<1x8xf32>
    %989 = arith.mulf %910, %811 : vector<1x8xf32>
    %990 = arith.subf %988, %989 : vector<1x8xf32>
    %991 = arith.mulf %904, %874 : vector<1x8xf32>
    %992 = arith.addf %990, %991 : vector<1x8xf32>
    %993 = arith.mulf %906, %867 : vector<1x8xf32>
    %994 = arith.addf %992, %993 : vector<1x8xf32>
    %995 = arith.mulf %904, %839 : vector<1x8xf32>
    %996 = arith.mulf %906, %846 : vector<1x8xf32>
    %997 = arith.addf %995, %996 : vector<1x8xf32>
    %998 = arith.mulf %908, %895 : vector<1x8xf32>
    %999 = arith.subf %997, %998 : vector<1x8xf32>
    %1000 = arith.mulf %910, %902 : vector<1x8xf32>
    %1001 = arith.addf %999, %1000 : vector<1x8xf32>
    %1002 = arith.mulf %904, %846 : vector<1x8xf32>
    %1003 = arith.mulf %906, %839 : vector<1x8xf32>
    %1004 = arith.subf %1002, %1003 : vector<1x8xf32>
    %1005 = arith.mulf %908, %902 : vector<1x8xf32>
    %1006 = arith.subf %1004, %1005 : vector<1x8xf32>
    %1007 = arith.mulf %910, %895 : vector<1x8xf32>
    %1008 = arith.subf %1006, %1007 : vector<1x8xf32>
    %1009 = arith.mulf %908, %839 : vector<1x8xf32>
    %1010 = arith.mulf %910, %846 : vector<1x8xf32>
    %1011 = arith.addf %1009, %1010 : vector<1x8xf32>
    %1012 = arith.mulf %904, %895 : vector<1x8xf32>
    %1013 = arith.addf %1011, %1012 : vector<1x8xf32>
    %1014 = arith.mulf %906, %902 : vector<1x8xf32>
    %1015 = arith.subf %1013, %1014 : vector<1x8xf32>
    %1016 = arith.mulf %908, %846 : vector<1x8xf32>
    %1017 = arith.mulf %910, %839 : vector<1x8xf32>
    %1018 = arith.subf %1016, %1017 : vector<1x8xf32>
    %1019 = arith.mulf %904, %902 : vector<1x8xf32>
    %1020 = arith.addf %1018, %1019 : vector<1x8xf32>
    %1021 = arith.mulf %906, %895 : vector<1x8xf32>
    %1022 = arith.addf %1020, %1021 : vector<1x8xf32>
    %c20_156 = arith.constant 20 : index
    %c0_157 = arith.constant 0 : index
    %c0_158 = arith.constant 0 : index
    %1023 = vector.load %arg3[%c20_156, %c0_157, %c0_158] : memref<72x1x8xf32, #tpu.memory_space<vmem>>, vector<1x1x8xf32>
    %1024 = vector.shape_cast %1023 : vector<1x1x8xf32> to vector<1x8xf32>
    %c21_159 = arith.constant 21 : index
    %c0_160 = arith.constant 0 : index
    %c0_161 = arith.constant 0 : index
    %1025 = vector.load %arg3[%c21_159, %c0_160, %c0_161] : memref<72x1x8xf32, #tpu.memory_space<vmem>>, vector<1x1x8xf32>
    %1026 = vector.shape_cast %1025 : vector<1x1x8xf32> to vector<1x8xf32>
    %c22_162 = arith.constant 22 : index
    %c0_163 = arith.constant 0 : index
    %c0_164 = arith.constant 0 : index
    %1027 = vector.load %arg3[%c22_162, %c0_163, %c0_164] : memref<72x1x8xf32, #tpu.memory_space<vmem>>, vector<1x1x8xf32>
    %1028 = vector.shape_cast %1027 : vector<1x1x8xf32> to vector<1x8xf32>
    %c23_165 = arith.constant 23 : index
    %c0_166 = arith.constant 0 : index
    %c0_167 = arith.constant 0 : index
    %1029 = vector.load %arg3[%c23_165, %c0_166, %c0_167] : memref<72x1x8xf32, #tpu.memory_space<vmem>>, vector<1x1x8xf32>
    %1030 = vector.shape_cast %1029 : vector<1x1x8xf32> to vector<1x8xf32>
    %1031 = arith.mulf %1024, %917 : vector<1x8xf32>
    %1032 = arith.mulf %1026, %924 : vector<1x8xf32>
    %1033 = arith.addf %1031, %1032 : vector<1x8xf32>
    %1034 = arith.mulf %1028, %945 : vector<1x8xf32>
    %1035 = arith.subf %1033, %1034 : vector<1x8xf32>
    %1036 = arith.mulf %1030, %952 : vector<1x8xf32>
    %1037 = arith.addf %1035, %1036 : vector<1x8xf32>
    %1038 = arith.mulf %1024, %924 : vector<1x8xf32>
    %1039 = arith.mulf %1026, %917 : vector<1x8xf32>
    %1040 = arith.subf %1038, %1039 : vector<1x8xf32>
    %1041 = arith.mulf %1028, %952 : vector<1x8xf32>
    %1042 = arith.subf %1040, %1041 : vector<1x8xf32>
    %1043 = arith.mulf %1030, %945 : vector<1x8xf32>
    %1044 = arith.subf %1042, %1043 : vector<1x8xf32>
    %1045 = arith.mulf %1028, %917 : vector<1x8xf32>
    %1046 = arith.mulf %1030, %924 : vector<1x8xf32>
    %1047 = arith.addf %1045, %1046 : vector<1x8xf32>
    %1048 = arith.mulf %1024, %945 : vector<1x8xf32>
    %1049 = arith.addf %1047, %1048 : vector<1x8xf32>
    %1050 = arith.mulf %1026, %952 : vector<1x8xf32>
    %1051 = arith.subf %1049, %1050 : vector<1x8xf32>
    %1052 = arith.mulf %1028, %924 : vector<1x8xf32>
    %1053 = arith.mulf %1030, %917 : vector<1x8xf32>
    %1054 = arith.subf %1052, %1053 : vector<1x8xf32>
    %1055 = arith.mulf %1024, %952 : vector<1x8xf32>
    %1056 = arith.addf %1054, %1055 : vector<1x8xf32>
    %1057 = arith.mulf %1026, %945 : vector<1x8xf32>
    %1058 = arith.addf %1056, %1057 : vector<1x8xf32>
    %1059 = arith.mulf %1024, %931 : vector<1x8xf32>
    %1060 = arith.mulf %1026, %938 : vector<1x8xf32>
    %1061 = arith.addf %1059, %1060 : vector<1x8xf32>
    %1062 = arith.mulf %1028, %959 : vector<1x8xf32>
    %1063 = arith.subf %1061, %1062 : vector<1x8xf32>
    %1064 = arith.mulf %1030, %966 : vector<1x8xf32>
    %1065 = arith.addf %1063, %1064 : vector<1x8xf32>
    %1066 = arith.mulf %1024, %938 : vector<1x8xf32>
    %1067 = arith.mulf %1026, %931 : vector<1x8xf32>
    %1068 = arith.subf %1066, %1067 : vector<1x8xf32>
    %1069 = arith.mulf %1028, %966 : vector<1x8xf32>
    %1070 = arith.subf %1068, %1069 : vector<1x8xf32>
    %1071 = arith.mulf %1030, %959 : vector<1x8xf32>
    %1072 = arith.subf %1070, %1071 : vector<1x8xf32>
    %1073 = arith.mulf %1028, %931 : vector<1x8xf32>
    %1074 = arith.mulf %1030, %938 : vector<1x8xf32>
    %1075 = arith.addf %1073, %1074 : vector<1x8xf32>
    %1076 = arith.mulf %1024, %959 : vector<1x8xf32>
    %1077 = arith.addf %1075, %1076 : vector<1x8xf32>
    %1078 = arith.mulf %1026, %966 : vector<1x8xf32>
    %1079 = arith.subf %1077, %1078 : vector<1x8xf32>
    %1080 = arith.mulf %1028, %938 : vector<1x8xf32>
    %1081 = arith.mulf %1030, %931 : vector<1x8xf32>
    %1082 = arith.subf %1080, %1081 : vector<1x8xf32>
    %1083 = arith.mulf %1024, %966 : vector<1x8xf32>
    %1084 = arith.addf %1082, %1083 : vector<1x8xf32>
    %1085 = arith.mulf %1026, %959 : vector<1x8xf32>
    %1086 = arith.addf %1084, %1085 : vector<1x8xf32>
    %1087 = arith.mulf %1024, %973 : vector<1x8xf32>
    %1088 = arith.mulf %1026, %980 : vector<1x8xf32>
    %1089 = arith.addf %1087, %1088 : vector<1x8xf32>
    %1090 = arith.mulf %1028, %1001 : vector<1x8xf32>
    %1091 = arith.subf %1089, %1090 : vector<1x8xf32>
    %1092 = arith.mulf %1030, %1008 : vector<1x8xf32>
    %1093 = arith.addf %1091, %1092 : vector<1x8xf32>
    %1094 = arith.mulf %1024, %980 : vector<1x8xf32>
    %1095 = arith.mulf %1026, %973 : vector<1x8xf32>
    %1096 = arith.subf %1094, %1095 : vector<1x8xf32>
    %1097 = arith.mulf %1028, %1008 : vector<1x8xf32>
    %1098 = arith.subf %1096, %1097 : vector<1x8xf32>
    %1099 = arith.mulf %1030, %1001 : vector<1x8xf32>
    %1100 = arith.subf %1098, %1099 : vector<1x8xf32>
    %1101 = arith.mulf %1028, %973 : vector<1x8xf32>
    %1102 = arith.mulf %1030, %980 : vector<1x8xf32>
    %1103 = arith.addf %1101, %1102 : vector<1x8xf32>
    %1104 = arith.mulf %1024, %1001 : vector<1x8xf32>
    %1105 = arith.addf %1103, %1104 : vector<1x8xf32>
    %1106 = arith.mulf %1026, %1008 : vector<1x8xf32>
    %1107 = arith.subf %1105, %1106 : vector<1x8xf32>
    %1108 = arith.mulf %1028, %980 : vector<1x8xf32>
    %1109 = arith.mulf %1030, %973 : vector<1x8xf32>
    %1110 = arith.subf %1108, %1109 : vector<1x8xf32>
    %1111 = arith.mulf %1024, %1008 : vector<1x8xf32>
    %1112 = arith.addf %1110, %1111 : vector<1x8xf32>
    %1113 = arith.mulf %1026, %1001 : vector<1x8xf32>
    %1114 = arith.addf %1112, %1113 : vector<1x8xf32>
    %1115 = arith.mulf %1024, %987 : vector<1x8xf32>
    %1116 = arith.mulf %1026, %994 : vector<1x8xf32>
    %1117 = arith.addf %1115, %1116 : vector<1x8xf32>
    %1118 = arith.mulf %1028, %1015 : vector<1x8xf32>
    %1119 = arith.subf %1117, %1118 : vector<1x8xf32>
    %1120 = arith.mulf %1030, %1022 : vector<1x8xf32>
    %1121 = arith.addf %1119, %1120 : vector<1x8xf32>
    %1122 = arith.mulf %1024, %994 : vector<1x8xf32>
    %1123 = arith.mulf %1026, %987 : vector<1x8xf32>
    %1124 = arith.subf %1122, %1123 : vector<1x8xf32>
    %1125 = arith.mulf %1028, %1022 : vector<1x8xf32>
    %1126 = arith.subf %1124, %1125 : vector<1x8xf32>
    %1127 = arith.mulf %1030, %1015 : vector<1x8xf32>
    %1128 = arith.subf %1126, %1127 : vector<1x8xf32>
    %1129 = arith.mulf %1028, %987 : vector<1x8xf32>
    %1130 = arith.mulf %1030, %994 : vector<1x8xf32>
    %1131 = arith.addf %1129, %1130 : vector<1x8xf32>
    %1132 = arith.mulf %1024, %1015 : vector<1x8xf32>
    %1133 = arith.addf %1131, %1132 : vector<1x8xf32>
    %1134 = arith.mulf %1026, %1022 : vector<1x8xf32>
    %1135 = arith.subf %1133, %1134 : vector<1x8xf32>
    %1136 = arith.mulf %1028, %994 : vector<1x8xf32>
    %1137 = arith.mulf %1030, %987 : vector<1x8xf32>
    %1138 = arith.subf %1136, %1137 : vector<1x8xf32>
    %1139 = arith.mulf %1024, %1022 : vector<1x8xf32>
    %1140 = arith.addf %1138, %1139 : vector<1x8xf32>
    %1141 = arith.mulf %1026, %1015 : vector<1x8xf32>
    %1142 = arith.addf %1140, %1141 : vector<1x8xf32>
    %1143 = arith.mulf %415, %1037 : vector<1x8xf32>
    %1144 = arith.mulf %418, %1114 : vector<1x8xf32>
    %1145 = arith.addf %1143, %1144 : vector<1x8xf32>
    %1146 = arith.mulf %415, %1044 : vector<1x8xf32>
    %1147 = arith.mulf %418, %1107 : vector<1x8xf32>
    %1148 = arith.subf %1146, %1147 : vector<1x8xf32>
    %1149 = arith.mulf %415, %1107 : vector<1x8xf32>
    %1150 = arith.mulf %418, %1044 : vector<1x8xf32>
    %1151 = arith.addf %1149, %1150 : vector<1x8xf32>
    %1152 = arith.mulf %415, %1114 : vector<1x8xf32>
    %1153 = arith.mulf %418, %1037 : vector<1x8xf32>
    %1154 = arith.subf %1152, %1153 : vector<1x8xf32>
    %1155 = arith.mulf %415, %1121 : vector<1x8xf32>
    %1156 = arith.mulf %418, %1086 : vector<1x8xf32>
    %1157 = arith.addf %1155, %1156 : vector<1x8xf32>
    %1158 = arith.mulf %415, %1128 : vector<1x8xf32>
    %1159 = arith.mulf %418, %1079 : vector<1x8xf32>
    %1160 = arith.subf %1158, %1159 : vector<1x8xf32>
    %1161 = arith.mulf %415, %1079 : vector<1x8xf32>
    %1162 = arith.mulf %418, %1128 : vector<1x8xf32>
    %1163 = arith.addf %1161, %1162 : vector<1x8xf32>
    %1164 = arith.mulf %415, %1086 : vector<1x8xf32>
    %1165 = arith.mulf %418, %1121 : vector<1x8xf32>
    %1166 = arith.subf %1164, %1165 : vector<1x8xf32>
    %1167 = arith.mulf %415, %1135 : vector<1x8xf32>
    %1168 = arith.mulf %418, %1072 : vector<1x8xf32>
    %1169 = arith.addf %1167, %1168 : vector<1x8xf32>
    %1170 = arith.mulf %415, %1142 : vector<1x8xf32>
    %1171 = arith.mulf %418, %1065 : vector<1x8xf32>
    %1172 = arith.subf %1170, %1171 : vector<1x8xf32>
    %1173 = arith.mulf %415, %1065 : vector<1x8xf32>
    %1174 = arith.mulf %418, %1142 : vector<1x8xf32>
    %1175 = arith.addf %1173, %1174 : vector<1x8xf32>
    %1176 = arith.mulf %415, %1072 : vector<1x8xf32>
    %1177 = arith.mulf %418, %1135 : vector<1x8xf32>
    %1178 = arith.subf %1176, %1177 : vector<1x8xf32>
    %1179 = arith.mulf %415, %1051 : vector<1x8xf32>
    %1180 = arith.mulf %418, %1100 : vector<1x8xf32>
    %1181 = arith.addf %1179, %1180 : vector<1x8xf32>
    %1182 = arith.mulf %415, %1058 : vector<1x8xf32>
    %1183 = arith.mulf %418, %1093 : vector<1x8xf32>
    %1184 = arith.subf %1182, %1183 : vector<1x8xf32>
    %1185 = arith.mulf %415, %1093 : vector<1x8xf32>
    %1186 = arith.mulf %418, %1058 : vector<1x8xf32>
    %1187 = arith.addf %1185, %1186 : vector<1x8xf32>
    %1188 = arith.mulf %415, %1100 : vector<1x8xf32>
    %1189 = arith.mulf %418, %1051 : vector<1x8xf32>
    %1190 = arith.subf %1188, %1189 : vector<1x8xf32>
    %1191 = arith.mulf %416, %1145 : vector<1x8xf32>
    %1192 = arith.mulf %419, %1172 : vector<1x8xf32>
    %1193 = arith.addf %1191, %1192 : vector<1x8xf32>
    %1194 = arith.mulf %416, %1148 : vector<1x8xf32>
    %1195 = arith.mulf %419, %1169 : vector<1x8xf32>
    %1196 = arith.subf %1194, %1195 : vector<1x8xf32>
    %1197 = arith.mulf %416, %1169 : vector<1x8xf32>
    %1198 = arith.mulf %419, %1148 : vector<1x8xf32>
    %1199 = arith.addf %1197, %1198 : vector<1x8xf32>
    %1200 = arith.mulf %416, %1172 : vector<1x8xf32>
    %1201 = arith.mulf %419, %1145 : vector<1x8xf32>
    %1202 = arith.subf %1200, %1201 : vector<1x8xf32>
    %1203 = arith.mulf %416, %1157 : vector<1x8xf32>
    %1204 = arith.mulf %419, %1184 : vector<1x8xf32>
    %1205 = arith.addf %1203, %1204 : vector<1x8xf32>
    %1206 = arith.mulf %416, %1160 : vector<1x8xf32>
    %1207 = arith.mulf %419, %1181 : vector<1x8xf32>
    %1208 = arith.subf %1206, %1207 : vector<1x8xf32>
    %1209 = arith.mulf %416, %1181 : vector<1x8xf32>
    %1210 = arith.mulf %419, %1160 : vector<1x8xf32>
    %1211 = arith.addf %1209, %1210 : vector<1x8xf32>
    %1212 = arith.mulf %416, %1184 : vector<1x8xf32>
    %1213 = arith.mulf %419, %1157 : vector<1x8xf32>
    %1214 = arith.subf %1212, %1213 : vector<1x8xf32>
    %1215 = arith.mulf %416, %1151 : vector<1x8xf32>
    %1216 = arith.mulf %419, %1178 : vector<1x8xf32>
    %1217 = arith.addf %1215, %1216 : vector<1x8xf32>
    %1218 = arith.mulf %416, %1154 : vector<1x8xf32>
    %1219 = arith.mulf %419, %1175 : vector<1x8xf32>
    %1220 = arith.subf %1218, %1219 : vector<1x8xf32>
    %1221 = arith.mulf %416, %1175 : vector<1x8xf32>
    %1222 = arith.mulf %419, %1154 : vector<1x8xf32>
    %1223 = arith.addf %1221, %1222 : vector<1x8xf32>
    %1224 = arith.mulf %416, %1178 : vector<1x8xf32>
    %1225 = arith.mulf %419, %1151 : vector<1x8xf32>
    %1226 = arith.subf %1224, %1225 : vector<1x8xf32>
    %1227 = arith.mulf %416, %1163 : vector<1x8xf32>
    %1228 = arith.mulf %419, %1190 : vector<1x8xf32>
    %1229 = arith.addf %1227, %1228 : vector<1x8xf32>
    %1230 = arith.mulf %416, %1166 : vector<1x8xf32>
    %1231 = arith.mulf %419, %1187 : vector<1x8xf32>
    %1232 = arith.subf %1230, %1231 : vector<1x8xf32>
    %1233 = arith.mulf %416, %1187 : vector<1x8xf32>
    %1234 = arith.mulf %419, %1166 : vector<1x8xf32>
    %1235 = arith.addf %1233, %1234 : vector<1x8xf32>
    %1236 = arith.mulf %416, %1190 : vector<1x8xf32>
    %1237 = arith.mulf %419, %1163 : vector<1x8xf32>
    %1238 = arith.subf %1236, %1237 : vector<1x8xf32>
    %1239 = arith.mulf %417, %1193 : vector<1x8xf32>
    %1240 = arith.mulf %420, %1208 : vector<1x8xf32>
    %1241 = arith.addf %1239, %1240 : vector<1x8xf32>
    %1242 = arith.mulf %417, %1196 : vector<1x8xf32>
    %1243 = arith.mulf %420, %1205 : vector<1x8xf32>
    %1244 = arith.subf %1242, %1243 : vector<1x8xf32>
    %1245 = arith.mulf %417, %1205 : vector<1x8xf32>
    %1246 = arith.mulf %420, %1196 : vector<1x8xf32>
    %1247 = arith.addf %1245, %1246 : vector<1x8xf32>
    %1248 = arith.mulf %417, %1208 : vector<1x8xf32>
    %1249 = arith.mulf %420, %1193 : vector<1x8xf32>
    %1250 = arith.subf %1248, %1249 : vector<1x8xf32>
    %1251 = arith.mulf %417, %1199 : vector<1x8xf32>
    %1252 = arith.mulf %420, %1214 : vector<1x8xf32>
    %1253 = arith.addf %1251, %1252 : vector<1x8xf32>
    %1254 = arith.mulf %417, %1202 : vector<1x8xf32>
    %1255 = arith.mulf %420, %1211 : vector<1x8xf32>
    %1256 = arith.subf %1254, %1255 : vector<1x8xf32>
    %1257 = arith.mulf %417, %1211 : vector<1x8xf32>
    %1258 = arith.mulf %420, %1202 : vector<1x8xf32>
    %1259 = arith.addf %1257, %1258 : vector<1x8xf32>
    %1260 = arith.mulf %417, %1214 : vector<1x8xf32>
    %1261 = arith.mulf %420, %1199 : vector<1x8xf32>
    %1262 = arith.subf %1260, %1261 : vector<1x8xf32>
    %1263 = arith.mulf %417, %1217 : vector<1x8xf32>
    %1264 = arith.mulf %420, %1232 : vector<1x8xf32>
    %1265 = arith.addf %1263, %1264 : vector<1x8xf32>
    %1266 = arith.mulf %417, %1220 : vector<1x8xf32>
    %1267 = arith.mulf %420, %1229 : vector<1x8xf32>
    %1268 = arith.subf %1266, %1267 : vector<1x8xf32>
    %1269 = arith.mulf %417, %1229 : vector<1x8xf32>
    %1270 = arith.mulf %420, %1220 : vector<1x8xf32>
    %1271 = arith.addf %1269, %1270 : vector<1x8xf32>
    %1272 = arith.mulf %417, %1232 : vector<1x8xf32>
    %1273 = arith.mulf %420, %1217 : vector<1x8xf32>
    %1274 = arith.subf %1272, %1273 : vector<1x8xf32>
    %1275 = arith.mulf %417, %1223 : vector<1x8xf32>
    %1276 = arith.mulf %420, %1238 : vector<1x8xf32>
    %1277 = arith.addf %1275, %1276 : vector<1x8xf32>
    %1278 = arith.mulf %417, %1226 : vector<1x8xf32>
    %1279 = arith.mulf %420, %1235 : vector<1x8xf32>
    %1280 = arith.subf %1278, %1279 : vector<1x8xf32>
    %1281 = arith.mulf %417, %1235 : vector<1x8xf32>
    %1282 = arith.mulf %420, %1226 : vector<1x8xf32>
    %1283 = arith.addf %1281, %1282 : vector<1x8xf32>
    %1284 = arith.mulf %417, %1238 : vector<1x8xf32>
    %1285 = arith.mulf %420, %1223 : vector<1x8xf32>
    %1286 = arith.subf %1284, %1285 : vector<1x8xf32>
    %c24_168 = arith.constant 24 : index
    %c0_169 = arith.constant 0 : index
    %c0_170 = arith.constant 0 : index
    %1287 = vector.load %arg3[%c24_168, %c0_169, %c0_170] : memref<72x1x8xf32, #tpu.memory_space<vmem>>, vector<1x1x8xf32>
    %1288 = vector.shape_cast %1287 : vector<1x1x8xf32> to vector<1x8xf32>
    %c25_171 = arith.constant 25 : index
    %c0_172 = arith.constant 0 : index
    %c0_173 = arith.constant 0 : index
    %1289 = vector.load %arg3[%c25_171, %c0_172, %c0_173] : memref<72x1x8xf32, #tpu.memory_space<vmem>>, vector<1x1x8xf32>
    %1290 = vector.shape_cast %1289 : vector<1x1x8xf32> to vector<1x8xf32>
    %c26_174 = arith.constant 26 : index
    %c0_175 = arith.constant 0 : index
    %c0_176 = arith.constant 0 : index
    %1291 = vector.load %arg3[%c26_174, %c0_175, %c0_176] : memref<72x1x8xf32, #tpu.memory_space<vmem>>, vector<1x1x8xf32>
    %1292 = vector.shape_cast %1291 : vector<1x1x8xf32> to vector<1x8xf32>
    %c27_177 = arith.constant 27 : index
    %c0_178 = arith.constant 0 : index
    %c0_179 = arith.constant 0 : index
    %1293 = vector.load %arg3[%c27_177, %c0_178, %c0_179] : memref<72x1x8xf32, #tpu.memory_space<vmem>>, vector<1x1x8xf32>
    %1294 = vector.shape_cast %1293 : vector<1x1x8xf32> to vector<1x8xf32>
    %1295 = arith.mulf %1288, %1241 : vector<1x8xf32>
    %1296 = arith.mulf %1290, %1244 : vector<1x8xf32>
    %1297 = arith.addf %1295, %1296 : vector<1x8xf32>
    %1298 = arith.mulf %1292, %1265 : vector<1x8xf32>
    %1299 = arith.subf %1297, %1298 : vector<1x8xf32>
    %1300 = arith.mulf %1294, %1268 : vector<1x8xf32>
    %1301 = arith.addf %1299, %1300 : vector<1x8xf32>
    %1302 = arith.mulf %1288, %1244 : vector<1x8xf32>
    %1303 = arith.mulf %1290, %1241 : vector<1x8xf32>
    %1304 = arith.subf %1302, %1303 : vector<1x8xf32>
    %1305 = arith.mulf %1292, %1268 : vector<1x8xf32>
    %1306 = arith.subf %1304, %1305 : vector<1x8xf32>
    %1307 = arith.mulf %1294, %1265 : vector<1x8xf32>
    %1308 = arith.subf %1306, %1307 : vector<1x8xf32>
    %1309 = arith.mulf %1292, %1241 : vector<1x8xf32>
    %1310 = arith.mulf %1294, %1244 : vector<1x8xf32>
    %1311 = arith.addf %1309, %1310 : vector<1x8xf32>
    %1312 = arith.mulf %1288, %1265 : vector<1x8xf32>
    %1313 = arith.addf %1311, %1312 : vector<1x8xf32>
    %1314 = arith.mulf %1290, %1268 : vector<1x8xf32>
    %1315 = arith.subf %1313, %1314 : vector<1x8xf32>
    %1316 = arith.mulf %1292, %1244 : vector<1x8xf32>
    %1317 = arith.mulf %1294, %1241 : vector<1x8xf32>
    %1318 = arith.subf %1316, %1317 : vector<1x8xf32>
    %1319 = arith.mulf %1288, %1268 : vector<1x8xf32>
    %1320 = arith.addf %1318, %1319 : vector<1x8xf32>
    %1321 = arith.mulf %1290, %1265 : vector<1x8xf32>
    %1322 = arith.addf %1320, %1321 : vector<1x8xf32>
    %1323 = arith.mulf %1288, %1247 : vector<1x8xf32>
    %1324 = arith.mulf %1290, %1250 : vector<1x8xf32>
    %1325 = arith.addf %1323, %1324 : vector<1x8xf32>
    %1326 = arith.mulf %1292, %1271 : vector<1x8xf32>
    %1327 = arith.subf %1325, %1326 : vector<1x8xf32>
    %1328 = arith.mulf %1294, %1274 : vector<1x8xf32>
    %1329 = arith.addf %1327, %1328 : vector<1x8xf32>
    %1330 = arith.mulf %1288, %1250 : vector<1x8xf32>
    %1331 = arith.mulf %1290, %1247 : vector<1x8xf32>
    %1332 = arith.subf %1330, %1331 : vector<1x8xf32>
    %1333 = arith.mulf %1292, %1274 : vector<1x8xf32>
    %1334 = arith.subf %1332, %1333 : vector<1x8xf32>
    %1335 = arith.mulf %1294, %1271 : vector<1x8xf32>
    %1336 = arith.subf %1334, %1335 : vector<1x8xf32>
    %1337 = arith.mulf %1292, %1247 : vector<1x8xf32>
    %1338 = arith.mulf %1294, %1250 : vector<1x8xf32>
    %1339 = arith.addf %1337, %1338 : vector<1x8xf32>
    %1340 = arith.mulf %1288, %1271 : vector<1x8xf32>
    %1341 = arith.addf %1339, %1340 : vector<1x8xf32>
    %1342 = arith.mulf %1290, %1274 : vector<1x8xf32>
    %1343 = arith.subf %1341, %1342 : vector<1x8xf32>
    %1344 = arith.mulf %1292, %1250 : vector<1x8xf32>
    %1345 = arith.mulf %1294, %1247 : vector<1x8xf32>
    %1346 = arith.subf %1344, %1345 : vector<1x8xf32>
    %1347 = arith.mulf %1288, %1274 : vector<1x8xf32>
    %1348 = arith.addf %1346, %1347 : vector<1x8xf32>
    %1349 = arith.mulf %1290, %1271 : vector<1x8xf32>
    %1350 = arith.addf %1348, %1349 : vector<1x8xf32>
    %1351 = arith.mulf %1288, %1253 : vector<1x8xf32>
    %1352 = arith.mulf %1290, %1256 : vector<1x8xf32>
    %1353 = arith.addf %1351, %1352 : vector<1x8xf32>
    %1354 = arith.mulf %1292, %1277 : vector<1x8xf32>
    %1355 = arith.subf %1353, %1354 : vector<1x8xf32>
    %1356 = arith.mulf %1294, %1280 : vector<1x8xf32>
    %1357 = arith.addf %1355, %1356 : vector<1x8xf32>
    %1358 = arith.mulf %1288, %1256 : vector<1x8xf32>
    %1359 = arith.mulf %1290, %1253 : vector<1x8xf32>
    %1360 = arith.subf %1358, %1359 : vector<1x8xf32>
    %1361 = arith.mulf %1292, %1280 : vector<1x8xf32>
    %1362 = arith.subf %1360, %1361 : vector<1x8xf32>
    %1363 = arith.mulf %1294, %1277 : vector<1x8xf32>
    %1364 = arith.subf %1362, %1363 : vector<1x8xf32>
    %1365 = arith.mulf %1292, %1253 : vector<1x8xf32>
    %1366 = arith.mulf %1294, %1256 : vector<1x8xf32>
    %1367 = arith.addf %1365, %1366 : vector<1x8xf32>
    %1368 = arith.mulf %1288, %1277 : vector<1x8xf32>
    %1369 = arith.addf %1367, %1368 : vector<1x8xf32>
    %1370 = arith.mulf %1290, %1280 : vector<1x8xf32>
    %1371 = arith.subf %1369, %1370 : vector<1x8xf32>
    %1372 = arith.mulf %1292, %1256 : vector<1x8xf32>
    %1373 = arith.mulf %1294, %1253 : vector<1x8xf32>
    %1374 = arith.subf %1372, %1373 : vector<1x8xf32>
    %1375 = arith.mulf %1288, %1280 : vector<1x8xf32>
    %1376 = arith.addf %1374, %1375 : vector<1x8xf32>
    %1377 = arith.mulf %1290, %1277 : vector<1x8xf32>
    %1378 = arith.addf %1376, %1377 : vector<1x8xf32>
    %1379 = arith.mulf %1288, %1259 : vector<1x8xf32>
    %1380 = arith.mulf %1290, %1262 : vector<1x8xf32>
    %1381 = arith.addf %1379, %1380 : vector<1x8xf32>
    %1382 = arith.mulf %1292, %1283 : vector<1x8xf32>
    %1383 = arith.subf %1381, %1382 : vector<1x8xf32>
    %1384 = arith.mulf %1294, %1286 : vector<1x8xf32>
    %1385 = arith.addf %1383, %1384 : vector<1x8xf32>
    %1386 = arith.mulf %1288, %1262 : vector<1x8xf32>
    %1387 = arith.mulf %1290, %1259 : vector<1x8xf32>
    %1388 = arith.subf %1386, %1387 : vector<1x8xf32>
    %1389 = arith.mulf %1292, %1286 : vector<1x8xf32>
    %1390 = arith.subf %1388, %1389 : vector<1x8xf32>
    %1391 = arith.mulf %1294, %1283 : vector<1x8xf32>
    %1392 = arith.subf %1390, %1391 : vector<1x8xf32>
    %1393 = arith.mulf %1292, %1259 : vector<1x8xf32>
    %1394 = arith.mulf %1294, %1262 : vector<1x8xf32>
    %1395 = arith.addf %1393, %1394 : vector<1x8xf32>
    %1396 = arith.mulf %1288, %1283 : vector<1x8xf32>
    %1397 = arith.addf %1395, %1396 : vector<1x8xf32>
    %1398 = arith.mulf %1290, %1286 : vector<1x8xf32>
    %1399 = arith.subf %1397, %1398 : vector<1x8xf32>
    %1400 = arith.mulf %1292, %1262 : vector<1x8xf32>
    %1401 = arith.mulf %1294, %1259 : vector<1x8xf32>
    %1402 = arith.subf %1400, %1401 : vector<1x8xf32>
    %1403 = arith.mulf %1288, %1286 : vector<1x8xf32>
    %1404 = arith.addf %1402, %1403 : vector<1x8xf32>
    %1405 = arith.mulf %1290, %1283 : vector<1x8xf32>
    %1406 = arith.addf %1404, %1405 : vector<1x8xf32>
    %c28_180 = arith.constant 28 : index
    %c0_181 = arith.constant 0 : index
    %c0_182 = arith.constant 0 : index
    %1407 = vector.load %arg3[%c28_180, %c0_181, %c0_182] : memref<72x1x8xf32, #tpu.memory_space<vmem>>, vector<1x1x8xf32>
    %1408 = vector.shape_cast %1407 : vector<1x1x8xf32> to vector<1x8xf32>
    %c29_183 = arith.constant 29 : index
    %c0_184 = arith.constant 0 : index
    %c0_185 = arith.constant 0 : index
    %1409 = vector.load %arg3[%c29_183, %c0_184, %c0_185] : memref<72x1x8xf32, #tpu.memory_space<vmem>>, vector<1x1x8xf32>
    %1410 = vector.shape_cast %1409 : vector<1x1x8xf32> to vector<1x8xf32>
    %c30_186 = arith.constant 30 : index
    %c0_187 = arith.constant 0 : index
    %c0_188 = arith.constant 0 : index
    %1411 = vector.load %arg3[%c30_186, %c0_187, %c0_188] : memref<72x1x8xf32, #tpu.memory_space<vmem>>, vector<1x1x8xf32>
    %1412 = vector.shape_cast %1411 : vector<1x1x8xf32> to vector<1x8xf32>
    %c31_189 = arith.constant 31 : index
    %c0_190 = arith.constant 0 : index
    %c0_191 = arith.constant 0 : index
    %1413 = vector.load %arg3[%c31_189, %c0_190, %c0_191] : memref<72x1x8xf32, #tpu.memory_space<vmem>>, vector<1x1x8xf32>
    %1414 = vector.shape_cast %1413 : vector<1x1x8xf32> to vector<1x8xf32>
    %1415 = arith.mulf %1408, %1301 : vector<1x8xf32>
    %1416 = arith.mulf %1410, %1308 : vector<1x8xf32>
    %1417 = arith.addf %1415, %1416 : vector<1x8xf32>
    %1418 = arith.mulf %1412, %1357 : vector<1x8xf32>
    %1419 = arith.subf %1417, %1418 : vector<1x8xf32>
    %1420 = arith.mulf %1414, %1364 : vector<1x8xf32>
    %1421 = arith.addf %1419, %1420 : vector<1x8xf32>
    %1422 = arith.mulf %1408, %1308 : vector<1x8xf32>
    %1423 = arith.mulf %1410, %1301 : vector<1x8xf32>
    %1424 = arith.subf %1422, %1423 : vector<1x8xf32>
    %1425 = arith.mulf %1412, %1364 : vector<1x8xf32>
    %1426 = arith.subf %1424, %1425 : vector<1x8xf32>
    %1427 = arith.mulf %1414, %1357 : vector<1x8xf32>
    %1428 = arith.subf %1426, %1427 : vector<1x8xf32>
    %1429 = arith.mulf %1412, %1301 : vector<1x8xf32>
    %1430 = arith.mulf %1414, %1308 : vector<1x8xf32>
    %1431 = arith.addf %1429, %1430 : vector<1x8xf32>
    %1432 = arith.mulf %1408, %1357 : vector<1x8xf32>
    %1433 = arith.addf %1431, %1432 : vector<1x8xf32>
    %1434 = arith.mulf %1410, %1364 : vector<1x8xf32>
    %1435 = arith.subf %1433, %1434 : vector<1x8xf32>
    %1436 = arith.mulf %1412, %1308 : vector<1x8xf32>
    %1437 = arith.mulf %1414, %1301 : vector<1x8xf32>
    %1438 = arith.subf %1436, %1437 : vector<1x8xf32>
    %1439 = arith.mulf %1408, %1364 : vector<1x8xf32>
    %1440 = arith.addf %1438, %1439 : vector<1x8xf32>
    %1441 = arith.mulf %1410, %1357 : vector<1x8xf32>
    %1442 = arith.addf %1440, %1441 : vector<1x8xf32>
    %1443 = arith.mulf %1408, %1329 : vector<1x8xf32>
    %1444 = arith.mulf %1410, %1336 : vector<1x8xf32>
    %1445 = arith.addf %1443, %1444 : vector<1x8xf32>
    %1446 = arith.mulf %1412, %1385 : vector<1x8xf32>
    %1447 = arith.subf %1445, %1446 : vector<1x8xf32>
    %1448 = arith.mulf %1414, %1392 : vector<1x8xf32>
    %1449 = arith.addf %1447, %1448 : vector<1x8xf32>
    %1450 = arith.mulf %1408, %1336 : vector<1x8xf32>
    %1451 = arith.mulf %1410, %1329 : vector<1x8xf32>
    %1452 = arith.subf %1450, %1451 : vector<1x8xf32>
    %1453 = arith.mulf %1412, %1392 : vector<1x8xf32>
    %1454 = arith.subf %1452, %1453 : vector<1x8xf32>
    %1455 = arith.mulf %1414, %1385 : vector<1x8xf32>
    %1456 = arith.subf %1454, %1455 : vector<1x8xf32>
    %1457 = arith.mulf %1412, %1329 : vector<1x8xf32>
    %1458 = arith.mulf %1414, %1336 : vector<1x8xf32>
    %1459 = arith.addf %1457, %1458 : vector<1x8xf32>
    %1460 = arith.mulf %1408, %1385 : vector<1x8xf32>
    %1461 = arith.addf %1459, %1460 : vector<1x8xf32>
    %1462 = arith.mulf %1410, %1392 : vector<1x8xf32>
    %1463 = arith.subf %1461, %1462 : vector<1x8xf32>
    %1464 = arith.mulf %1412, %1336 : vector<1x8xf32>
    %1465 = arith.mulf %1414, %1329 : vector<1x8xf32>
    %1466 = arith.subf %1464, %1465 : vector<1x8xf32>
    %1467 = arith.mulf %1408, %1392 : vector<1x8xf32>
    %1468 = arith.addf %1466, %1467 : vector<1x8xf32>
    %1469 = arith.mulf %1410, %1385 : vector<1x8xf32>
    %1470 = arith.addf %1468, %1469 : vector<1x8xf32>
    %1471 = arith.mulf %1408, %1315 : vector<1x8xf32>
    %1472 = arith.mulf %1410, %1322 : vector<1x8xf32>
    %1473 = arith.addf %1471, %1472 : vector<1x8xf32>
    %1474 = arith.mulf %1412, %1371 : vector<1x8xf32>
    %1475 = arith.subf %1473, %1474 : vector<1x8xf32>
    %1476 = arith.mulf %1414, %1378 : vector<1x8xf32>
    %1477 = arith.addf %1475, %1476 : vector<1x8xf32>
    %1478 = arith.mulf %1408, %1322 : vector<1x8xf32>
    %1479 = arith.mulf %1410, %1315 : vector<1x8xf32>
    %1480 = arith.subf %1478, %1479 : vector<1x8xf32>
    %1481 = arith.mulf %1412, %1378 : vector<1x8xf32>
    %1482 = arith.subf %1480, %1481 : vector<1x8xf32>
    %1483 = arith.mulf %1414, %1371 : vector<1x8xf32>
    %1484 = arith.subf %1482, %1483 : vector<1x8xf32>
    %1485 = arith.mulf %1412, %1315 : vector<1x8xf32>
    %1486 = arith.mulf %1414, %1322 : vector<1x8xf32>
    %1487 = arith.addf %1485, %1486 : vector<1x8xf32>
    %1488 = arith.mulf %1408, %1371 : vector<1x8xf32>
    %1489 = arith.addf %1487, %1488 : vector<1x8xf32>
    %1490 = arith.mulf %1410, %1378 : vector<1x8xf32>
    %1491 = arith.subf %1489, %1490 : vector<1x8xf32>
    %1492 = arith.mulf %1412, %1322 : vector<1x8xf32>
    %1493 = arith.mulf %1414, %1315 : vector<1x8xf32>
    %1494 = arith.subf %1492, %1493 : vector<1x8xf32>
    %1495 = arith.mulf %1408, %1378 : vector<1x8xf32>
    %1496 = arith.addf %1494, %1495 : vector<1x8xf32>
    %1497 = arith.mulf %1410, %1371 : vector<1x8xf32>
    %1498 = arith.addf %1496, %1497 : vector<1x8xf32>
    %1499 = arith.mulf %1408, %1343 : vector<1x8xf32>
    %1500 = arith.mulf %1410, %1350 : vector<1x8xf32>
    %1501 = arith.addf %1499, %1500 : vector<1x8xf32>
    %1502 = arith.mulf %1412, %1399 : vector<1x8xf32>
    %1503 = arith.subf %1501, %1502 : vector<1x8xf32>
    %1504 = arith.mulf %1414, %1406 : vector<1x8xf32>
    %1505 = arith.addf %1503, %1504 : vector<1x8xf32>
    %1506 = arith.mulf %1408, %1350 : vector<1x8xf32>
    %1507 = arith.mulf %1410, %1343 : vector<1x8xf32>
    %1508 = arith.subf %1506, %1507 : vector<1x8xf32>
    %1509 = arith.mulf %1412, %1406 : vector<1x8xf32>
    %1510 = arith.subf %1508, %1509 : vector<1x8xf32>
    %1511 = arith.mulf %1414, %1399 : vector<1x8xf32>
    %1512 = arith.subf %1510, %1511 : vector<1x8xf32>
    %1513 = arith.mulf %1412, %1343 : vector<1x8xf32>
    %1514 = arith.mulf %1414, %1350 : vector<1x8xf32>
    %1515 = arith.addf %1513, %1514 : vector<1x8xf32>
    %1516 = arith.mulf %1408, %1399 : vector<1x8xf32>
    %1517 = arith.addf %1515, %1516 : vector<1x8xf32>
    %1518 = arith.mulf %1410, %1406 : vector<1x8xf32>
    %1519 = arith.subf %1517, %1518 : vector<1x8xf32>
    %1520 = arith.mulf %1412, %1350 : vector<1x8xf32>
    %1521 = arith.mulf %1414, %1343 : vector<1x8xf32>
    %1522 = arith.subf %1520, %1521 : vector<1x8xf32>
    %1523 = arith.mulf %1408, %1406 : vector<1x8xf32>
    %1524 = arith.addf %1522, %1523 : vector<1x8xf32>
    %1525 = arith.mulf %1410, %1399 : vector<1x8xf32>
    %1526 = arith.addf %1524, %1525 : vector<1x8xf32>
    %c32_192 = arith.constant 32 : index
    %c0_193 = arith.constant 0 : index
    %c0_194 = arith.constant 0 : index
    %1527 = vector.load %arg3[%c32_192, %c0_193, %c0_194] : memref<72x1x8xf32, #tpu.memory_space<vmem>>, vector<1x1x8xf32>
    %1528 = vector.shape_cast %1527 : vector<1x1x8xf32> to vector<1x8xf32>
    %c33_195 = arith.constant 33 : index
    %c0_196 = arith.constant 0 : index
    %c0_197 = arith.constant 0 : index
    %1529 = vector.load %arg3[%c33_195, %c0_196, %c0_197] : memref<72x1x8xf32, #tpu.memory_space<vmem>>, vector<1x1x8xf32>
    %1530 = vector.shape_cast %1529 : vector<1x1x8xf32> to vector<1x8xf32>
    %c34 = arith.constant 34 : index
    %c0_198 = arith.constant 0 : index
    %c0_199 = arith.constant 0 : index
    %1531 = vector.load %arg3[%c34, %c0_198, %c0_199] : memref<72x1x8xf32, #tpu.memory_space<vmem>>, vector<1x1x8xf32>
    %1532 = vector.shape_cast %1531 : vector<1x1x8xf32> to vector<1x8xf32>
    %c35 = arith.constant 35 : index
    %c0_200 = arith.constant 0 : index
    %c0_201 = arith.constant 0 : index
    %1533 = vector.load %arg3[%c35, %c0_200, %c0_201] : memref<72x1x8xf32, #tpu.memory_space<vmem>>, vector<1x1x8xf32>
    %1534 = vector.shape_cast %1533 : vector<1x1x8xf32> to vector<1x8xf32>
    %1535 = arith.mulf %1528, %1421 : vector<1x8xf32>
    %1536 = arith.mulf %1530, %1428 : vector<1x8xf32>
    %1537 = arith.addf %1535, %1536 : vector<1x8xf32>
    %1538 = arith.mulf %1532, %1449 : vector<1x8xf32>
    %1539 = arith.subf %1537, %1538 : vector<1x8xf32>
    %1540 = arith.mulf %1534, %1456 : vector<1x8xf32>
    %1541 = arith.addf %1539, %1540 : vector<1x8xf32>
    %1542 = arith.mulf %1528, %1428 : vector<1x8xf32>
    %1543 = arith.mulf %1530, %1421 : vector<1x8xf32>
    %1544 = arith.subf %1542, %1543 : vector<1x8xf32>
    %1545 = arith.mulf %1532, %1456 : vector<1x8xf32>
    %1546 = arith.subf %1544, %1545 : vector<1x8xf32>
    %1547 = arith.mulf %1534, %1449 : vector<1x8xf32>
    %1548 = arith.subf %1546, %1547 : vector<1x8xf32>
    %1549 = arith.mulf %1532, %1421 : vector<1x8xf32>
    %1550 = arith.mulf %1534, %1428 : vector<1x8xf32>
    %1551 = arith.addf %1549, %1550 : vector<1x8xf32>
    %1552 = arith.mulf %1528, %1449 : vector<1x8xf32>
    %1553 = arith.addf %1551, %1552 : vector<1x8xf32>
    %1554 = arith.mulf %1530, %1456 : vector<1x8xf32>
    %1555 = arith.subf %1553, %1554 : vector<1x8xf32>
    %1556 = arith.mulf %1532, %1428 : vector<1x8xf32>
    %1557 = arith.mulf %1534, %1421 : vector<1x8xf32>
    %1558 = arith.subf %1556, %1557 : vector<1x8xf32>
    %1559 = arith.mulf %1528, %1456 : vector<1x8xf32>
    %1560 = arith.addf %1558, %1559 : vector<1x8xf32>
    %1561 = arith.mulf %1530, %1449 : vector<1x8xf32>
    %1562 = arith.addf %1560, %1561 : vector<1x8xf32>
    %1563 = arith.mulf %1528, %1435 : vector<1x8xf32>
    %1564 = arith.mulf %1530, %1442 : vector<1x8xf32>
    %1565 = arith.addf %1563, %1564 : vector<1x8xf32>
    %1566 = arith.mulf %1532, %1463 : vector<1x8xf32>
    %1567 = arith.subf %1565, %1566 : vector<1x8xf32>
    %1568 = arith.mulf %1534, %1470 : vector<1x8xf32>
    %1569 = arith.addf %1567, %1568 : vector<1x8xf32>
    %1570 = arith.mulf %1528, %1442 : vector<1x8xf32>
    %1571 = arith.mulf %1530, %1435 : vector<1x8xf32>
    %1572 = arith.subf %1570, %1571 : vector<1x8xf32>
    %1573 = arith.mulf %1532, %1470 : vector<1x8xf32>
    %1574 = arith.subf %1572, %1573 : vector<1x8xf32>
    %1575 = arith.mulf %1534, %1463 : vector<1x8xf32>
    %1576 = arith.subf %1574, %1575 : vector<1x8xf32>
    %1577 = arith.mulf %1532, %1435 : vector<1x8xf32>
    %1578 = arith.mulf %1534, %1442 : vector<1x8xf32>
    %1579 = arith.addf %1577, %1578 : vector<1x8xf32>
    %1580 = arith.mulf %1528, %1463 : vector<1x8xf32>
    %1581 = arith.addf %1579, %1580 : vector<1x8xf32>
    %1582 = arith.mulf %1530, %1470 : vector<1x8xf32>
    %1583 = arith.subf %1581, %1582 : vector<1x8xf32>
    %1584 = arith.mulf %1532, %1442 : vector<1x8xf32>
    %1585 = arith.mulf %1534, %1435 : vector<1x8xf32>
    %1586 = arith.subf %1584, %1585 : vector<1x8xf32>
    %1587 = arith.mulf %1528, %1470 : vector<1x8xf32>
    %1588 = arith.addf %1586, %1587 : vector<1x8xf32>
    %1589 = arith.mulf %1530, %1463 : vector<1x8xf32>
    %1590 = arith.addf %1588, %1589 : vector<1x8xf32>
    %1591 = arith.mulf %1528, %1477 : vector<1x8xf32>
    %1592 = arith.mulf %1530, %1484 : vector<1x8xf32>
    %1593 = arith.addf %1591, %1592 : vector<1x8xf32>
    %1594 = arith.mulf %1532, %1505 : vector<1x8xf32>
    %1595 = arith.subf %1593, %1594 : vector<1x8xf32>
    %1596 = arith.mulf %1534, %1512 : vector<1x8xf32>
    %1597 = arith.addf %1595, %1596 : vector<1x8xf32>
    %1598 = arith.mulf %1528, %1484 : vector<1x8xf32>
    %1599 = arith.mulf %1530, %1477 : vector<1x8xf32>
    %1600 = arith.subf %1598, %1599 : vector<1x8xf32>
    %1601 = arith.mulf %1532, %1512 : vector<1x8xf32>
    %1602 = arith.subf %1600, %1601 : vector<1x8xf32>
    %1603 = arith.mulf %1534, %1505 : vector<1x8xf32>
    %1604 = arith.subf %1602, %1603 : vector<1x8xf32>
    %1605 = arith.mulf %1532, %1477 : vector<1x8xf32>
    %1606 = arith.mulf %1534, %1484 : vector<1x8xf32>
    %1607 = arith.addf %1605, %1606 : vector<1x8xf32>
    %1608 = arith.mulf %1528, %1505 : vector<1x8xf32>
    %1609 = arith.addf %1607, %1608 : vector<1x8xf32>
    %1610 = arith.mulf %1530, %1512 : vector<1x8xf32>
    %1611 = arith.subf %1609, %1610 : vector<1x8xf32>
    %1612 = arith.mulf %1532, %1484 : vector<1x8xf32>
    %1613 = arith.mulf %1534, %1477 : vector<1x8xf32>
    %1614 = arith.subf %1612, %1613 : vector<1x8xf32>
    %1615 = arith.mulf %1528, %1512 : vector<1x8xf32>
    %1616 = arith.addf %1614, %1615 : vector<1x8xf32>
    %1617 = arith.mulf %1530, %1505 : vector<1x8xf32>
    %1618 = arith.addf %1616, %1617 : vector<1x8xf32>
    %1619 = arith.mulf %1528, %1491 : vector<1x8xf32>
    %1620 = arith.mulf %1530, %1498 : vector<1x8xf32>
    %1621 = arith.addf %1619, %1620 : vector<1x8xf32>
    %1622 = arith.mulf %1532, %1519 : vector<1x8xf32>
    %1623 = arith.subf %1621, %1622 : vector<1x8xf32>
    %1624 = arith.mulf %1534, %1526 : vector<1x8xf32>
    %1625 = arith.addf %1623, %1624 : vector<1x8xf32>
    %1626 = arith.mulf %1528, %1498 : vector<1x8xf32>
    %1627 = arith.mulf %1530, %1491 : vector<1x8xf32>
    %1628 = arith.subf %1626, %1627 : vector<1x8xf32>
    %1629 = arith.mulf %1532, %1526 : vector<1x8xf32>
    %1630 = arith.subf %1628, %1629 : vector<1x8xf32>
    %1631 = arith.mulf %1534, %1519 : vector<1x8xf32>
    %1632 = arith.subf %1630, %1631 : vector<1x8xf32>
    %1633 = arith.mulf %1532, %1491 : vector<1x8xf32>
    %1634 = arith.mulf %1534, %1498 : vector<1x8xf32>
    %1635 = arith.addf %1633, %1634 : vector<1x8xf32>
    %1636 = arith.mulf %1528, %1519 : vector<1x8xf32>
    %1637 = arith.addf %1635, %1636 : vector<1x8xf32>
    %1638 = arith.mulf %1530, %1526 : vector<1x8xf32>
    %1639 = arith.subf %1637, %1638 : vector<1x8xf32>
    %1640 = arith.mulf %1532, %1498 : vector<1x8xf32>
    %1641 = arith.mulf %1534, %1491 : vector<1x8xf32>
    %1642 = arith.subf %1640, %1641 : vector<1x8xf32>
    %1643 = arith.mulf %1528, %1526 : vector<1x8xf32>
    %1644 = arith.addf %1642, %1643 : vector<1x8xf32>
    %1645 = arith.mulf %1530, %1519 : vector<1x8xf32>
    %1646 = arith.addf %1644, %1645 : vector<1x8xf32>
    %c36 = arith.constant 36 : index
    %c0_202 = arith.constant 0 : index
    %c0_203 = arith.constant 0 : index
    %1647 = vector.load %arg3[%c36, %c0_202, %c0_203] : memref<72x1x8xf32, #tpu.memory_space<vmem>>, vector<1x1x8xf32>
    %1648 = vector.shape_cast %1647 : vector<1x1x8xf32> to vector<1x8xf32>
    %c37 = arith.constant 37 : index
    %c0_204 = arith.constant 0 : index
    %c0_205 = arith.constant 0 : index
    %1649 = vector.load %arg3[%c37, %c0_204, %c0_205] : memref<72x1x8xf32, #tpu.memory_space<vmem>>, vector<1x1x8xf32>
    %1650 = vector.shape_cast %1649 : vector<1x1x8xf32> to vector<1x8xf32>
    %c38 = arith.constant 38 : index
    %c0_206 = arith.constant 0 : index
    %c0_207 = arith.constant 0 : index
    %1651 = vector.load %arg3[%c38, %c0_206, %c0_207] : memref<72x1x8xf32, #tpu.memory_space<vmem>>, vector<1x1x8xf32>
    %1652 = vector.shape_cast %1651 : vector<1x1x8xf32> to vector<1x8xf32>
    %c39 = arith.constant 39 : index
    %c0_208 = arith.constant 0 : index
    %c0_209 = arith.constant 0 : index
    %1653 = vector.load %arg3[%c39, %c0_208, %c0_209] : memref<72x1x8xf32, #tpu.memory_space<vmem>>, vector<1x1x8xf32>
    %1654 = vector.shape_cast %1653 : vector<1x1x8xf32> to vector<1x8xf32>
    %1655 = arith.mulf %1648, %1541 : vector<1x8xf32>
    %1656 = arith.mulf %1650, %1548 : vector<1x8xf32>
    %1657 = arith.addf %1655, %1656 : vector<1x8xf32>
    %1658 = arith.mulf %1652, %1625 : vector<1x8xf32>
    %1659 = arith.subf %1657, %1658 : vector<1x8xf32>
    %1660 = arith.mulf %1654, %1632 : vector<1x8xf32>
    %1661 = arith.addf %1659, %1660 : vector<1x8xf32>
    %1662 = arith.mulf %1648, %1548 : vector<1x8xf32>
    %1663 = arith.mulf %1650, %1541 : vector<1x8xf32>
    %1664 = arith.subf %1662, %1663 : vector<1x8xf32>
    %1665 = arith.mulf %1652, %1632 : vector<1x8xf32>
    %1666 = arith.subf %1664, %1665 : vector<1x8xf32>
    %1667 = arith.mulf %1654, %1625 : vector<1x8xf32>
    %1668 = arith.subf %1666, %1667 : vector<1x8xf32>
    %1669 = arith.mulf %1652, %1541 : vector<1x8xf32>
    %1670 = arith.mulf %1654, %1548 : vector<1x8xf32>
    %1671 = arith.addf %1669, %1670 : vector<1x8xf32>
    %1672 = arith.mulf %1648, %1625 : vector<1x8xf32>
    %1673 = arith.addf %1671, %1672 : vector<1x8xf32>
    %1674 = arith.mulf %1650, %1632 : vector<1x8xf32>
    %1675 = arith.subf %1673, %1674 : vector<1x8xf32>
    %1676 = arith.mulf %1652, %1548 : vector<1x8xf32>
    %1677 = arith.mulf %1654, %1541 : vector<1x8xf32>
    %1678 = arith.subf %1676, %1677 : vector<1x8xf32>
    %1679 = arith.mulf %1648, %1632 : vector<1x8xf32>
    %1680 = arith.addf %1678, %1679 : vector<1x8xf32>
    %1681 = arith.mulf %1650, %1625 : vector<1x8xf32>
    %1682 = arith.addf %1680, %1681 : vector<1x8xf32>
    %1683 = arith.mulf %1648, %1639 : vector<1x8xf32>
    %1684 = arith.mulf %1650, %1646 : vector<1x8xf32>
    %1685 = arith.addf %1683, %1684 : vector<1x8xf32>
    %1686 = arith.mulf %1652, %1555 : vector<1x8xf32>
    %1687 = arith.subf %1685, %1686 : vector<1x8xf32>
    %1688 = arith.mulf %1654, %1562 : vector<1x8xf32>
    %1689 = arith.addf %1687, %1688 : vector<1x8xf32>
    %1690 = arith.mulf %1648, %1646 : vector<1x8xf32>
    %1691 = arith.mulf %1650, %1639 : vector<1x8xf32>
    %1692 = arith.subf %1690, %1691 : vector<1x8xf32>
    %1693 = arith.mulf %1652, %1562 : vector<1x8xf32>
    %1694 = arith.subf %1692, %1693 : vector<1x8xf32>
    %1695 = arith.mulf %1654, %1555 : vector<1x8xf32>
    %1696 = arith.subf %1694, %1695 : vector<1x8xf32>
    %1697 = arith.mulf %1652, %1639 : vector<1x8xf32>
    %1698 = arith.mulf %1654, %1646 : vector<1x8xf32>
    %1699 = arith.addf %1697, %1698 : vector<1x8xf32>
    %1700 = arith.mulf %1648, %1555 : vector<1x8xf32>
    %1701 = arith.addf %1699, %1700 : vector<1x8xf32>
    %1702 = arith.mulf %1650, %1562 : vector<1x8xf32>
    %1703 = arith.subf %1701, %1702 : vector<1x8xf32>
    %1704 = arith.mulf %1652, %1646 : vector<1x8xf32>
    %1705 = arith.mulf %1654, %1639 : vector<1x8xf32>
    %1706 = arith.subf %1704, %1705 : vector<1x8xf32>
    %1707 = arith.mulf %1648, %1562 : vector<1x8xf32>
    %1708 = arith.addf %1706, %1707 : vector<1x8xf32>
    %1709 = arith.mulf %1650, %1555 : vector<1x8xf32>
    %1710 = arith.addf %1708, %1709 : vector<1x8xf32>
    %1711 = arith.mulf %1648, %1583 : vector<1x8xf32>
    %1712 = arith.mulf %1650, %1590 : vector<1x8xf32>
    %1713 = arith.addf %1711, %1712 : vector<1x8xf32>
    %1714 = arith.mulf %1652, %1611 : vector<1x8xf32>
    %1715 = arith.subf %1713, %1714 : vector<1x8xf32>
    %1716 = arith.mulf %1654, %1618 : vector<1x8xf32>
    %1717 = arith.addf %1715, %1716 : vector<1x8xf32>
    %1718 = arith.mulf %1648, %1590 : vector<1x8xf32>
    %1719 = arith.mulf %1650, %1583 : vector<1x8xf32>
    %1720 = arith.subf %1718, %1719 : vector<1x8xf32>
    %1721 = arith.mulf %1652, %1618 : vector<1x8xf32>
    %1722 = arith.subf %1720, %1721 : vector<1x8xf32>
    %1723 = arith.mulf %1654, %1611 : vector<1x8xf32>
    %1724 = arith.subf %1722, %1723 : vector<1x8xf32>
    %1725 = arith.mulf %1652, %1583 : vector<1x8xf32>
    %1726 = arith.mulf %1654, %1590 : vector<1x8xf32>
    %1727 = arith.addf %1725, %1726 : vector<1x8xf32>
    %1728 = arith.mulf %1648, %1611 : vector<1x8xf32>
    %1729 = arith.addf %1727, %1728 : vector<1x8xf32>
    %1730 = arith.mulf %1650, %1618 : vector<1x8xf32>
    %1731 = arith.subf %1729, %1730 : vector<1x8xf32>
    %1732 = arith.mulf %1652, %1590 : vector<1x8xf32>
    %1733 = arith.mulf %1654, %1583 : vector<1x8xf32>
    %1734 = arith.subf %1732, %1733 : vector<1x8xf32>
    %1735 = arith.mulf %1648, %1618 : vector<1x8xf32>
    %1736 = arith.addf %1734, %1735 : vector<1x8xf32>
    %1737 = arith.mulf %1650, %1611 : vector<1x8xf32>
    %1738 = arith.addf %1736, %1737 : vector<1x8xf32>
    %1739 = arith.mulf %1648, %1597 : vector<1x8xf32>
    %1740 = arith.mulf %1650, %1604 : vector<1x8xf32>
    %1741 = arith.addf %1739, %1740 : vector<1x8xf32>
    %1742 = arith.mulf %1652, %1569 : vector<1x8xf32>
    %1743 = arith.subf %1741, %1742 : vector<1x8xf32>
    %1744 = arith.mulf %1654, %1576 : vector<1x8xf32>
    %1745 = arith.addf %1743, %1744 : vector<1x8xf32>
    %1746 = arith.mulf %1648, %1604 : vector<1x8xf32>
    %1747 = arith.mulf %1650, %1597 : vector<1x8xf32>
    %1748 = arith.subf %1746, %1747 : vector<1x8xf32>
    %1749 = arith.mulf %1652, %1576 : vector<1x8xf32>
    %1750 = arith.subf %1748, %1749 : vector<1x8xf32>
    %1751 = arith.mulf %1654, %1569 : vector<1x8xf32>
    %1752 = arith.subf %1750, %1751 : vector<1x8xf32>
    %1753 = arith.mulf %1652, %1597 : vector<1x8xf32>
    %1754 = arith.mulf %1654, %1604 : vector<1x8xf32>
    %1755 = arith.addf %1753, %1754 : vector<1x8xf32>
    %1756 = arith.mulf %1648, %1569 : vector<1x8xf32>
    %1757 = arith.addf %1755, %1756 : vector<1x8xf32>
    %1758 = arith.mulf %1650, %1576 : vector<1x8xf32>
    %1759 = arith.subf %1757, %1758 : vector<1x8xf32>
    %1760 = arith.mulf %1652, %1604 : vector<1x8xf32>
    %1761 = arith.mulf %1654, %1597 : vector<1x8xf32>
    %1762 = arith.subf %1760, %1761 : vector<1x8xf32>
    %1763 = arith.mulf %1648, %1576 : vector<1x8xf32>
    %1764 = arith.addf %1762, %1763 : vector<1x8xf32>
    %1765 = arith.mulf %1650, %1569 : vector<1x8xf32>
    %1766 = arith.addf %1764, %1765 : vector<1x8xf32>
    %c40 = arith.constant 40 : index
    %c0_210 = arith.constant 0 : index
    %c0_211 = arith.constant 0 : index
    %1767 = vector.load %arg3[%c40, %c0_210, %c0_211] : memref<72x1x8xf32, #tpu.memory_space<vmem>>, vector<1x1x8xf32>
    %1768 = vector.shape_cast %1767 : vector<1x1x8xf32> to vector<1x8xf32>
    %c41 = arith.constant 41 : index
    %c0_212 = arith.constant 0 : index
    %c0_213 = arith.constant 0 : index
    %1769 = vector.load %arg3[%c41, %c0_212, %c0_213] : memref<72x1x8xf32, #tpu.memory_space<vmem>>, vector<1x1x8xf32>
    %1770 = vector.shape_cast %1769 : vector<1x1x8xf32> to vector<1x8xf32>
    %c42 = arith.constant 42 : index
    %c0_214 = arith.constant 0 : index
    %c0_215 = arith.constant 0 : index
    %1771 = vector.load %arg3[%c42, %c0_214, %c0_215] : memref<72x1x8xf32, #tpu.memory_space<vmem>>, vector<1x1x8xf32>
    %1772 = vector.shape_cast %1771 : vector<1x1x8xf32> to vector<1x8xf32>
    %c43 = arith.constant 43 : index
    %c0_216 = arith.constant 0 : index
    %c0_217 = arith.constant 0 : index
    %1773 = vector.load %arg3[%c43, %c0_216, %c0_217] : memref<72x1x8xf32, #tpu.memory_space<vmem>>, vector<1x1x8xf32>
    %1774 = vector.shape_cast %1773 : vector<1x1x8xf32> to vector<1x8xf32>
    %1775 = arith.mulf %1768, %1661 : vector<1x8xf32>
    %1776 = arith.mulf %1770, %1668 : vector<1x8xf32>
    %1777 = arith.addf %1775, %1776 : vector<1x8xf32>
    %1778 = arith.mulf %1772, %1717 : vector<1x8xf32>
    %1779 = arith.subf %1777, %1778 : vector<1x8xf32>
    %1780 = arith.mulf %1774, %1724 : vector<1x8xf32>
    %1781 = arith.addf %1779, %1780 : vector<1x8xf32>
    %1782 = arith.mulf %1768, %1668 : vector<1x8xf32>
    %1783 = arith.mulf %1770, %1661 : vector<1x8xf32>
    %1784 = arith.subf %1782, %1783 : vector<1x8xf32>
    %1785 = arith.mulf %1772, %1724 : vector<1x8xf32>
    %1786 = arith.subf %1784, %1785 : vector<1x8xf32>
    %1787 = arith.mulf %1774, %1717 : vector<1x8xf32>
    %1788 = arith.subf %1786, %1787 : vector<1x8xf32>
    %1789 = arith.mulf %1772, %1661 : vector<1x8xf32>
    %1790 = arith.mulf %1774, %1668 : vector<1x8xf32>
    %1791 = arith.addf %1789, %1790 : vector<1x8xf32>
    %1792 = arith.mulf %1768, %1717 : vector<1x8xf32>
    %1793 = arith.addf %1791, %1792 : vector<1x8xf32>
    %1794 = arith.mulf %1770, %1724 : vector<1x8xf32>
    %1795 = arith.subf %1793, %1794 : vector<1x8xf32>
    %1796 = arith.mulf %1772, %1668 : vector<1x8xf32>
    %1797 = arith.mulf %1774, %1661 : vector<1x8xf32>
    %1798 = arith.subf %1796, %1797 : vector<1x8xf32>
    %1799 = arith.mulf %1768, %1724 : vector<1x8xf32>
    %1800 = arith.addf %1798, %1799 : vector<1x8xf32>
    %1801 = arith.mulf %1770, %1717 : vector<1x8xf32>
    %1802 = arith.addf %1800, %1801 : vector<1x8xf32>
    %1803 = arith.mulf %1768, %1689 : vector<1x8xf32>
    %1804 = arith.mulf %1770, %1696 : vector<1x8xf32>
    %1805 = arith.addf %1803, %1804 : vector<1x8xf32>
    %1806 = arith.mulf %1772, %1745 : vector<1x8xf32>
    %1807 = arith.subf %1805, %1806 : vector<1x8xf32>
    %1808 = arith.mulf %1774, %1752 : vector<1x8xf32>
    %1809 = arith.addf %1807, %1808 : vector<1x8xf32>
    %1810 = arith.mulf %1768, %1696 : vector<1x8xf32>
    %1811 = arith.mulf %1770, %1689 : vector<1x8xf32>
    %1812 = arith.subf %1810, %1811 : vector<1x8xf32>
    %1813 = arith.mulf %1772, %1752 : vector<1x8xf32>
    %1814 = arith.subf %1812, %1813 : vector<1x8xf32>
    %1815 = arith.mulf %1774, %1745 : vector<1x8xf32>
    %1816 = arith.subf %1814, %1815 : vector<1x8xf32>
    %1817 = arith.mulf %1772, %1689 : vector<1x8xf32>
    %1818 = arith.mulf %1774, %1696 : vector<1x8xf32>
    %1819 = arith.addf %1817, %1818 : vector<1x8xf32>
    %1820 = arith.mulf %1768, %1745 : vector<1x8xf32>
    %1821 = arith.addf %1819, %1820 : vector<1x8xf32>
    %1822 = arith.mulf %1770, %1752 : vector<1x8xf32>
    %1823 = arith.subf %1821, %1822 : vector<1x8xf32>
    %1824 = arith.mulf %1772, %1696 : vector<1x8xf32>
    %1825 = arith.mulf %1774, %1689 : vector<1x8xf32>
    %1826 = arith.subf %1824, %1825 : vector<1x8xf32>
    %1827 = arith.mulf %1768, %1752 : vector<1x8xf32>
    %1828 = arith.addf %1826, %1827 : vector<1x8xf32>
    %1829 = arith.mulf %1770, %1745 : vector<1x8xf32>
    %1830 = arith.addf %1828, %1829 : vector<1x8xf32>
    %1831 = arith.mulf %1768, %1675 : vector<1x8xf32>
    %1832 = arith.mulf %1770, %1682 : vector<1x8xf32>
    %1833 = arith.addf %1831, %1832 : vector<1x8xf32>
    %1834 = arith.mulf %1772, %1731 : vector<1x8xf32>
    %1835 = arith.subf %1833, %1834 : vector<1x8xf32>
    %1836 = arith.mulf %1774, %1738 : vector<1x8xf32>
    %1837 = arith.addf %1835, %1836 : vector<1x8xf32>
    %1838 = arith.mulf %1768, %1682 : vector<1x8xf32>
    %1839 = arith.mulf %1770, %1675 : vector<1x8xf32>
    %1840 = arith.subf %1838, %1839 : vector<1x8xf32>
    %1841 = arith.mulf %1772, %1738 : vector<1x8xf32>
    %1842 = arith.subf %1840, %1841 : vector<1x8xf32>
    %1843 = arith.mulf %1774, %1731 : vector<1x8xf32>
    %1844 = arith.subf %1842, %1843 : vector<1x8xf32>
    %1845 = arith.mulf %1772, %1675 : vector<1x8xf32>
    %1846 = arith.mulf %1774, %1682 : vector<1x8xf32>
    %1847 = arith.addf %1845, %1846 : vector<1x8xf32>
    %1848 = arith.mulf %1768, %1731 : vector<1x8xf32>
    %1849 = arith.addf %1847, %1848 : vector<1x8xf32>
    %1850 = arith.mulf %1770, %1738 : vector<1x8xf32>
    %1851 = arith.subf %1849, %1850 : vector<1x8xf32>
    %1852 = arith.mulf %1772, %1682 : vector<1x8xf32>
    %1853 = arith.mulf %1774, %1675 : vector<1x8xf32>
    %1854 = arith.subf %1852, %1853 : vector<1x8xf32>
    %1855 = arith.mulf %1768, %1738 : vector<1x8xf32>
    %1856 = arith.addf %1854, %1855 : vector<1x8xf32>
    %1857 = arith.mulf %1770, %1731 : vector<1x8xf32>
    %1858 = arith.addf %1856, %1857 : vector<1x8xf32>
    %1859 = arith.mulf %1768, %1703 : vector<1x8xf32>
    %1860 = arith.mulf %1770, %1710 : vector<1x8xf32>
    %1861 = arith.addf %1859, %1860 : vector<1x8xf32>
    %1862 = arith.mulf %1772, %1759 : vector<1x8xf32>
    %1863 = arith.subf %1861, %1862 : vector<1x8xf32>
    %1864 = arith.mulf %1774, %1766 : vector<1x8xf32>
    %1865 = arith.addf %1863, %1864 : vector<1x8xf32>
    %1866 = arith.mulf %1768, %1710 : vector<1x8xf32>
    %1867 = arith.mulf %1770, %1703 : vector<1x8xf32>
    %1868 = arith.subf %1866, %1867 : vector<1x8xf32>
    %1869 = arith.mulf %1772, %1766 : vector<1x8xf32>
    %1870 = arith.subf %1868, %1869 : vector<1x8xf32>
    %1871 = arith.mulf %1774, %1759 : vector<1x8xf32>
    %1872 = arith.subf %1870, %1871 : vector<1x8xf32>
    %1873 = arith.mulf %1772, %1703 : vector<1x8xf32>
    %1874 = arith.mulf %1774, %1710 : vector<1x8xf32>
    %1875 = arith.addf %1873, %1874 : vector<1x8xf32>
    %1876 = arith.mulf %1768, %1759 : vector<1x8xf32>
    %1877 = arith.addf %1875, %1876 : vector<1x8xf32>
    %1878 = arith.mulf %1770, %1766 : vector<1x8xf32>
    %1879 = arith.subf %1877, %1878 : vector<1x8xf32>
    %1880 = arith.mulf %1772, %1710 : vector<1x8xf32>
    %1881 = arith.mulf %1774, %1703 : vector<1x8xf32>
    %1882 = arith.subf %1880, %1881 : vector<1x8xf32>
    %1883 = arith.mulf %1768, %1766 : vector<1x8xf32>
    %1884 = arith.addf %1882, %1883 : vector<1x8xf32>
    %1885 = arith.mulf %1770, %1759 : vector<1x8xf32>
    %1886 = arith.addf %1884, %1885 : vector<1x8xf32>
    %c44 = arith.constant 44 : index
    %c0_218 = arith.constant 0 : index
    %c0_219 = arith.constant 0 : index
    %1887 = vector.load %arg3[%c44, %c0_218, %c0_219] : memref<72x1x8xf32, #tpu.memory_space<vmem>>, vector<1x1x8xf32>
    %1888 = vector.shape_cast %1887 : vector<1x1x8xf32> to vector<1x8xf32>
    %c45 = arith.constant 45 : index
    %c0_220 = arith.constant 0 : index
    %c0_221 = arith.constant 0 : index
    %1889 = vector.load %arg3[%c45, %c0_220, %c0_221] : memref<72x1x8xf32, #tpu.memory_space<vmem>>, vector<1x1x8xf32>
    %1890 = vector.shape_cast %1889 : vector<1x1x8xf32> to vector<1x8xf32>
    %c46 = arith.constant 46 : index
    %c0_222 = arith.constant 0 : index
    %c0_223 = arith.constant 0 : index
    %1891 = vector.load %arg3[%c46, %c0_222, %c0_223] : memref<72x1x8xf32, #tpu.memory_space<vmem>>, vector<1x1x8xf32>
    %1892 = vector.shape_cast %1891 : vector<1x1x8xf32> to vector<1x8xf32>
    %c47 = arith.constant 47 : index
    %c0_224 = arith.constant 0 : index
    %c0_225 = arith.constant 0 : index
    %1893 = vector.load %arg3[%c47, %c0_224, %c0_225] : memref<72x1x8xf32, #tpu.memory_space<vmem>>, vector<1x1x8xf32>
    %1894 = vector.shape_cast %1893 : vector<1x1x8xf32> to vector<1x8xf32>
    %1895 = arith.mulf %1888, %1781 : vector<1x8xf32>
    %1896 = arith.mulf %1890, %1788 : vector<1x8xf32>
    %1897 = arith.addf %1895, %1896 : vector<1x8xf32>
    %1898 = arith.mulf %1892, %1809 : vector<1x8xf32>
    %1899 = arith.subf %1897, %1898 : vector<1x8xf32>
    %1900 = arith.mulf %1894, %1816 : vector<1x8xf32>
    %1901 = arith.addf %1899, %1900 : vector<1x8xf32>
    %1902 = arith.mulf %1888, %1788 : vector<1x8xf32>
    %1903 = arith.mulf %1890, %1781 : vector<1x8xf32>
    %1904 = arith.subf %1902, %1903 : vector<1x8xf32>
    %1905 = arith.mulf %1892, %1816 : vector<1x8xf32>
    %1906 = arith.subf %1904, %1905 : vector<1x8xf32>
    %1907 = arith.mulf %1894, %1809 : vector<1x8xf32>
    %1908 = arith.subf %1906, %1907 : vector<1x8xf32>
    %1909 = arith.mulf %1892, %1781 : vector<1x8xf32>
    %1910 = arith.mulf %1894, %1788 : vector<1x8xf32>
    %1911 = arith.addf %1909, %1910 : vector<1x8xf32>
    %1912 = arith.mulf %1888, %1809 : vector<1x8xf32>
    %1913 = arith.addf %1911, %1912 : vector<1x8xf32>
    %1914 = arith.mulf %1890, %1816 : vector<1x8xf32>
    %1915 = arith.subf %1913, %1914 : vector<1x8xf32>
    %1916 = arith.mulf %1892, %1788 : vector<1x8xf32>
    %1917 = arith.mulf %1894, %1781 : vector<1x8xf32>
    %1918 = arith.subf %1916, %1917 : vector<1x8xf32>
    %1919 = arith.mulf %1888, %1816 : vector<1x8xf32>
    %1920 = arith.addf %1918, %1919 : vector<1x8xf32>
    %1921 = arith.mulf %1890, %1809 : vector<1x8xf32>
    %1922 = arith.addf %1920, %1921 : vector<1x8xf32>
    %1923 = arith.mulf %1888, %1795 : vector<1x8xf32>
    %1924 = arith.mulf %1890, %1802 : vector<1x8xf32>
    %1925 = arith.addf %1923, %1924 : vector<1x8xf32>
    %1926 = arith.mulf %1892, %1823 : vector<1x8xf32>
    %1927 = arith.subf %1925, %1926 : vector<1x8xf32>
    %1928 = arith.mulf %1894, %1830 : vector<1x8xf32>
    %1929 = arith.addf %1927, %1928 : vector<1x8xf32>
    %1930 = arith.mulf %1888, %1802 : vector<1x8xf32>
    %1931 = arith.mulf %1890, %1795 : vector<1x8xf32>
    %1932 = arith.subf %1930, %1931 : vector<1x8xf32>
    %1933 = arith.mulf %1892, %1830 : vector<1x8xf32>
    %1934 = arith.subf %1932, %1933 : vector<1x8xf32>
    %1935 = arith.mulf %1894, %1823 : vector<1x8xf32>
    %1936 = arith.subf %1934, %1935 : vector<1x8xf32>
    %1937 = arith.mulf %1892, %1795 : vector<1x8xf32>
    %1938 = arith.mulf %1894, %1802 : vector<1x8xf32>
    %1939 = arith.addf %1937, %1938 : vector<1x8xf32>
    %1940 = arith.mulf %1888, %1823 : vector<1x8xf32>
    %1941 = arith.addf %1939, %1940 : vector<1x8xf32>
    %1942 = arith.mulf %1890, %1830 : vector<1x8xf32>
    %1943 = arith.subf %1941, %1942 : vector<1x8xf32>
    %1944 = arith.mulf %1892, %1802 : vector<1x8xf32>
    %1945 = arith.mulf %1894, %1795 : vector<1x8xf32>
    %1946 = arith.subf %1944, %1945 : vector<1x8xf32>
    %1947 = arith.mulf %1888, %1830 : vector<1x8xf32>
    %1948 = arith.addf %1946, %1947 : vector<1x8xf32>
    %1949 = arith.mulf %1890, %1823 : vector<1x8xf32>
    %1950 = arith.addf %1948, %1949 : vector<1x8xf32>
    %1951 = arith.mulf %1888, %1837 : vector<1x8xf32>
    %1952 = arith.mulf %1890, %1844 : vector<1x8xf32>
    %1953 = arith.addf %1951, %1952 : vector<1x8xf32>
    %1954 = arith.mulf %1892, %1865 : vector<1x8xf32>
    %1955 = arith.subf %1953, %1954 : vector<1x8xf32>
    %1956 = arith.mulf %1894, %1872 : vector<1x8xf32>
    %1957 = arith.addf %1955, %1956 : vector<1x8xf32>
    %1958 = arith.mulf %1888, %1844 : vector<1x8xf32>
    %1959 = arith.mulf %1890, %1837 : vector<1x8xf32>
    %1960 = arith.subf %1958, %1959 : vector<1x8xf32>
    %1961 = arith.mulf %1892, %1872 : vector<1x8xf32>
    %1962 = arith.subf %1960, %1961 : vector<1x8xf32>
    %1963 = arith.mulf %1894, %1865 : vector<1x8xf32>
    %1964 = arith.subf %1962, %1963 : vector<1x8xf32>
    %1965 = arith.mulf %1892, %1837 : vector<1x8xf32>
    %1966 = arith.mulf %1894, %1844 : vector<1x8xf32>
    %1967 = arith.addf %1965, %1966 : vector<1x8xf32>
    %1968 = arith.mulf %1888, %1865 : vector<1x8xf32>
    %1969 = arith.addf %1967, %1968 : vector<1x8xf32>
    %1970 = arith.mulf %1890, %1872 : vector<1x8xf32>
    %1971 = arith.subf %1969, %1970 : vector<1x8xf32>
    %1972 = arith.mulf %1892, %1844 : vector<1x8xf32>
    %1973 = arith.mulf %1894, %1837 : vector<1x8xf32>
    %1974 = arith.subf %1972, %1973 : vector<1x8xf32>
    %1975 = arith.mulf %1888, %1872 : vector<1x8xf32>
    %1976 = arith.addf %1974, %1975 : vector<1x8xf32>
    %1977 = arith.mulf %1890, %1865 : vector<1x8xf32>
    %1978 = arith.addf %1976, %1977 : vector<1x8xf32>
    %1979 = arith.mulf %1888, %1851 : vector<1x8xf32>
    %1980 = arith.mulf %1890, %1858 : vector<1x8xf32>
    %1981 = arith.addf %1979, %1980 : vector<1x8xf32>
    %1982 = arith.mulf %1892, %1879 : vector<1x8xf32>
    %1983 = arith.subf %1981, %1982 : vector<1x8xf32>
    %1984 = arith.mulf %1894, %1886 : vector<1x8xf32>
    %1985 = arith.addf %1983, %1984 : vector<1x8xf32>
    %1986 = arith.mulf %1888, %1858 : vector<1x8xf32>
    %1987 = arith.mulf %1890, %1851 : vector<1x8xf32>
    %1988 = arith.subf %1986, %1987 : vector<1x8xf32>
    %1989 = arith.mulf %1892, %1886 : vector<1x8xf32>
    %1990 = arith.subf %1988, %1989 : vector<1x8xf32>
    %1991 = arith.mulf %1894, %1879 : vector<1x8xf32>
    %1992 = arith.subf %1990, %1991 : vector<1x8xf32>
    %1993 = arith.mulf %1892, %1851 : vector<1x8xf32>
    %1994 = arith.mulf %1894, %1858 : vector<1x8xf32>
    %1995 = arith.addf %1993, %1994 : vector<1x8xf32>
    %1996 = arith.mulf %1888, %1879 : vector<1x8xf32>
    %1997 = arith.addf %1995, %1996 : vector<1x8xf32>
    %1998 = arith.mulf %1890, %1886 : vector<1x8xf32>
    %1999 = arith.subf %1997, %1998 : vector<1x8xf32>
    %2000 = arith.mulf %1892, %1858 : vector<1x8xf32>
    %2001 = arith.mulf %1894, %1851 : vector<1x8xf32>
    %2002 = arith.subf %2000, %2001 : vector<1x8xf32>
    %2003 = arith.mulf %1888, %1886 : vector<1x8xf32>
    %2004 = arith.addf %2002, %2003 : vector<1x8xf32>
    %2005 = arith.mulf %1890, %1879 : vector<1x8xf32>
    %2006 = arith.addf %2004, %2005 : vector<1x8xf32>
    %2007 = arith.mulf %415, %1901 : vector<1x8xf32>
    %2008 = arith.mulf %418, %1978 : vector<1x8xf32>
    %2009 = arith.addf %2007, %2008 : vector<1x8xf32>
    %2010 = arith.mulf %415, %1908 : vector<1x8xf32>
    %2011 = arith.mulf %418, %1971 : vector<1x8xf32>
    %2012 = arith.subf %2010, %2011 : vector<1x8xf32>
    %2013 = arith.mulf %415, %1971 : vector<1x8xf32>
    %2014 = arith.mulf %418, %1908 : vector<1x8xf32>
    %2015 = arith.addf %2013, %2014 : vector<1x8xf32>
    %2016 = arith.mulf %415, %1978 : vector<1x8xf32>
    %2017 = arith.mulf %418, %1901 : vector<1x8xf32>
    %2018 = arith.subf %2016, %2017 : vector<1x8xf32>
    %2019 = arith.mulf %415, %1985 : vector<1x8xf32>
    %2020 = arith.mulf %418, %1950 : vector<1x8xf32>
    %2021 = arith.addf %2019, %2020 : vector<1x8xf32>
    %2022 = arith.mulf %415, %1992 : vector<1x8xf32>
    %2023 = arith.mulf %418, %1943 : vector<1x8xf32>
    %2024 = arith.subf %2022, %2023 : vector<1x8xf32>
    %2025 = arith.mulf %415, %1943 : vector<1x8xf32>
    %2026 = arith.mulf %418, %1992 : vector<1x8xf32>
    %2027 = arith.addf %2025, %2026 : vector<1x8xf32>
    %2028 = arith.mulf %415, %1950 : vector<1x8xf32>
    %2029 = arith.mulf %418, %1985 : vector<1x8xf32>
    %2030 = arith.subf %2028, %2029 : vector<1x8xf32>
    %2031 = arith.mulf %415, %1999 : vector<1x8xf32>
    %2032 = arith.mulf %418, %1936 : vector<1x8xf32>
    %2033 = arith.addf %2031, %2032 : vector<1x8xf32>
    %2034 = arith.mulf %415, %2006 : vector<1x8xf32>
    %2035 = arith.mulf %418, %1929 : vector<1x8xf32>
    %2036 = arith.subf %2034, %2035 : vector<1x8xf32>
    %2037 = arith.mulf %415, %1929 : vector<1x8xf32>
    %2038 = arith.mulf %418, %2006 : vector<1x8xf32>
    %2039 = arith.addf %2037, %2038 : vector<1x8xf32>
    %2040 = arith.mulf %415, %1936 : vector<1x8xf32>
    %2041 = arith.mulf %418, %1999 : vector<1x8xf32>
    %2042 = arith.subf %2040, %2041 : vector<1x8xf32>
    %2043 = arith.mulf %415, %1915 : vector<1x8xf32>
    %2044 = arith.mulf %418, %1964 : vector<1x8xf32>
    %2045 = arith.addf %2043, %2044 : vector<1x8xf32>
    %2046 = arith.mulf %415, %1922 : vector<1x8xf32>
    %2047 = arith.mulf %418, %1957 : vector<1x8xf32>
    %2048 = arith.subf %2046, %2047 : vector<1x8xf32>
    %2049 = arith.mulf %415, %1957 : vector<1x8xf32>
    %2050 = arith.mulf %418, %1922 : vector<1x8xf32>
    %2051 = arith.addf %2049, %2050 : vector<1x8xf32>
    %2052 = arith.mulf %415, %1964 : vector<1x8xf32>
    %2053 = arith.mulf %418, %1915 : vector<1x8xf32>
    %2054 = arith.subf %2052, %2053 : vector<1x8xf32>
    %2055 = arith.mulf %416, %2009 : vector<1x8xf32>
    %2056 = arith.mulf %419, %2036 : vector<1x8xf32>
    %2057 = arith.addf %2055, %2056 : vector<1x8xf32>
    %2058 = arith.mulf %416, %2012 : vector<1x8xf32>
    %2059 = arith.mulf %419, %2033 : vector<1x8xf32>
    %2060 = arith.subf %2058, %2059 : vector<1x8xf32>
    %2061 = arith.mulf %416, %2033 : vector<1x8xf32>
    %2062 = arith.mulf %419, %2012 : vector<1x8xf32>
    %2063 = arith.addf %2061, %2062 : vector<1x8xf32>
    %2064 = arith.mulf %416, %2036 : vector<1x8xf32>
    %2065 = arith.mulf %419, %2009 : vector<1x8xf32>
    %2066 = arith.subf %2064, %2065 : vector<1x8xf32>
    %2067 = arith.mulf %416, %2021 : vector<1x8xf32>
    %2068 = arith.mulf %419, %2048 : vector<1x8xf32>
    %2069 = arith.addf %2067, %2068 : vector<1x8xf32>
    %2070 = arith.mulf %416, %2024 : vector<1x8xf32>
    %2071 = arith.mulf %419, %2045 : vector<1x8xf32>
    %2072 = arith.subf %2070, %2071 : vector<1x8xf32>
    %2073 = arith.mulf %416, %2045 : vector<1x8xf32>
    %2074 = arith.mulf %419, %2024 : vector<1x8xf32>
    %2075 = arith.addf %2073, %2074 : vector<1x8xf32>
    %2076 = arith.mulf %416, %2048 : vector<1x8xf32>
    %2077 = arith.mulf %419, %2021 : vector<1x8xf32>
    %2078 = arith.subf %2076, %2077 : vector<1x8xf32>
    %2079 = arith.mulf %416, %2015 : vector<1x8xf32>
    %2080 = arith.mulf %419, %2042 : vector<1x8xf32>
    %2081 = arith.addf %2079, %2080 : vector<1x8xf32>
    %2082 = arith.mulf %416, %2018 : vector<1x8xf32>
    %2083 = arith.mulf %419, %2039 : vector<1x8xf32>
    %2084 = arith.subf %2082, %2083 : vector<1x8xf32>
    %2085 = arith.mulf %416, %2039 : vector<1x8xf32>
    %2086 = arith.mulf %419, %2018 : vector<1x8xf32>
    %2087 = arith.addf %2085, %2086 : vector<1x8xf32>
    %2088 = arith.mulf %416, %2042 : vector<1x8xf32>
    %2089 = arith.mulf %419, %2015 : vector<1x8xf32>
    %2090 = arith.subf %2088, %2089 : vector<1x8xf32>
    %2091 = arith.mulf %416, %2027 : vector<1x8xf32>
    %2092 = arith.mulf %419, %2054 : vector<1x8xf32>
    %2093 = arith.addf %2091, %2092 : vector<1x8xf32>
    %2094 = arith.mulf %416, %2030 : vector<1x8xf32>
    %2095 = arith.mulf %419, %2051 : vector<1x8xf32>
    %2096 = arith.subf %2094, %2095 : vector<1x8xf32>
    %2097 = arith.mulf %416, %2051 : vector<1x8xf32>
    %2098 = arith.mulf %419, %2030 : vector<1x8xf32>
    %2099 = arith.addf %2097, %2098 : vector<1x8xf32>
    %2100 = arith.mulf %416, %2054 : vector<1x8xf32>
    %2101 = arith.mulf %419, %2027 : vector<1x8xf32>
    %2102 = arith.subf %2100, %2101 : vector<1x8xf32>
    %2103 = arith.mulf %417, %2057 : vector<1x8xf32>
    %2104 = arith.mulf %420, %2072 : vector<1x8xf32>
    %2105 = arith.addf %2103, %2104 : vector<1x8xf32>
    %2106 = arith.mulf %417, %2060 : vector<1x8xf32>
    %2107 = arith.mulf %420, %2069 : vector<1x8xf32>
    %2108 = arith.subf %2106, %2107 : vector<1x8xf32>
    %2109 = arith.mulf %417, %2069 : vector<1x8xf32>
    %2110 = arith.mulf %420, %2060 : vector<1x8xf32>
    %2111 = arith.addf %2109, %2110 : vector<1x8xf32>
    %2112 = arith.mulf %417, %2072 : vector<1x8xf32>
    %2113 = arith.mulf %420, %2057 : vector<1x8xf32>
    %2114 = arith.subf %2112, %2113 : vector<1x8xf32>
    %2115 = arith.mulf %417, %2063 : vector<1x8xf32>
    %2116 = arith.mulf %420, %2078 : vector<1x8xf32>
    %2117 = arith.addf %2115, %2116 : vector<1x8xf32>
    %2118 = arith.mulf %417, %2066 : vector<1x8xf32>
    %2119 = arith.mulf %420, %2075 : vector<1x8xf32>
    %2120 = arith.subf %2118, %2119 : vector<1x8xf32>
    %2121 = arith.mulf %417, %2075 : vector<1x8xf32>
    %2122 = arith.mulf %420, %2066 : vector<1x8xf32>
    %2123 = arith.addf %2121, %2122 : vector<1x8xf32>
    %2124 = arith.mulf %417, %2078 : vector<1x8xf32>
    %2125 = arith.mulf %420, %2063 : vector<1x8xf32>
    %2126 = arith.subf %2124, %2125 : vector<1x8xf32>
    %2127 = arith.mulf %417, %2081 : vector<1x8xf32>
    %2128 = arith.mulf %420, %2096 : vector<1x8xf32>
    %2129 = arith.addf %2127, %2128 : vector<1x8xf32>
    %2130 = arith.mulf %417, %2084 : vector<1x8xf32>
    %2131 = arith.mulf %420, %2093 : vector<1x8xf32>
    %2132 = arith.subf %2130, %2131 : vector<1x8xf32>
    %2133 = arith.mulf %417, %2093 : vector<1x8xf32>
    %2134 = arith.mulf %420, %2084 : vector<1x8xf32>
    %2135 = arith.addf %2133, %2134 : vector<1x8xf32>
    %2136 = arith.mulf %417, %2096 : vector<1x8xf32>
    %2137 = arith.mulf %420, %2081 : vector<1x8xf32>
    %2138 = arith.subf %2136, %2137 : vector<1x8xf32>
    %2139 = arith.mulf %417, %2087 : vector<1x8xf32>
    %2140 = arith.mulf %420, %2102 : vector<1x8xf32>
    %2141 = arith.addf %2139, %2140 : vector<1x8xf32>
    %2142 = arith.mulf %417, %2090 : vector<1x8xf32>
    %2143 = arith.mulf %420, %2099 : vector<1x8xf32>
    %2144 = arith.subf %2142, %2143 : vector<1x8xf32>
    %2145 = arith.mulf %417, %2099 : vector<1x8xf32>
    %2146 = arith.mulf %420, %2090 : vector<1x8xf32>
    %2147 = arith.addf %2145, %2146 : vector<1x8xf32>
    %2148 = arith.mulf %417, %2102 : vector<1x8xf32>
    %2149 = arith.mulf %420, %2087 : vector<1x8xf32>
    %2150 = arith.subf %2148, %2149 : vector<1x8xf32>
    %c48 = arith.constant 48 : index
    %c0_226 = arith.constant 0 : index
    %c0_227 = arith.constant 0 : index
    %2151 = vector.load %arg3[%c48, %c0_226, %c0_227] : memref<72x1x8xf32, #tpu.memory_space<vmem>>, vector<1x1x8xf32>
    %2152 = vector.shape_cast %2151 : vector<1x1x8xf32> to vector<1x8xf32>
    %c49 = arith.constant 49 : index
    %c0_228 = arith.constant 0 : index
    %c0_229 = arith.constant 0 : index
    %2153 = vector.load %arg3[%c49, %c0_228, %c0_229] : memref<72x1x8xf32, #tpu.memory_space<vmem>>, vector<1x1x8xf32>
    %2154 = vector.shape_cast %2153 : vector<1x1x8xf32> to vector<1x8xf32>
    %c50 = arith.constant 50 : index
    %c0_230 = arith.constant 0 : index
    %c0_231 = arith.constant 0 : index
    %2155 = vector.load %arg3[%c50, %c0_230, %c0_231] : memref<72x1x8xf32, #tpu.memory_space<vmem>>, vector<1x1x8xf32>
    %2156 = vector.shape_cast %2155 : vector<1x1x8xf32> to vector<1x8xf32>
    %c51 = arith.constant 51 : index
    %c0_232 = arith.constant 0 : index
    %c0_233 = arith.constant 0 : index
    %2157 = vector.load %arg3[%c51, %c0_232, %c0_233] : memref<72x1x8xf32, #tpu.memory_space<vmem>>, vector<1x1x8xf32>
    %2158 = vector.shape_cast %2157 : vector<1x1x8xf32> to vector<1x8xf32>
    %2159 = arith.mulf %2152, %2105 : vector<1x8xf32>
    %2160 = arith.mulf %2154, %2108 : vector<1x8xf32>
    %2161 = arith.addf %2159, %2160 : vector<1x8xf32>
    %2162 = arith.mulf %2156, %2129 : vector<1x8xf32>
    %2163 = arith.subf %2161, %2162 : vector<1x8xf32>
    %2164 = arith.mulf %2158, %2132 : vector<1x8xf32>
    %2165 = arith.addf %2163, %2164 : vector<1x8xf32>
    %2166 = arith.mulf %2152, %2108 : vector<1x8xf32>
    %2167 = arith.mulf %2154, %2105 : vector<1x8xf32>
    %2168 = arith.subf %2166, %2167 : vector<1x8xf32>
    %2169 = arith.mulf %2156, %2132 : vector<1x8xf32>
    %2170 = arith.subf %2168, %2169 : vector<1x8xf32>
    %2171 = arith.mulf %2158, %2129 : vector<1x8xf32>
    %2172 = arith.subf %2170, %2171 : vector<1x8xf32>
    %2173 = arith.mulf %2156, %2105 : vector<1x8xf32>
    %2174 = arith.mulf %2158, %2108 : vector<1x8xf32>
    %2175 = arith.addf %2173, %2174 : vector<1x8xf32>
    %2176 = arith.mulf %2152, %2129 : vector<1x8xf32>
    %2177 = arith.addf %2175, %2176 : vector<1x8xf32>
    %2178 = arith.mulf %2154, %2132 : vector<1x8xf32>
    %2179 = arith.subf %2177, %2178 : vector<1x8xf32>
    %2180 = arith.mulf %2156, %2108 : vector<1x8xf32>
    %2181 = arith.mulf %2158, %2105 : vector<1x8xf32>
    %2182 = arith.subf %2180, %2181 : vector<1x8xf32>
    %2183 = arith.mulf %2152, %2132 : vector<1x8xf32>
    %2184 = arith.addf %2182, %2183 : vector<1x8xf32>
    %2185 = arith.mulf %2154, %2129 : vector<1x8xf32>
    %2186 = arith.addf %2184, %2185 : vector<1x8xf32>
    %2187 = arith.mulf %2152, %2111 : vector<1x8xf32>
    %2188 = arith.mulf %2154, %2114 : vector<1x8xf32>
    %2189 = arith.addf %2187, %2188 : vector<1x8xf32>
    %2190 = arith.mulf %2156, %2135 : vector<1x8xf32>
    %2191 = arith.subf %2189, %2190 : vector<1x8xf32>
    %2192 = arith.mulf %2158, %2138 : vector<1x8xf32>
    %2193 = arith.addf %2191, %2192 : vector<1x8xf32>
    %2194 = arith.mulf %2152, %2114 : vector<1x8xf32>
    %2195 = arith.mulf %2154, %2111 : vector<1x8xf32>
    %2196 = arith.subf %2194, %2195 : vector<1x8xf32>
    %2197 = arith.mulf %2156, %2138 : vector<1x8xf32>
    %2198 = arith.subf %2196, %2197 : vector<1x8xf32>
    %2199 = arith.mulf %2158, %2135 : vector<1x8xf32>
    %2200 = arith.subf %2198, %2199 : vector<1x8xf32>
    %2201 = arith.mulf %2156, %2111 : vector<1x8xf32>
    %2202 = arith.mulf %2158, %2114 : vector<1x8xf32>
    %2203 = arith.addf %2201, %2202 : vector<1x8xf32>
    %2204 = arith.mulf %2152, %2135 : vector<1x8xf32>
    %2205 = arith.addf %2203, %2204 : vector<1x8xf32>
    %2206 = arith.mulf %2154, %2138 : vector<1x8xf32>
    %2207 = arith.subf %2205, %2206 : vector<1x8xf32>
    %2208 = arith.mulf %2156, %2114 : vector<1x8xf32>
    %2209 = arith.mulf %2158, %2111 : vector<1x8xf32>
    %2210 = arith.subf %2208, %2209 : vector<1x8xf32>
    %2211 = arith.mulf %2152, %2138 : vector<1x8xf32>
    %2212 = arith.addf %2210, %2211 : vector<1x8xf32>
    %2213 = arith.mulf %2154, %2135 : vector<1x8xf32>
    %2214 = arith.addf %2212, %2213 : vector<1x8xf32>
    %2215 = arith.mulf %2152, %2117 : vector<1x8xf32>
    %2216 = arith.mulf %2154, %2120 : vector<1x8xf32>
    %2217 = arith.addf %2215, %2216 : vector<1x8xf32>
    %2218 = arith.mulf %2156, %2141 : vector<1x8xf32>
    %2219 = arith.subf %2217, %2218 : vector<1x8xf32>
    %2220 = arith.mulf %2158, %2144 : vector<1x8xf32>
    %2221 = arith.addf %2219, %2220 : vector<1x8xf32>
    %2222 = arith.mulf %2152, %2120 : vector<1x8xf32>
    %2223 = arith.mulf %2154, %2117 : vector<1x8xf32>
    %2224 = arith.subf %2222, %2223 : vector<1x8xf32>
    %2225 = arith.mulf %2156, %2144 : vector<1x8xf32>
    %2226 = arith.subf %2224, %2225 : vector<1x8xf32>
    %2227 = arith.mulf %2158, %2141 : vector<1x8xf32>
    %2228 = arith.subf %2226, %2227 : vector<1x8xf32>
    %2229 = arith.mulf %2156, %2117 : vector<1x8xf32>
    %2230 = arith.mulf %2158, %2120 : vector<1x8xf32>
    %2231 = arith.addf %2229, %2230 : vector<1x8xf32>
    %2232 = arith.mulf %2152, %2141 : vector<1x8xf32>
    %2233 = arith.addf %2231, %2232 : vector<1x8xf32>
    %2234 = arith.mulf %2154, %2144 : vector<1x8xf32>
    %2235 = arith.subf %2233, %2234 : vector<1x8xf32>
    %2236 = arith.mulf %2156, %2120 : vector<1x8xf32>
    %2237 = arith.mulf %2158, %2117 : vector<1x8xf32>
    %2238 = arith.subf %2236, %2237 : vector<1x8xf32>
    %2239 = arith.mulf %2152, %2144 : vector<1x8xf32>
    %2240 = arith.addf %2238, %2239 : vector<1x8xf32>
    %2241 = arith.mulf %2154, %2141 : vector<1x8xf32>
    %2242 = arith.addf %2240, %2241 : vector<1x8xf32>
    %2243 = arith.mulf %2152, %2123 : vector<1x8xf32>
    %2244 = arith.mulf %2154, %2126 : vector<1x8xf32>
    %2245 = arith.addf %2243, %2244 : vector<1x8xf32>
    %2246 = arith.mulf %2156, %2147 : vector<1x8xf32>
    %2247 = arith.subf %2245, %2246 : vector<1x8xf32>
    %2248 = arith.mulf %2158, %2150 : vector<1x8xf32>
    %2249 = arith.addf %2247, %2248 : vector<1x8xf32>
    %2250 = arith.mulf %2152, %2126 : vector<1x8xf32>
    %2251 = arith.mulf %2154, %2123 : vector<1x8xf32>
    %2252 = arith.subf %2250, %2251 : vector<1x8xf32>
    %2253 = arith.mulf %2156, %2150 : vector<1x8xf32>
    %2254 = arith.subf %2252, %2253 : vector<1x8xf32>
    %2255 = arith.mulf %2158, %2147 : vector<1x8xf32>
    %2256 = arith.subf %2254, %2255 : vector<1x8xf32>
    %2257 = arith.mulf %2156, %2123 : vector<1x8xf32>
    %2258 = arith.mulf %2158, %2126 : vector<1x8xf32>
    %2259 = arith.addf %2257, %2258 : vector<1x8xf32>
    %2260 = arith.mulf %2152, %2147 : vector<1x8xf32>
    %2261 = arith.addf %2259, %2260 : vector<1x8xf32>
    %2262 = arith.mulf %2154, %2150 : vector<1x8xf32>
    %2263 = arith.subf %2261, %2262 : vector<1x8xf32>
    %2264 = arith.mulf %2156, %2126 : vector<1x8xf32>
    %2265 = arith.mulf %2158, %2123 : vector<1x8xf32>
    %2266 = arith.subf %2264, %2265 : vector<1x8xf32>
    %2267 = arith.mulf %2152, %2150 : vector<1x8xf32>
    %2268 = arith.addf %2266, %2267 : vector<1x8xf32>
    %2269 = arith.mulf %2154, %2147 : vector<1x8xf32>
    %2270 = arith.addf %2268, %2269 : vector<1x8xf32>
    %c52 = arith.constant 52 : index
    %c0_234 = arith.constant 0 : index
    %c0_235 = arith.constant 0 : index
    %2271 = vector.load %arg3[%c52, %c0_234, %c0_235] : memref<72x1x8xf32, #tpu.memory_space<vmem>>, vector<1x1x8xf32>
    %2272 = vector.shape_cast %2271 : vector<1x1x8xf32> to vector<1x8xf32>
    %c53 = arith.constant 53 : index
    %c0_236 = arith.constant 0 : index
    %c0_237 = arith.constant 0 : index
    %2273 = vector.load %arg3[%c53, %c0_236, %c0_237] : memref<72x1x8xf32, #tpu.memory_space<vmem>>, vector<1x1x8xf32>
    %2274 = vector.shape_cast %2273 : vector<1x1x8xf32> to vector<1x8xf32>
    %c54 = arith.constant 54 : index
    %c0_238 = arith.constant 0 : index
    %c0_239 = arith.constant 0 : index
    %2275 = vector.load %arg3[%c54, %c0_238, %c0_239] : memref<72x1x8xf32, #tpu.memory_space<vmem>>, vector<1x1x8xf32>
    %2276 = vector.shape_cast %2275 : vector<1x1x8xf32> to vector<1x8xf32>
    %c55 = arith.constant 55 : index
    %c0_240 = arith.constant 0 : index
    %c0_241 = arith.constant 0 : index
    %2277 = vector.load %arg3[%c55, %c0_240, %c0_241] : memref<72x1x8xf32, #tpu.memory_space<vmem>>, vector<1x1x8xf32>
    %2278 = vector.shape_cast %2277 : vector<1x1x8xf32> to vector<1x8xf32>
    %2279 = arith.mulf %2272, %2165 : vector<1x8xf32>
    %2280 = arith.mulf %2274, %2172 : vector<1x8xf32>
    %2281 = arith.addf %2279, %2280 : vector<1x8xf32>
    %2282 = arith.mulf %2276, %2221 : vector<1x8xf32>
    %2283 = arith.subf %2281, %2282 : vector<1x8xf32>
    %2284 = arith.mulf %2278, %2228 : vector<1x8xf32>
    %2285 = arith.addf %2283, %2284 : vector<1x8xf32>
    %2286 = arith.mulf %2272, %2172 : vector<1x8xf32>
    %2287 = arith.mulf %2274, %2165 : vector<1x8xf32>
    %2288 = arith.subf %2286, %2287 : vector<1x8xf32>
    %2289 = arith.mulf %2276, %2228 : vector<1x8xf32>
    %2290 = arith.subf %2288, %2289 : vector<1x8xf32>
    %2291 = arith.mulf %2278, %2221 : vector<1x8xf32>
    %2292 = arith.subf %2290, %2291 : vector<1x8xf32>
    %2293 = arith.mulf %2276, %2165 : vector<1x8xf32>
    %2294 = arith.mulf %2278, %2172 : vector<1x8xf32>
    %2295 = arith.addf %2293, %2294 : vector<1x8xf32>
    %2296 = arith.mulf %2272, %2221 : vector<1x8xf32>
    %2297 = arith.addf %2295, %2296 : vector<1x8xf32>
    %2298 = arith.mulf %2274, %2228 : vector<1x8xf32>
    %2299 = arith.subf %2297, %2298 : vector<1x8xf32>
    %2300 = arith.mulf %2276, %2172 : vector<1x8xf32>
    %2301 = arith.mulf %2278, %2165 : vector<1x8xf32>
    %2302 = arith.subf %2300, %2301 : vector<1x8xf32>
    %2303 = arith.mulf %2272, %2228 : vector<1x8xf32>
    %2304 = arith.addf %2302, %2303 : vector<1x8xf32>
    %2305 = arith.mulf %2274, %2221 : vector<1x8xf32>
    %2306 = arith.addf %2304, %2305 : vector<1x8xf32>
    %2307 = arith.mulf %2272, %2193 : vector<1x8xf32>
    %2308 = arith.mulf %2274, %2200 : vector<1x8xf32>
    %2309 = arith.addf %2307, %2308 : vector<1x8xf32>
    %2310 = arith.mulf %2276, %2249 : vector<1x8xf32>
    %2311 = arith.subf %2309, %2310 : vector<1x8xf32>
    %2312 = arith.mulf %2278, %2256 : vector<1x8xf32>
    %2313 = arith.addf %2311, %2312 : vector<1x8xf32>
    %2314 = arith.mulf %2272, %2200 : vector<1x8xf32>
    %2315 = arith.mulf %2274, %2193 : vector<1x8xf32>
    %2316 = arith.subf %2314, %2315 : vector<1x8xf32>
    %2317 = arith.mulf %2276, %2256 : vector<1x8xf32>
    %2318 = arith.subf %2316, %2317 : vector<1x8xf32>
    %2319 = arith.mulf %2278, %2249 : vector<1x8xf32>
    %2320 = arith.subf %2318, %2319 : vector<1x8xf32>
    %2321 = arith.mulf %2276, %2193 : vector<1x8xf32>
    %2322 = arith.mulf %2278, %2200 : vector<1x8xf32>
    %2323 = arith.addf %2321, %2322 : vector<1x8xf32>
    %2324 = arith.mulf %2272, %2249 : vector<1x8xf32>
    %2325 = arith.addf %2323, %2324 : vector<1x8xf32>
    %2326 = arith.mulf %2274, %2256 : vector<1x8xf32>
    %2327 = arith.subf %2325, %2326 : vector<1x8xf32>
    %2328 = arith.mulf %2276, %2200 : vector<1x8xf32>
    %2329 = arith.mulf %2278, %2193 : vector<1x8xf32>
    %2330 = arith.subf %2328, %2329 : vector<1x8xf32>
    %2331 = arith.mulf %2272, %2256 : vector<1x8xf32>
    %2332 = arith.addf %2330, %2331 : vector<1x8xf32>
    %2333 = arith.mulf %2274, %2249 : vector<1x8xf32>
    %2334 = arith.addf %2332, %2333 : vector<1x8xf32>
    %2335 = arith.mulf %2272, %2179 : vector<1x8xf32>
    %2336 = arith.mulf %2274, %2186 : vector<1x8xf32>
    %2337 = arith.addf %2335, %2336 : vector<1x8xf32>
    %2338 = arith.mulf %2276, %2235 : vector<1x8xf32>
    %2339 = arith.subf %2337, %2338 : vector<1x8xf32>
    %2340 = arith.mulf %2278, %2242 : vector<1x8xf32>
    %2341 = arith.addf %2339, %2340 : vector<1x8xf32>
    %2342 = arith.mulf %2272, %2186 : vector<1x8xf32>
    %2343 = arith.mulf %2274, %2179 : vector<1x8xf32>
    %2344 = arith.subf %2342, %2343 : vector<1x8xf32>
    %2345 = arith.mulf %2276, %2242 : vector<1x8xf32>
    %2346 = arith.subf %2344, %2345 : vector<1x8xf32>
    %2347 = arith.mulf %2278, %2235 : vector<1x8xf32>
    %2348 = arith.subf %2346, %2347 : vector<1x8xf32>
    %2349 = arith.mulf %2276, %2179 : vector<1x8xf32>
    %2350 = arith.mulf %2278, %2186 : vector<1x8xf32>
    %2351 = arith.addf %2349, %2350 : vector<1x8xf32>
    %2352 = arith.mulf %2272, %2235 : vector<1x8xf32>
    %2353 = arith.addf %2351, %2352 : vector<1x8xf32>
    %2354 = arith.mulf %2274, %2242 : vector<1x8xf32>
    %2355 = arith.subf %2353, %2354 : vector<1x8xf32>
    %2356 = arith.mulf %2276, %2186 : vector<1x8xf32>
    %2357 = arith.mulf %2278, %2179 : vector<1x8xf32>
    %2358 = arith.subf %2356, %2357 : vector<1x8xf32>
    %2359 = arith.mulf %2272, %2242 : vector<1x8xf32>
    %2360 = arith.addf %2358, %2359 : vector<1x8xf32>
    %2361 = arith.mulf %2274, %2235 : vector<1x8xf32>
    %2362 = arith.addf %2360, %2361 : vector<1x8xf32>
    %2363 = arith.mulf %2272, %2207 : vector<1x8xf32>
    %2364 = arith.mulf %2274, %2214 : vector<1x8xf32>
    %2365 = arith.addf %2363, %2364 : vector<1x8xf32>
    %2366 = arith.mulf %2276, %2263 : vector<1x8xf32>
    %2367 = arith.subf %2365, %2366 : vector<1x8xf32>
    %2368 = arith.mulf %2278, %2270 : vector<1x8xf32>
    %2369 = arith.addf %2367, %2368 : vector<1x8xf32>
    %2370 = arith.mulf %2272, %2214 : vector<1x8xf32>
    %2371 = arith.mulf %2274, %2207 : vector<1x8xf32>
    %2372 = arith.subf %2370, %2371 : vector<1x8xf32>
    %2373 = arith.mulf %2276, %2270 : vector<1x8xf32>
    %2374 = arith.subf %2372, %2373 : vector<1x8xf32>
    %2375 = arith.mulf %2278, %2263 : vector<1x8xf32>
    %2376 = arith.subf %2374, %2375 : vector<1x8xf32>
    %2377 = arith.mulf %2276, %2207 : vector<1x8xf32>
    %2378 = arith.mulf %2278, %2214 : vector<1x8xf32>
    %2379 = arith.addf %2377, %2378 : vector<1x8xf32>
    %2380 = arith.mulf %2272, %2263 : vector<1x8xf32>
    %2381 = arith.addf %2379, %2380 : vector<1x8xf32>
    %2382 = arith.mulf %2274, %2270 : vector<1x8xf32>
    %2383 = arith.subf %2381, %2382 : vector<1x8xf32>
    %2384 = arith.mulf %2276, %2214 : vector<1x8xf32>
    %2385 = arith.mulf %2278, %2207 : vector<1x8xf32>
    %2386 = arith.subf %2384, %2385 : vector<1x8xf32>
    %2387 = arith.mulf %2272, %2270 : vector<1x8xf32>
    %2388 = arith.addf %2386, %2387 : vector<1x8xf32>
    %2389 = arith.mulf %2274, %2263 : vector<1x8xf32>
    %2390 = arith.addf %2388, %2389 : vector<1x8xf32>
    %c56 = arith.constant 56 : index
    %c0_242 = arith.constant 0 : index
    %c0_243 = arith.constant 0 : index
    %2391 = vector.load %arg3[%c56, %c0_242, %c0_243] : memref<72x1x8xf32, #tpu.memory_space<vmem>>, vector<1x1x8xf32>
    %2392 = vector.shape_cast %2391 : vector<1x1x8xf32> to vector<1x8xf32>
    %c57 = arith.constant 57 : index
    %c0_244 = arith.constant 0 : index
    %c0_245 = arith.constant 0 : index
    %2393 = vector.load %arg3[%c57, %c0_244, %c0_245] : memref<72x1x8xf32, #tpu.memory_space<vmem>>, vector<1x1x8xf32>
    %2394 = vector.shape_cast %2393 : vector<1x1x8xf32> to vector<1x8xf32>
    %c58 = arith.constant 58 : index
    %c0_246 = arith.constant 0 : index
    %c0_247 = arith.constant 0 : index
    %2395 = vector.load %arg3[%c58, %c0_246, %c0_247] : memref<72x1x8xf32, #tpu.memory_space<vmem>>, vector<1x1x8xf32>
    %2396 = vector.shape_cast %2395 : vector<1x1x8xf32> to vector<1x8xf32>
    %c59 = arith.constant 59 : index
    %c0_248 = arith.constant 0 : index
    %c0_249 = arith.constant 0 : index
    %2397 = vector.load %arg3[%c59, %c0_248, %c0_249] : memref<72x1x8xf32, #tpu.memory_space<vmem>>, vector<1x1x8xf32>
    %2398 = vector.shape_cast %2397 : vector<1x1x8xf32> to vector<1x8xf32>
    %2399 = arith.mulf %2392, %2285 : vector<1x8xf32>
    %2400 = arith.mulf %2394, %2292 : vector<1x8xf32>
    %2401 = arith.addf %2399, %2400 : vector<1x8xf32>
    %2402 = arith.mulf %2396, %2313 : vector<1x8xf32>
    %2403 = arith.subf %2401, %2402 : vector<1x8xf32>
    %2404 = arith.mulf %2398, %2320 : vector<1x8xf32>
    %2405 = arith.addf %2403, %2404 : vector<1x8xf32>
    %2406 = arith.mulf %2392, %2292 : vector<1x8xf32>
    %2407 = arith.mulf %2394, %2285 : vector<1x8xf32>
    %2408 = arith.subf %2406, %2407 : vector<1x8xf32>
    %2409 = arith.mulf %2396, %2320 : vector<1x8xf32>
    %2410 = arith.subf %2408, %2409 : vector<1x8xf32>
    %2411 = arith.mulf %2398, %2313 : vector<1x8xf32>
    %2412 = arith.subf %2410, %2411 : vector<1x8xf32>
    %2413 = arith.mulf %2396, %2285 : vector<1x8xf32>
    %2414 = arith.mulf %2398, %2292 : vector<1x8xf32>
    %2415 = arith.addf %2413, %2414 : vector<1x8xf32>
    %2416 = arith.mulf %2392, %2313 : vector<1x8xf32>
    %2417 = arith.addf %2415, %2416 : vector<1x8xf32>
    %2418 = arith.mulf %2394, %2320 : vector<1x8xf32>
    %2419 = arith.subf %2417, %2418 : vector<1x8xf32>
    %2420 = arith.mulf %2396, %2292 : vector<1x8xf32>
    %2421 = arith.mulf %2398, %2285 : vector<1x8xf32>
    %2422 = arith.subf %2420, %2421 : vector<1x8xf32>
    %2423 = arith.mulf %2392, %2320 : vector<1x8xf32>
    %2424 = arith.addf %2422, %2423 : vector<1x8xf32>
    %2425 = arith.mulf %2394, %2313 : vector<1x8xf32>
    %2426 = arith.addf %2424, %2425 : vector<1x8xf32>
    %2427 = arith.mulf %2392, %2299 : vector<1x8xf32>
    %2428 = arith.mulf %2394, %2306 : vector<1x8xf32>
    %2429 = arith.addf %2427, %2428 : vector<1x8xf32>
    %2430 = arith.mulf %2396, %2327 : vector<1x8xf32>
    %2431 = arith.subf %2429, %2430 : vector<1x8xf32>
    %2432 = arith.mulf %2398, %2334 : vector<1x8xf32>
    %2433 = arith.addf %2431, %2432 : vector<1x8xf32>
    %2434 = arith.mulf %2392, %2306 : vector<1x8xf32>
    %2435 = arith.mulf %2394, %2299 : vector<1x8xf32>
    %2436 = arith.subf %2434, %2435 : vector<1x8xf32>
    %2437 = arith.mulf %2396, %2334 : vector<1x8xf32>
    %2438 = arith.subf %2436, %2437 : vector<1x8xf32>
    %2439 = arith.mulf %2398, %2327 : vector<1x8xf32>
    %2440 = arith.subf %2438, %2439 : vector<1x8xf32>
    %2441 = arith.mulf %2396, %2299 : vector<1x8xf32>
    %2442 = arith.mulf %2398, %2306 : vector<1x8xf32>
    %2443 = arith.addf %2441, %2442 : vector<1x8xf32>
    %2444 = arith.mulf %2392, %2327 : vector<1x8xf32>
    %2445 = arith.addf %2443, %2444 : vector<1x8xf32>
    %2446 = arith.mulf %2394, %2334 : vector<1x8xf32>
    %2447 = arith.subf %2445, %2446 : vector<1x8xf32>
    %2448 = arith.mulf %2396, %2306 : vector<1x8xf32>
    %2449 = arith.mulf %2398, %2299 : vector<1x8xf32>
    %2450 = arith.subf %2448, %2449 : vector<1x8xf32>
    %2451 = arith.mulf %2392, %2334 : vector<1x8xf32>
    %2452 = arith.addf %2450, %2451 : vector<1x8xf32>
    %2453 = arith.mulf %2394, %2327 : vector<1x8xf32>
    %2454 = arith.addf %2452, %2453 : vector<1x8xf32>
    %2455 = arith.mulf %2392, %2341 : vector<1x8xf32>
    %2456 = arith.mulf %2394, %2348 : vector<1x8xf32>
    %2457 = arith.addf %2455, %2456 : vector<1x8xf32>
    %2458 = arith.mulf %2396, %2369 : vector<1x8xf32>
    %2459 = arith.subf %2457, %2458 : vector<1x8xf32>
    %2460 = arith.mulf %2398, %2376 : vector<1x8xf32>
    %2461 = arith.addf %2459, %2460 : vector<1x8xf32>
    %2462 = arith.mulf %2392, %2348 : vector<1x8xf32>
    %2463 = arith.mulf %2394, %2341 : vector<1x8xf32>
    %2464 = arith.subf %2462, %2463 : vector<1x8xf32>
    %2465 = arith.mulf %2396, %2376 : vector<1x8xf32>
    %2466 = arith.subf %2464, %2465 : vector<1x8xf32>
    %2467 = arith.mulf %2398, %2369 : vector<1x8xf32>
    %2468 = arith.subf %2466, %2467 : vector<1x8xf32>
    %2469 = arith.mulf %2396, %2341 : vector<1x8xf32>
    %2470 = arith.mulf %2398, %2348 : vector<1x8xf32>
    %2471 = arith.addf %2469, %2470 : vector<1x8xf32>
    %2472 = arith.mulf %2392, %2369 : vector<1x8xf32>
    %2473 = arith.addf %2471, %2472 : vector<1x8xf32>
    %2474 = arith.mulf %2394, %2376 : vector<1x8xf32>
    %2475 = arith.subf %2473, %2474 : vector<1x8xf32>
    %2476 = arith.mulf %2396, %2348 : vector<1x8xf32>
    %2477 = arith.mulf %2398, %2341 : vector<1x8xf32>
    %2478 = arith.subf %2476, %2477 : vector<1x8xf32>
    %2479 = arith.mulf %2392, %2376 : vector<1x8xf32>
    %2480 = arith.addf %2478, %2479 : vector<1x8xf32>
    %2481 = arith.mulf %2394, %2369 : vector<1x8xf32>
    %2482 = arith.addf %2480, %2481 : vector<1x8xf32>
    %2483 = arith.mulf %2392, %2355 : vector<1x8xf32>
    %2484 = arith.mulf %2394, %2362 : vector<1x8xf32>
    %2485 = arith.addf %2483, %2484 : vector<1x8xf32>
    %2486 = arith.mulf %2396, %2383 : vector<1x8xf32>
    %2487 = arith.subf %2485, %2486 : vector<1x8xf32>
    %2488 = arith.mulf %2398, %2390 : vector<1x8xf32>
    %2489 = arith.addf %2487, %2488 : vector<1x8xf32>
    %2490 = arith.mulf %2392, %2362 : vector<1x8xf32>
    %2491 = arith.mulf %2394, %2355 : vector<1x8xf32>
    %2492 = arith.subf %2490, %2491 : vector<1x8xf32>
    %2493 = arith.mulf %2396, %2390 : vector<1x8xf32>
    %2494 = arith.subf %2492, %2493 : vector<1x8xf32>
    %2495 = arith.mulf %2398, %2383 : vector<1x8xf32>
    %2496 = arith.subf %2494, %2495 : vector<1x8xf32>
    %2497 = arith.mulf %2396, %2355 : vector<1x8xf32>
    %2498 = arith.mulf %2398, %2362 : vector<1x8xf32>
    %2499 = arith.addf %2497, %2498 : vector<1x8xf32>
    %2500 = arith.mulf %2392, %2383 : vector<1x8xf32>
    %2501 = arith.addf %2499, %2500 : vector<1x8xf32>
    %2502 = arith.mulf %2394, %2390 : vector<1x8xf32>
    %2503 = arith.subf %2501, %2502 : vector<1x8xf32>
    %2504 = arith.mulf %2396, %2362 : vector<1x8xf32>
    %2505 = arith.mulf %2398, %2355 : vector<1x8xf32>
    %2506 = arith.subf %2504, %2505 : vector<1x8xf32>
    %2507 = arith.mulf %2392, %2390 : vector<1x8xf32>
    %2508 = arith.addf %2506, %2507 : vector<1x8xf32>
    %2509 = arith.mulf %2394, %2383 : vector<1x8xf32>
    %2510 = arith.addf %2508, %2509 : vector<1x8xf32>
    %c60 = arith.constant 60 : index
    %c0_250 = arith.constant 0 : index
    %c0_251 = arith.constant 0 : index
    %2511 = vector.load %arg3[%c60, %c0_250, %c0_251] : memref<72x1x8xf32, #tpu.memory_space<vmem>>, vector<1x1x8xf32>
    %2512 = vector.shape_cast %2511 : vector<1x1x8xf32> to vector<1x8xf32>
    %c61 = arith.constant 61 : index
    %c0_252 = arith.constant 0 : index
    %c0_253 = arith.constant 0 : index
    %2513 = vector.load %arg3[%c61, %c0_252, %c0_253] : memref<72x1x8xf32, #tpu.memory_space<vmem>>, vector<1x1x8xf32>
    %2514 = vector.shape_cast %2513 : vector<1x1x8xf32> to vector<1x8xf32>
    %c62 = arith.constant 62 : index
    %c0_254 = arith.constant 0 : index
    %c0_255 = arith.constant 0 : index
    %2515 = vector.load %arg3[%c62, %c0_254, %c0_255] : memref<72x1x8xf32, #tpu.memory_space<vmem>>, vector<1x1x8xf32>
    %2516 = vector.shape_cast %2515 : vector<1x1x8xf32> to vector<1x8xf32>
    %c63 = arith.constant 63 : index
    %c0_256 = arith.constant 0 : index
    %c0_257 = arith.constant 0 : index
    %2517 = vector.load %arg3[%c63, %c0_256, %c0_257] : memref<72x1x8xf32, #tpu.memory_space<vmem>>, vector<1x1x8xf32>
    %2518 = vector.shape_cast %2517 : vector<1x1x8xf32> to vector<1x8xf32>
    %2519 = arith.mulf %2512, %2405 : vector<1x8xf32>
    %2520 = arith.mulf %2514, %2412 : vector<1x8xf32>
    %2521 = arith.addf %2519, %2520 : vector<1x8xf32>
    %2522 = arith.mulf %2516, %2489 : vector<1x8xf32>
    %2523 = arith.subf %2521, %2522 : vector<1x8xf32>
    %2524 = arith.mulf %2518, %2496 : vector<1x8xf32>
    %2525 = arith.addf %2523, %2524 : vector<1x8xf32>
    %2526 = arith.mulf %2512, %2412 : vector<1x8xf32>
    %2527 = arith.mulf %2514, %2405 : vector<1x8xf32>
    %2528 = arith.subf %2526, %2527 : vector<1x8xf32>
    %2529 = arith.mulf %2516, %2496 : vector<1x8xf32>
    %2530 = arith.subf %2528, %2529 : vector<1x8xf32>
    %2531 = arith.mulf %2518, %2489 : vector<1x8xf32>
    %2532 = arith.subf %2530, %2531 : vector<1x8xf32>
    %2533 = arith.mulf %2516, %2405 : vector<1x8xf32>
    %2534 = arith.mulf %2518, %2412 : vector<1x8xf32>
    %2535 = arith.addf %2533, %2534 : vector<1x8xf32>
    %2536 = arith.mulf %2512, %2489 : vector<1x8xf32>
    %2537 = arith.addf %2535, %2536 : vector<1x8xf32>
    %2538 = arith.mulf %2514, %2496 : vector<1x8xf32>
    %2539 = arith.subf %2537, %2538 : vector<1x8xf32>
    %2540 = arith.mulf %2516, %2412 : vector<1x8xf32>
    %2541 = arith.mulf %2518, %2405 : vector<1x8xf32>
    %2542 = arith.subf %2540, %2541 : vector<1x8xf32>
    %2543 = arith.mulf %2512, %2496 : vector<1x8xf32>
    %2544 = arith.addf %2542, %2543 : vector<1x8xf32>
    %2545 = arith.mulf %2514, %2489 : vector<1x8xf32>
    %2546 = arith.addf %2544, %2545 : vector<1x8xf32>
    %2547 = arith.mulf %2512, %2503 : vector<1x8xf32>
    %2548 = arith.mulf %2514, %2510 : vector<1x8xf32>
    %2549 = arith.addf %2547, %2548 : vector<1x8xf32>
    %2550 = arith.mulf %2516, %2419 : vector<1x8xf32>
    %2551 = arith.subf %2549, %2550 : vector<1x8xf32>
    %2552 = arith.mulf %2518, %2426 : vector<1x8xf32>
    %2553 = arith.addf %2551, %2552 : vector<1x8xf32>
    %2554 = arith.mulf %2512, %2510 : vector<1x8xf32>
    %2555 = arith.mulf %2514, %2503 : vector<1x8xf32>
    %2556 = arith.subf %2554, %2555 : vector<1x8xf32>
    %2557 = arith.mulf %2516, %2426 : vector<1x8xf32>
    %2558 = arith.subf %2556, %2557 : vector<1x8xf32>
    %2559 = arith.mulf %2518, %2419 : vector<1x8xf32>
    %2560 = arith.subf %2558, %2559 : vector<1x8xf32>
    %2561 = arith.mulf %2516, %2503 : vector<1x8xf32>
    %2562 = arith.mulf %2518, %2510 : vector<1x8xf32>
    %2563 = arith.addf %2561, %2562 : vector<1x8xf32>
    %2564 = arith.mulf %2512, %2419 : vector<1x8xf32>
    %2565 = arith.addf %2563, %2564 : vector<1x8xf32>
    %2566 = arith.mulf %2514, %2426 : vector<1x8xf32>
    %2567 = arith.subf %2565, %2566 : vector<1x8xf32>
    %2568 = arith.mulf %2516, %2510 : vector<1x8xf32>
    %2569 = arith.mulf %2518, %2503 : vector<1x8xf32>
    %2570 = arith.subf %2568, %2569 : vector<1x8xf32>
    %2571 = arith.mulf %2512, %2426 : vector<1x8xf32>
    %2572 = arith.addf %2570, %2571 : vector<1x8xf32>
    %2573 = arith.mulf %2514, %2419 : vector<1x8xf32>
    %2574 = arith.addf %2572, %2573 : vector<1x8xf32>
    %2575 = arith.mulf %2512, %2447 : vector<1x8xf32>
    %2576 = arith.mulf %2514, %2454 : vector<1x8xf32>
    %2577 = arith.addf %2575, %2576 : vector<1x8xf32>
    %2578 = arith.mulf %2516, %2475 : vector<1x8xf32>
    %2579 = arith.subf %2577, %2578 : vector<1x8xf32>
    %2580 = arith.mulf %2518, %2482 : vector<1x8xf32>
    %2581 = arith.addf %2579, %2580 : vector<1x8xf32>
    %2582 = arith.mulf %2512, %2454 : vector<1x8xf32>
    %2583 = arith.mulf %2514, %2447 : vector<1x8xf32>
    %2584 = arith.subf %2582, %2583 : vector<1x8xf32>
    %2585 = arith.mulf %2516, %2482 : vector<1x8xf32>
    %2586 = arith.subf %2584, %2585 : vector<1x8xf32>
    %2587 = arith.mulf %2518, %2475 : vector<1x8xf32>
    %2588 = arith.subf %2586, %2587 : vector<1x8xf32>
    %2589 = arith.mulf %2516, %2447 : vector<1x8xf32>
    %2590 = arith.mulf %2518, %2454 : vector<1x8xf32>
    %2591 = arith.addf %2589, %2590 : vector<1x8xf32>
    %2592 = arith.mulf %2512, %2475 : vector<1x8xf32>
    %2593 = arith.addf %2591, %2592 : vector<1x8xf32>
    %2594 = arith.mulf %2514, %2482 : vector<1x8xf32>
    %2595 = arith.subf %2593, %2594 : vector<1x8xf32>
    %2596 = arith.mulf %2516, %2454 : vector<1x8xf32>
    %2597 = arith.mulf %2518, %2447 : vector<1x8xf32>
    %2598 = arith.subf %2596, %2597 : vector<1x8xf32>
    %2599 = arith.mulf %2512, %2482 : vector<1x8xf32>
    %2600 = arith.addf %2598, %2599 : vector<1x8xf32>
    %2601 = arith.mulf %2514, %2475 : vector<1x8xf32>
    %2602 = arith.addf %2600, %2601 : vector<1x8xf32>
    %2603 = arith.mulf %2512, %2461 : vector<1x8xf32>
    %2604 = arith.mulf %2514, %2468 : vector<1x8xf32>
    %2605 = arith.addf %2603, %2604 : vector<1x8xf32>
    %2606 = arith.mulf %2516, %2433 : vector<1x8xf32>
    %2607 = arith.subf %2605, %2606 : vector<1x8xf32>
    %2608 = arith.mulf %2518, %2440 : vector<1x8xf32>
    %2609 = arith.addf %2607, %2608 : vector<1x8xf32>
    %2610 = arith.mulf %2512, %2468 : vector<1x8xf32>
    %2611 = arith.mulf %2514, %2461 : vector<1x8xf32>
    %2612 = arith.subf %2610, %2611 : vector<1x8xf32>
    %2613 = arith.mulf %2516, %2440 : vector<1x8xf32>
    %2614 = arith.subf %2612, %2613 : vector<1x8xf32>
    %2615 = arith.mulf %2518, %2433 : vector<1x8xf32>
    %2616 = arith.subf %2614, %2615 : vector<1x8xf32>
    %2617 = arith.mulf %2516, %2461 : vector<1x8xf32>
    %2618 = arith.mulf %2518, %2468 : vector<1x8xf32>
    %2619 = arith.addf %2617, %2618 : vector<1x8xf32>
    %2620 = arith.mulf %2512, %2433 : vector<1x8xf32>
    %2621 = arith.addf %2619, %2620 : vector<1x8xf32>
    %2622 = arith.mulf %2514, %2440 : vector<1x8xf32>
    %2623 = arith.subf %2621, %2622 : vector<1x8xf32>
    %2624 = arith.mulf %2516, %2468 : vector<1x8xf32>
    %2625 = arith.mulf %2518, %2461 : vector<1x8xf32>
    %2626 = arith.subf %2624, %2625 : vector<1x8xf32>
    %2627 = arith.mulf %2512, %2440 : vector<1x8xf32>
    %2628 = arith.addf %2626, %2627 : vector<1x8xf32>
    %2629 = arith.mulf %2514, %2433 : vector<1x8xf32>
    %2630 = arith.addf %2628, %2629 : vector<1x8xf32>
    %c64 = arith.constant 64 : index
    %c0_258 = arith.constant 0 : index
    %c0_259 = arith.constant 0 : index
    %2631 = vector.load %arg3[%c64, %c0_258, %c0_259] : memref<72x1x8xf32, #tpu.memory_space<vmem>>, vector<1x1x8xf32>
    %2632 = vector.shape_cast %2631 : vector<1x1x8xf32> to vector<1x8xf32>
    %c65 = arith.constant 65 : index
    %c0_260 = arith.constant 0 : index
    %c0_261 = arith.constant 0 : index
    %2633 = vector.load %arg3[%c65, %c0_260, %c0_261] : memref<72x1x8xf32, #tpu.memory_space<vmem>>, vector<1x1x8xf32>
    %2634 = vector.shape_cast %2633 : vector<1x1x8xf32> to vector<1x8xf32>
    %c66 = arith.constant 66 : index
    %c0_262 = arith.constant 0 : index
    %c0_263 = arith.constant 0 : index
    %2635 = vector.load %arg3[%c66, %c0_262, %c0_263] : memref<72x1x8xf32, #tpu.memory_space<vmem>>, vector<1x1x8xf32>
    %2636 = vector.shape_cast %2635 : vector<1x1x8xf32> to vector<1x8xf32>
    %c67 = arith.constant 67 : index
    %c0_264 = arith.constant 0 : index
    %c0_265 = arith.constant 0 : index
    %2637 = vector.load %arg3[%c67, %c0_264, %c0_265] : memref<72x1x8xf32, #tpu.memory_space<vmem>>, vector<1x1x8xf32>
    %2638 = vector.shape_cast %2637 : vector<1x1x8xf32> to vector<1x8xf32>
    %2639 = arith.mulf %2632, %2525 : vector<1x8xf32>
    %2640 = arith.mulf %2634, %2532 : vector<1x8xf32>
    %2641 = arith.addf %2639, %2640 : vector<1x8xf32>
    %2642 = arith.mulf %2636, %2581 : vector<1x8xf32>
    %2643 = arith.subf %2641, %2642 : vector<1x8xf32>
    %2644 = arith.mulf %2638, %2588 : vector<1x8xf32>
    %2645 = arith.addf %2643, %2644 : vector<1x8xf32>
    %2646 = arith.mulf %2632, %2532 : vector<1x8xf32>
    %2647 = arith.mulf %2634, %2525 : vector<1x8xf32>
    %2648 = arith.subf %2646, %2647 : vector<1x8xf32>
    %2649 = arith.mulf %2636, %2588 : vector<1x8xf32>
    %2650 = arith.subf %2648, %2649 : vector<1x8xf32>
    %2651 = arith.mulf %2638, %2581 : vector<1x8xf32>
    %2652 = arith.subf %2650, %2651 : vector<1x8xf32>
    %2653 = arith.mulf %2636, %2525 : vector<1x8xf32>
    %2654 = arith.mulf %2638, %2532 : vector<1x8xf32>
    %2655 = arith.addf %2653, %2654 : vector<1x8xf32>
    %2656 = arith.mulf %2632, %2581 : vector<1x8xf32>
    %2657 = arith.addf %2655, %2656 : vector<1x8xf32>
    %2658 = arith.mulf %2634, %2588 : vector<1x8xf32>
    %2659 = arith.subf %2657, %2658 : vector<1x8xf32>
    %2660 = arith.mulf %2636, %2532 : vector<1x8xf32>
    %2661 = arith.mulf %2638, %2525 : vector<1x8xf32>
    %2662 = arith.subf %2660, %2661 : vector<1x8xf32>
    %2663 = arith.mulf %2632, %2588 : vector<1x8xf32>
    %2664 = arith.addf %2662, %2663 : vector<1x8xf32>
    %2665 = arith.mulf %2634, %2581 : vector<1x8xf32>
    %2666 = arith.addf %2664, %2665 : vector<1x8xf32>
    %2667 = arith.mulf %2632, %2553 : vector<1x8xf32>
    %2668 = arith.mulf %2634, %2560 : vector<1x8xf32>
    %2669 = arith.addf %2667, %2668 : vector<1x8xf32>
    %2670 = arith.mulf %2636, %2609 : vector<1x8xf32>
    %2671 = arith.subf %2669, %2670 : vector<1x8xf32>
    %2672 = arith.mulf %2638, %2616 : vector<1x8xf32>
    %2673 = arith.addf %2671, %2672 : vector<1x8xf32>
    %2674 = arith.mulf %2632, %2560 : vector<1x8xf32>
    %2675 = arith.mulf %2634, %2553 : vector<1x8xf32>
    %2676 = arith.subf %2674, %2675 : vector<1x8xf32>
    %2677 = arith.mulf %2636, %2616 : vector<1x8xf32>
    %2678 = arith.subf %2676, %2677 : vector<1x8xf32>
    %2679 = arith.mulf %2638, %2609 : vector<1x8xf32>
    %2680 = arith.subf %2678, %2679 : vector<1x8xf32>
    %2681 = arith.mulf %2636, %2553 : vector<1x8xf32>
    %2682 = arith.mulf %2638, %2560 : vector<1x8xf32>
    %2683 = arith.addf %2681, %2682 : vector<1x8xf32>
    %2684 = arith.mulf %2632, %2609 : vector<1x8xf32>
    %2685 = arith.addf %2683, %2684 : vector<1x8xf32>
    %2686 = arith.mulf %2634, %2616 : vector<1x8xf32>
    %2687 = arith.subf %2685, %2686 : vector<1x8xf32>
    %2688 = arith.mulf %2636, %2560 : vector<1x8xf32>
    %2689 = arith.mulf %2638, %2553 : vector<1x8xf32>
    %2690 = arith.subf %2688, %2689 : vector<1x8xf32>
    %2691 = arith.mulf %2632, %2616 : vector<1x8xf32>
    %2692 = arith.addf %2690, %2691 : vector<1x8xf32>
    %2693 = arith.mulf %2634, %2609 : vector<1x8xf32>
    %2694 = arith.addf %2692, %2693 : vector<1x8xf32>
    %2695 = arith.mulf %2632, %2539 : vector<1x8xf32>
    %2696 = arith.mulf %2634, %2546 : vector<1x8xf32>
    %2697 = arith.addf %2695, %2696 : vector<1x8xf32>
    %2698 = arith.mulf %2636, %2595 : vector<1x8xf32>
    %2699 = arith.subf %2697, %2698 : vector<1x8xf32>
    %2700 = arith.mulf %2638, %2602 : vector<1x8xf32>
    %2701 = arith.addf %2699, %2700 : vector<1x8xf32>
    %2702 = arith.mulf %2632, %2546 : vector<1x8xf32>
    %2703 = arith.mulf %2634, %2539 : vector<1x8xf32>
    %2704 = arith.subf %2702, %2703 : vector<1x8xf32>
    %2705 = arith.mulf %2636, %2602 : vector<1x8xf32>
    %2706 = arith.subf %2704, %2705 : vector<1x8xf32>
    %2707 = arith.mulf %2638, %2595 : vector<1x8xf32>
    %2708 = arith.subf %2706, %2707 : vector<1x8xf32>
    %2709 = arith.mulf %2636, %2539 : vector<1x8xf32>
    %2710 = arith.mulf %2638, %2546 : vector<1x8xf32>
    %2711 = arith.addf %2709, %2710 : vector<1x8xf32>
    %2712 = arith.mulf %2632, %2595 : vector<1x8xf32>
    %2713 = arith.addf %2711, %2712 : vector<1x8xf32>
    %2714 = arith.mulf %2634, %2602 : vector<1x8xf32>
    %2715 = arith.subf %2713, %2714 : vector<1x8xf32>
    %2716 = arith.mulf %2636, %2546 : vector<1x8xf32>
    %2717 = arith.mulf %2638, %2539 : vector<1x8xf32>
    %2718 = arith.subf %2716, %2717 : vector<1x8xf32>
    %2719 = arith.mulf %2632, %2602 : vector<1x8xf32>
    %2720 = arith.addf %2718, %2719 : vector<1x8xf32>
    %2721 = arith.mulf %2634, %2595 : vector<1x8xf32>
    %2722 = arith.addf %2720, %2721 : vector<1x8xf32>
    %2723 = arith.mulf %2632, %2567 : vector<1x8xf32>
    %2724 = arith.mulf %2634, %2574 : vector<1x8xf32>
    %2725 = arith.addf %2723, %2724 : vector<1x8xf32>
    %2726 = arith.mulf %2636, %2623 : vector<1x8xf32>
    %2727 = arith.subf %2725, %2726 : vector<1x8xf32>
    %2728 = arith.mulf %2638, %2630 : vector<1x8xf32>
    %2729 = arith.addf %2727, %2728 : vector<1x8xf32>
    %2730 = arith.mulf %2632, %2574 : vector<1x8xf32>
    %2731 = arith.mulf %2634, %2567 : vector<1x8xf32>
    %2732 = arith.subf %2730, %2731 : vector<1x8xf32>
    %2733 = arith.mulf %2636, %2630 : vector<1x8xf32>
    %2734 = arith.subf %2732, %2733 : vector<1x8xf32>
    %2735 = arith.mulf %2638, %2623 : vector<1x8xf32>
    %2736 = arith.subf %2734, %2735 : vector<1x8xf32>
    %2737 = arith.mulf %2636, %2567 : vector<1x8xf32>
    %2738 = arith.mulf %2638, %2574 : vector<1x8xf32>
    %2739 = arith.addf %2737, %2738 : vector<1x8xf32>
    %2740 = arith.mulf %2632, %2623 : vector<1x8xf32>
    %2741 = arith.addf %2739, %2740 : vector<1x8xf32>
    %2742 = arith.mulf %2634, %2630 : vector<1x8xf32>
    %2743 = arith.subf %2741, %2742 : vector<1x8xf32>
    %2744 = arith.mulf %2636, %2574 : vector<1x8xf32>
    %2745 = arith.mulf %2638, %2567 : vector<1x8xf32>
    %2746 = arith.subf %2744, %2745 : vector<1x8xf32>
    %2747 = arith.mulf %2632, %2630 : vector<1x8xf32>
    %2748 = arith.addf %2746, %2747 : vector<1x8xf32>
    %2749 = arith.mulf %2634, %2623 : vector<1x8xf32>
    %2750 = arith.addf %2748, %2749 : vector<1x8xf32>
    %c68 = arith.constant 68 : index
    %c0_266 = arith.constant 0 : index
    %c0_267 = arith.constant 0 : index
    %2751 = vector.load %arg3[%c68, %c0_266, %c0_267] : memref<72x1x8xf32, #tpu.memory_space<vmem>>, vector<1x1x8xf32>
    %2752 = vector.shape_cast %2751 : vector<1x1x8xf32> to vector<1x8xf32>
    %c69 = arith.constant 69 : index
    %c0_268 = arith.constant 0 : index
    %c0_269 = arith.constant 0 : index
    %2753 = vector.load %arg3[%c69, %c0_268, %c0_269] : memref<72x1x8xf32, #tpu.memory_space<vmem>>, vector<1x1x8xf32>
    %2754 = vector.shape_cast %2753 : vector<1x1x8xf32> to vector<1x8xf32>
    %c70 = arith.constant 70 : index
    %c0_270 = arith.constant 0 : index
    %c0_271 = arith.constant 0 : index
    %2755 = vector.load %arg3[%c70, %c0_270, %c0_271] : memref<72x1x8xf32, #tpu.memory_space<vmem>>, vector<1x1x8xf32>
    %2756 = vector.shape_cast %2755 : vector<1x1x8xf32> to vector<1x8xf32>
    %c71 = arith.constant 71 : index
    %c0_272 = arith.constant 0 : index
    %c0_273 = arith.constant 0 : index
    %2757 = vector.load %arg3[%c71, %c0_272, %c0_273] : memref<72x1x8xf32, #tpu.memory_space<vmem>>, vector<1x1x8xf32>
    %2758 = vector.shape_cast %2757 : vector<1x1x8xf32> to vector<1x8xf32>
    %2759 = arith.mulf %2752, %2645 : vector<1x8xf32>
    %2760 = arith.mulf %2754, %2652 : vector<1x8xf32>
    %2761 = arith.addf %2759, %2760 : vector<1x8xf32>
    %2762 = arith.mulf %2756, %2673 : vector<1x8xf32>
    %2763 = arith.subf %2761, %2762 : vector<1x8xf32>
    %2764 = arith.mulf %2758, %2680 : vector<1x8xf32>
    %2765 = arith.addf %2763, %2764 : vector<1x8xf32>
    %2766 = arith.mulf %2752, %2652 : vector<1x8xf32>
    %2767 = arith.mulf %2754, %2645 : vector<1x8xf32>
    %2768 = arith.subf %2766, %2767 : vector<1x8xf32>
    %2769 = arith.mulf %2756, %2680 : vector<1x8xf32>
    %2770 = arith.subf %2768, %2769 : vector<1x8xf32>
    %2771 = arith.mulf %2758, %2673 : vector<1x8xf32>
    %2772 = arith.subf %2770, %2771 : vector<1x8xf32>
    %2773 = arith.mulf %2756, %2645 : vector<1x8xf32>
    %2774 = arith.mulf %2758, %2652 : vector<1x8xf32>
    %2775 = arith.addf %2773, %2774 : vector<1x8xf32>
    %2776 = arith.mulf %2752, %2673 : vector<1x8xf32>
    %2777 = arith.addf %2775, %2776 : vector<1x8xf32>
    %2778 = arith.mulf %2754, %2680 : vector<1x8xf32>
    %2779 = arith.subf %2777, %2778 : vector<1x8xf32>
    %2780 = arith.mulf %2756, %2652 : vector<1x8xf32>
    %2781 = arith.mulf %2758, %2645 : vector<1x8xf32>
    %2782 = arith.subf %2780, %2781 : vector<1x8xf32>
    %2783 = arith.mulf %2752, %2680 : vector<1x8xf32>
    %2784 = arith.addf %2782, %2783 : vector<1x8xf32>
    %2785 = arith.mulf %2754, %2673 : vector<1x8xf32>
    %2786 = arith.addf %2784, %2785 : vector<1x8xf32>
    %2787 = arith.mulf %2752, %2659 : vector<1x8xf32>
    %2788 = arith.mulf %2754, %2666 : vector<1x8xf32>
    %2789 = arith.addf %2787, %2788 : vector<1x8xf32>
    %2790 = arith.mulf %2756, %2687 : vector<1x8xf32>
    %2791 = arith.subf %2789, %2790 : vector<1x8xf32>
    %2792 = arith.mulf %2758, %2694 : vector<1x8xf32>
    %2793 = arith.addf %2791, %2792 : vector<1x8xf32>
    %2794 = arith.mulf %2752, %2666 : vector<1x8xf32>
    %2795 = arith.mulf %2754, %2659 : vector<1x8xf32>
    %2796 = arith.subf %2794, %2795 : vector<1x8xf32>
    %2797 = arith.mulf %2756, %2694 : vector<1x8xf32>
    %2798 = arith.subf %2796, %2797 : vector<1x8xf32>
    %2799 = arith.mulf %2758, %2687 : vector<1x8xf32>
    %2800 = arith.subf %2798, %2799 : vector<1x8xf32>
    %2801 = arith.mulf %2756, %2659 : vector<1x8xf32>
    %2802 = arith.mulf %2758, %2666 : vector<1x8xf32>
    %2803 = arith.addf %2801, %2802 : vector<1x8xf32>
    %2804 = arith.mulf %2752, %2687 : vector<1x8xf32>
    %2805 = arith.addf %2803, %2804 : vector<1x8xf32>
    %2806 = arith.mulf %2754, %2694 : vector<1x8xf32>
    %2807 = arith.subf %2805, %2806 : vector<1x8xf32>
    %2808 = arith.mulf %2756, %2666 : vector<1x8xf32>
    %2809 = arith.mulf %2758, %2659 : vector<1x8xf32>
    %2810 = arith.subf %2808, %2809 : vector<1x8xf32>
    %2811 = arith.mulf %2752, %2694 : vector<1x8xf32>
    %2812 = arith.addf %2810, %2811 : vector<1x8xf32>
    %2813 = arith.mulf %2754, %2687 : vector<1x8xf32>
    %2814 = arith.addf %2812, %2813 : vector<1x8xf32>
    %2815 = arith.mulf %2752, %2701 : vector<1x8xf32>
    %2816 = arith.mulf %2754, %2708 : vector<1x8xf32>
    %2817 = arith.addf %2815, %2816 : vector<1x8xf32>
    %2818 = arith.mulf %2756, %2729 : vector<1x8xf32>
    %2819 = arith.subf %2817, %2818 : vector<1x8xf32>
    %2820 = arith.mulf %2758, %2736 : vector<1x8xf32>
    %2821 = arith.addf %2819, %2820 : vector<1x8xf32>
    %2822 = arith.mulf %2752, %2708 : vector<1x8xf32>
    %2823 = arith.mulf %2754, %2701 : vector<1x8xf32>
    %2824 = arith.subf %2822, %2823 : vector<1x8xf32>
    %2825 = arith.mulf %2756, %2736 : vector<1x8xf32>
    %2826 = arith.subf %2824, %2825 : vector<1x8xf32>
    %2827 = arith.mulf %2758, %2729 : vector<1x8xf32>
    %2828 = arith.subf %2826, %2827 : vector<1x8xf32>
    %2829 = arith.mulf %2756, %2701 : vector<1x8xf32>
    %2830 = arith.mulf %2758, %2708 : vector<1x8xf32>
    %2831 = arith.addf %2829, %2830 : vector<1x8xf32>
    %2832 = arith.mulf %2752, %2729 : vector<1x8xf32>
    %2833 = arith.addf %2831, %2832 : vector<1x8xf32>
    %2834 = arith.mulf %2754, %2736 : vector<1x8xf32>
    %2835 = arith.subf %2833, %2834 : vector<1x8xf32>
    %2836 = arith.mulf %2756, %2708 : vector<1x8xf32>
    %2837 = arith.mulf %2758, %2701 : vector<1x8xf32>
    %2838 = arith.subf %2836, %2837 : vector<1x8xf32>
    %2839 = arith.mulf %2752, %2736 : vector<1x8xf32>
    %2840 = arith.addf %2838, %2839 : vector<1x8xf32>
    %2841 = arith.mulf %2754, %2729 : vector<1x8xf32>
    %2842 = arith.addf %2840, %2841 : vector<1x8xf32>
    %2843 = arith.mulf %2752, %2715 : vector<1x8xf32>
    %2844 = arith.mulf %2754, %2722 : vector<1x8xf32>
    %2845 = arith.addf %2843, %2844 : vector<1x8xf32>
    %2846 = arith.mulf %2756, %2743 : vector<1x8xf32>
    %2847 = arith.subf %2845, %2846 : vector<1x8xf32>
    %2848 = arith.mulf %2758, %2750 : vector<1x8xf32>
    %2849 = arith.addf %2847, %2848 : vector<1x8xf32>
    %2850 = arith.mulf %2752, %2722 : vector<1x8xf32>
    %2851 = arith.mulf %2754, %2715 : vector<1x8xf32>
    %2852 = arith.subf %2850, %2851 : vector<1x8xf32>
    %2853 = arith.mulf %2756, %2750 : vector<1x8xf32>
    %2854 = arith.subf %2852, %2853 : vector<1x8xf32>
    %2855 = arith.mulf %2758, %2743 : vector<1x8xf32>
    %2856 = arith.subf %2854, %2855 : vector<1x8xf32>
    %2857 = arith.mulf %2756, %2715 : vector<1x8xf32>
    %2858 = arith.mulf %2758, %2722 : vector<1x8xf32>
    %2859 = arith.addf %2857, %2858 : vector<1x8xf32>
    %2860 = arith.mulf %2752, %2743 : vector<1x8xf32>
    %2861 = arith.addf %2859, %2860 : vector<1x8xf32>
    %2862 = arith.mulf %2754, %2750 : vector<1x8xf32>
    %2863 = arith.subf %2861, %2862 : vector<1x8xf32>
    %2864 = arith.mulf %2756, %2722 : vector<1x8xf32>
    %2865 = arith.mulf %2758, %2715 : vector<1x8xf32>
    %2866 = arith.subf %2864, %2865 : vector<1x8xf32>
    %2867 = arith.mulf %2752, %2750 : vector<1x8xf32>
    %2868 = arith.addf %2866, %2867 : vector<1x8xf32>
    %2869 = arith.mulf %2754, %2743 : vector<1x8xf32>
    %2870 = arith.addf %2868, %2869 : vector<1x8xf32>
    %2871 = arith.mulf %2765, %2765 : vector<1x8xf32>
    %2872 = arith.mulf %2772, %2772 : vector<1x8xf32>
    %2873 = arith.addf %2871, %2872 : vector<1x8xf32>
    %2874 = arith.addf %421, %2873 : vector<1x8xf32>
    %2875 = arith.mulf %2849, %2849 : vector<1x8xf32>
    %2876 = arith.mulf %2856, %2856 : vector<1x8xf32>
    %2877 = arith.addf %2875, %2876 : vector<1x8xf32>
    %2878 = arith.addf %2874, %2877 : vector<1x8xf32>
    %2879 = arith.mulf %2863, %2863 : vector<1x8xf32>
    %2880 = arith.mulf %2870, %2870 : vector<1x8xf32>
    %2881 = arith.addf %2879, %2880 : vector<1x8xf32>
    %2882 = arith.addf %2878, %2881 : vector<1x8xf32>
    %2883 = arith.mulf %2779, %2779 : vector<1x8xf32>
    %2884 = arith.mulf %2786, %2786 : vector<1x8xf32>
    %2885 = arith.addf %2883, %2884 : vector<1x8xf32>
    %2886 = arith.addf %2882, %2885 : vector<1x8xf32>
    %2887 = arith.mulf %2835, %2835 : vector<1x8xf32>
    %2888 = arith.mulf %2842, %2842 : vector<1x8xf32>
    %2889 = arith.addf %2887, %2888 : vector<1x8xf32>
    %2890 = arith.subf %2886, %2889 : vector<1x8xf32>
    %2891 = arith.mulf %2807, %2807 : vector<1x8xf32>
    %2892 = arith.mulf %2814, %2814 : vector<1x8xf32>
    %2893 = arith.addf %2891, %2892 : vector<1x8xf32>
    %2894 = arith.subf %2890, %2893 : vector<1x8xf32>
    %2895 = arith.mulf %2793, %2793 : vector<1x8xf32>
    %2896 = arith.mulf %2800, %2800 : vector<1x8xf32>
    %2897 = arith.addf %2895, %2896 : vector<1x8xf32>
    %2898 = arith.subf %2894, %2897 : vector<1x8xf32>
    %2899 = arith.mulf %2821, %2821 : vector<1x8xf32>
    %2900 = arith.mulf %2828, %2828 : vector<1x8xf32>
    %2901 = arith.addf %2899, %2900 : vector<1x8xf32>
    %2902 = arith.subf %2898, %2901 : vector<1x8xf32>
    %c0_274 = arith.constant 0 : index
    %c0_275 = arith.constant 0 : index
    %2903 = vector.load %arg4[%c0_274, %c0_275] : memref<1x8xf32, #tpu.memory_space<vmem>>, vector<1x8xf32>
    tpu.vector_store %arg4[%c0_274, %c0_275], %2902 {strides = array<i32>} : memref<1x8xf32, #tpu.memory_space<vmem>>, vector<1x8xf32>,
    return
  }
  func.func @transform_0(%arg0: i32) -> (i32, i32, i32, i32) {
    %c0_i32 = arith.constant 0 : i32
    %c0_i32_0 = arith.constant 0 : i32
    %c0_i32_1 = arith.constant 0 : i32
    %c0_i32_2 = arith.constant 0 : i32
    %c0_i32_3 = arith.constant 0 : i32
    return %c0_i32, %c0_i32_0, %c0_i32_1, %c0_i32_2 : i32, i32, i32, i32
  }
  func.func @transform_1(%arg0: i32) -> (i32, i32, i32) {
    %c0_i32 = arith.constant 0 : i32
    %c0_i32_0 = arith.constant 0 : i32
    %c0_i32_1 = arith.constant 0 : i32
    %c0_i32_2 = arith.constant 0 : i32
    return %c0_i32, %c0_i32_0, %c0_i32_1 : i32, i32, i32
  }
  func.func @transform_2(%arg0: i32) -> (i32, i32, i32) {
    %c0_i32 = arith.constant 0 : i32
    %c0_i32_0 = arith.constant 0 : i32
    %c0_i32_1 = arith.constant 0 : i32
    %c0_i32_2 = arith.constant 0 : i32
    return %c0_i32, %c0_i32_0, %c0_i32_1 : i32, i32, i32
  }
  func.func @transform_3(%arg0: i32) -> (i32, i32) {
    %c0_i32 = arith.constant 0 : i32
    %c0_i32_0 = arith.constant 0 : i32
    %c0_i32_1 = arith.constant 0 : i32
    return %c0_i32, %c0_i32_0 : i32, i32
  }
}

</mosaic_0001>

<bundles_post_ra>
// kernel: tpu_custom_call.1
= control target key start
LH: loop header
LB: loop body
LE: loop exit
PB: predicated region body
PF: predicated region fallthrough
CT: control target
= control target key end

     0   :  { %8 = vsyncpa [#allocation3], 0  ;;  %s9581_s0 = inlined_call_operand.vmem [shape: f32[5,6,3,8], index: 0, kind: input, shape index: {}]   ;;  %s9582_s1 = inlined_call_operand.vmem [shape: f32[34,3,8], index: 1, kind: input, shape index: {}]   ;;  %s9583_s2 = inlined_call_operand.vmem [shape: f32[72,1,8], index: 2, kind: input, shape index: {}]   ;;  %s9584_s3 = inlined_call_operand.hbm [shape: f32[1,8], index: 3, kind: output, shape index: {}]  }
   0x1   :  { %v15_v0 = vld [vmem:[%s9581_s0] sm:$0x7]  ;;  %v16_v1 = vld [vmem:[%s9581_s0 + $0x4] sm:$0x7]  ;;  %v17_v2 = vld [vmem:[%s9581_s0 + $0x8] sm:$0x7] }
   0x2   :  { %v5328_v3 = vld [vmem:[%s9582_s1] sm:$0x7]  ;;  %v5016_v4 = vld [vmem:[%s9581_s0 + $0x18] sm:$0x7]  ;;  %v5017_v8 = vld [vmem:[%s9581_s0 + $0x1c] sm:$0x7] }
   0x3   :  { %v22_v5 = vmul.f32 %v5328_v3, %v15_v0  ;;  %v23_v6 = vmul.f32 %v5328_v3, %v16_v1  ;;  %v24_v7 = vmul.f32 %v5328_v3, %v17_v2  ;;  %v5018_v9 = vld [vmem:[%s9581_s0 + $0x20] sm:$0x7]  ;;  %v5345_v10 = vld [vmem:[%s9582_s1 + $0x4] sm:$0x7]  ;;  %v5023_v14 = vld [vmem:[%s9581_s0 + $0x30] sm:$0x7] }
   0x4   :  { %v37_v11 = vmul.f32 %v5345_v10, %v5016_v4  ;;  %v38_v12 = vmul.f32 %v5345_v10, %v5017_v8  ;;  %v39_v13 = vmul.f32 %v5345_v10, %v5018_v9  ;;  %v5024_v15 = vld [vmem:[%s9581_s0 + $0x34] sm:$0x7]  ;;  %v18_v16 = vld [vmem:[%s9581_s0 + $0xc] sm:$0x7]  ;;  %v5019_v17 = vld [vmem:[%s9581_s0 + $0x24] sm:$0x7] }
   0x5   :  { %v5025_v18 = vld [vmem:[%s9581_s0 + $0x38] sm:$0x7]  ;;  %v5368_v22 = vld [vmem:[%s9582_s1 + $0x8] sm:$0x7]  ;;  %v5031_v24 = vld [vmem:[%s9581_s0 + $0x4c] sm:$0x7]  ;;  %v25_v27 = vmul.f32 %v5328_v3, %v18_v16  ;;  %v40_v28 = vmul.f32 %v5345_v10, %v5019_v17 }
   0x6   :  { %v43_v19 = vadd.f32 %v37_v11, %v22_v5  ;;  %v44_v20 = vadd.f32 %v38_v12, %v23_v6  ;;  %v45_v21 = vadd.f32 %v39_v13, %v24_v7  ;;  %v5030_v23 = vld [vmem:[%s9581_s0 + $0x48] sm:$0x7]  ;;  %v58_v25 = vmul.f32 %v5368_v22, %v5023_v14  ;;  %v5032_v30 = vld [vmem:[%s9581_s0 + $0x50] sm:$0x7]  ;;  %v5387_v31 = vld [vmem:[%s9582_s1 + $0xc] sm:$0x7] }
   0x7   :  { %v59_v26 = vmul.f32 %v5368_v22, %v5024_v15  ;;  %v60_v29 = vmul.f32 %v5368_v22, %v5025_v18  ;;  %v79_v34 = vmul.f32 %v5387_v31, %v5030_v23  ;;  %v80_v35 = vmul.f32 %v5387_v31, %v5031_v24  ;;  %v5037_v36 = vld [vmem:[%s9581_s0 + $0x60] sm:$0x7]  ;;  %v5038_v37 = vld [vmem:[%s9581_s0 + $0x64] sm:$0x7]  ;;  %v5026_v38 = vld [vmem:[%s9581_s0 + $0x3c] sm:$0x7] }
   0x8   :  { %v64_v32 = vadd.f32 %v58_v25, %v43_v19  ;;  %v5403_v40 = vld [vmem:[%s9582_s1 + $0x10] sm:$0x7]  ;;  %v81_v41 = vmul.f32 %v5387_v31, %v5032_v30  ;;  %v5039_v42 = vld [vmem:[%s9581_s0 + $0x68] sm:$0x7]  ;;  %v46_v47 = vadd.f32 %v40_v28, %v25_v27  ;;  %v61_v48 = vmul.f32 %v5368_v22, %v5026_v38  ;;  %v5033_v50 = vld [vmem:[%s9581_s0 + $0x54] sm:$0x7] }
   0x9   :  { %v65_v33 = vadd.f32 %v59_v26, %v44_v20  ;;  %v66_v39 = vadd.f32 %v60_v29, %v45_v21  ;;  %v100_v45 = vmul.f32 %v5403_v40, %v5037_v36  ;;  %v101_v46 = vmul.f32 %v5403_v40, %v5038_v37  ;;  %v5419_v52 = vld [vmem:[%s9582_s1 + $0x14] sm:$0x7]  ;;  %v5040_v60 = vld [vmem:[%s9581_s0 + $0x6c] sm:$0x7]  ;;  %v19_v7 = vld [vmem:[%s9581_s0 + $0x10] sm:$0x7] }
   0xa   :  { %v85_v43 = vadd.f32 %v79_v34, %v64_v32  ;;  %v102_v51 = vmul.f32 %v5403_v40, %v5039_v42  ;;  %v67_v56 = vadd.f32 %v61_v48, %v46_v47  ;;  %v82_v57 = vmul.f32 %v5387_v31, %v5033_v50  ;;  %v5020_v11 = vld [vmem:[%s9581_s0 + $0x28] sm:$0x7]  ;;  %v20_v14 = vld [vmem:[%s9581_s0 + $0x14] sm:$0x7]  ;;  %v5021_v15 = vld [vmem:[%s9581_s0 + $0x2c] sm:$0x7] }
   0xb   :  { %v86_v44 = vadd.f32 %v80_v35, %v65_v33  ;;  %v87_v49 = vadd.f32 %v81_v41, %v66_v39  ;;  %v103_v2 = vmul.f32 %v5403_v40, %v5040_v60  ;;  %v26_v23 = vmul.f32 %v5328_v3, %v19_v7 }
   0xc   :  { %v106_v53 = vadd.f32 %v100_v45, %v85_v43  ;;  %v88_v1 = vadd.f32 %v82_v57, %v67_v56  ;;  %v41_v24 = vmul.f32 %v5345_v10, %v5020_v11  ;;  %v5459_v26 = vmul.f32 %v5328_v3, %v20_v14 }
   0xd   :  { %v107_v54 = vadd.f32 %v101_v46, %v86_v44  ;;  %v108_v55 = vadd.f32 %v102_v51, %v87_v49  ;;  %v5462_v27 = vmul.f32 %v5345_v10, %v5021_v15  ;;  %v5288_v47 = vmov 683565275  }
   0xe   :  { %v114_v58 = vadd.f32 %v5419_v52, %v106_v53  ;;  %v109_v16 = vadd.f32 %v103_v2, %v88_v1  ;;  %v5467_v37 = vadd.f32 %v41_v24, %v26_v23  ;;  %v5289_v49 = vmov 2475754826  }
   0xf   :  { %v115_v59 = vadd.f32 %v5419_v52, %v107_v54  ;;  %v116_v61 = vadd.f32 %v5419_v52, %v108_v55  ;;  %v5290_v51 = vmov 2131351028   ;;  %v5291_v54 = vmov 2102212464  }
  0x10   :  { %v120_v62 = vmax.f32 %v114_v58, 0.0  ;;  %v5465_v30 = vadd.f32 %v5419_v52, %v109_v16  ;;  %v5292_v56 = vmov 920167782  }
  0x11   :  { %v121_v63 = vmax.f32 %v115_v59, 0.0  ;;  %v122_v0 = vmax.f32 %v116_v61, 0.0 }
  0x12   :  { %v5429_v4 = vmul.f32 0.5, %v120_v62  ;;  %v123_v3 = vmax.f32 %v5465_v30, 0.0 }
  0x13   :  { %v5431_v5 = vmul.f32 0.5, %v121_v63  ;;  %v5433_v6 = vmul.f32 0.5, %v122_v0  ;;  %v5293_v0 = vmov 1326507024  }
  0x14   :  { %v132_v8 = vand.u32 2147483647, %v5429_v4  ;;  %v135_v9 = vand.u32 2139095040, %v5429_v4 }
  0x15   :  { %v235_v12 = vand.u32 2147483647, %v5431_v5  ;;  %v238_v13 = vand.u32 2139095040, %v5431_v5  ;;  %v341_v21 = vand.u32 2139095040, %v5433_v6 }
  0x16   :  { %v136_v17 = vshrl.u32 %v135_v9, 23  ;;  %v139_v18 = vand.u32 8388607, %v132_v8 }
  0x17   :  { %v239_v19 = vshrl.u32 %v238_v13, 23  ;;  %v242_v20 = vand.u32 8388607, %v235_v12  ;;  %v342_v29 = vshrl.u32 %v341_v21, 23 }
  0x18   :  { %v5045_v25 = vadd.s32 4294967169, %v136_v17  ;;  %v140_v33 = vor.u32 8388608, %v139_v18 }
  0x19   :  { %v5049_v28 = vadd.s32 4294967169, %v239_v19  ;;  %v243_v34 = vor.u32 8388608, %v242_v20  ;;  %v5053_v36 = vadd.s32 4294967169, %v342_v29 }
  0x1a   :  { %v142_v32 = vadd.s32 1, %v5045_v25  ;;  %v5470_v42 = vshll.u32 %v140_v33, 8 }
  0x1b   :  { %v245_v35 = vadd.s32 1, %v5049_v28  ;;  %v5472_v44 = vshll.u32 %v243_v34, 8  ;;  %v5474_v45 = vadd.s32 1, %v5053_v36 }
  0x1c   :  { %vm143_vm0 = vcmp.gt.s32.totalorder %v142_v32, 0 }
  0x1d   :  { %v144_v38 = vsel %vm143_vm0, %v142_v32, 0  ;;  %vm246_vm1 = vcmp.gt.s32.totalorder %v245_v35, 0  ;;  %vm349_vm6 = vcmp.gt.s32.totalorder %v5474_v45, 0 }
  0x1e   :  { %v145_v39 = vshrl.u32 %v144_v38, 5  ;;  %v146_v10 = vand.u32 31, %v144_v38  ;;  %v247_v41 = vsel %vm246_vm1, %v245_v35, 0 }
  0x1f   :  { %v249_v43 = vand.u32 31, %v247_v41  ;;  %v5481_v58 = vshrl.u32 %v247_v41, 5 }
  0x20   :  { %v147_v46 = vsub.s32 32, %v146_v10  ;;  %v149_v48 = vshll.u32 %v5288_v47, %v146_v10  ;;  %v152_v50 = vshll.u32 %v5289_v49, %v146_v10  ;;  %v155_v53 = vshll.u32 %v5290_v51, %v146_v10 }
  0x21   :  { %v158_v55 = vshll.u32 %v5291_v54, %v146_v10  ;;  %v161_v57 = vshll.u32 %v5292_v56, %v146_v10  ;;  %vm164_vm2 = vcmp.lt.s32.totalorder %v145_v39, 1  ;;  %vm165_vm3 = vcmp.lt.s32.totalorder %v145_v39, 2 }
  0x22   :  { %v148_v59 = vshrl.u32 %v5288_v47, %v147_v46  ;;  %v150_v60 = vshrl.u32 %v5289_v49, %v147_v46  ;;  %v153_v61 = vshrl.u32 %v5290_v51, %v147_v46  ;;  %v156_v62 = vshrl.u32 %v5291_v54, %v147_v46 }
  0x23   :  { %v159_v63 = vshrl.u32 %v5292_v56, %v147_v46  ;;  %v162_v1 = vshrl.u32 %v5293_v0, %v147_v46  ;;  %vm167_vm4 = vcmp.lt.s32.totalorder %v145_v39, 4  ;;  %v250_v11 = vsub.s32 32, %v249_v43 }
  0x24   :  { %v151_v2 = vor.u32 %v150_v60, %v149_v48  ;;  %v154_v7 = vor.u32 %v153_v61, %v152_v50  ;;  %v157_v9 = vor.u32 %v156_v62, %v155_v53  ;;  %vm166_vm5 = vcmp.lt.s32.totalorder %v145_v39, 3 }
  0x25   :  { %v160_v13 = vor.u32 %v159_v63, %v158_v55  ;;  %v163_v14 = vor.u32 %v162_v1, %v161_v57  ;;  %v252_v15 = vshll.u32 %v5288_v47, %v249_v43  ;;  %v255_v24 = vshll.u32 %v5289_v49, %v249_v43 }
  0x26   :  { %v168_v16 = vsel %vm164_vm2, %v148_v59, %v151_v2  ;;  %v169_v17 = vsel %vm167_vm4, %v157_v9, 2102212464  ;;  %v172_v18 = vsel %vm164_vm2, %v151_v2, %v154_v7  ;;  %v176_v19 = vsel %vm164_vm2, %v154_v7, %v157_v9 }
  0x27   :  { %v170_v20 = vsel %vm166_vm5, %v154_v7, %v169_v17  ;;  %v173_v21 = vsel %vm167_vm4, %v160_v13, 920167782  ;;  %v177_v23 = vsel %vm167_vm4, %v163_v14, 1326507024  ;;  %v251_v29 = vshrl.u32 %v5288_v47, %v250_v11  ;;  %v5027_v14 = vld [vmem:[%s9581_s0 + $0x40] sm:$0x7] }
  0x28   :  { %v174_v25 = vsel %vm166_vm5, %v157_v9, %v173_v21  ;;  %v178_v28 = vsel %vm166_vm5, %v160_v13, %v177_v23  ;;  %v253_v32 = vshrl.u32 %v5289_v49, %v250_v11  ;;  %v171_v33 = vsel %vm165_vm3, %v168_v16, %v170_v20 }
  0x29   :  { %v175_v34 = vsel %vm165_vm3, %v172_v18, %v174_v25  ;;  %v179_v35 = vsel %vm165_vm3, %v176_v19, %v178_v28  ;;  %v256_v36 = vshrl.u32 %v5290_v51, %v250_v11  ;;  %v258_v53 = vshll.u32 %v5290_v51, %v249_v43 }
  0x2a   :  { %v5502_v38 = vmul.u32.u64.low %v5470_v42, %v179_v35  ;;  %v5503_v10 = vmul.u32.u64.high %v5470_v42, %v179_v35, %v5502_v38  ;;  %v5506_v41 = vmul.u32.u64.low %v5470_v42, %v175_v34  ;;  %v5507_v46 = vmul.u32.u64.high %v5470_v42, %v175_v34, %v5506_v41 }
  0x2b   :  { %v254_v48 = vor.u32 %v253_v32, %v252_v15  ;;  %v257_v50 = vor.u32 %v256_v36, %v255_v24  ;;  %v259_v55 = vshrl.u32 %v5291_v54, %v250_v11  ;;  %v261_v39 = vshll.u32 %v5291_v54, %v249_v43 }
  0x2c   :  { %v262_v57 = vshrl.u32 %v5292_v56, %v250_v11  ;;  %v264_v59 = vshll.u32 %v5292_v56, %v249_v43  ;;  %v265_v60 = vshrl.u32 %v5293_v0, %v250_v11  ;;  %v187_v61 = vmul.u32 %v5470_v42, %v171_v33 }
  0x2d   :  { %v260_v62 = vor.u32 %v259_v55, %v258_v53  ;;  %vm267_vm7 = vcmp.lt.s32.totalorder %v5481_v58, 1  ;;  %vm268_vm8 = vcmp.lt.s32.totalorder %v5481_v58, 2  ;;  %vm189_vm9 = vc.u32 %v5503_v10, %v5506_v41 }
  0x2e   :  { %v190_v63 = vadd.s32 1, %v5507_v46  ;;  %v263_v1 = vor.u32 %v262_v57, %v261_v39  ;;  %vm269_vm10 = vcmp.lt.s32.totalorder %v5481_v58, 3  ;;  %v266_v2 = vor.u32 %v265_v60, %v264_v59 }
  0x2f   :  { %vm270_vm11 = vcmp.lt.s32.totalorder %v5481_v58, 4  ;;  %v271_v43 = vsel %vm267_vm7, %v251_v29, %v254_v48  ;;  %v275_v7 = vsel %vm267_vm7, %v254_v48, %v257_v50  ;;  %v279_v13 = vsel %vm267_vm7, %v257_v50, %v260_v62 }
  0x30   :  { %v191_v42 = vsel %vm189_vm9, %v190_v63, %v5507_v46  ;;  %v272_v9 = vsel %vm270_vm11, %v260_v62, 2102212464  ;;  %v276_v11 = vsel %vm270_vm11, %v263_v1, 920167782  ;;  %v280_v18 = vsel %vm270_vm11, %v266_v2, 1326507024 }
  0x31   :  { %v192_v15 = vadd.s32 %v191_v42, %v187_v61  ;;  %v273_v16 = vsel %vm269_vm10, %v257_v50, %v272_v9  ;;  %v277_v17 = vsel %vm269_vm10, %v260_v62, %v276_v11  ;;  %v281_v21 = vsel %vm269_vm10, %v263_v1, %v280_v18 }
  0x32   :  { %v274_v19 = vsel %vm268_vm8, %v271_v43, %v273_v16  ;;  %v278_v20 = vsel %vm268_vm8, %v275_v7, %v277_v17  ;;  %v350_v23 = vsel %vm349_vm6, %v5474_v45, 0  ;;  %v282_v25 = vsel %vm268_vm8, %v279_v13, %v281_v21  ;;  %v5034_v45 = vld [vmem:[%s9581_s0 + $0x58] sm:$0x7]  ;;  %v5041_v16 = vld [vmem:[%s9581_s0 + $0x70] sm:$0x7] }
  0x33   :  { %v193_v24 = vadd.s32 536870912, %v192_v15  ;;  %v5544_v28 = vmul.u32.u64.low %v5472_v44, %v278_v20  ;;  %v5545_v29 = vmul.u32.u64.high %v5472_v44, %v278_v20, %v5544_v28  ;;  %v62_v32 = vmul.f32 %v5368_v22, %v5027_v14 }
  0x34   :  { %v5550_v33 = vmul.u32.u64.low %v5472_v44, %v282_v25  ;;  %v5551_v34 = vmul.u32.u64.high %v5472_v44, %v282_v25, %v5550_v33  ;;  %v338_v35 = vand.u32 2147483647, %v5433_v6  ;;  %v5559_v58 = vmul.f32 0.5, %v123_v3  ;;  %v5028_v3 = vld [vmem:[%s9581_s0 + $0x44] sm:$0x7] }
  0x35   :  { %v5561_v36 = vshrl.u32 %v193_v24, 30  ;;  %v352_v38 = vand.u32 31, %v350_v23  ;;  %v290_v46 = vmul.u32 %v5472_v44, %v274_v19  ;;  %v48_v48 = vadd.f32 %v5462_v27, %v5459_v26 }
  0x36   :  { %v293_v53 = vadd.s32 1, %v5545_v29  ;;  %v68_v39 = vadd.f32 %v62_v32, %v5467_v37  ;;  %v83_v57 = vmul.f32 %v5387_v31, %v5034_v45  ;;  %vm292_vm12 = vc.u32 %v5551_v34, %v5544_v28 }
  0x37   :  { %v195_v50 = vshll.u32 %v5561_v36, 30  ;;  %v353_v55 = vsub.s32 32, %v352_v38  ;;  %v345_v30 = vand.u32 8388607, %v338_v35  ;;  %v5580_v44 = vshrl.u32 %v350_v23, 5 }
  0x38   :  { %v294_v27 = vsel %vm292_vm12, %v293_v53, %v5545_v29  ;;  %v444_v37 = vand.u32 2139095040, %v5559_v58  ;;  %v355_v60 = vshll.u32 %v5288_v47, %v352_v38  ;;  %v358_v62 = vshll.u32 %v5289_v49, %v352_v38 }
  0x39   :  { %v5577_v26 = vsub.s32 %v192_v15, %v195_v50  ;;  %v295_v59 = vadd.s32 %v294_v27, %v290_v46  ;;  %v356_v61 = vshrl.u32 %v5289_v49, %v353_v55  ;;  %v359_v1 = vshrl.u32 %v5290_v51, %v353_v55 }
  0x3a   :  { %v361_v2 = vshll.u32 %v5290_v51, %v352_v38  ;;  %v362_v43 = vshrl.u32 %v5291_v54, %v353_v55  ;;  %v63_v7 = vmul.f32 %v5368_v22, %v5028_v3  ;;  %v89_v42 = vadd.f32 %v83_v57, %v68_v39 }
  0x3b   :  { %v198_v63 = vsub.s32 0, %v5577_v26  ;;  %v296_v9 = vadd.s32 536870912, %v295_v59  ;;  %v364_v11 = vshll.u32 %v5291_v54, %v352_v38  ;;  %v346_v14 = vor.u32 8388608, %v345_v30 }
  0x3c   :  { %vm373_vm13 = vcmp.lt.s32.totalorder %v5580_v44, 4  ;;  %v445_v15 = vshrl.u32 %v444_v37, 23  ;;  %v357_v18 = vor.u32 %v356_v61, %v355_v60  ;;  %v365_v19 = vshrl.u32 %v5292_v56, %v353_v55 }
  0x3d   :  { %v5046_v13 = vmin.u32 %v198_v63, %v5577_v26  ;;  %v5597_v17 = vshrl.u32 %v296_v9, 30  ;;  %v367_v22 = vshll.u32 %v5292_v56, %v352_v38  ;;  %v360_v21 = vor.u32 %v359_v1, %v358_v62  ;;  %v5035_v38 = vld [vmem:[%s9581_s0 + $0x5c] sm:$0x7] }
  0x3e   :  { %v363_v23 = vor.u32 %v362_v43, %v361_v2  ;;  %v368_v24 = vshrl.u32 %v5293_v0, %v353_v55  ;;  %v366_v29 = vor.u32 %v365_v19, %v364_v11  ;;  %vm370_vm14 = vcmp.lt.s32.totalorder %v5580_v44, 1 }
  0x3f   :  { %v200_v20 = vclz %v5046_v13  ;;  %v298_v25 = vshll.u32 %v5597_v17, 30  ;;  %vm372_vm15 = vcmp.lt.s32.totalorder %v5580_v44, 3  ;;  %v104_v32 = vmul.f32 %v5403_v40, %v5041_v16 }
  0x40   :  { %v369_v45 = vor.u32 %v368_v24, %v367_v22  ;;  %v386_v46 = vshll.u32 %v346_v14, 8  ;;  %v354_v53 = vshrl.u32 %v5288_v47, %v353_v55  ;;  %vm371_vm0 = vcmp.lt.s32.totalorder %v5580_v44, 2 }
  0x41   :  { %v5047_v33 = vadd.s32 4294967294, %v200_v20  ;;  %v5609_v50 = vsub.s32 %v295_v59, %v298_v25  ;;  %v379_v39 = vsel %vm373_vm13, %v366_v29, 920167782  ;;  %v375_v57 = vsel %vm373_vm13, %v363_v23, 2102212464 }
  0x42   :  { %v378_v30 = vsel %vm370_vm14, %v357_v18, %v360_v21  ;;  %v380_v3 = vsel %vm372_vm15, %v363_v23, %v379_v39  ;;  %v383_v27 = vsel %vm373_vm13, %v369_v45, 1326507024  ;;  %v382_v37 = vsel %vm370_vm14, %v360_v21, %v363_v23 }
  0x43   :  { %vm5048_vm1 = vcmp.lt.s32.totalorder %v5047_v33, 0  ;;  %v301_v55 = vsub.s32 0, %v5609_v50  ;;  %v5057_v59 = vadd.s32 4294967169, %v445_v15  ;;  %v69_v60 = vadd.f32 %v63_v7, %v48_v48  ;;  %v5042_v7 = vld [vmem:[%s9581_s0 + $0x74] sm:$0x7] }
  0x44   :  { %v84_v61 = vmul.f32 %v5387_v31, %v5035_v38  ;;  %v384_v62 = vsel %vm372_vm15, %v366_v29, %v383_v27  ;;  %v374_v1 = vsel %vm370_vm14, %v354_v53, %v357_v18  ;;  %v376_v2 = vsel %vm372_vm15, %v360_v21, %v375_v57 }
  0x45   :  { %v5050_v63 = vmin.u32 %v301_v55, %v5609_v50  ;;  %v381_v43 = vsel %vm371_vm0, %v378_v30, %v380_v3  ;;  %v110_v9 = vadd.f32 %v104_v32, %v89_v42  ;;  %v203_v11 = vsel %vm5048_vm1, 0, %v5047_v33 }
  0x46   :  { %v385_v48 = vsel %vm371_vm0, %v382_v37, %v384_v62  ;;  %v441_v31 = vand.u32 2147483647, %v5559_v58  ;;  %v451_v16 = vadd.s32 1, %v5057_v59  ;;  %v377_v18 = vsel %vm371_vm0, %v374_v1, %v376_v2 }
  0x47   :  { %v303_v13 = vclz %v5050_v63  ;;  %v5642_v14 = vmul.u32.u64.low %v386_v46, %v385_v48  ;;  %v5643_v15 = vmul.u32.u64.high %v386_v46, %v385_v48, %v5642_v14  ;;  %v208_v22 = vsub.s32 4294967266, %v203_v11 }
  0x48   :  { %v5647_v19 = vmul.u32.u64.low %v386_v46, %v381_v43  ;;  %v5648_v42 = vmul.u32.u64.high %v386_v46, %v381_v43, %v5647_v19  ;;  %vm452_vm2 = vcmp.gt.s32.totalorder %v451_v16, 0  ;;  %v90_v21 = vadd.f32 %v84_v61, %v69_v60 }
  0x49   :  { %v5051_v20 = vadd.s32 4294967294, %v303_v13  ;;  %v105_v23 = vmul.f32 %v5403_v40, %v5042_v7  ;;  %v118_v24 = vadd.f32 %v5419_v52, %v110_v9  ;;  %v453_v25 = vsel %vm452_vm2, %v451_v16, 0 }
  0x4a   :  { %v393_v29 = vmul.u32 %v386_v46, %v377_v18  ;;  %vm395_vm4 = vc.u32 %v5643_v15, %v5647_v19  ;;  %v448_v44 = vand.u32 8388607, %v441_v31  ;;  %v188_v32 = vadd.s32 %v5506_v41, %v5503_v10 }
  0x4b   :  { %vm5052_vm3 = vcmp.lt.s32.totalorder %v5051_v20, 0  ;;  %v204_v33 = vsub.s32 32, %v203_v11  ;;  %v396_v45 = vadd.s32 1, %v5648_v42  ;;  %v455_v38 = vand.u32 31, %v453_v25 }
  0x4c   :  { %v209_v53 = vadd.s32 127, %v208_v22  ;;  %v306_v40 = vsel %vm5052_vm3, 0, %v5051_v20  ;;  %v111_v30 = vadd.f32 %v105_v23, %v90_v21  ;;  %v124_v46 = vmax.f32 %v118_v24, 0.0 }
  0x4d   :  { %v397_v39 = vsel %vm395_vm4, %v396_v45, %v5648_v42  ;;  %v456_v57 = vsub.s32 32, %v455_v38  ;;  %v205_v27 = vshll.u32 %v5577_v26, %v203_v11  ;;  %v206_v55 = vshrl.u32 %v188_v32, %v204_v33 }
  0x4e   :  { %v398_v3 = vadd.s32 %v397_v39, %v393_v29  ;;  %v311_v37 = vsub.s32 4294967266, %v306_v40  ;;  %v449_v59 = vor.u32 8388608, %v448_v44  ;;  %v210_v60 = vshll.u32 %v209_v53, 23 }
  0x4f   :  { %v458_v10 = vshll.u32 %v5288_v47, %v455_v38  ;;  %v459_v41 = vshrl.u32 %v5289_v49, %v456_v57  ;;  %v291_v62 = vadd.s32 %v5544_v28, %v5551_v34  ;;  %v454_v63 = vshrl.u32 %v453_v25, 5 }
  0x50   :  { %v399_v61 = vadd.s32 536870912, %v398_v3  ;;  %v461_v1 = vshll.u32 %v5289_v49, %v455_v38  ;;  %v462_v2 = vshrl.u32 %v5290_v51, %v456_v57  ;;  %v307_v43 = vsub.s32 32, %v306_v40 }
  0x51   :  { %v464_v26 = vshll.u32 %v5290_v51, %v455_v38  ;;  %v465_v11 = vshrl.u32 %v5291_v54, %v456_v57  ;;  %v207_v48 = vor.u32 %v206_v55, %v205_v27  ;;  %v312_v7 = vadd.s32 127, %v311_v37 }
  0x52   :  { %v5668_v9 = vshrl.u32 %v399_v61, 30  ;;  %v467_v13 = vshll.u32 %v5291_v54, %v455_v38  ;;  %v468_v14 = vshrl.u32 %v5292_v56, %v456_v57  ;;  %v211_v16 = vor.u32 4788187, %v210_v60 }
  0x53   :  { %v308_v28 = vshll.u32 %v5609_v50, %v306_v40  ;;  %v460_v18 = vor.u32 %v459_v41, %v458_v10  ;;  %v463_v42 = vor.u32 %v462_v2, %v461_v1  ;;  %v470_v20 = vshll.u32 %v5292_v56, %v455_v38 }
  0x54   :  { %v401_v34 = vshll.u32 %v5668_v9, 30  ;;  %v469_v22 = vor.u32 %v468_v14, %v467_v13  ;;  %v471_v21 = vshrl.u32 %v5293_v0, %v456_v57  ;;  %v309_v23 = vshrl.u32 %v291_v62, %v307_v43 }
  0x55   :  { %v466_v25 = vor.u32 %v465_v11, %v464_v26  ;;  %vm473_vm5 = vcmp.lt.s32.totalorder %v454_v63, 1  ;;  %v5680_v29 = vmul.f32 0.5, %v124_v46  ;;  %v313_v44 = vshll.u32 %v312_v7, 23 }
  0x56   :  { %v5678_v24 = vsub.s32 %v398_v3, %v401_v34  ;;  %v457_v32 = vshrl.u32 %v5288_v47, %v456_v57  ;;  %vm476_vm6 = vcmp.lt.s32.totalorder %v454_v63, 4  ;;  %v472_v33 = vor.u32 %v471_v21, %v470_v20 }
  0x57   :  { %vm475_vm7 = vcmp.lt.s32.totalorder %v454_v63, 3  ;;  %v478_v45 = vsel %vm476_vm6, %v466_v25, 2102212464  ;;  %vm474_vm8 = vcmp.lt.s32.totalorder %v454_v63, 2  ;;  %v481_v38 = vsel %vm473_vm5, %v460_v18, %v463_v42 }
  0x58   :  { %v404_v50 = vsub.s32 0, %v5678_v24  ;;  %v482_v53 = vsel %vm476_vm6, %v469_v22, 920167782  ;;  %v489_v40 = vshll.u32 %v449_v59, 8  ;;  %v212_v39 = vand.u32 2147483647, %v211_v16 }
  0x59   :  { %v214_v3 = vcvt.s32.f32 %v207_v48  ;;  %v310_v46 = vor.u32 %v309_v23, %v308_v28  ;;  %v477_v57 = vsel %vm473_vm5, %v457_v32, %v460_v18  ;;  %v479_v55 = vsel %vm475_vm7, %v463_v42, %v478_v45 }
  0x5a   :  { %v5054_v27 = vmin.u32 %v404_v50, %v5678_v24  ;;  %v483_v37 = vsel %vm475_vm7, %v466_v25, %v482_v53  ;;  %v485_v60 = vsel %vm473_vm5, %v463_v42, %v466_v25  ;;  %v314_v61 = vor.u32 4788187, %v313_v44 }
  0x5b   :  { %v484_v41 = vsel %vm474_vm8, %v481_v38, %v483_v37  ;;  %v486_v62 = vsel %vm476_vm6, %v472_v33, 1326507024  ;;  %v119_v43 = vadd.f32 %v5419_v52, %v111_v30  ;;  %v480_v11 = vsel %vm474_vm8, %v477_v57, %v479_v55 }
  0x5c   :  { %v406_v10 = vclz %v5054_v27  ;;  %v487_v59 = vsel %vm475_vm7, %v469_v22, %v486_v62  ;;  %v5695_v1 = vmul.u32.u64.low %v489_v40, %v484_v41  ;;  %v5696_v2 = vmul.u32.u64.high %v489_v40, %v484_v41, %v5695_v1 }
  0x5d   :  { %v488_v48 = vsel %vm474_vm8, %v485_v60, %v487_v59  ;;  %v215_v7 = vmul.f32 %v214_v3, %v212_v39  ;;  %v315_v16 = vand.u32 2147483647, %v314_v61  ;;  %v317_v28 = vcvt.s32.f32 %v310_v46 }
  0x5e   :  { %v5055_v26 = vadd.s32 4294967294, %v406_v10  ;;  %v5702_v13 = vmul.u32.u64.low %v489_v40, %v488_v48  ;;  %v5703_v14 = vmul.u32.u64.high %v489_v40, %v488_v48, %v5702_v13  ;;  %v547_v34 = vand.u32 2139095040, %v5680_v29 }
  0x5f   :  { %v496_v18 = vmul.u32 %v489_v40, %v480_v11  ;;  %v499_v42 = vadd.s32 1, %v5696_v2  ;;  %v125_v22 = vmax.f32 %v119_v43, 0.0  ;;  %vm134_vm10 = vcmp.lt.s32.totalorder %v5429_v4, 0 }
  0x60   :  { %vm5056_vm9 = vcmp.lt.s32.totalorder %v5055_v26, 0  ;;  %vm498_vm11 = vc.u32 %v5703_v14, %v5695_v1  ;;  %v544_v52 = vand.u32 2147483647, %v5680_v29  ;;  %v548_v30 = vshrl.u32 %v547_v34, 23 }
  0x61   :  { %v409_v20 = vsel %vm5056_vm9, 0, %v5055_v26  ;;  %v216_v63 = vxor.u32 2147483648, %v215_v7  ;;  %v318_v21 = vmul.f32 %v317_v28, %v315_v16  ;;  %v394_v23 = vadd.s32 %v5647_v19, %v5643_v15 }
  0x62   :  { %v500_v25 = vsel %vm498_vm11, %v499_v42, %v5696_v2  ;;  %v410_v44 = vsub.s32 32, %v409_v20  ;;  %v414_v32 = vsub.s32 4294967266, %v409_v20  ;;  %v5061_v33 = vadd.s32 4294967169, %v548_v30 }
  0x63   :  { %v501_v50 = vadd.s32 %v500_v25, %v496_v18  ;;  %v5714_v45 = vmul.f32 0.5, %v125_v22  ;;  %vm237_vm12 = vcmp.lt.s32.totalorder %v5431_v5, 0  ;;  %vm5719_vm13 = vcmp.le.f32.partialorder %v132_v8, 0.7853982 }
  0x64   :  { %v218_v53 = vsub.s32 4, %v5561_v36  ;;  %v554_v15 = vadd.s32 1, %v5061_v33  ;;  %v217_v19 = vsel %vm134_vm10, %v216_v63, %v215_v7  ;;  %v319_v39 = vxor.u32 2147483648, %v318_v21 }
  0x65   :  { %v502_v40 = vadd.s32 536870912, %v501_v50  ;;  %v411_v3 = vshll.u32 %v5678_v24, %v409_v20  ;;  %v551_v46 = vand.u32 8388607, %v544_v52  ;;  %v412_v27 = vshrl.u32 %v394_v23, %v410_v44 }
  0x66   :  { %v415_v57 = vadd.s32 127, %v414_v32  ;;  %vm555_vm14 = vcmp.gt.s32.totalorder %v554_v15, 0  ;;  %v650_v37 = vand.u32 2139095040, %v5714_v45  ;;  %v5735_v60 = vsel %vm5719_vm13, %v5429_v4, %v217_v19 }
  0x67   :  { %v5729_v55 = vshrl.u32 %v502_v40, 30  ;;  %v556_v8 = vsel %vm555_vm14, %v554_v15, 0  ;;  %vm5740_vm15 = vcmp.le.f32.partialorder %v235_v12, 0.7853982  ;;  %v320_v10 = vsel %vm237_vm12, %v319_v39, %v318_v21 }
  0x68   :  { %v552_v41 = vor.u32 8388608, %v551_v46  ;;  %v558_v62 = vand.u32 31, %v556_v8  ;;  %v5749_v59 = vsel %vm134_vm10, %v218_v53, %v5561_v36  ;;  %v5751_v2 = vor.u32 %v412_v27, %v411_v3 }
  0x69   :  { %v504_v61 = vshll.u32 %v5729_v55, 30  ;;  %v416_v43 = vshll.u32 %v415_v57, 23  ;;  %5236 = vcosq.f32 %v5735_v60  ;;  %v651_v48 = vshrl.u32 %v650_v37, 23 }
  0x6a   :  { %v559_v12 = vsub.s32 32, %v558_v62  ;;  %v561_v11 = vshll.u32 %v5288_v47, %v558_v62  ;;  %v5760_v7 = vsel %vm5740_vm15, %v5431_v5, %v320_v10  ;;  %v557_v36 = vshrl.u32 %v556_v8, 5 }
  0x6b   :  { %v5753_v26 = vsub.s32 %v501_v50, %v504_v61  ;;  %v564_v16 = vshll.u32 %v5289_v49, %v558_v62  ;;  %v497_v28 = vadd.s32 %v5695_v1, %v5703_v14  ;;  %v5768_v42 = vshll.u32 %v552_v41, 8 }
  0x6c   :  { %v562_v34 = vshrl.u32 %v5289_v49, %v559_v12  ;;  %v565_v18 = vshrl.u32 %v5290_v51, %v559_v12  ;;  %v417_v22 = vor.u32 4788187, %v416_v43  ;;  %v420_v20 = vcvt.s32.f32 %v5751_v2 }
  0x6d   :  { %v507_v13 = vsub.s32 0, %v5753_v26  ;;  %v567_v63 = vshll.u32 %v5290_v51, %v558_v62  ;;  %v560_v21 = vshrl.u32 %v5288_v47, %v559_v12  ;;  %v5065_v44 = vadd.s32 4294967169, %v651_v48 }
  0x6e   :  { %v563_v23 = vor.u32 %v562_v34, %v561_v11  ;;  %v566_v25 = vor.u32 %v565_v18, %v564_v16  ;;  %v568_v1 = vshrl.u32 %v5291_v54, %v559_v12  ;;  %v570_v14 = vshll.u32 %v5291_v54, %v558_v62 }
  0x6f   :  { %v5058_v30 = vmin.u32 %v507_v13, %v5753_v26  ;;  %vm576_vm0 = vcmp.lt.s32.totalorder %v557_v36, 1  ;;  %v571_v50 = vshrl.u32 %v5292_v56, %v559_v12  ;;  %v573_v33 = vshll.u32 %v5292_v56, %v558_v62 }
  0x70   :  { %v574_v53 = vshrl.u32 %v5293_v0, %v559_v12  ;;  %vm577_vm1 = vcmp.lt.s32.totalorder %v557_v36, 2  ;;  %v569_v15 = vor.u32 %v568_v1, %v567_v63  ;;  %vm578_vm2 = vcmp.lt.s32.totalorder %v557_v36, 3 }
  0x71   :  { %v509_v32 = vclz %v5058_v30  ;;  %vm579_vm3 = vcmp.lt.s32.totalorder %v557_v36, 4  ;;  %v572_v19 = vor.u32 %v571_v50, %v570_v14  ;;  %v580_v3 = vsel %vm576_vm0, %v560_v21, %v563_v23 }
  0x72   :  { %v575_v39 = vor.u32 %v574_v53, %v573_v33  ;;  %v584_v46 = vsel %vm576_vm0, %v563_v23, %v566_v25  ;;  %v581_v27 = vsel %vm579_vm3, %v569_v15, 2102212464  ;;  %v588_v57 = vsel %vm576_vm0, %v566_v25, %v569_v15 }
  0x73   :  { %v5059_v40 = vadd.s32 4294967294, %v509_v32  ;;  %v657_v8 = vadd.s32 1, %v5065_v44  ;;  %v5779_v37 = vpop.eup %5236  ;;  %v582_v10 = vsel %vm578_vm2, %v566_v25, %v581_v27  ;;  %v585_v41 = vsel %vm579_vm3, %v572_v19, 920167782 }
  0x74   :  { %v589_v62 = vsel %vm579_vm3, %v575_v39, 1326507024  ;;  %v418_v2 = vand.u32 2147483647, %v417_v22  ;;  %vm340_vm5 = vcmp.lt.s32.totalorder %v5433_v6, 0  ;;  %v583_v48 = vsel %vm577_vm1, %v580_v3, %v582_v10 }
  0x75   :  { %vm5060_vm4 = vcmp.lt.s32.totalorder %v5059_v40, 0  ;;  %v586_v13 = vsel %vm578_vm2, %v569_v15, %v585_v41  ;;  %v590_v16 = vsel %vm578_vm2, %v572_v19, %v589_v62  ;;  %vm658_vm6 = vcmp.gt.s32.totalorder %v657_v8, 0 }
  0x76   :  { %v512_v61 = vsel %vm5060_vm4, 0, %v5059_v40  ;;  %v587_v30 = vsel %vm577_vm1, %v584_v46, %v586_v13  ;;  %v591_v63 = vsel %vm577_vm1, %v588_v57, %v590_v16  ;;  %vm5800_vm7 = vcmp.le.f32.partialorder %v338_v35, 0.7853982 }
  0x77   :  { %v513_v43 = vsub.s32 32, %v512_v61  ;;  %v514_v12 = vshll.u32 %v5753_v26, %v512_v61  ;;  %v517_v11 = vsub.s32 4294967266, %v512_v61  ;;  %v647_v36 = vand.u32 2147483647, %v5714_v45 }
  0x78   :  { %v5790_v22 = vmul.u32.u64.low %v5768_v42, %v591_v63  ;;  %v5791_v21 = vmul.u32.u64.high %v5768_v42, %v591_v63, %v5790_v22  ;;  %v5794_v26 = vmul.u32.u64.low %v5768_v42, %v587_v30  ;;  %v5795_v23 = vmul.u32.u64.high %v5768_v42, %v587_v30, %v5794_v26 }
  0x79   :  { %v515_v34 = vshrl.u32 %v497_v28, %v513_v43  ;;  %v518_v18 = vadd.s32 127, %v517_v11  ;;  %v421_v28 = vmul.f32 %v420_v20, %v418_v2  ;;  %v659_v32 = vsel %vm658_vm6, %v657_v8, 0 }
  0x7a   :  { %v5808_v1 = vsel %vm5719_vm13, 0, %v5749_v59  ;;  %5238 = vsinq.f32 %v5735_v60  ;;  %v661_v50 = vand.u32 31, %v659_v32  ;;  %v599_v20 = vmul.u32 %v5768_v42, %v583_v48 }
  0x7b   :  { %v519_v44 = vshll.u32 %v518_v18, 23  ;;  %v516_v14 = vor.u32 %v515_v34, %v514_v12  ;;  %v5812_v33 = vand.u32 3, %v5808_v1  ;;  %5240 = vcosq.f32 %v5760_v7 }
  0x7c   :  { %v321_v53 = vsub.s32 4, %v5597_v17  ;;  %5242 = vsinq.f32 %v5760_v7  ;;  %vm601_vm8 = vc.u32 %v5791_v21, %v5794_v26  ;;  %v602_v38 = vadd.s32 1, %v5795_v23 }
  0x7d   :  { %v520_v35 = vor.u32 4788187, %v519_v44  ;;  %v422_v60 = vxor.u32 2147483648, %v421_v28  ;;  %v654_v59 = vand.u32 8388607, %v647_v36  ;;  %v5823_v40 = vshrl.u32 %v659_v32, 5 }
  0x7e   :  { %v662_v15 = vsub.s32 32, %v661_v50  ;;  %v523_v19 = vcvt.s32.f32 %v516_v14  ;;  %v603_v39 = vsel %vm601_vm8, %v602_v38, %v5795_v23  ;;  %v664_v42 = vshll.u32 %v5288_v47, %v661_v50 }
  0x7f   :  { %v667_v3 = vshll.u32 %v5289_v49, %v661_v50  ;;  %v521_v7 = vand.u32 2147483647, %v520_v35  ;;  %v604_v46 = vadd.s32 %v603_v39, %v599_v20  ;;  %v670_v57 = vshll.u32 %v5290_v51, %v661_v50  ;;  %v5095_v35 = vld [vmem:[%s9582_s1 + $0x20] sm:$0x7] }
  0x80   :  { %v665_v27 = vshrl.u32 %v5289_v49, %v662_v15  ;;  %v668_v8 = vshrl.u32 %v5290_v51, %v662_v15  ;;  %v671_v61 = vshrl.u32 %v5291_v54, %v662_v15  ;;  %v673_v10 = vshll.u32 %v5291_v54, %v661_v50 }
  0x81   :  { %v674_v41 = vshrl.u32 %v5292_v56, %v662_v15  ;;  %v423_v62 = vsel %vm340_vm5, %v422_v60, %v421_v28  ;;  %v605_v2 = vadd.s32 536870912, %v604_v46  ;;  %v655_v43 = vor.u32 8388608, %v654_v59 }
  0x82   :  { %v676_v12 = vshll.u32 %v5292_v56, %v661_v50  ;;  %v666_v11 = vor.u32 %v665_v27, %v664_v42  ;;  %v669_v48 = vor.u32 %v668_v8, %v667_v3  ;;  %v677_v16 = vshrl.u32 %v5293_v0, %v662_v15 }
  0x83   :  { %v675_v13 = vor.u32 %v674_v41, %v673_v10  ;;  %v322_v34 = vsel %vm237_vm12, %v321_v53, %v5597_v17  ;;  %v5841_v18 = vshrl.u32 %v605_v2, 30  ;;  %v672_v30 = vor.u32 %v671_v61, %v670_v57 }
  0x84   :  { %vm679_vm9 = vcmp.lt.s32.totalorder %v5823_v40, 1  ;;  %v5844_v63 = vpop.eup %5238  ;;  %v426_v22 = vsel %vm5800_vm7, %v5433_v6, %v423_v62  ;;  %v524_v23 = vmul.f32 %v523_v19, %v521_v7  ;;  %vm681_vm10 = vcmp.lt.s32.totalorder %v5823_v40, 3 }
  0x85   :  { %vm682_vm11 = vcmp.lt.s32.totalorder %v5823_v40, 4  ;;  %v5851_v28 = vpop.eup %5240  ;;  %v607_v17 = vshll.u32 %v5841_v18, 30  ;;  %v663_v44 = vshrl.u32 %v5288_v47, %v662_v15  ;;  %v678_v32 = vor.u32 %v677_v16, %v676_v12 }
  0x86   :  { %vm680_vm12 = vcmp.lt.s32.totalorder %v5823_v40, 2  ;;  %v5856_v14 = vpop.eup %5242  ;;  %v5860_v50 = vsel %vm5740_vm15, 0, %v322_v34  ;;  %vm5864_vm13 = vcmp.le.f32.partialorder %v441_v31, 0.7853982  ;;  %v687_v20 = vsel %vm679_vm9, %v666_v11, %v669_v48 }
  0x87   :  { %v688_v53 = vsel %vm682_vm11, %v675_v13, 920167782  ;;  %v5872_v38 = vshll.u32 %v655_v43, 8  ;;  %5244 = vcosq.f32 %v426_v22  ;;  %v5874_v60 = vsub.s32 %v604_v46, %v607_v17 }
  0x88   :  { %v684_v24 = vsel %vm682_vm11, %v672_v30, 2102212464  ;;  %v689_v31 = vsel %vm681_vm10, %v672_v30, %v688_v53  ;;  %v424_v59 = vsub.s32 4, %v5668_v9  ;;  %5246 = vsinq.f32 %v426_v22 }
  0x89   :  { %v525_v15 = vxor.u32 2147483648, %v524_v23  ;;  %v690_v19 = vsel %vm680_vm12, %v687_v20, %v689_v31  ;;  %v610_v39 = vsub.s32 0, %v5874_v60  ;;  %v683_v42 = vsel %vm679_vm9, %v663_v44, %v666_v11 }
  0x8a   :  { %v691_v3 = vsel %vm679_vm9, %v669_v48, %v672_v30  ;;  %v692_v7 = vsel %vm682_vm11, %v678_v32, 1326507024  ;;  %v685_v46 = vsel %vm681_vm10, %v669_v48, %v684_v24  ;;  %vm227_vm14 = vcmp.eq.s32.totalorder %v5812_v33, 0 }
  0x8b   :  { %v693_v27 = vsel %vm681_vm10, %v675_v13, %v692_v7  ;;  %v5895_v57 = vmul.u32.u64.low %v5872_v38, %v690_v19  ;;  %v5896_v8 = vmul.u32.u64.high %v5872_v38, %v690_v19, %v5895_v57  ;;  %v328_v61 = vand.u32 3, %v5860_v50 }
  0x8c   :  { %vm443_vm15 = vcmp.lt.s32.totalorder %v5559_v58, 0  ;;  %v5062_v10 = vmin.u32 %v610_v39, %v5874_v60  ;;  %vm226_vm0 = vcmp.lt.s32.totalorder %v5812_v33, 2  ;;  %vm230_vm1 = vcmp.eq.s32.totalorder %v5812_v33, 2 }
  0x8d   :  { %v231_v41 = vxor.u32 2147483648, %v5779_v37  ;;  %v425_v62 = vsel %vm340_vm5, %v424_v59, %v5668_v9  ;;  %v694_v2 = vsel %vm680_vm12, %v691_v3, %v693_v27  ;;  %v686_v12 = vsel %vm680_vm12, %v683_v42, %v685_v46 }
  0x8e   :  { %v612_v43 = vclz %v5062_v10  ;;  %v5914_v11 = vmul.u32.u64.low %v5872_v38, %v694_v2  ;;  %v5915_v48 = vmul.u32.u64.high %v5872_v38, %v694_v2, %v5914_v11  ;;  %v228_v13 = vxor.u32 2147483648, %v5844_v63 }
  0x8f   :  { %v334_v16 = vxor.u32 2147483648, %v5851_v28  ;;  %v526_v34 = vsel %vm443_vm15, %v525_v15, %v524_v23  ;;  %v705_v9 = vadd.s32 1, %v5896_v8  ;;  %vm224_vm2 = vweird.f32 %v5429_v4 }
  0x90   :  { %vm327_vm3 = vweird.f32 %v5431_v5  ;;  %v331_v40 = vxor.u32 2147483648, %v5856_v14  ;;  %vm333_vm4 = vcmp.eq.s32.totalorder %v328_v61, 2  ;;  %v5927_v30 = vsel %vm5800_vm7, 0, %v425_v62 }
  0x91   :  { %v5063_v22 = vadd.s32 4294967294, %v612_v43  ;;  %vm329_vm5 = vcmp.lt.s32.totalorder %v328_v61, 2  ;;  %vm330_vm6 = vcmp.eq.s32.totalorder %v328_v61, 0  ;;  %v431_v17 = vand.u32 3, %v5927_v30  ;;  %v5931_v44 = vpop.eup %5244 }
  0x92   :  { %v702_v23 = vmul.u32 %v5872_v38, %v686_v12  ;;  %v232_v32 = vsel %vm230_vm1, %v231_v41, %v5844_v63  ;;  %v529_v25 = vsel %vm5864_vm13, %v5559_v58, %v526_v34  ;;  %vm704_vm8 = vc.u32 %v5915_v48, %v5895_v57  ;;  %v5943_v20 = vpop.eup %5246 }
  0x93   :  { %vm5064_vm7 = vcmp.lt.s32.totalorder %v5063_v22, 0  ;;  %v229_v53 = vsel %vm227_vm14, %v5779_v37, %v228_v13  ;;  %v335_v38 = vsel %vm333_vm4, %v334_v16, %v5856_v14  ;;  %v706_v31 = vsel %vm704_vm8, %v705_v9, %v5896_v8 }
  0x94   :  { %v615_v24 = vsel %vm5064_vm7, 0, %v5063_v22  ;;  %v332_v59 = vsel %vm330_vm6, %v5851_v28, %v331_v40  ;;  %v527_v15 = vsub.s32 4, %v5729_v55  ;;  %v843_v39 = vadd.s32 3, %v5808_v1 }
  0x95   :  { %v620_v19 = vsub.s32 4294967266, %v615_v24  ;;  %vm430_vm9 = vweird.f32 %v5433_v6  ;;  %5248 = vcosq.f32 %v529_v25  ;;  %v600_v42 = vadd.s32 %v5794_v26, %v5791_v21 }
  0x96   :  { %v616_v3 = vsub.s32 32, %v615_v24  ;;  %v707_v7 = vadd.s32 %v706_v31, %v702_v23  ;;  %v434_v46 = vxor.u32 2147483648, %v5943_v20  ;;  %v437_v27 = vxor.u32 2147483648, %v5931_v44  ;;  %v5094_v23 = vld [vmem:[%s9582_s1 + $0x1c] sm:$0x7] }
  0x97   :  { %5250 = vsinq.f32 %v529_v25  ;;  %v621_v8 = vadd.s32 127, %v620_v19  ;;  %vm432_vm10 = vcmp.lt.s32.totalorder %v431_v17, 2  ;;  %vm433_vm11 = vcmp.eq.s32.totalorder %v431_v17, 0 }
  0x98   :  { %vm436_vm12 = vcmp.eq.s32.totalorder %v431_v17, 2  ;;  %v708_v10 = vadd.s32 536870912, %v707_v7  ;;  %v233_v1 = vsel %vm226_vm0, %v229_v53, %v232_v32  ;;  %v336_v62 = vsel %vm329_vm5, %v332_v59, %v335_v38 }
  0x99   :  { %v528_v21 = vsel %vm443_vm15, %v527_v15, %v5729_v55  ;;  %vm5972_vm14 = vcmp.le.f32.partialorder %v544_v52, 0.7853982  ;;  %v844_v2 = vand.u32 3, %v843_v39  ;;  %v617_v43 = vshll.u32 %v5874_v60, %v615_v24 }
  0x9a   :  { %v618_v12 = vshrl.u32 %v600_v42, %v616_v3  ;;  %v622_v11 = vshll.u32 %v621_v8, 23  ;;  %v5977_v34 = vshrl.u32 %v708_v10, 30  ;;  %v435_v33 = vsel %vm433_vm11, %v5931_v44, %v434_v46 }
  0x9b   :  { %v438_v55 = vsel %vm436_vm12, %v437_v27, %v5943_v20  ;;  %vm546_vm15 = vcmp.lt.s32.totalorder %v5680_v29, 0  ;;  %v630_v52 = vsub.s32 4, %v5841_v18  ;;  %v5989_v61 = vsel %vm224_vm2, nan, %v233_v1 }
  0x9c   :  { %v5993_v60 = vsel %vm327_vm3, nan, %v336_v62  ;;  %v530_v9 = vsel %vm5864_vm13, 0, %v528_v21  ;;  %v710_v22 = vshll.u32 %v5977_v34, 30  ;;  %vm846_vm0 = vcmp.eq.s32.totalorder %v844_v2, 0 }
  0x9d   :  { %v6001_v32 = vand.u32 3, %v530_v9  ;;  %vm849_vm1 = vcmp.eq.s32.totalorder %v844_v2, 2  ;;  %v947_v25 = vadd.s32 3, %v5860_v50  ;;  %v439_v53 = vsel %vm432_vm10, %v435_v33, %v438_v55 }
  0x9e   :  { %v619_v38 = vor.u32 %v618_v12, %v617_v43  ;;  %v623_v24 = vor.u32 4788187, %v622_v11  ;;  %v6005_v31 = vsub.s32 %v707_v7, %v710_v22  ;;  %v631_v59 = vsel %vm546_vm15, %v630_v52, %v5841_v18  ;;  %v5093_v18 = vld [vmem:[%s9582_s1 + $0x18] sm:$0x7] }
  0x9f   :  { %v1051_v15 = vadd.s32 3, %v5927_v30  ;;  %v1155_v19 = vadd.s32 3, %v530_v9  ;;  %v1382_v39 = vmul.f32 0.0, %v5094_v23  ;;  %v6014_v42 = vpop.eup %5248  ;;  %vm845_vm13 = vcmp.lt.s32.totalorder %v844_v2, 2 }
  0xa0   :  { %v713_v50 = vsub.s32 0, %v6005_v31  ;;  %v848_v17 = vsel %vm846_vm0, %v5779_v37, %v228_v13  ;;  %v851_v3 = vsel %vm849_vm1, %v231_v41, %v5844_v63  ;;  %v6030_v7 = vsel %vm430_vm9, nan, %v439_v53  ;;  %v5096_v41 = vld [vmem:[%s9582_s1 + $0x24] sm:$0x7] }
  0xa1   :  { %v6026_v30 = vpop.eup %5250  ;;  %v6032_v8 = vand.u32 3, %v947_v25  ;;  %v1383_v10 = vadd.f32 %v5093_v18, %v1382_v39  ;;  %v1384_v1 = vmul.f32 0.0, %v5095_v35  ;;  %v624_v62 = vand.u32 2147483647, %v623_v24 }
  0xa2   :  { %v626_v13 = vcvt.s32.f32 %v619_v38  ;;  %v6036_v37 = vsel %vm5972_vm14, 0, %v631_v59  ;;  %v5066_v63 = vmin.u32 %v713_v50, %v6005_v31  ;;  %v540_v21 = vxor.u32 2147483648, %v6014_v42 }
  0xa3   :  { %v6044_v43 = vand.u32 3, %v6036_v37  ;;  %v852_v12 = vsel %vm845_vm13, %v848_v17, %v851_v3  ;;  %v6047_v11 = vand.u32 3, %v1051_v15  ;;  %v537_v33 = vxor.u32 2147483648, %v6026_v30 }
  0xa4   :  { %v715_v55 = vclz %v5066_v63  ;;  %v6050_v52 = vand.u32 3, %v1155_v19  ;;  %v1385_v9 = vsub.f32 %v1383_v10, %v1384_v1  ;;  %vm536_vm4 = vcmp.eq.s32.totalorder %v6001_v32, 0 }
  0xa5   :  { %vm539_vm5 = vcmp.eq.s32.totalorder %v6001_v32, 2  ;;  %vm950_vm6 = vcmp.eq.s32.totalorder %v6032_v8, 0  ;;  %v1386_v22 = vmul.f32 0.0, %v5096_v41  ;;  %v1388_v25 = vmul.f32 0.0, %v5093_v18 }
  0xa6   :  { %v1395_v53 = vsub.f32 %v1384_v1, %v5096_v41  ;;  %v627_v38 = vmul.f32 %v626_v13, %v624_v62  ;;  %v703_v2 = vadd.s32 %v5895_v57, %v5915_v48  ;;  %v5067_v24 = vadd.s32 4294967294, %v715_v55 }
  0xa7   :  { %v853_v59 = vsel %vm224_vm2, nan, %v852_v12  ;;  %vm949_vm7 = vcmp.lt.s32.totalorder %v6032_v8, 2  ;;  %v1387_v15 = vadd.f32 %v1386_v22, %v1385_v9  ;;  %v1389_v19 = vsub.f32 %v1388_v25, %v5094_v23 }
  0xa8   :  { %v1392_v50 = vadd.f32 %v5095_v35, %v1386_v22  ;;  %vm5068_vm8 = vcmp.lt.s32.totalorder %v5067_v24, 0  ;;  %v952_v17 = vsel %vm950_vm6, %v5851_v28, %v331_v40  ;;  %vm953_vm10 = vcmp.eq.s32.totalorder %v6032_v8, 2 }
  0xa9   :  { %v1396_v3 = vadd.f32 %v1395_v53, %v1388_v25  ;;  %v718_v18 = vsel %vm5068_vm8, 0, %v5067_v24  ;;  %vm1054_vm11 = vcmp.eq.s32.totalorder %v6047_v11, 0  ;;  %v1390_v57 = vsub.f32 %v1389_v19, %v1384_v1  ;;  %v5097_v19 = vld [vmem:[%s9582_s1 + $0x28] sm:$0x7] }
  0xaa   :  { %v1393_v48 = vadd.f32 %v1392_v50, %v1388_v25  ;;  %v628_v4 = vxor.u32 2147483648, %v627_v38  ;;  %v723_v10 = vsub.s32 4294967266, %v718_v18  ;;  %v1398_v13 = vmul.f32 %v1387_v15, %v5989_v61 }
  0xab   :  { %v1397_v62 = vadd.f32 %v1396_v3, %v1382_v39  ;;  %v719_v23 = vsub.s32 32, %v718_v18  ;;  %v955_v35 = vsel %vm953_vm10, %v334_v16, %v5856_v14  ;;  %v1391_v63 = vsub.f32 %v1390_v57, %v1386_v22 }
  0xac   :  { %v1394_v40 = vsub.f32 %v1393_v48, %v1382_v39  ;;  %v724_v41 = vadd.s32 127, %v723_v10  ;;  %v1408_v9 = vmul.f32 %v1387_v15, %v853_v59  ;;  %v629_v28 = vsel %vm546_vm15, %v628_v4, %v627_v38  ;;  %v5098_v39 = vld [vmem:[%s9582_s1 + $0x2c] sm:$0x7] }
  0xad   :  { %v1399_v12 = vmul.f32 %v1397_v62, %v853_v59  ;;  %v1407_v55 = vmul.f32 %v1397_v62, %v5989_v61  ;;  %v1401_v1 = vmul.f32 %v1391_v63, %v5989_v61  ;;  %v1405_v24 = vmul.f32 %v1391_v63, %v853_v59 }
  0xae   :  { %v1402_v25 = vmul.f32 %v1394_v40, %v853_v59  ;;  %v1404_v53 = vmul.f32 %v1394_v40, %v5989_v61  ;;  %v720_v14 = vshll.u32 %v6005_v31, %v718_v18  ;;  %vm1057_vm2 = vcmp.eq.s32.totalorder %v6047_v11, 2 }
  0xaf   :  { %v1400_v16 = vadd.f32 %v1399_v12, %v1398_v13  ;;  %v721_v22 = vshrl.u32 %v703_v2, %v719_v23  ;;  %v725_v15 = vshll.u32 %v724_v41, 23  ;;  %v6087_v50 = vsel %vm536_vm4, %v6014_v42, %v537_v33  ;;  %v5099_v2 = vld [vmem:[%s9582_s1 + $0x30] sm:$0x7] }
  0xb0   :  { %v1403_v61 = vsub.f32 %v1401_v1, %v1402_v25  ;;  %v1406_v59 = vadd.f32 %v1405_v24, %v1404_v53  ;;  %v6094_v31 = vsel %vm539_vm5, %v540_v21, %v6026_v30  ;;  %v1409_v38 = vsub.f32 %v1407_v55, %v1408_v9 }
  0xb1   :  { %v1418_v3 = vmul.f32 %v5097_v19, %v1400_v16  ;;  %vm649_vm12 = vcmp.lt.s32.totalorder %v5714_v45, 0  ;;  %vm1053_vm15 = vcmp.lt.s32.totalorder %v6047_v11, 2  ;;  %v1056_v18 = vsel %vm1054_vm11, %v5931_v44, %v434_v46  ;;  %v5100_v46 = vld [vmem:[%s9582_s1 + $0x34] sm:$0x7] }
  0xb2   :  { %v1419_v57 = vmul.f32 %v5098_v39, %v1403_v61  ;;  %v1421_v48 = vmul.f32 %v5099_v2, %v1406_v59  ;;  %v632_v4 = vsel %vm5972_vm14, %v5680_v29, %v629_v28  ;;  %v956_v10 = vsel %vm949_vm7, %v952_v17, %v955_v35 }
  0xb3   :  { %v1059_v62 = vsel %vm1057_vm2, %v437_v27, %v5943_v20  ;;  %v1425_v13 = vmul.f32 %v5097_v19, %v1403_v61  ;;  %v722_v23 = vor.u32 %v721_v22, %v720_v14  ;;  %v726_v63 = vor.u32 4788187, %v725_v15 }
  0xb4   :  { %v1420_v40 = vadd.f32 %v1419_v57, %v1418_v3  ;;  %v1426_v41 = vmul.f32 %v5098_v39, %v1400_v16  ;;  %vm535_vm14 = vcmp.lt.s32.totalorder %v6001_v32, 2  ;;  %vm6122_vm0 = vcmp.le.f32.partialorder %v647_v36, 0.7853982  ;;  %v5101_v32 = vld [vmem:[%s9582_s1 + $0x38] sm:$0x7] }
  0xb5   :  { %v733_v44 = vsub.s32 4, %v5977_v34  ;;  %vm1158_vm1 = vcmp.eq.s32.totalorder %v6050_v52, 0  ;;  %vm1161_vm13 = vcmp.eq.s32.totalorder %v6050_v52, 2  ;;  %v1428_v20 = vmul.f32 %v5099_v2, %v1409_v38 }
  0xb6   :  { %5252 = vcosq.f32 %v632_v4  ;;  %v1422_v27 = vsub.f32 %v1420_v40, %v1421_v48  ;;  %v1423_v8 = vmul.f32 %v5100_v46, %v1409_v38  ;;  %v1427_v17 = vsub.f32 %v1425_v13, %v1426_v41 }
  0xb7   :  { %5254 = vsinq.f32 %v632_v4  ;;  %vm1157_vm4 = vcmp.lt.s32.totalorder %v6050_v52, 2  ;;  %v1430_v35 = vmul.f32 %v5100_v46, %v1406_v59  ;;  %v1432_v12 = vmul.f32 %v5099_v2, %v1400_v16 }
  0xb8   :  { %v1433_v36 = vmul.f32 %v5100_v46, %v1403_v61  ;;  %v727_v55 = vand.u32 2147483647, %v726_v63  ;;  %v729_v9 = vcvt.s32.f32 %v722_v23  ;;  %v1429_v1 = vsub.f32 %v1427_v17, %v1428_v20 }
  0xb9   :  { %v1435_v25 = vmul.f32 %v5097_v19, %v1406_v59  ;;  %v1437_v24 = vmul.f32 %v5098_v39, %v1409_v38  ;;  %v1439_v28 = vmul.f32 %v5099_v2, %v1403_v61  ;;  %v1440_v14 = vmul.f32 %v5100_v46, %v1400_v16 }
  0xba   :  { %v1434_v53 = vadd.f32 %v1433_v36, %v1432_v12  ;;  %v1259_v22 = vadd.s32 3, %v6036_v37  ;;  %v1424_v15 = vadd.f32 %v1423_v8, %v1422_v27  ;;  %v1431_v3 = vsub.f32 %v1429_v1, %v1430_v35  ;;  %v5103_v36 = vld [vmem:[%s9582_s1 + $0x40] sm:$0x7] }
  0xbb   :  { %v1442_v57 = vmul.f32 %v5097_v19, %v1409_v38  ;;  %v734_v48 = vsel %vm649_vm12, %v733_v44, %v5977_v34  ;;  %v1441_v13 = vsub.f32 %v1439_v28, %v1440_v14  ;;  %v1444_v40 = vmul.f32 %v5098_v39, %v1406_v59 }
  0xbc   :  { %v1436_v4 = vadd.f32 %v1435_v25, %v1434_v53  ;;  %v730_v63 = vmul.f32 %v729_v9, %v727_v55  ;;  %v957_v23 = vsel %vm327_vm3, nan, %v956_v10  ;;  %v1060_v61 = vsel %vm1053_vm15, %v1056_v18, %v1059_v62 }
  0xbd   :  { %v1160_v37 = vsel %vm1158_vm1, %v6014_v42, %v537_v33  ;;  %v1443_v16 = vadd.f32 %v1442_v57, %v1441_v13  ;;  %v1449_v34 = vmul.f32 %v1431_v3, %v5993_v60  ;;  %v1453_v38 = vmul.f32 %v1431_v3, %v957_v23 }
  0xbe   :  { %v1438_v19 = vsub.f32 %v1436_v4, %v1437_v24  ;;  %v6146_v39 = vsel %vm6122_vm0, 0, %v734_v48  ;;  %v1163_v5 = vsel %vm1161_vm13, %v540_v21, %v6026_v30  ;;  %v6153_v11 = vand.u32 3, %v1259_v22  ;;  %v5102_v30 = vld [vmem:[%s9582_s1 + $0x3c] sm:$0x7] }
  0xbf   :  { %v1446_v59 = vmul.f32 %v1424_v15, %v5993_v60  ;;  %v1445_v33 = vadd.f32 %v1444_v40, %v1443_v16  ;;  %v1456_v10 = vmul.f32 %v1424_v15, %v957_v23  ;;  %v6161_v46 = vsel %vm535_vm14, %v6087_v50, %v6094_v31  ;;  %v5104_v50 = vld [vmem:[%s9582_s1 + $0x44] sm:$0x7] }
  0xc0   :  { %v1450_v2 = vmul.f32 %v1438_v19, %v957_v23  ;;  %v1452_v18 = vmul.f32 %v1438_v19, %v5993_v60  ;;  %v5253_v62 = vpop.eup %5252  ;;  %vm639_vm3 = vcmp.eq.s32.totalorder %v6044_v43, 0  ;;  %vm642_vm5 = vcmp.eq.s32.totalorder %v6044_v43, 2 }
  0xc1   :  { %v731_v42 = vxor.u32 2147483648, %v730_v63  ;;  %v5255_v21 = vpop.eup %5254  ;;  %v1447_v41 = vmul.f32 %v1445_v33, %v957_v23  ;;  %v1455_v27 = vmul.f32 %v1445_v33, %v5993_v60  ;;  %v1061_v31 = vsel %vm430_vm9, nan, %v1060_v61 }
  0xc2   :  { %v1451_v44 = vsub.f32 %v1449_v34, %v1450_v2  ;;  %v1454_v20 = vadd.f32 %v1453_v38, %v1452_v18  ;;  %v6179_v8 = vsel %vm1157_vm4, %v1160_v37, %v1163_v5  ;;  %vm1265_vm6 = vcmp.eq.s32.totalorder %v6153_v11, 2 }
  0xc3   :  { %v6183_v17 = vadd.s32 3, %v6146_v39  ;;  %v643_v60 = vxor.u32 2147483648, %v5253_v62  ;;  %v1448_v35 = vadd.f32 %v1447_v41, %v1446_v59  ;;  %v1457_v12 = vsub.f32 %v1455_v27, %v1456_v10 }
  0xc4   :  { %v1467_v55 = vmul.f32 %v5102_v30, %v1451_v44  ;;  %vm533_vm7 = vweird.f32 %v5559_v58  ;;  %v640_v6 = vxor.u32 2147483648, %v5255_v21  ;;  %v732_v52 = vsel %vm649_vm12, %v731_v42, %v730_v63 }
  0xc5   :  { %v1473_v9 = vmul.f32 %v5101_v32, %v1451_v44  ;;  %v1481_v1 = vmul.f32 %v5104_v50, %v1451_v44  ;;  %v1466_v25 = vmul.f32 %v5101_v32, %v1448_v35  ;;  %v1469_v53 = vmul.f32 %v5103_v36, %v1454_v20 }
  0xc6   :  { %v1474_v24 = vmul.f32 %v5102_v30, %v1448_v35  ;;  %v1476_v28 = vmul.f32 %v5103_v36, %v1457_v12  ;;  %vm638_vm9 = vcmp.lt.s32.totalorder %v6044_v43, 2  ;;  %v1478_v14 = vmul.f32 %v5104_v50, %v1454_v20 }
  0xc7   :  { %v1480_v22 = vmul.f32 %v5103_v36, %v1448_v35  ;;  %v1483_v15 = vmul.f32 %v5101_v32, %v1454_v20  ;;  %v1487_v3 = vmul.f32 %v5103_v36, %v1451_v44  ;;  %v1468_v57 = vadd.f32 %v1467_v55, %v1466_v25 }
  0xc8   :  { %v1471_v48 = vmul.f32 %v5104_v50, %v1457_v12  ;;  %v1475_v4 = vsub.f32 %v1473_v9, %v1474_v24  ;;  %v1488_v13 = vmul.f32 %v5104_v50, %v1448_v35  ;;  %vm1262_vm8 = vcmp.eq.s32.totalorder %v6153_v11, 0  ;;  %v6221_v35 = vld [vmem:[%s9583_s2 + $0x1] sm:$0x1]  ;;  %v5107_v24 = vld [vmem:[%s9582_s1 + $0x50] sm:$0x7] }
  0xc9   :  { %v1482_v40 = vadd.f32 %v1481_v1, %v1480_v22  ;;  %v1485_v63 = vmul.f32 %v5102_v30, %v1457_v12  ;;  %v1490_v23 = vmul.f32 %v5101_v32, %v1457_v12  ;;  %v735_v61 = vsel %vm6122_vm0, %v5714_v45, %v732_v52  ;;  %v1901_v52 = vld [vmem:[%s9583_s2] sm:$0x1] }
  0xca   :  { %vm1261_vm10 = vcmp.lt.s32.totalorder %v6153_v11, 2  ;;  %v1470_v37 = vsub.f32 %v1468_v57, %v1469_v53  ;;  %v1477_v19 = vsub.f32 %v1475_v4, %v1476_v28  ;;  %v644_v16 = vsel %vm642_vm5, %v643_v60, %v5255_v21 }
  0xcb   :  { %v1267_v34 = vsel %vm1265_vm6, %v643_v60, %v5255_v21  ;;  %v1484_v38 = vadd.f32 %v1483_v15, %v1482_v40  ;;  %v1489_v5 = vsub.f32 %v1487_v3, %v1488_v13  ;;  %v641_v59 = vsel %vm639_vm3, %v5253_v62, %v640_v6 }
  0xcc   :  { %v1264_v33 = vsel %vm1262_vm8, %v5253_v62, %v640_v6  ;;  %v1472_v2 = vadd.f32 %v1471_v48, %v1470_v37  ;;  %v1479_v18 = vsub.f32 %v1477_v19, %v1478_v14  ;;  %5256 = vcosq.f32 %v735_v61  ;;  %v5105_v6 = vld [vmem:[%s9582_s1 + $0x48] sm:$0x7]  ;;  %v5130_v19 = vld [vmem:[%s9583_s2 + $0x2] sm:$0x1] }
  0xcd   :  { %v1486_v26 = vsub.f32 %v1484_v38, %v1485_v63  ;;  %v1491_v10 = vadd.f32 %v1490_v23, %v1489_v5  ;;  %v1492_v42 = vmul.f32 %v5102_v30, %v1454_v20  ;;  %5258 = vsinq.f32 %v735_v61  ;;  %v5106_v20 = vld [vmem:[%s9582_s1 + $0x4c] sm:$0x7] }
  0xce   :  { %v1494_v41 = vmul.f32 %v1472_v2, %v6030_v7  ;;  %v1497_v44 = vmul.f32 %v1479_v18, %v6030_v7  ;;  %v1501_v27 = vmul.f32 %v1479_v18, %v1061_v31  ;;  %v1504_v60 = vmul.f32 %v1472_v2, %v1061_v31 }
  0xcf   :  { %v1493_v32 = vadd.f32 %v1492_v42, %v1491_v10  ;;  %v1498_v21 = vmul.f32 %v1486_v26, %v1061_v31  ;;  %v1500_v50 = vmul.f32 %v1486_v26, %v6030_v7  ;;  %v6209_v62 = vsel %vm533_vm7, nan, %v6161_v46 }
  0xd0   :  { %vm636_vm11 = vweird.f32 %v5680_v29  ;;  %v6213_v30 = vand.u32 3, %v6146_v39  ;;  %v5108_v39 = vld [vmem:[%s9582_s1 + $0x54] sm:$0x7]  ;;  %v645_v9 = vsel %vm638_vm9, %v641_v59, %v644_v16  ;;  %v6241_v1 = vand.u32 3, %v6183_v17  ;;  %v6261_v16 = vld [vmem:[%s9583_s2 + $0x3] sm:$0x1] }
  0xd1   :  { %v1495_v12 = vmul.f32 %v1493_v32, %v1061_v31  ;;  %v1499_v36 = vsub.f32 %v1497_v44, %v1498_v21  ;;  %v1502_v55 = vadd.f32 %v1501_v27, %v1500_v50  ;;  %v1503_v46 = vmul.f32 %v1493_v32, %v6030_v7 }
  0xd2   :  { %v1165_v31 = vsel %vm533_vm7, nan, %v6179_v8  ;;  %v1268_v7 = vsel %vm1261_vm10, %v1264_v33, %v1267_v34  ;;  %v6247_v43 = vmul.f32 0.0, %v6221_v35  ;;  %v6249_v8 = vmul.f32 0.0, %v1901_v52 }
  0xd3   :  { %v1496_v25 = vadd.f32 %v1495_v12, %v1494_v41  ;;  %v1505_v53 = vsub.f32 %v1503_v46, %v1504_v60  ;;  %v1515_v28 = vmul.f32 %v5106_v20, %v1499_v36  ;;  %v1517_v14 = vmul.f32 %v5107_v24, %v1502_v55 }
  0xd4   :  { %v1521_v22 = vmul.f32 %v5105_v6, %v1499_v36  ;;  %v1529_v58 = vmul.f32 %v5108_v39, %v1499_v36  ;;  %v1526_v17 = vmul.f32 %v5108_v39, %v1502_v55  ;;  %vm742_vm2 = vcmp.eq.s32.totalorder %v6213_v30, 0 }
  0xd5   :  { %v1514_v11 = vmul.f32 %v5105_v6, %v1496_v25  ;;  %v1522_v15 = vmul.f32 %v5106_v20, %v1496_v25  ;;  %v1524_v3 = vmul.f32 %v5107_v24, %v1505_v53  ;;  %vm745_vm12 = vcmp.eq.s32.totalorder %v6213_v30, 2 }
  0xd6   :  { %vm1366_vm15 = vcmp.eq.s32.totalorder %v6241_v1, 0  ;;  %vm1369_vm14 = vcmp.eq.s32.totalorder %v6241_v1, 2  ;;  %v1528_v57 = vmul.f32 %v5107_v24, %v1496_v25  ;;  %v1531_v48 = vmul.f32 %v5105_v6, %v1502_v55  ;;  %v5257_v40 = vpop.eup %5256 }
  0xd7   :  { %v1535_v4 = vmul.f32 %v5107_v24, %v1499_v36  ;;  %v1536_v13 = vmul.f32 %v5108_v39, %v1496_v25  ;;  %v1516_v63 = vadd.f32 %v1515_v28, %v1514_v11  ;;  %v1519_v23 = vmul.f32 %v5108_v39, %v1505_v53  ;;  %v5259_v34 = vpop.eup %5258  ;;  %v5109_v25 = vld [vmem:[%s9582_s1 + $0x58] sm:$0x7] }
  0xd8   :  { %v1523_v61 = vsub.f32 %v1521_v22, %v1522_v15  ;;  %v1538_v37 = vmul.f32 %v5105_v6, %v1505_v53  ;;  %v1530_v38 = vadd.f32 %v1529_v58, %v1528_v57  ;;  %v1533_v5 = vmul.f32 %v5106_v20, %v1505_v53  ;;  %v5110_v53 = vld [vmem:[%s9582_s1 + $0x5c] sm:$0x7] }
  0xd9   :  { %v1537_v59 = vsub.f32 %v1535_v4, %v1536_v13  ;;  %v1540_v33 = vmul.f32 %v5106_v20, %v1502_v55  ;;  %v6265_v2 = vsel %vm636_vm11, nan, %v645_v9  ;;  %v6269_v18 = vsel %vm636_vm11, nan, %v1268_v7  ;;  %v5112_v4 = vld [vmem:[%s9582_s1 + $0x64] sm:$0x7] }
  0xda   :  { %v1518_v26 = vsub.f32 %v1516_v63, %v1517_v14  ;;  %v1525_v10 = vsub.f32 %v1523_v61, %v1524_v3  ;;  %v1532_v42 = vadd.f32 %v1531_v48, %v1530_v38  ;;  %v6271_v44 = vmul.f32 0.0, %v5130_v19  ;;  %v5111_v48 = vld [vmem:[%s9582_s1 + $0x60] sm:$0x7] }
  0xdb   :  { %v1539_v41 = vadd.f32 %v1538_v37, %v1537_v59  ;;  %v6274_v27 = vmul.f32 0.0, %v6261_v16  ;;  %v6277_v50 = vadd.f32 %v6247_v43, %v1901_v52  ;;  %v1915_v60 = vsub.f32 %v6249_v8, %v6221_v35 }
  0xdc   :  { %v1520_v32 = vadd.f32 %v1519_v23, %v1518_v26  ;;  %v1527_v21 = vsub.f32 %v1525_v10, %v1526_v17  ;;  %v743_v29 = vxor.u32 2147483648, %v5259_v34  ;;  %v746_v20 = vxor.u32 2147483648, %v5257_v40 }
  0xdd   :  { %v1534_v12 = vsub.f32 %v1532_v42, %v1533_v5  ;;  %v1541_v36 = vadd.f32 %v1540_v33, %v1539_v41  ;;  %vm741_vm0 = vcmp.lt.s32.totalorder %v6213_v30, 2  ;;  %vm1365_vm1 = vcmp.lt.s32.totalorder %v6241_v1, 2 }
  0xde   :  { %v1542_v55 = vmul.f32 %v1520_v32, %v6209_v62  ;;  %v1545_v46 = vmul.f32 %v1527_v21, %v6209_v62  ;;  %v1549_v6 = vmul.f32 %v1527_v21, %v1165_v31  ;;  %v1552_v39 = vmul.f32 %v1520_v32, %v1165_v31 }
  0xdf   :  { %v1543_v9 = vmul.f32 %v1541_v36, %v1165_v31  ;;  %v1546_v52 = vmul.f32 %v1534_v12, %v1165_v31  ;;  %v1548_v7 = vmul.f32 %v1534_v12, %v6209_v62  ;;  %v1551_v35 = vmul.f32 %v1541_v36, %v6209_v62 }
  0xe0   :  { %v1911_v24 = vsub.f32 %v6277_v50, %v6271_v44  ;;  %v1918_v28 = vadd.f32 %v5130_v19, %v6274_v27  ;;  %v1921_v31 = vsub.f32 %v6271_v44, %v6261_v16  ;;  %v6300_v14 = vadd.f32 %v6249_v8, %v6247_v43  ;;  %v5116_v50 = vld [vmem:[%s9582_s1 + $0x74] sm:$0x7] }
  0xe1   :  { %v1544_v62 = vadd.f32 %v1543_v9, %v1542_v55  ;;  %v1547_v22 = vsub.f32 %v1545_v46, %v1546_v52  ;;  %v1550_v58 = vadd.f32 %v1549_v6, %v1548_v7  ;;  %v1553_v11 = vsub.f32 %v1551_v35, %v1552_v39 }
  0xe2   :  { %vm739_vm13 = vweird.f32 %v5714_v45  ;;  %v744_v15 = vsel %vm742_vm2, %v5257_v40, %v743_v29  ;;  %v747_v3 = vsel %vm745_vm12, %v746_v20, %v5259_v34  ;;  %v1368_v17 = vsel %vm1366_vm15, %v5257_v40, %v743_v29 }
  0xe3   :  { %v1371_v57 = vsel %vm1369_vm14, %v746_v20, %v5259_v34  ;;  %v1562_v13 = vmul.f32 %v5109_v25, %v1544_v62  ;;  %v1563_v63 = vmul.f32 %v5110_v53, %v1547_v22  ;;  %v1565_v23 = vmul.f32 %v5111_v48, %v1550_v58 }
  0xe4   :  { %v1927_v61 = vsub.f32 %v6249_v8, %v6247_v43  ;;  %v1567_v37 = vmul.f32 %v5112_v4, %v1553_v11  ;;  %v1569_v19 = vmul.f32 %v5109_v25, %v1547_v22  ;;  %v1570_v40 = vmul.f32 %v5110_v53, %v1544_v62 }
  0xe5   :  { %v1572_v16 = vmul.f32 %v5111_v48, %v1553_v11  ;;  %v1564_v38 = vadd.f32 %v1563_v63, %v1562_v13  ;;  %v1576_v34 = vmul.f32 %v5111_v48, %v1544_v62  ;;  %v1577_v5 = vmul.f32 %v5112_v4, %v1547_v22 }
  0xe6   :  { %v1579_v59 = vmul.f32 %v5109_v25, %v1550_v58  ;;  %v1571_v33 = vsub.f32 %v1569_v19, %v1570_v40  ;;  %v1574_v26 = vmul.f32 %v5112_v4, %v1550_v58  ;;  %v1583_v10 = vmul.f32 %v5111_v48, %v1547_v22  ;;  %v5113_v48 = vld [vmem:[%s9582_s1 + $0x68] sm:$0x7] }
  0xe7   :  { %v1584_v42 = vmul.f32 %v5112_v4, %v1544_v62  ;;  %v1566_v41 = vsub.f32 %v1564_v38, %v1565_v23  ;;  %v1578_v32 = vadd.f32 %v1577_v5, %v1576_v34  ;;  %v1581_v21 = vmul.f32 %v5110_v53, %v1553_v11  ;;  %v5114_v4 = vld [vmem:[%s9582_s1 + $0x6c] sm:$0x7] }
  0xe8   :  { %v1586_v29 = vmul.f32 %v5109_v25, %v1553_v11  ;;  %v1573_v20 = vsub.f32 %v1571_v33, %v1572_v16  ;;  %v1588_v36 = vmul.f32 %v5110_v53, %v1550_v58  ;;  %v1916_v55 = vsub.f32 %v1915_v60, %v6271_v44 }
  0xe9   :  { %v1585_v12 = vsub.f32 %v1583_v10, %v1584_v42  ;;  %v1568_v46 = vadd.f32 %v1567_v37, %v1566_v41  ;;  %v1580_v6 = vadd.f32 %v1579_v59, %v1578_v32  ;;  %v6321_v39 = vadd.f32 %v1918_v28, %v6249_v8  ;;  %v5115_v37 = vld [vmem:[%s9582_s1 + $0x70] sm:$0x7] }
  0xea   :  { %v6324_v9 = vadd.f32 %v1921_v31, %v6249_v8  ;;  %v748_v52 = vsel %vm741_vm0, %v744_v15, %v747_v3  ;;  %v1372_v7 = vsel %vm1365_vm1, %v1368_v17, %v1371_v57  ;;  %v1575_v35 = vsub.f32 %v1573_v20, %v1574_v26 }
  0xeb   :  { %v1587_v25 = vadd.f32 %v1586_v29, %v1585_v12  ;;  %v1582_v62 = vsub.f32 %v1580_v6, %v1581_v21  ;;  %v1590_v53 = vmul.f32 %v1568_v46, %v6265_v2  ;;  %v1925_v60 = vsub.f32 %v6300_v14, %v6271_v44 }
  0xec   :  { %v1928_v28 = vsub.f32 %v1927_v61, %v6271_v44  ;;  %v1593_v31 = vmul.f32 %v1575_v35, %v6265_v2  ;;  %v1597_v58 = vmul.f32 %v1575_v35, %v6269_v18  ;;  %v1600_v30 = vmul.f32 %v1568_v46, %v6269_v18 }
  0xed   :  { %v1589_v22 = vadd.f32 %v1588_v36, %v1587_v25  ;;  %v6339_v1 = vsel %vm739_vm13, nan, %v748_v52  ;;  %v1594_v11 = vmul.f32 %v1582_v62, %v6269_v18  ;;  %v1596_v15 = vmul.f32 %v1582_v62, %v6265_v2  ;;  %v6396_v36 = vld [vmem:[%s9583_s2 + $0x6] sm:$0x1] }
  0xee   :  { %v1930_v14 = vadd.f32 %v6274_v27, %v6271_v44  ;;  %v6347_v3 = vsel %vm739_vm13, nan, %v1372_v7  ;;  %v6361_v13 = vadd.f32 %v6274_v27, %v1911_v24  ;;  %v6376_v24 = vsub.f32 %v1928_v28, %v6274_v27 }
  0xef   :  { %v1591_v17 = vmul.f32 %v1589_v22, %v6269_v18  ;;  %v1599_v57 = vmul.f32 %v1589_v22, %v6265_v2  ;;  %v1595_v45 = vsub.f32 %v1593_v31, %v1594_v11  ;;  %v1598_v63 = vadd.f32 %v1597_v58, %v1596_v15 }
  0xf0   :  { %v6364_v18 = vsub.f32 %v1916_v55, %v6274_v27  ;;  %v6367_v2 = vadd.f32 %v1925_v60, %v6274_v27  ;;  %v1933_v19 = vsub.f32 %v6271_v44, %v6274_v27  ;;  %v6381_v34 = vadd.f32 %v1930_v14, %v6249_v8  ;;  %v6386_v44 = vld [vmem:[%s9583_s2 + $0x4] sm:$0x1]  ;;  %v6391_v27 = vld [vmem:[%s9583_s2 + $0x5] sm:$0x1] }
  0xf1   :  { %v1592_v23 = vadd.f32 %v1591_v17, %v1590_v53  ;;  %v1601_v61 = vsub.f32 %v1599_v57, %v1600_v30  ;;  %v1611_v40 = vmul.f32 %v5114_v4, %v1595_v45  ;;  %v1613_v16 = vmul.f32 %v5115_v37, %v1598_v63  ;;  %v6404_v53 = vld [vmem:[%s9583_s2 + $0x7] sm:$0x1] }
  0xf2   :  { %v1617_v38 = vmul.f32 %v5113_v48, %v1595_v45  ;;  %v1622_v26 = vmul.f32 %v5116_v50, %v1598_v63  ;;  %v1625_v41 = vmul.f32 %v5116_v50, %v1595_v45  ;;  %v1627_v32 = vmul.f32 %v5113_v48, %v1598_v63 }
  0xf3   :  { %v1610_v5 = vmul.f32 %v5113_v48, %v1592_v23  ;;  %v1618_v59 = vmul.f32 %v5114_v4, %v1592_v23  ;;  %v1620_v33 = vmul.f32 %v5115_v37, %v1601_v61  ;;  %v1615_v10 = vmul.f32 %v5116_v50, %v1601_v61 }
  0xf4   :  { %v1624_v42 = vmul.f32 %v5115_v37, %v1592_v23  ;;  %v1631_v20 = vmul.f32 %v5115_v37, %v1595_v45  ;;  %v1632_v12 = vmul.f32 %v5116_v50, %v1592_v23  ;;  %v1629_v46 = vmul.f32 %v5114_v4, %v1601_v61 }
  0xf5   :  { %v1612_v21 = vadd.f32 %v1611_v40, %v1610_v5  ;;  %v1619_v29 = vsub.f32 %v1617_v38, %v1618_v59  ;;  %v1634_v6 = vmul.f32 %v5113_v48, %v1601_v61  ;;  %v6399_v52 = vadd.f32 %v1933_v19, %v6249_v8  ;;  %v5118_v38 = vld [vmem:[%s9582_s1 + $0x7c] sm:$0x7]  ;;  %v5119_v5 = vld [vmem:[%s9582_s1 + $0x80] sm:$0x7] }
  0xf6   :  { %v1626_v55 = vadd.f32 %v1625_v41, %v1624_v42  ;;  %v1633_v25 = vsub.f32 %v1631_v20, %v1632_v12  ;;  %v1636_v62 = vmul.f32 %v5114_v4, %v1598_v63  ;;  %v1944_v28 = vmul.f32 %v6386_v44, %v6361_v13 }
  0xf7   :  { %v1614_v7 = vsub.f32 %v1612_v21, %v1613_v16  ;;  %v1621_v35 = vsub.f32 %v1619_v29, %v1620_v33  ;;  %v1945_v22 = vmul.f32 %v6391_v27, %v6364_v18  ;;  %v6412_v8 = vmul.f32 %v6396_v36, %v6367_v2  ;;  %v5117_v16 = vld [vmem:[%s9582_s1 + $0x78] sm:$0x7] }
  0xf8   :  { %v1628_v60 = vadd.f32 %v1627_v32, %v1626_v55  ;;  %v1635_v30 = vadd.f32 %v1634_v6, %v1633_v25  ;;  %v1951_v11 = vmul.f32 %v6386_v44, %v6364_v18  ;;  %v1952_v14 = vmul.f32 %v6391_v27, %v6361_v13  ;;  %v5120_v32 = vld [vmem:[%s9582_s1 + $0x84] sm:$0x7] }
  0xf9   :  { %v1616_v31 = vadd.f32 %v1615_v10, %v1614_v7  ;;  %v1623_v58 = vsub.f32 %v1621_v35, %v1622_v26  ;;  %v1958_v17 = vmul.f32 %v6396_v36, %v6361_v13  ;;  %v1959_v57 = vmul.f32 %v6404_v53, %v6364_v18 }
  0xfa   :  { %v1630_v15 = vsub.f32 %v1628_v60, %v1629_v46  ;;  %v1637_v48 = vadd.f32 %v1636_v62, %v1635_v30  ;;  %v6428_v50 = vadd.f32 %v1945_v22, %v1944_v28  ;;  %v6443_v59 = vmul.f32 %v6404_v53, %v6376_v24 }
  0xfb   :  { %v1638_v4 = vmul.f32 %v1616_v31, %v6339_v1  ;;  %v1641_v45 = vmul.f32 %v1623_v58, %v6339_v1  ;;  %v1645_v63 = vmul.f32 %v1623_v58, %v6347_v3  ;;  %v1648_v37 = vmul.f32 %v1616_v31, %v6347_v3 }
  0xfc   :  { %v1642_v23 = vmul.f32 %v1630_v15, %v6347_v3  ;;  %v1644_v61 = vmul.f32 %v1630_v15, %v6339_v1  ;;  %v1639_v19 = vmul.f32 %v1637_v48, %v6347_v3  ;;  %v1647_v40 = vmul.f32 %v1637_v48, %v6339_v1 }
  0xfd   :  { %v6447_v3 = vmul.f32 %v6396_v36, %v6376_v24  ;;  %v1953_v26 = vsub.f32 %v1951_v11, %v1952_v14  ;;  %v6451_v10 = vmul.f32 %v6386_v44, %v6367_v2  ;;  %v1960_v21 = vadd.f32 %v1959_v57, %v1958_v17 }
  0xfe   :  { %v1643_v1 = vsub.f32 %v1641_v45, %v1642_v23  ;;  %v1646_v33 = vadd.f32 %v1645_v63, %v1644_v61  ;;  %v1640_v42 = vadd.f32 %v1639_v19, %v1638_v4  ;;  %v1649_v41 = vsub.f32 %v1647_v40, %v1648_v37 }
  0xff   :  { %v6458_v29 = vmul.f32 %v6391_v27, %v6376_v24  ;;  %v1965_v46 = vmul.f32 %v6396_v36, %v6364_v18  ;;  %v1966_v57 = vmul.f32 %v6404_v53, %v6361_v13  ;;  %v1948_v23 = vsub.f32 %v6428_v50, %v6412_v8 }
 0x100   :  { %v1659_v20 = vmul.f32 %v5118_v38, %v1643_v1  ;;  %v1661_v12 = vmul.f32 %v5119_v5, %v1646_v33  ;;  %v1665_v55 = vmul.f32 %v5117_v16, %v1643_v1  ;;  %v1658_v6 = vmul.f32 %v5117_v16, %v1640_v42 }
 0x101   :  { %v1666_v7 = vmul.f32 %v5118_v38, %v1640_v42  ;;  %v1668_v35 = vmul.f32 %v5119_v5, %v1649_v41  ;;  %v1670_v25 = vmul.f32 %v5120_v32, %v1646_v33  ;;  %v1663_v62 = vmul.f32 %v5120_v32, %v1649_v41 }
 0x102   :  { %v1672_v60 = vmul.f32 %v5119_v5, %v1640_v42  ;;  %v1673_v28 = vmul.f32 %v5120_v32, %v1643_v1  ;;  %v1675_v22 = vmul.f32 %v5117_v16, %v1646_v33  ;;  %v1660_v31 = vadd.f32 %v1659_v20, %v1658_v6 }
 0x103   :  { %v1667_v58 = vsub.f32 %v1665_v55, %v1666_v7  ;;  %v1679_v30 = vmul.f32 %v5119_v5, %v1643_v1  ;;  %v1680_v11 = vmul.f32 %v5120_v32, %v1640_v42  ;;  %v1677_v14 = vmul.f32 %v5118_v38, %v1649_v41 }
 0x104   :  { %v1674_v15 = vadd.f32 %v1673_v28, %v1672_v60  ;;  %v1682_v17 = vmul.f32 %v5117_v16, %v1649_v41  ;;  %v1662_v48 = vsub.f32 %v1660_v31, %v1661_v12  ;;  %v1684_v45 = vmul.f32 %v5118_v38, %v1646_v33 }
 0x105   :  { %v1669_v18 = vsub.f32 %v1667_v58, %v1668_v35  ;;  %v1681_v4 = vsub.f32 %v1679_v30, %v1680_v11  ;;  %v1955_v61 = vsub.f32 %v1953_v26, %v6447_v3  ;;  %v6469_v37 = vmul.f32 %v6404_v53, %v6367_v2 }
 0x106   :  { %v1676_v63 = vadd.f32 %v1675_v22, %v1674_v15  ;;  %v1664_v19 = vadd.f32 %v1663_v62, %v1662_v48  ;;  %v1962_v5 = vadd.f32 %v6451_v10, %v1960_v21  ;;  %v1967_v1 = vsub.f32 %v1965_v46, %v1966_v57 }
 0x107   :  { %v1671_v40 = vsub.f32 %v1669_v18, %v1670_v25  ;;  %v1683_v16 = vadd.f32 %v1682_v17, %v1681_v4  ;;  %v1968_v38 = vmul.f32 %v6386_v44, %v6376_v24  ;;  %v6476_v33 = vmul.f32 %v6391_v27, %v6367_v2 }
 0x108   :  { %v1678_v13 = vsub.f32 %v1676_v63, %v1677_v14  ;;  %v1686_v26 = vmul.f32 %v1664_v19, %v1664_v19  ;;  %v1972_v41 = vadd.f32 %v6458_v29, %v6451_v10  ;;  %v1932_v20 = vsub.f32 %v6381_v34, %v6247_v43 }
 0x109   :  { %v1685_v50 = vadd.f32 %v1684_v45, %v1683_v16  ;;  %v1687_v42 = vmul.f32 %v1671_v40, %v1671_v40  ;;  %v1935_v21 = vadd.f32 %v6399_v52, %v6247_v43  ;;  %v1920_v24 = vsub.f32 %v6321_v39, %v6247_v43 }
 0x10a   :  { %v1689_v32 = vmul.f32 %v1678_v13, %v1678_v13  ;;  %v1923_v2 = vadd.f32 %v6324_v9, %v6247_v43  ;;  %v6489_v46 = vadd.f32 %v6443_v59, %v1948_v23  ;;  %v6492_v6 = vsub.f32 %v1955_v61, %v6469_v37 }
 0x10b   :  { %v1688_v12 = vadd.f32 %v1687_v42, %v1686_v26  ;;  %v1691_v55 = vmul.f32 %v1685_v50, %v1685_v50  ;;  %v6495_v7 = vsub.f32 %v1962_v5, %v6458_v29  ;;  %v1975_v34 = vsub.f32 %v1968_v38, %v6476_v33 }
 0x10c   :  { %v1969_v35 = vadd.f32 %v1968_v38, %v1967_v1  ;;  %v1973_v25 = vsub.f32 %v1972_v41, %v6412_v8  ;;  %v1978_v39 = vadd.f32 %v6443_v59, %v6412_v8  ;;  %v1984_v43 = vmul.f32 %v6386_v44, %v1920_v24 }
 0x10d   :  { %v1690_v52 = vsub.f32 %v1688_v12, %v1689_v32  ;;  %v1985_v9 = vmul.f32 %v6391_v27, %v1923_v2  ;;  %v1987_v62 = vmul.f32 %v6396_v36, %v1932_v20  ;;  %v1989_v60 = vmul.f32 %v6404_v53, %v1935_v21 }
 0x10e   :  { %v1991_v22 = vmul.f32 %v6386_v44, %v1923_v2  ;;  %v1992_v31 = vmul.f32 %v6391_v27, %v1920_v24  ;;  %v1998_v58 = vmul.f32 %v6396_v36, %v1920_v24  ;;  %v1999_v30 = vmul.f32 %v6404_v53, %v1923_v2 }
 0x10f   :  { %v1692_v28 = vsub.f32 %v1690_v52, %v1691_v55  ;;  %v2003_v11 = vmul.f32 %v6391_v27, %v1935_v21  ;;  %v2005_v8 = vmul.f32 %v6396_v36, %v1923_v2  ;;  %v2006_v15 = vmul.f32 %v6404_v53, %v1920_v24  ;;  %v6548_v55 = vld [vmem:[%s9583_s2 + $0xa] sm:$0x1] }
 0x110   :  { %v1994_v17 = vmul.f32 %v6396_v36, %v1935_v21  ;;  %v1996_v57 = vmul.f32 %v6404_v53, %v1932_v20  ;;  %v2010_v48 = vmul.f32 %v6391_v27, %v1932_v20  ;;  %v6518_v18 = vadd.f32 %v6476_v33, %v1969_v35  ;;  %v6529_v27 = vld [vmem:[%s9583_s2 + $0x8] sm:$0x1]  ;;  %v6534_v53 = vld [vmem:[%s9583_s2 + $0x9] sm:$0x1] }
 0x111   :  { %v6512_v14 = vmul.f32 0.5, %v1692_v28  ;;  %v1976_v4 = vsub.f32 %v1975_v34, %v6447_v3  ;;  %v1981_v45 = vsub.f32 %v6447_v3, %v6469_v37  ;;  %v2001_v63 = vmul.f32 %v6386_v44, %v1932_v20 }
 0x112   :  { %v1986_v61 = vadd.f32 %v1985_v9, %v1984_v43  ;;  %v1993_v19 = vsub.f32 %v1991_v22, %v1992_v31  ;;  %v2008_v36 = vmul.f32 %v6386_v44, %v1935_v21  ;;  %v1979_v3 = vadd.f32 %v1978_v39, %v6451_v10 }
 0x113   :  { %v1697_v23 = vand.u32 2139095040, %v6512_v14  ;;  %v2000_v40 = vadd.f32 %v1999_v30, %v1998_v58  ;;  %v2007_v16 = vsub.f32 %v2005_v8, %v2006_v15  ;;  %v2012_v5 = vadd.f32 %v2003_v11, %v2001_v63 }
 0x114   :  { %v2015_v1 = vsub.f32 %v2008_v36, %v2010_v48  ;;  %v2018_v50 = vadd.f32 %v1989_v60, %v1987_v62  ;;  %v2021_v26 = vsub.f32 %v1994_v17, %v1996_v57  ;;  %v1694_v44 = vand.u32 2147483647, %v6512_v14 }
 0x115   :  { %v1698_v13 = vshrl.u32 %v1697_v23, 23  ;;  %v6539_v42 = vadd.f32 %v1973_v25, %v6443_v59  ;;  %v2032_v41 = vmul.f32 %v6529_v27, %v6489_v46  ;;  %v2033_v32 = vmul.f32 %v6534_v53, %v6492_v6 }
 0x116   :  { %v1982_v10 = vadd.f32 %v1981_v45, %v1968_v38  ;;  %v1988_v21 = vsub.f32 %v1986_v61, %v1987_v62  ;;  %v1995_v12 = vsub.f32 %v1993_v19, %v1994_v17  ;;  %v6551_v24 = vsub.f32 %v1976_v4, %v6469_v37 }
 0x117   :  { %v5121_v20 = vadd.s32 4294967169, %v1698_v13  ;;  %v2002_v59 = vadd.f32 %v2001_v63, %v2000_v40  ;;  %v2009_v2 = vadd.f32 %v2008_v36, %v2007_v16  ;;  %v2013_v34 = vsub.f32 %v2012_v5, %v1987_v62 }
 0x118   :  { %v2016_v35 = vsub.f32 %v2015_v1, %v1994_v17  ;;  %v2019_v25 = vadd.f32 %v2018_v50, %v2001_v63  ;;  %v2022_v39 = vadd.f32 %v2021_v26, %v2008_v36  ;;  %v1701_v38 = vand.u32 8388607, %v1694_v44 }
 0x119   :  { %v1704_v52 = vadd.s32 1, %v5121_v20  ;;  %v6556_v43 = vsub.f32 %v1979_v3, %v6458_v29  ;;  %v2034_v9 = vadd.f32 %v2033_v32, %v2032_v41  ;;  %v2035_v28 = vmul.f32 %v6548_v55, %v6539_v42 }
 0x11a   :  { %v6561_v37 = vadd.f32 %v1982_v10, %v6476_v33  ;;  %v6563_v22 = vadd.f32 %v1989_v60, %v1988_v21  ;;  %v6565_v62 = vsub.f32 %v1995_v12, %v1996_v57  ;;  %v6567_v58 = vsub.f32 %v2002_v59, %v2003_v11  ;;  %v6582_v33 = vld [vmem:[%s9583_s2 + $0xb] sm:$0x1] }
 0x11b   :  { %vm1705_vm4 = vcmp.gt.s32.totalorder %v1704_v52, 0  ;;  %v6569_v30 = vadd.f32 %v2010_v48, %v2009_v2  ;;  %v6571_v8 = vadd.f32 %v2013_v34, %v1989_v60  ;;  %v6573_v15 = vsub.f32 %v2016_v35, %v1996_v57 }
 0x11c   :  { %v1706_v31 = vsel %vm1705_vm4, %v1704_v52, 0  ;;  %v6575_v17 = vsub.f32 %v2019_v25, %v2003_v11  ;;  %v6577_v4 = vadd.f32 %v2022_v39, %v2010_v48  ;;  %v1702_v45 = vor.u32 8388608, %v1701_v38 }
 0x11d   :  { %v1708_v29 = vand.u32 31, %v1706_v31  ;;  %v1707_v63 = vshrl.u32 %v1706_v31, 5  ;;  %v2036_v23 = vsub.f32 %v2034_v9, %v2035_v28  ;;  %v2037_v61 = vmul.f32 %v6582_v33, %v6551_v24 }
 0x11e   :  { %v2039_v3 = vmul.f32 %v6529_v27, %v6492_v6  ;;  %v2040_v40 = vmul.f32 %v6534_v53, %v6489_v46  ;;  %v1742_v41 = vshll.u32 %v1702_v45, 8  ;;  %v2044_v35 = vmul.f32 %v6582_v33, %v6539_v42 }
 0x11f   :  { %v1709_v60 = vsub.s32 32, %v1708_v29  ;;  %v1711_v19 = vshll.u32 %v5288_v47, %v1708_v29  ;;  %v1714_v57 = vshll.u32 %v5289_v49, %v1708_v29  ;;  %v1717_v11 = vshll.u32 %v5290_v51, %v1708_v29 }
 0x120   :  { %v1720_v48 = vshll.u32 %v5291_v54, %v1708_v29  ;;  %v1723_v36 = vshll.u32 %v5292_v56, %v1708_v29  ;;  %vm1726_vm3 = vcmp.lt.s32.totalorder %v1707_v63, 1  ;;  %vm1729_vm5 = vcmp.lt.s32.totalorder %v1707_v63, 4 }
 0x121   :  { %v1710_v16 = vshrl.u32 %v5288_v47, %v1709_v60  ;;  %v1712_v5 = vshrl.u32 %v5289_v49, %v1709_v60  ;;  %v1715_v13 = vshrl.u32 %v5290_v51, %v1709_v60  ;;  %v1718_v1 = vshrl.u32 %v5291_v54, %v1709_v60 }
 0x122   :  { %v1721_v50 = vshrl.u32 %v5292_v56, %v1709_v60  ;;  %v1724_v26 = vshrl.u32 %v5293_v0, %v1709_v60  ;;  %vm1727_vm6 = vcmp.lt.s32.totalorder %v1707_v63, 2  ;;  %vm1728_vm7 = vcmp.lt.s32.totalorder %v1707_v63, 3 }
 0x123   :  { %v1713_v32 = vor.u32 %v1712_v5, %v1711_v19  ;;  %v1716_v20 = vor.u32 %v1715_v13, %v1714_v57  ;;  %v1719_v10 = vor.u32 %v1718_v1, %v1717_v11  ;;  %v2042_v56 = vmul.f32 %v6548_v55, %v6551_v24 }
 0x124   :  { %v1722_v21 = vor.u32 %v1721_v50, %v1720_v48  ;;  %v1725_v12 = vor.u32 %v1724_v26, %v1723_v36  ;;  %v2046_v25 = vmul.f32 %v6548_v55, %v6489_v46  ;;  %v2047_v28 = vmul.f32 %v6582_v33, %v6492_v6 }
 0x125   :  { %v1730_v47 = vsel %vm1726_vm3, %v1710_v16, %v1713_v32  ;;  %v1731_v49 = vsel %vm1729_vm5, %v1719_v10, 2102212464  ;;  %v1734_v59 = vsel %vm1726_vm3, %v1713_v32, %v1716_v20  ;;  %v1738_v51 = vsel %vm1726_vm3, %v1716_v20, %v1719_v10 }
 0x126   :  { %v1732_v2 = vsel %vm1728_vm7, %v1716_v20, %v1731_v49  ;;  %v1735_v54 = vsel %vm1729_vm5, %v1722_v21, 920167782  ;;  %v1739_v34 = vsel %vm1729_vm5, %v1725_v12, 1326507024  ;;  %v6619_v19 = vadd.f32 %v2037_v61, %v2036_v23 }
 0x127   :  { %v1736_v0 = vsel %vm1728_vm7, %v1719_v10, %v1735_v54  ;;  %v1740_v52 = vsel %vm1728_vm7, %v1722_v21, %v1739_v34  ;;  %v1733_v39 = vsel %vm1727_vm6, %v1730_v47, %v1732_v2  ;;  %v2041_v57 = vsub.f32 %v2039_v3, %v2040_v40 }
 0x128   :  { %v1737_v38 = vsel %vm1727_vm6, %v1734_v59, %v1736_v0  ;;  %v1741_v9 = vsel %vm1727_vm6, %v1738_v51, %v1740_v52  ;;  %v2053_v11 = vmul.f32 %v6548_v55, %v6492_v6  ;;  %v2054_v63 = vmul.f32 %v6582_v33, %v6489_v46 }
 0x129   :  { %v6612_v31 = vmul.u32.u64.low %v1742_v41, %v1741_v9  ;;  %v6613_v29 = vmul.u32.u64.high %v1742_v41, %v1741_v9, %v6612_v31  ;;  %v6615_v45 = vmul.u32.u64.low %v1742_v41, %v1737_v38  ;;  %v6616_v60 = vmul.u32.u64.high %v1742_v41, %v1737_v38, %v6615_v45 }
 0x12a   :  { %v2060_v48 = vmul.f32 %v6529_v27, %v6495_v7  ;;  %v2061_v36 = vmul.f32 %v6534_v53, %v6518_v18  ;;  %v2067_v16 = vmul.f32 %v6529_v27, %v6518_v18  ;;  %v2068_v23 = vmul.f32 %v6534_v53, %v6495_v7 }
 0x12b   :  { %v1749_v61 = vmul.u32 %v1742_v41, %v1733_v39  ;;  %v2048_v3 = vadd.f32 %v2047_v28, %v2046_v25  ;;  %v2049_v6 = vmul.f32 %v6529_v27, %v6539_v42  ;;  %v2051_v46 = vmul.f32 %v6534_v53, %v6551_v24 }
 0x12c   :  { %vm1751_vm9 = vc.u32 %v6613_v29, %v6615_v45  ;;  %v1752_v40 = vadd.s32 1, %v6616_v60  ;;  %v2074_v5 = vmul.f32 %v6548_v55, %v6495_v7  ;;  %v2075_v13 = vmul.f32 %v6582_v33, %v6518_v18 }
 0x12d   :  { %v2043_v1 = vsub.f32 %v2041_v57, %v2042_v56  ;;  %v2055_v50 = vsub.f32 %v2053_v11, %v2054_v63  ;;  %v2056_v26 = vmul.f32 %v6529_v27, %v6551_v24  ;;  %v2063_v41 = vmul.f32 %v6548_v55, %v6556_v43 }
 0x12e   :  { %v1753_v32 = vsel %vm1751_vm9, %v1752_v40, %v6616_v60  ;;  %v2062_v20 = vadd.f32 %v2061_v36, %v2060_v48  ;;  %v2069_v10 = vsub.f32 %v2067_v16, %v2068_v23  ;;  %v2070_v21 = vmul.f32 %v6548_v55, %v6561_v37 }
 0x12f   :  { %v1754_v12 = vadd.s32 %v1753_v32, %v1749_v61  ;;  %v2050_v47 = vadd.f32 %v2049_v6, %v2048_v3  ;;  %v2081_v49 = vmul.f32 %v6548_v55, %v6518_v18  ;;  %v2082_v59 = vmul.f32 %v6582_v33, %v6495_v7 }
 0x130   :  { %v2076_v51 = vadd.f32 %v2075_v13, %v2074_v5  ;;  %v2077_v24 = vmul.f32 %v6529_v27, %v6556_v43  ;;  %v2088_v2 = vmul.f32 %v6529_v27, %v6563_v22  ;;  %v2089_v54 = vmul.f32 %v6534_v53, %v6565_v62 }
 0x131   :  { %v1755_v34 = vadd.s32 536870912, %v1754_v12  ;;  %v6661_v56 = vsub.f32 %v2043_v1, %v2044_v35  ;;  %v2057_v0 = vadd.f32 %v2056_v26, %v2055_v50  ;;  %v2058_v18 = vmul.f32 %v6534_v53, %v6539_v42 }
 0x132   :  { %v2064_v52 = vsub.f32 %v2062_v20, %v2063_v41  ;;  %v2065_v7 = vmul.f32 %v6582_v33, %v6561_v37  ;;  %v2071_v25 = vsub.f32 %v2069_v10, %v2070_v21  ;;  %v2072_v39 = vmul.f32 %v6582_v33, %v6556_v43 }
 0x133   :  { %v1756_v38 = vshrl.u32 %v1755_v34, 30  ;;  %v6669_v9 = vsub.f32 %v2050_v47, %v2051_v46  ;;  %v2083_v28 = vsub.f32 %v2081_v49, %v2082_v59  ;;  %v2084_v35 = vmul.f32 %v6529_v27, %v6561_v37 }
 0x134   :  { %v2078_v31 = vadd.f32 %v2077_v24, %v2076_v51  ;;  %v2079_v60 = vmul.f32 %v6534_v53, %v6561_v37  ;;  %v2090_v42 = vadd.f32 %v2089_v54, %v2088_v2  ;;  %v2091_v57 = vmul.f32 %v6548_v55, %v6571_v8 }
 0x135   :  { %v1757_v11 = vshll.u32 %v1756_v38, 30  ;;  %v6677_v63 = vadd.f32 %v2058_v18, %v2057_v0  ;;  %v2116_v48 = vmul.f32 %v6529_v27, %v6567_v58  ;;  %v2117_v36 = vmul.f32 %v6534_v53, %v6569_v30 }
 0x136   :  { %v6683_v16 = vadd.f32 %v2065_v7, %v2064_v52  ;;  %v6685_v23 = vsub.f32 %v2071_v25, %v2072_v39  ;;  %v2095_v37 = vmul.f32 %v6529_v27, %v6565_v62  ;;  %v2096_v61 = vmul.f32 %v6534_v53, %v6563_v22 }
 0x137   :  { %vm1696_vm8 = vcmp.lt.s32.totalorder %v6512_v14, 0  ;;  %v6692_v3 = vsub.s32 %v1754_v12, %v1757_v11  ;;  %v2085_v6 = vadd.f32 %v2084_v35, %v2083_v28  ;;  %v2086_v46 = vmul.f32 %v6534_v53, %v6556_v43 }
 0x138   :  { %v2093_v40 = vmul.f32 %v6582_v33, %v6573_v15  ;;  %v1750_v5 = vadd.s32 %v6615_v45, %v6613_v29  ;;  %v6700_v13 = vsub.f32 %v2078_v31, %v2079_v60  ;;  %v2092_v1 = vsub.f32 %v2090_v42, %v2091_v57  ;;  %v6753_v42 = vld [vmem:[%s9583_s2 + $0xc] sm:$0x1] }
 0x139   :  { %v2119_v50 = vmul.f32 %v6548_v55, %v6575_v17  ;;  %v1760_v26 = vsub.s32 0, %v6692_v3  ;;  %v2118_v41 = vadd.f32 %v2117_v36, %v2116_v48  ;;  %v2123_v32 = vmul.f32 %v6529_v27, %v6569_v30 }
 0x13a   :  { %v2124_v43 = vmul.f32 %v6534_v53, %v6567_v58  ;;  %v2097_v20 = vsub.f32 %v2095_v37, %v2096_v61  ;;  %v2098_v10 = vmul.f32 %v6548_v55, %v6573_v15  ;;  %v2102_v29 = vmul.f32 %v6548_v55, %v6563_v22 }
 0x13b   :  { %v2103_v45 = vmul.f32 %v6582_v33, %v6565_v62  ;;  %v5122_v21 = vmin.u32 %v1760_v26, %v6692_v3  ;;  %v6716_v12 = vadd.f32 %v2086_v46, %v2085_v6  ;;  %v6720_v47 = vmul.f32 %v6582_v33, %v6571_v8 }
 0x13c   :  { %v2105_v49 = vmul.f32 %v6529_v27, %v6571_v8  ;;  %vm6726_vm10 = vcmp.le.f32.partialorder %v1694_v44, 0.7853982  ;;  %v1780_v51 = vsub.s32 4, %v1756_v38  ;;  %v6730_v24 = vadd.f32 %v2093_v40, %v2092_v1 }
 0x13d   :  { %v6734_v2 = vmul.f32 %v6534_v53, %v6573_v15  ;;  %v2121_v54 = vmul.f32 %v6582_v33, %v6577_v4  ;;  %v1762_v34 = vclz %v5122_v21  ;;  %v2120_v0 = vsub.f32 %v2118_v41, %v2119_v50 }
 0x13e   :  { %v2125_v18 = vsub.f32 %v2123_v32, %v2124_v43  ;;  %v2126_v52 = vmul.f32 %v6548_v55, %v6577_v4  ;;  %v2099_v44 = vsub.f32 %v2097_v20, %v2098_v10  ;;  %v2104_v7 = vadd.f32 %v2103_v45, %v2102_v29  ;;  %v6786_v20 = vld [vmem:[%s9583_s2 + $0xe] sm:$0x1] }
 0x13f   :  { %v2109_v25 = vmul.f32 %v6548_v55, %v6565_v62  ;;  %v2110_v39 = vmul.f32 %v6582_v33, %v6563_v22  ;;  %v5123_v28 = vadd.s32 4294967294, %v1762_v34  ;;  %v2112_v35 = vmul.f32 %v6529_v27, %v6573_v15  ;;  %v6758_v62 = vld [vmem:[%s9583_s2 + $0xd] sm:$0x1] }
 0x140   :  { %v2130_v31 = vmul.f32 %v6548_v55, %v6567_v58  ;;  %v2131_v60 = vmul.f32 %v6582_v33, %v6569_v30  ;;  %v1781_v22 = vsel %vm1696_vm8, %v1780_v51, %v1756_v38  ;;  %v2114_v15 = vmul.f32 %v6534_v53, %v6571_v8  ;;  %v6799_v51 = vld [vmem:[%s9583_s2 + $0xf] sm:$0x1] }
 0x141   :  { %v2137_v57 = vmul.f32 %v6548_v55, %v6569_v30  ;;  %v2138_v11 = vmul.f32 %v6582_v33, %v6567_v58  ;;  %vm5124_vm11 = vcmp.lt.s32.totalorder %v5123_v28, 0  ;;  %v6768_v48 = vadd.f32 %v2121_v54, %v2120_v0 }
 0x142   :  { %v2127_v36 = vsub.f32 %v2125_v18, %v2126_v52  ;;  %v2128_v37 = vmul.f32 %v6582_v33, %v6575_v17  ;;  %v1765_v61 = vsel %vm5124_vm11, 0, %v5123_v28  ;;  %v2133_v38 = vmul.f32 %v6529_v27, %v6575_v17 }
 0x143   :  { %v2152_v8 = vmul.f32 %v6753_v42, %v6619_v19  ;;  %v2153_v55 = vmul.f32 %v6758_v62, %v6661_v56  ;;  %v1766_v30 = vsub.s32 32, %v1765_v61  ;;  %v1767_v58 = vshll.u32 %v6692_v3, %v1765_v61 }
 0x144   :  { %v1770_v6 = vsub.s32 4294967266, %v1765_v61  ;;  %v2132_v46 = vadd.f32 %v2131_v60, %v2130_v31  ;;  %v2106_v40 = vadd.f32 %v2105_v49, %v2104_v7  ;;  %v2111_v1 = vsub.f32 %v2109_v25, %v2110_v39 }
 0x145   :  { %v2139_v50 = vsub.f32 %v2137_v57, %v2138_v11  ;;  %v2140_v33 = vmul.f32 %v6529_v27, %v6577_v4  ;;  %v1768_v26 = vshrl.u32 %v1750_v5, %v1766_v30  ;;  %v1783_v32 = vsel %vm6726_vm10, 0, %v1781_v22 }
 0x146   :  { %v1771_v41 = vadd.s32 127, %v1770_v6  ;;  %v2129_v43 = vsub.f32 %v2127_v36, %v2128_v37  ;;  %v2154_v3 = vadd.f32 %v2153_v55, %v2152_v8  ;;  %v2155_v10 = vmul.f32 %v6786_v20, %v6768_v48 }
 0x147   :  { %v2159_v29 = vmul.f32 %v6753_v42, %v6661_v56  ;;  %v2160_v27 = vmul.f32 %v6758_v62, %v6619_v19  ;;  %v1769_v5 = vor.u32 %v1768_v26, %v1767_v58  ;;  %v2134_v21 = vadd.f32 %v2133_v38, %v2132_v46 }
 0x148   :  { %v1772_v45 = vshll.u32 %v1771_v41, 23  ;;  %v2135_v49 = vmul.f32 %v6534_v53, %v6577_v4  ;;  %v1890_v54 = vadd.s32 3, %v1783_v32  ;;  %v2113_v34 = vadd.f32 %v2112_v35, %v2111_v1 }
 0x149   :  { %v2141_v0 = vadd.f32 %v2140_v33, %v2139_v50  ;;  %v2142_v18 = vmul.f32 %v6534_v53, %v6575_v17  ;;  %v1776_v7 = vcvt.s32.f32 %v1769_v5  ;;  %v2157_v25 = vmul.f32 %v6799_v51, %v2129_v43 }
 0x14a   :  { %v1773_v52 = vor.u32 4788187, %v1772_v45  ;;  %v2162_v39 = vmul.f32 %v6786_v20, %v2129_v43  ;;  %v2156_v28 = vsub.f32 %v2154_v3, %v2155_v10  ;;  %v2161_v31 = vsub.f32 %v2159_v29, %v2160_v27 }
 0x14b   :  { %v2166_v4 = vmul.f32 %v6786_v20, %v6619_v19  ;;  %v2167_v60 = vmul.f32 %v6799_v51, %v6661_v56  ;;  %v6810_v35 = vsub.f32 %v2099_v44, %v6720_v47  ;;  %v6813_v53 = vsub.f32 %v2106_v40, %v6734_v2 }
 0x14c   :  { %v1774_v22 = vand.u32 2147483647, %v1773_v52  ;;  %v2136_v17 = vsub.f32 %v2134_v21, %v2135_v49  ;;  %v6815_v57 = vand.u32 3, %v1783_v32  ;;  %v6817_v11 = vand.u32 3, %v1890_v54 }
 0x14d   :  { %v6819_v36 = vadd.f32 %v2114_v15, %v2113_v34  ;;  %v2143_v37 = vadd.f32 %v2142_v18, %v2141_v0  ;;  %v2164_v38 = vmul.f32 %v6799_v51, %v6768_v48  ;;  %v2169_v8 = vmul.f32 %v6753_v42, %v6768_v48 }
 0x14e   :  { %v1777_v61 = vmul.f32 %v1776_v7, %v1774_v22  ;;  %v2171_v47 = vmul.f32 %v6758_v62, %v2129_v43  ;;  %v6826_v44 = vadd.f32 %v2157_v25, %v2156_v28  ;;  %v2163_v2 = vsub.f32 %v2161_v31, %v2162_v39 }
 0x14f   :  { %v2168_v55 = vadd.f32 %v2167_v60, %v2166_v4  ;;  %v2173_v30 = vmul.f32 %v6786_v20, %v6661_v56  ;;  %v2174_v15 = vmul.f32 %v6799_v51, %v6619_v19  ;;  %v2176_v6 = vmul.f32 %v6753_v42, %v2129_v43 }
 0x150   :  { %v1778_v58 = vxor.u32 2147483648, %v1777_v61  ;;  %v2180_v46 = vmul.f32 %v6753_v42, %v2136_v17  ;;  %v2181_v40 = vmul.f32 %v6758_v62, %v2143_v37  ;;  %v2187_v1 = vmul.f32 %v6753_v42, %v2143_v37 }
 0x151   :  { %v2188_v50 = vmul.f32 %v6758_v62, %v2136_v17  ;;  %v2194_v33 = vmul.f32 %v6786_v20, %v2136_v17  ;;  %v2195_v56 = vmul.f32 %v6799_v51, %v2143_v37  ;;  %v2201_v41 = vmul.f32 %v6786_v20, %v2143_v37 }
 0x152   :  { %v1779_v26 = vsel %vm1696_vm8, %v1778_v58, %v1777_v61  ;;  %v2202_v19 = vmul.f32 %v6799_v51, %v2136_v17  ;;  %v2178_v43 = vmul.f32 %v6758_v62, %v6768_v48  ;;  %v2208_v3 = vmul.f32 %v6753_v42, %v6700_v13 }
 0x153   :  { %v1782_v32 = vsel %vm6726_vm10, %v6512_v14, %v1779_v26  ;;  %v2209_v10 = vmul.f32 %v6758_v62, %v6716_v12  ;;  %v6852_v29 = vsub.f32 %v2163_v2, %v2164_v38  ;;  %v2175_v27 = vsub.f32 %v2173_v30, %v2174_v15 }
 0x154   :  { %5260 = vcosq.f32 %v1782_v32  ;;  %v2183_v5 = vmul.f32 %v6786_v20, %v6669_v9  ;;  %v2182_v45 = vadd.f32 %v2181_v40, %v2180_v46  ;;  %v2189_v59 = vsub.f32 %v2187_v1, %v2188_v50 }
 0x155   :  { %5262 = vsinq.f32 %v1782_v32  ;;  %v2190_v21 = vmul.f32 %v6786_v20, %v6677_v63  ;;  %vm1792_vm2 = vcmp.eq.s32.totalorder %v6815_v57, 2  ;;  %vm1896_vm12 = vcmp.eq.s32.totalorder %v6817_v11, 2 }
 0x156   :  { %v2196_v48 = vadd.f32 %v2195_v56, %v2194_v33  ;;  %v2197_v49 = vmul.f32 %v6753_v42, %v6669_v9  ;;  %v2203_v54 = vsub.f32 %v2201_v41, %v2202_v19  ;;  %v2204_v34 = vmul.f32 %v6753_v42, %v6677_v63 }
 0x157   :  { %vm1789_vm15 = vcmp.eq.s32.totalorder %v6815_v57, 0  ;;  %vm1893_vm14 = vcmp.eq.s32.totalorder %v6817_v11, 0  ;;  %v2210_v0 = vadd.f32 %v2209_v10, %v2208_v3  ;;  %v2211_v18 = vmul.f32 %v6786_v20, %v6813_v53 }
 0x158   :  { %v2215_v52 = vmul.f32 %v6753_v42, %v6716_v12  ;;  %v2216_v7 = vmul.f32 %v6758_v62, %v6700_v13  ;;  %vm1788_vm0 = vcmp.lt.s32.totalorder %v6815_v57, 2  ;;  %vm1892_vm1 = vcmp.lt.s32.totalorder %v6817_v11, 2  ;;  %v6954_v11 = vld [vmem:[%s9583_s2 + $0x10] sm:$0x1] }
 0x159   :  { %v2170_v25 = vadd.f32 %v2169_v8, %v2168_v55  ;;  %v2177_v39 = vadd.f32 %v2176_v6, %v2175_v27  ;;  %v2185_v28 = vmul.f32 %v6799_v51, %v6677_v63  ;;  %v2192_v31 = vmul.f32 %v6799_v51, %v6669_v9 }
 0x15a   :  { %vm1786_vm13 = vweird.f32 %v6512_v14  ;;  %v2184_v4 = vsub.f32 %v2182_v45, %v2183_v5  ;;  %v2191_v60 = vsub.f32 %v2189_v59, %v2190_v21  ;;  %v2222_v22 = vmul.f32 %v6786_v20, %v6700_v13 }
 0x15b   :  { %v2223_v17 = vmul.f32 %v6799_v51, %v6716_v12  ;;  %v2198_v37 = vadd.f32 %v2197_v49, %v2196_v48  ;;  %v2199_v61 = vmul.f32 %v6758_v62, %v6677_v63  ;;  %v2205_v38 = vadd.f32 %v2204_v34, %v2203_v54 }
 0x15c   :  { %v2206_v8 = vmul.f32 %v6758_v62, %v6669_v9  ;;  %v2212_v2 = vsub.f32 %v2210_v0, %v2211_v18  ;;  %v2213_v55 = vmul.f32 %v6799_v51, %v6819_v36  ;;  %v2217_v30 = vsub.f32 %v2215_v52, %v2216_v7 }
 0x15d   :  { %v2218_v58 = vmul.f32 %v6786_v20, %v6819_v36  ;;  %v6891_v15 = vsub.f32 %v2170_v25, %v2171_v47  ;;  %v6893_v6 = vadd.f32 %v2178_v43, %v2177_v39  ;;  %v2229_v46 = vmul.f32 %v6786_v20, %v6716_v12 }
 0x15e   :  { %v2230_v63 = vmul.f32 %v6799_v51, %v6700_v13  ;;  %v6899_v40 = vadd.f32 %v2185_v28, %v2184_v4  ;;  %v6901_v9 = vsub.f32 %v2191_v60, %v2192_v31  ;;  %v2224_v1 = vadd.f32 %v2223_v17, %v2222_v22  ;;  %v5261_v33 = vpop.eup %5260  ;;  %v6959_v28 = vld [vmem:[%s9583_s2 + $0x11] sm:$0x1]  ;;  %v6970_v22 = vld [vmem:[%s9583_s2 + $0x12] sm:$0x1]  ;;  %v6975_v17 = vld [vmem:[%s9583_s2 + $0x13] sm:$0x1] }
 0x15f   :  { %v2225_v50 = vmul.f32 %v6753_v42, %v6813_v53  ;;  %v6905_v26 = vsub.f32 %v2198_v37, %v2199_v61  ;;  %v6907_v47 = vadd.f32 %v2206_v8, %v2205_v38  ;;  %v2220_v56 = vmul.f32 %v6799_v51, %v6813_v53  ;;  %v5263_v13 = vpop.eup %5262 }
 0x160   :  { %v2227_v12 = vmul.f32 %v6758_v62, %v6819_v36  ;;  %v1793_v41 = vxor.u32 2147483648, %v5261_v33  ;;  %v6913_v19 = vadd.f32 %v2213_v55, %v2212_v2  ;;  %v2219_v32 = vsub.f32 %v2217_v30, %v2218_v58 }
 0x161   :  { %v2232_v43 = vmul.f32 %v6753_v42, %v6819_v36  ;;  %v1790_v3 = vxor.u32 2147483648, %v5263_v13  ;;  %v2231_v10 = vsub.f32 %v2229_v46, %v2230_v63  ;;  %v2236_v27 = vmul.f32 %v6753_v42, %v6730_v24 }
 0x162   :  { %v2237_v5 = vmul.f32 %v6758_v62, %v6810_v35  ;;  %v1794_v45 = vsel %vm1792_vm2, %v1793_v41, %v5263_v13  ;;  %v1898_v59 = vsel %vm1896_vm12, %v1793_v41, %v5263_v13  ;;  %v2226_v21 = vadd.f32 %v2225_v50, %v2224_v1 }
 0x163   :  { %v2234_v48 = vmul.f32 %v6758_v62, %v6813_v53  ;;  %v1791_v36 = vsel %vm1789_vm15, %v5261_v33, %v1790_v3  ;;  %v1895_v49 = vsel %vm1893_vm14, %v5261_v33, %v1790_v3  ;;  %v2243_v54 = vmul.f32 %v6753_v42, %v6810_v35 }
 0x164   :  { %v2244_v34 = vmul.f32 %v6758_v62, %v6730_v24  ;;  %v1795_v0 = vsel %vm1788_vm0, %v1791_v36, %v1794_v45  ;;  %v1899_v18 = vsel %vm1892_vm1, %v1895_v49, %v1898_v59  ;;  %v2221_v52 = vsub.f32 %v2219_v32, %v2220_v56 }
 0x165   :  { %v2239_v53 = vmul.f32 %v6786_v20, %v6683_v16  ;;  %v6943_v7 = vsel %vm1786_vm13, nan, %v1795_v0  ;;  %v6947_v25 = vsel %vm1786_vm13, nan, %v1899_v18  ;;  %v2238_v39 = vadd.f32 %v2237_v5, %v2236_v27 }
 0x166   :  { %v2241_v57 = vmul.f32 %v6799_v51, %v6685_v23  ;;  %v6961_v31 = vsub.f32 %v2226_v21, %v2227_v12  ;;  %v2233_v4 = vadd.f32 %v2232_v43, %v2231_v10  ;;  %v2246_v14 = vmul.f32 %v6786_v20, %v6685_v23 }
 0x167   :  { %v2250_v60 = vmul.f32 %v6786_v20, %v6730_v24  ;;  %v2245_v37 = vsub.f32 %v2243_v54, %v2244_v34  ;;  %v2251_v61 = vmul.f32 %v6799_v51, %v6810_v35  ;;  %v2257_v38 = vmul.f32 %v6786_v20, %v6810_v35 }
 0x168   :  { %v2258_v8 = vmul.f32 %v6799_v51, %v6730_v24  ;;  %v2272_v2 = vmul.f32 %v6954_v11, %v6826_v44  ;;  %v2273_v55 = vmul.f32 %v6959_v28, %v6852_v29  ;;  %v2279_v30 = vmul.f32 %v6954_v11, %v6852_v29 }
 0x169   :  { %v2280_v58 = vmul.f32 %v6959_v28, %v6826_v44  ;;  %v2240_v46 = vsub.f32 %v2238_v39, %v2239_v53  ;;  %v2248_v63 = vmul.f32 %v6799_v51, %v6683_v16  ;;  %v2286_v20 = vmul.f32 %v6970_v22, %v6826_v44 }
 0x16a   :  { %v2287_v24 = vmul.f32 %v6975_v17, %v6852_v29  ;;  %v6997_v35 = vadd.f32 %v2234_v48, %v2233_v4  ;;  %v2253_v1 = vmul.f32 %v6753_v42, %v6683_v16  ;;  %v2293_v50 = vmul.f32 %v6970_v22, %v6852_v29 }
 0x16b   :  { %v2294_v33 = vmul.f32 %v6975_v17, %v6826_v44  ;;  %v2247_v56 = vsub.f32 %v2245_v37, %v2246_v14  ;;  %v2252_v12 = vadd.f32 %v2251_v61, %v2250_v60  ;;  %v2259_v51 = vsub.f32 %v2257_v38, %v2258_v8 }
 0x16c   :  { %v2260_v13 = vmul.f32 %v6753_v42, %v6685_v23  ;;  %v2274_v41 = vadd.f32 %v2273_v55, %v2272_v2  ;;  %v2275_v32 = vmul.f32 %v6970_v22, %v6913_v19  ;;  %v2281_v43 = vsub.f32 %v2279_v30, %v2280_v58 }
 0x16d   :  { %v2282_v3 = vmul.f32 %v6970_v22, %v2221_v52  ;;  %v2242_v10 = vadd.f32 %v2241_v57, %v2240_v46  ;;  %v2255_v29 = vmul.f32 %v6758_v62, %v6685_v23  ;;  %v2288_v27 = vadd.f32 %v2287_v24, %v2286_v20 }
 0x16e   :  { %v2289_v44 = vmul.f32 %v6954_v11, %v6913_v19  ;;  %v2295_v5 = vsub.f32 %v2293_v50, %v2294_v33  ;;  %v2296_v45 = vmul.f32 %v6954_v11, %v2221_v52  ;;  %v2300_v42 = vmul.f32 %v6954_v11, %v6899_v40 }
 0x16f   :  { %v2301_v59 = vmul.f32 %v6959_v28, %v6901_v9  ;;  %v2249_v21 = vsub.f32 %v2247_v56, %v2248_v63  ;;  %v2254_v48 = vadd.f32 %v2253_v1, %v2252_v12  ;;  %v2261_v36 = vadd.f32 %v2260_v13, %v2259_v51 }
 0x170   :  { %v2262_v49 = vmul.f32 %v6758_v62, %v6683_v16  ;;  %v2276_v23 = vsub.f32 %v2274_v41, %v2275_v32  ;;  %v2277_v54 = vmul.f32 %v6975_v17, %v2221_v52  ;;  %v2283_v34 = vsub.f32 %v2281_v43, %v2282_v3 }
 0x171   :  { %v2284_v0 = vmul.f32 %v6975_v17, %v6913_v19  ;;  %v2290_v18 = vadd.f32 %v2289_v44, %v2288_v27  ;;  %v2291_v53 = vmul.f32 %v6959_v28, %v2221_v52  ;;  %v2307_v39 = vmul.f32 %v6954_v11, %v6901_v9 }
 0x172   :  { %v2308_v57 = vmul.f32 %v6959_v28, %v6899_v40  ;;  %v2297_v4 = vadd.f32 %v2296_v45, %v2295_v5  ;;  %v2298_v16 = vmul.f32 %v6959_v28, %v6913_v19  ;;  %v2302_v62 = vadd.f32 %v2301_v59, %v2300_v42 }
 0x173   :  { %v2303_v14 = vmul.f32 %v6970_v22, %v2242_v10  ;;  %v7032_v60 = vsub.f32 %v2254_v48, %v2255_v29  ;;  %v7034_v37 = vadd.f32 %v2262_v49, %v2261_v36  ;;  %v2314_v52 = vmul.f32 %v6970_v22, %v6899_v40 }
 0x174   :  { %v2315_v61 = vmul.f32 %v6975_v17, %v6901_v9  ;;  %v7040_v38 = vadd.f32 %v2277_v54, %v2276_v23  ;;  %v7042_v8 = vsub.f32 %v2283_v34, %v2284_v0  ;;  %v2321_v19 = vmul.f32 %v6970_v22, %v6901_v9 }
 0x175   :  { %v2322_v2 = vmul.f32 %v6975_v17, %v6899_v40  ;;  %v7048_v55 = vsub.f32 %v2290_v18, %v2291_v53  ;;  %v2305_v30 = vmul.f32 %v6975_v17, %v2249_v21  ;;  %v2309_v58 = vsub.f32 %v2307_v39, %v2308_v57 }
 0x176   :  { %v2310_v46 = vmul.f32 %v6970_v22, %v2249_v21  ;;  %v7052_v63 = vadd.f32 %v2298_v16, %v2297_v4  ;;  %v2304_v20 = vsub.f32 %v2302_v62, %v2303_v14  ;;  %v2312_v24 = vmul.f32 %v6975_v17, %v2242_v10 }
 0x177   :  { %v2317_v1 = vmul.f32 %v6954_v11, %v2242_v10  ;;  %v2316_v50 = vadd.f32 %v2315_v61, %v2314_v52  ;;  %v2319_v9 = vmul.f32 %v6959_v28, %v2249_v21  ;;  %v2324_v33 = vmul.f32 %v6954_v11, %v2249_v21 }
 0x178   :  { %v2328_v40 = vmul.f32 %v6954_v11, %v6891_v15  ;;  %v2323_v56 = vsub.f32 %v2321_v19, %v2322_v2  ;;  %v2329_v12 = vmul.f32 %v6959_v28, %v6893_v6  ;;  %v2335_v51 = vmul.f32 %v6954_v11, %v6893_v6 }
 0x179   :  { %v2336_v13 = vmul.f32 %v6959_v28, %v6891_v15  ;;  %v2342_v41 = vmul.f32 %v6970_v22, %v6891_v15  ;;  %v2343_v32 = vmul.f32 %v6975_v17, %v6893_v6  ;;  %v2349_v43 = vmul.f32 %v6970_v22, %v6893_v6 }
 0x17a   :  { %v2350_v3 = vmul.f32 %v6975_v17, %v6891_v15  ;;  %v2311_v29 = vsub.f32 %v2309_v58, %v2310_v46  ;;  %v2326_v27 = vmul.f32 %v6959_v28, %v2242_v10  ;;  %v2356_v44 = vmul.f32 %v6954_v11, %v6905_v26  ;;  %v7114_v46 = vld [vmem:[%s9583_s2 + $0x14] sm:$0x1] }
 0x17b   :  { %v2357_v5 = vmul.f32 %v6959_v28, %v6907_v47  ;;  %v2318_v45 = vadd.f32 %v2317_v1, %v2316_v50  ;;  %v2331_v42 = vmul.f32 %v6970_v22, %v6961_v31  ;;  %v2363_v59 = vmul.f32 %v6954_v11, %v6907_v47 }
 0x17c   :  { %v2364_v6 = vmul.f32 %v6959_v28, %v6905_v26  ;;  %v2325_v15 = vadd.f32 %v2324_v33, %v2323_v56  ;;  %v2330_v21 = vadd.f32 %v2329_v12, %v2328_v40  ;;  %v2337_v48 = vsub.f32 %v2335_v51, %v2336_v13 }
 0x17d   :  { %v2338_v10 = vmul.f32 %v6970_v22, %v6997_v35  ;;  %v2344_v36 = vadd.f32 %v2343_v32, %v2342_v41  ;;  %v2345_v49 = vmul.f32 %v6954_v11, %v6961_v31  ;;  %v2351_v23 = vsub.f32 %v2349_v43, %v2350_v3 }
 0x17e   :  { %v2352_v54 = vmul.f32 %v6954_v11, %v6997_v35  ;;  %v7091_v34 = vadd.f32 %v2305_v30, %v2304_v20  ;;  %v7093_v0 = vsub.f32 %v2311_v29, %v2312_v24  ;;  %v2358_v18 = vadd.f32 %v2357_v5, %v2356_v44  ;;  %v7119_v20 = vld [vmem:[%s9583_s2 + $0x15] sm:$0x1]  ;;  %v7158_v29 = vld [vmem:[%s9583_s2 + $0x16] sm:$0x1] }
 0x17f   :  { %v2359_v53 = vmul.f32 %v6970_v22, %v7032_v60  ;;  %v7097_v39 = vsub.f32 %v2318_v45, %v2319_v9  ;;  %v2333_v57 = vmul.f32 %v6975_v17, %v6997_v35  ;;  %v2365_v4 = vsub.f32 %v2363_v59, %v2364_v6 }
 0x180   :  { %v2366_v16 = vmul.f32 %v6970_v22, %v7034_v37  ;;  %v7103_v62 = vadd.f32 %v2326_v27, %v2325_v15  ;;  %v2332_v14 = vsub.f32 %v2330_v21, %v2331_v42  ;;  %v2339_v52 = vsub.f32 %v2337_v48, %v2338_v10  ;;  %v7163_v27 = vld [vmem:[%s9583_s2 + $0x17] sm:$0x1] }
 0x181   :  { %v2340_v61 = vmul.f32 %v6975_v17, %v6961_v31  ;;  %v2346_v19 = vadd.f32 %v2345_v49, %v2344_v36  ;;  %v2347_v2 = vmul.f32 %v6959_v28, %v6997_v35  ;;  %v2353_v30 = vadd.f32 %v2352_v54, %v2351_v23 }
 0x182   :  { %v2354_v58 = vmul.f32 %v6959_v28, %v6961_v31  ;;  %v2360_v24 = vsub.f32 %v2358_v18, %v2359_v53  ;;  %v2361_v1 = vmul.f32 %v6975_v17, %v7034_v37  ;;  %v2370_v35 = vmul.f32 %v6970_v22, %v6905_v26 }
 0x183   :  { %v2371_v31 = vmul.f32 %v6975_v17, %v6907_v47  ;;  %v2367_v50 = vsub.f32 %v2365_v4, %v2366_v16  ;;  %v2368_v9 = vmul.f32 %v6975_v17, %v7032_v60  ;;  %v2377_v33 = vmul.f32 %v6970_v22, %v6907_v47 }
 0x184   :  { %v2378_v40 = vmul.f32 %v6975_v17, %v6905_v26  ;;  %v7133_v56 = vadd.f32 %v2333_v57, %v2332_v14  ;;  %v7135_v12 = vsub.f32 %v2339_v52, %v2340_v61  ;;  %v2392_v51 = vmul.f32 %v7114_v46, %v7040_v38 }
 0x185   :  { %v2393_v13 = vmul.f32 %v7119_v20, %v7042_v8  ;;  %v7141_v41 = vsub.f32 %v2346_v19, %v2347_v2  ;;  %v7143_v32 = vadd.f32 %v2354_v58, %v2353_v30  ;;  %v2373_v47 = vmul.f32 %v6954_v11, %v7032_v60 }
 0x186   :  { %v2375_v26 = vmul.f32 %v6959_v28, %v7034_v37  ;;  %v7149_v22 = vadd.f32 %v2361_v1, %v2360_v24  ;;  %v2372_v17 = vadd.f32 %v2371_v31, %v2370_v35  ;;  %v2380_v43 = vmul.f32 %v6954_v11, %v7034_v37 }
 0x187   :  { %v2382_v3 = vmul.f32 %v6959_v28, %v7032_v60  ;;  %v7165_v44 = vsub.f32 %v2367_v50, %v2368_v9  ;;  %v2379_v5 = vsub.f32 %v2377_v33, %v2378_v40  ;;  %v2420_v45 = vmul.f32 %v7114_v46, %v7048_v55 }
 0x188   :  { %v2421_v11 = vmul.f32 %v7119_v20, %v7052_v63  ;;  %v2394_v28 = vadd.f32 %v2393_v13, %v2392_v51  ;;  %v2395_v60 = vmul.f32 %v7158_v29, %v7091_v34  ;;  %v2399_v37 = vmul.f32 %v7114_v46, %v7042_v8 }
 0x189   :  { %v2400_v42 = vmul.f32 %v7119_v20, %v7040_v38  ;;  %v2406_v59 = vmul.f32 %v7158_v29, %v7040_v38  ;;  %v2407_v6 = vmul.f32 %v7163_v27, %v7042_v8  ;;  %v2413_v15 = vmul.f32 %v7158_v29, %v7042_v8 }
 0x18a   :  { %v2414_v21 = vmul.f32 %v7163_v27, %v7040_v38  ;;  %v2374_v48 = vadd.f32 %v2373_v47, %v2372_v17  ;;  %v2397_v10 = vmul.f32 %v7163_v27, %v7093_v0  ;;  %v2427_v36 = vmul.f32 %v7114_v46, %v7052_v63 }
 0x18b   :  { %v2428_v49 = vmul.f32 %v7119_v20, %v7048_v55  ;;  %v2381_v23 = vadd.f32 %v2380_v43, %v2379_v5  ;;  %v2402_v54 = vmul.f32 %v7158_v29, %v7093_v0  ;;  %v2422_v18 = vadd.f32 %v2421_v11, %v2420_v45 }
 0x18c   :  { %v2423_v8 = vmul.f32 %v7158_v29, %v7097_v39  ;;  %v2396_v53 = vsub.f32 %v2394_v28, %v2395_v60  ;;  %v2401_v38 = vsub.f32 %v2399_v37, %v2400_v42  ;;  %v2434_v57 = vmul.f32 %v7158_v29, %v7048_v55 }
 0x18d   :  { %v2435_v4 = vmul.f32 %v7163_v27, %v7052_v63  ;;  %v2408_v16 = vadd.f32 %v2407_v6, %v2406_v59  ;;  %v2409_v14 = vmul.f32 %v7114_v46, %v7091_v34  ;;  %v2415_v52 = vsub.f32 %v2413_v15, %v2414_v21 }
 0x18e   :  { %v2416_v61 = vmul.f32 %v7114_v46, %v7093_v0  ;;  %v7203_v19 = vsub.f32 %v2374_v48, %v2375_v26  ;;  %v7207_v2 = vmul.f32 %v7163_v27, %v7091_v34  ;;  %v2429_v30 = vsub.f32 %v2427_v36, %v2428_v49 }
 0x18f   :  { %v2430_v58 = vmul.f32 %v7158_v29, %v7103_v62  ;;  %v7211_v24 = vadd.f32 %v2382_v3, %v2381_v23  ;;  %v7215_v1 = vmul.f32 %v7119_v20, %v7093_v0  ;;  %v2424_v35 = vsub.f32 %v2422_v18, %v2423_v8 }
 0x190   :  { %v2425_v31 = vmul.f32 %v7163_v27, %v7103_v62  ;;  %v7219_v50 = vadd.f32 %v2397_v10, %v2396_v53  ;;  %v7221_v9 = vsub.f32 %v2401_v38, %v2402_v54  ;;  %v2436_v33 = vadd.f32 %v2435_v4, %v2434_v57 }
 0x191   :  { %v2437_v40 = vmul.f32 %v7114_v46, %v7097_v39  ;;  %v7225_v51 = vadd.f32 %v2409_v14, %v2408_v16  ;;  %v7227_v13 = vadd.f32 %v2416_v61, %v2415_v52  ;;  %v7231_v0 = vmul.f32 %v7119_v20, %v7091_v34 }
 0x192   :  { %v7235_v47 = vmul.f32 %v7163_v27, %v7097_v39  ;;  %v7237_v26 = vsub.f32 %v2429_v30, %v2430_v58  ;;  %v7241_v17 = vmul.f32 %v7119_v20, %v7103_v62  ;;  %v2441_v43 = vmul.f32 %v7158_v29, %v7052_v63 }
 0x193   :  { %v2442_v3 = vmul.f32 %v7163_v27, %v7048_v55  ;;  %v7247_v5 = vadd.f32 %v2425_v31, %v2424_v35  ;;  %v2444_v34 = vmul.f32 %v7114_v46, %v7103_v62  ;;  %v2469_v45 = vmul.f32 %v7158_v29, %v7135_v12 }
 0x194   :  { %v2470_v11 = vmul.f32 %v7163_v27, %v7133_v56  ;;  %v2438_v28 = vadd.f32 %v2437_v40, %v2436_v33  ;;  %v2446_v60 = vmul.f32 %v7119_v20, %v7097_v39  ;;  %v2448_v63 = vmul.f32 %v7114_v46, %v7133_v56 }
 0x195   :  { %v2449_v55 = vmul.f32 %v7119_v20, %v7135_v12  ;;  %v2462_v37 = vmul.f32 %v7158_v29, %v7133_v56  ;;  %v2463_v62 = vmul.f32 %v7163_v27, %v7135_v12  ;;  %v2472_v59 = vmul.f32 %v7114_v46, %v7165_v44 }
 0x196   :  { %v2471_v42 = vsub.f32 %v2469_v45, %v2470_v11  ;;  %v2443_v6 = vsub.f32 %v2441_v43, %v2442_v3  ;;  %v2451_v39 = vmul.f32 %v7158_v29, %v7149_v22  ;;  %v2476_v15 = vmul.f32 %v7114_v46, %v7141_v41 }
 0x197   :  { %v2477_v21 = vmul.f32 %v7119_v20, %v7143_v32  ;;  %v2455_v48 = vmul.f32 %v7114_v46, %v7135_v12  ;;  %v2456_v10 = vmul.f32 %v7119_v20, %v7133_v56  ;;  %v2483_v36 = vmul.f32 %v7114_v46, %v7143_v32 }
 0x198   :  { %v2484_v49 = vmul.f32 %v7119_v20, %v7141_v41  ;;  %v2450_v23 = vadd.f32 %v2449_v55, %v2448_v63  ;;  %v2465_v54 = vmul.f32 %v7114_v46, %v7149_v22  ;;  %v2490_v18 = vmul.f32 %v7158_v29, %v7141_v41 }
 0x199   :  { %v2491_v8 = vmul.f32 %v7163_v27, %v7143_v32  ;;  %v2464_v12 = vadd.f32 %v2463_v62, %v2462_v37  ;;  %v2473_v53 = vadd.f32 %v2472_v59, %v2471_v42  ;;  %v2474_v56 = vmul.f32 %v7119_v20, %v7149_v22 }
 0x19a   :  { %v2479_v38 = vmul.f32 %v7158_v29, %v7203_v19  ;;  %v2478_v57 = vadd.f32 %v2477_v21, %v2476_v15  ;;  %v2486_v4 = vmul.f32 %v7158_v29, %v7211_v24  ;;  %v2497_v16 = vmul.f32 %v7158_v29, %v7143_v32 }
 0x19b   :  { %v2498_v14 = vmul.f32 %v7163_v27, %v7141_v41  ;;  %v2485_v52 = vsub.f32 %v2483_v36, %v2484_v49  ;;  %v2492_v61 = vadd.f32 %v2491_v8, %v2490_v18  ;;  %v2493_v30 = vmul.f32 %v7114_v46, %v7203_v19 }
 0x19c   :  { %v2500_v58 = vmul.f32 %v7114_v46, %v7211_v24  ;;  %v2457_v35 = vsub.f32 %v2455_v48, %v2456_v10  ;;  %v2458_v31 = vmul.f32 %v7158_v29, %v7165_v44  ;;  %v2502_v40 = vmul.f32 %v7119_v20, %v7203_v19 }
 0x19d   :  { %v2499_v33 = vsub.f32 %v2497_v16, %v2498_v14  ;;  %v2445_v32 = vadd.f32 %v2444_v34, %v2443_v6  ;;  %v2453_v41 = vmul.f32 %v7163_v27, %v7165_v44  ;;  %v2466_v43 = vadd.f32 %v2465_v54, %v2464_v12 }
 0x19e   :  { %v2467_v3 = vmul.f32 %v7119_v20, %v7165_v44  ;;  %v2475_v45 = vadd.f32 %v2474_v56, %v2473_v53  ;;  %v2480_v11 = vsub.f32 %v2478_v57, %v2479_v38  ;;  %v2481_v46 = vmul.f32 %v7163_v27, %v7211_v24 }
 0x19f   :  { %v2501_v63 = vadd.f32 %v2500_v58, %v2499_v33  ;;  %v2487_v55 = vsub.f32 %v2485_v52, %v2486_v4  ;;  %v2488_v29 = vmul.f32 %v7163_v27, %v7203_v19  ;;  %v2494_v37 = vadd.f32 %v2493_v30, %v2492_v61 }
 0x1a0   :  { %v2495_v34 = vmul.f32 %v7119_v20, %v7211_v24  ;;  %v2452_v62 = vsub.f32 %v2450_v23, %v2451_v39  ;;  %v2459_v42 = vsub.f32 %v2457_v35, %v2458_v31  ;;  %v2460_v59 = vmul.f32 %v7163_v27, %v7149_v22 }
 0x1a1   :  { %v2503_v44 = vadd.f32 %v2502_v40, %v2501_v63  ;;  %v2405_v6 = vsub.f32 %v7221_v9, %v7207_v2  ;;  %v2412_v15 = vsub.f32 %v7225_v51, %v7215_v1  ;;  %v2419_v21 = vadd.f32 %v7231_v0, %v7227_v13 }
 0x1a2   :  { %v2468_v19 = vsub.f32 %v2466_v43, %v2467_v3  ;;  %v2447_v48 = vadd.f32 %v2446_v60, %v2445_v32  ;;  %v2482_v10 = vadd.f32 %v2481_v46, %v2480_v11  ;;  %v2504_v20 = vmul.f32 %v7219_v50, %v6943_v7 }
 0x1a3   :  { %v2505_v24 = vmul.f32 %v2475_v45, %v6947_v25  ;;  %v2433_v22 = vsub.f32 %v7237_v26, %v7235_v47  ;;  %v2440_v27 = vsub.f32 %v2438_v28, %v7241_v17  ;;  %v2489_v2 = vsub.f32 %v2487_v55, %v2488_v29 }
 0x1a4   :  { %v2496_v9 = vsub.f32 %v2494_v37, %v2495_v34  ;;  %v2454_v39 = vadd.f32 %v2453_v41, %v2452_v62  ;;  %v2461_v1 = vsub.f32 %v2459_v42, %v2460_v59  ;;  %v2531_v51 = vmul.f32 %v2503_v44, %v6943_v7 }
 0x1a5   :  { %v2532_v13 = vmul.f32 %v7247_v5, %v6947_v25  ;;  %v2507_v0 = vmul.f32 %v2405_v6, %v6943_v7  ;;  %v2508_v60 = vmul.f32 %v2468_v19, %v6947_v25  ;;  %v2510_v36 = vmul.f32 %v2468_v19, %v6943_v7 }
 0x1a6   :  { %v2511_v49 = vmul.f32 %v2405_v6, %v6947_v25  ;;  %v2506_v47 = vadd.f32 %v2505_v24, %v2504_v20  ;;  %v2516_v26 = vmul.f32 %v2482_v10, %v6943_v7  ;;  %v2517_v17 = vmul.f32 %v2447_v48, %v6947_v25 }
 0x1a7   :  { %v2519_v28 = vmul.f32 %v2489_v2, %v6943_v7  ;;  %v2520_v23 = vmul.f32 %v2440_v27, %v6947_v25  ;;  %v2528_v54 = vmul.f32 %v2496_v9, %v6943_v7  ;;  %v2529_v18 = vmul.f32 %v2433_v22, %v6947_v25 }
 0x1a8   :  { %v2513_v8 = vmul.f32 %v2475_v45, %v6943_v7  ;;  %v2533_v12 = vsub.f32 %v2531_v51, %v2532_v13  ;;  %v2543_v53 = vmul.f32 %v2419_v21, %v6943_v7  ;;  %v2544_v56 = vmul.f32 %v2454_v39, %v6947_v25 }
 0x1a9   :  { %v2509_v38 = vsub.f32 %v2507_v0, %v2508_v60  ;;  %v7345_v57 = vadd.f32 %v2511_v49, %v2510_v36  ;;  %v2540_v4 = vmul.f32 %v2412_v15, %v6943_v7  ;;  %v2541_v16 = vmul.f32 %v2461_v1, %v6947_v25 }
 0x1aa   :  { %v2514_v14 = vmul.f32 %v7219_v50, %v6947_v25  ;;  %v2522_v52 = vmul.f32 %v2440_v27, %v6943_v7  ;;  %v2523_v61 = vmul.f32 %v2489_v2, %v6947_v25  ;;  %v2525_v30 = vmul.f32 %v2447_v48, %v6943_v7 }
 0x1ab   :  { %v2518_v58 = vadd.f32 %v2517_v17, %v2516_v26  ;;  %v2521_v35 = vsub.f32 %v2519_v28, %v2520_v23  ;;  %v2526_v31 = vmul.f32 %v2482_v10, %v6947_v25  ;;  %v2530_v33 = vadd.f32 %v2529_v18, %v2528_v54 }
 0x1ac   :  { %v2534_v40 = vmul.f32 %v7247_v5, %v6943_v7  ;;  %v2545_v32 = vsub.f32 %v2543_v53, %v2544_v56  ;;  %v2553_v41 = vrot.slane %v2506_v47, 7  ;;  %v2557_v43 = vrot.slane %v2533_v12, 7 }
 0x1ad   :  { %v2535_v3 = vmul.f32 %v2503_v44, %v6947_v25  ;;  %v2537_v50 = vmul.f32 %v2433_v22, %v6943_v7  ;;  %v2538_v45 = vmul.f32 %v2496_v9, %v6947_v25  ;;  %v2542_v11 = vadd.f32 %v2541_v16, %v2540_v4 }
 0x1ae   :  { %v2546_v46 = vmul.f32 %v2454_v39, %v6943_v7  ;;  %v2547_v63 = vmul.f32 %v2419_v21, %v6947_v25  ;;  %v2549_v55 = vmul.f32 %v2461_v1, %v6943_v7  ;;  %v2550_v29 = vmul.f32 %v2412_v15, %v6947_v25 }
 0x1af   :  { %v2515_v37 = vsub.f32 %v2513_v8, %v2514_v14  ;;  %v2524_v5 = vadd.f32 %v2523_v61, %v2522_v52  ;;  %v2562_v34 = vrot.slane %v2509_v38, 7  ;;  %v2566_v62 = vrot.slane %v2530_v33, 7 }
 0x1b0   :  { %v2555_v42 = vmul.f32 %v2553_v41, %v6943_v7  ;;  %v2559_v59 = vmul.f32 %v2557_v43, %v6947_v25  ;;  %v2577_v44 = vrot.slane %v2518_v58, 7  ;;  %v2581_v6 = vrot.slane %v2545_v32, 7 }
 0x1b1   :  { %v2527_v19 = vsub.f32 %v2525_v30, %v2526_v31  ;;  %v2539_v48 = vsub.f32 %v2537_v50, %v2538_v45  ;;  %v2586_v10 = vrot.slane %v2521_v35, 7  ;;  %v2590_v20 = vrot.slane %v2542_v11, 7 }
 0x1b2   :  { %v2536_v24 = vadd.f32 %v2535_v3, %v2534_v40  ;;  %v2548_v21 = vadd.f32 %v2547_v63, %v2546_v46  ;;  %v2551_v22 = vsub.f32 %v2549_v55, %v2550_v29  ;;  %v2574_v27 = vmul.f32 %v2553_v41, %v6947_v25 }
 0x1b3   :  { %v2564_v15 = vmul.f32 %v2562_v34, %v6943_v7  ;;  %v2568_v2 = vmul.f32 %v2566_v62, %v6947_v25  ;;  %v2570_v9 = vmul.f32 %v2566_v62, %v6943_v7  ;;  %v2571_v39 = vmul.f32 %v2562_v34, %v6947_v25 }
 0x1b4   :  { %v7371_v1 = vadd.f32 %v2559_v59, %v2555_v42  ;;  %v2573_v51 = vmul.f32 %v2557_v43, %v6943_v7  ;;  %v2579_v13 = vmul.f32 %v2577_v44, %v6943_v7  ;;  %v2583_v0 = vmul.f32 %v2581_v6, %v6947_v25 }
 0x1b5   :  { %v2588_v60 = vmul.f32 %v2586_v10, %v6943_v7  ;;  %v2592_v36 = vmul.f32 %v2590_v20, %v6947_v25  ;;  %v2601_v49 = vrot.slane %v7345_v57, 7  ;;  %v2605_v47 = vrot.slane %v2539_v48, 7 }
 0x1b6   :  { %v2610_v26 = vrot.slane %v2515_v37, 7  ;;  %v2614_v17 = vrot.slane %v2536_v24, 7  ;;  %v2634_v28 = vrot.slane %v2527_v19, 7  ;;  %v2638_v23 = vrot.slane %v2548_v21, 7 }
 0x1b7   :  { %v2569_v54 = vsub.f32 %v2564_v15, %v2568_v2  ;;  %v7379_v18 = vadd.f32 %v2571_v39, %v2570_v9  ;;  %v2625_v8 = vrot.slane %v2524_v5, 7  ;;  %v2629_v12 = vrot.slane %v2551_v22, 7 }
 0x1b8   :  { %v2584_v53 = vadd.f32 %v2583_v0, %v2579_v13  ;;  %v2594_v56 = vmul.f32 %v2590_v20, %v6943_v7  ;;  %v2595_v38 = vmul.f32 %v2586_v10, %v6947_v25  ;;  %v2597_v4 = vmul.f32 %v2581_v6, %v6943_v7 }
 0x1b9   :  { %v2593_v16 = vsub.f32 %v2588_v60, %v2592_v36  ;;  %v2598_v57 = vmul.f32 %v2577_v44, %v6947_v25  ;;  %v2603_v14 = vmul.f32 %v2601_v49, %v6943_v7  ;;  %v2607_v52 = vmul.f32 %v2605_v47, %v6947_v25 }
 0x1ba   :  { %v2612_v61 = vmul.f32 %v2610_v26, %v6943_v7  ;;  %v2616_v30 = vmul.f32 %v2614_v17, %v6947_v25  ;;  %v2636_v58 = vmul.f32 %v2634_v28, %v6943_v7  ;;  %v2640_v35 = vmul.f32 %v2638_v23, %v6947_v25 }
 0x1bb   :  { %v2618_v31 = vmul.f32 %v2614_v17, %v6943_v7  ;;  %v2619_v33 = vmul.f32 %v2610_v26, %v6947_v25  ;;  %v2627_v40 = vmul.f32 %v2625_v8, %v6943_v7  ;;  %v2631_v32 = vmul.f32 %v2629_v12, %v6947_v25 }
 0x1bc   :  { %v7396_v41 = vmul.f32 %v2605_v47, %v6943_v7  ;;  %v7399_v43 = vmul.f32 %v2601_v49, %v6947_v25  ;;  %v2642_v3 = vmul.f32 %v2638_v23, %v6943_v7  ;;  %v2643_v50 = vmul.f32 %v2634_v28, %v6947_v25 }
 0x1bd   :  { %v2599_v45 = vsub.f32 %v2597_v4, %v2598_v57  ;;  %v7404_v11 = vmul.f32 %v2629_v12, %v6943_v7  ;;  %v7407_v46 = vmul.f32 %v2625_v8, %v6947_v25  ;;  %v2649_v63 = vrot.slane %v7371_v1, 7 }
 0x1be   :  { %v2575_v55 = vsub.f32 %v2573_v51, %v2574_v27  ;;  %v2596_v29 = vadd.f32 %v2595_v38, %v2594_v56  ;;  %v2608_v37 = vadd.f32 %v2607_v52, %v2603_v14  ;;  %v2641_v5 = vsub.f32 %v2636_v58, %v2640_v35 }
 0x1bf   :  { %v2617_v34 = vsub.f32 %v2612_v61, %v2616_v30  ;;  %v7410_v62 = vadd.f32 %v2619_v33, %v2618_v31  ;;  %v2632_v42 = vadd.f32 %v2631_v32, %v2627_v40  ;;  %v2653_v59 = vrot.slane %v2593_v16, 7 }
 0x1c0   :  { %v2623_v44 = vsub.f32 %v7396_v41, %v7399_v43  ;;  %v7414_v6 = vadd.f32 %v2643_v50, %v2642_v3  ;;  %v2658_v19 = vrot.slane %v2569_v54, 7  ;;  %v2662_v48 = vrot.slane %v2584_v53, 7 }
 0x1c1   :  { %v2647_v10 = vsub.f32 %v7404_v11, %v7407_v46  ;;  %v2651_v20 = vmul.f32 %v2649_v63, %v6943_v7  ;;  %v2673_v24 = vrot.slane %v7379_v18, 7  ;;  %v2677_v21 = vrot.slane %v2599_v45, 7 }
 0x1c2   :  { %v2682_v22 = vrot.slane %v2575_v55, 7  ;;  %v2686_v27 = vrot.slane %v2596_v29, 7  ;;  %v2697_v15 = vrot.slane %v2608_v37, 7  ;;  %v2701_v2 = vrot.slane %v2641_v5, 7 }
 0x1c3   :  { %v2655_v9 = vmul.f32 %v2653_v59, %v6947_v25  ;;  %v2669_v39 = vmul.f32 %v2653_v59, %v6943_v7  ;;  %v2706_v1 = vrot.slane %v2617_v34, 7  ;;  %v2710_v51 = vrot.slane %v2632_v42, 7 }
 0x1c4   :  { %v2660_v13 = vmul.f32 %v2658_v19, %v6943_v7  ;;  %v2664_v0 = vmul.f32 %v2662_v48, %v6947_v25  ;;  %v2666_v60 = vmul.f32 %v2662_v48, %v6943_v7  ;;  %v2667_v36 = vmul.f32 %v2658_v19, %v6947_v25 }
 0x1c5   :  { %v2670_v49 = vmul.f32 %v2649_v63, %v6947_v25  ;;  %v2675_v47 = vmul.f32 %v2673_v24, %v6943_v7  ;;  %v2679_v26 = vmul.f32 %v2677_v21, %v6947_v25  ;;  %v7430_v17 = vmul.f32 %v2677_v21, %v6943_v7 }
 0x1c6   :  { %v7433_v28 = vmul.f32 %v2682_v22, %v6943_v7  ;;  %v7436_v23 = vmul.f32 %v2686_v27, %v6947_v25  ;;  %v2699_v54 = vmul.f32 %v2697_v15, %v6943_v7  ;;  %v2703_v18 = vmul.f32 %v2701_v2, %v6947_v25 }
 0x1c7   :  { %v2708_v8 = vmul.f32 %v2706_v1, %v6943_v7  ;;  %v2712_v12 = vmul.f32 %v2710_v51, %v6947_v25  ;;  %v2714_v53 = vmul.f32 %v2710_v51, %v6943_v7  ;;  %v2717_v56 = vmul.f32 %v2701_v2, %v6943_v7  ;;  %v7493_v51 = vld [vmem:[%s9583_s2 + $0x19] sm:$0x1] }
 0x1c8   :  { %v2715_v38 = vmul.f32 %v2706_v1, %v6947_v25  ;;  %v2718_v4 = vmul.f32 %v2697_v15, %v6947_v25  ;;  %v2756_v16 = vlaneseq  ;;  %v2690_v57 = vmul.f32 %v2686_v27, %v6943_v7  ;;  %v7488_v1 = vld [vmem:[%s9583_s2 + $0x18] sm:$0x1] }
 0x1c9   :  { %v2691_v14 = vmul.f32 %v2682_v22, %v6947_v25  ;;  %v7449_v52 = vmul.f32 %v2673_v24, %v6947_v25  ;;  %v5294_v61 = vmov 1966171168   ;;  %v2656_v58 = vadd.f32 %v2655_v9, %v2651_v20 }
 0x1ca   :  { %v2754_v30 = vunpack.c.l.s4 %v5294_v61  ;;  %v2665_v35 = vsub.f32 %v2660_v13, %v2664_v0  ;;  %v2721_v31 = vrot.slane %v7410_v62, 7  ;;  %v2757_v33 = vshrl.u32 %v2756_v16, 7  ;;  %v7499_v0 = vld [vmem:[%s9583_s2 + $0x1a] sm:$0x1] }
 0x1cb   :  { %v2668_v40 = vadd.f32 %v2667_v36, %v2666_v60  ;;  %v2704_v32 = vadd.f32 %v2703_v18, %v2699_v54  ;;  %v2713_v41 = vsub.f32 %v2708_v8, %v2712_v12  ;;  %v2671_v3 = vsub.f32 %v2669_v39, %v2670_v49  ;;  %v7508_v8 = vld [vmem:[%s9583_s2 + $0x1b] sm:$0x1] }
 0x1cc   :  { %v2755_v43 = vunpack.c.0.s8 %v2754_v30  ;;  %v7452_v50 = vadd.f32 %v2679_v26, %v2675_v47  ;;  %v2716_v45 = vadd.f32 %v2715_v38, %v2714_v53  ;;  %v2719_v11 = vsub.f32 %v2717_v56, %v2718_v4 }
 0x1cd   :  { %v2689_v46 = vsub.f32 %v7433_v28, %v7436_v23  ;;  %v7456_v63 = vadd.f32 %v2691_v14, %v2690_v57  ;;  %v2695_v55 = vsub.f32 %v7430_v17, %v7449_v52  ;;  %v2723_v37 = vmul.f32 %v2721_v31, %v6943_v7 }
 0x1ce   :  { %v7460_v29 = vsub.s32 %v2755_v43, %v2757_v33  ;;  %v2725_v5 = vrot.slane %v2647_v10, 7  ;;  %v2730_v34 = vrot.slane %v2623_v44, 7  ;;  %v2734_v42 = vrot.slane %v7414_v6, 7 }
 0x1cf   :  { %vm5000_vm4 = vcmask 57344  }
 0x1d0   :  { %v2759_v59 = vrot.slane %v2656_v58, %v7460_v29  ;;  %v2777_v19 = vrot.slane %v2665_v35, %v7460_v29  ;;  %v2796_v48 = vrot.slane %v2704_v32, %v7460_v29  ;;  %v2815_v20 = vrot.slane %v2713_v41, %v7460_v29 }
 0x1d1   :  { %v2855_v24 = vrot.slane %v2668_v40, %v7460_v29  ;;  %v2873_v21 = vrot.slane %v2671_v3, %v7460_v29  ;;  %v2892_v22 = vrot.slane %v2716_v45, %v7460_v29  ;;  %v2911_v27 = vrot.slane %v2719_v11, %v7460_v29 }
 0x1d2   :  { %v2766_v44 = vrot.slane %v2759_v59, %v7460_v29  ;;  %v2784_v6 = vrot.slane %v2777_v19, %v7460_v29  ;;  %v2803_v10 = vrot.slane %v2796_v48, %v7460_v29  ;;  %v2822_v15 = vrot.slane %v2815_v20, %v7460_v29 }
 0x1d3   :  { %v2727_v2 = vmul.f32 %v2725_v5, %v6947_v25  ;;  %v7480_v9 = vmul.f32 %v2730_v34, %v6943_v7  ;;  %v7483_v39 = vmul.f32 %v2725_v5, %v6943_v7  ;;  %v2862_v13 = vrot.slane %v2855_v24, %v7460_v29 }
 0x1d4   :  { %v2767_v60 = vcombine.high %v2766_v44, %v2766_v44  ;;  %v2785_v36 = vcombine.high %v2784_v6, %v2784_v6  ;;  %v2804_v49 = vcombine.high %v2803_v10, %v2803_v10  ;;  %v2880_v47 = vrot.slane %v2873_v21, %v7460_v29 }
 0x1d5   :  { %v2736_v26 = vmul.f32 %v2734_v42, %v6947_v25  ;;  %v2738_v54 = vmul.f32 %v2734_v42, %v6943_v7  ;;  %v2739_v18 = vmul.f32 %v2730_v34, %v6947_v25  ;;  %v2823_v12 = vcombine.high %v2822_v15, %v2822_v15 }
 0x1d6   :  { %v2769_v53 = vmul.f32 %v7488_v1, %v2767_v60  ;;  %v2787_v56 = vmul.f32 %v7493_v51, %v2785_v36  ;;  %v2899_v38 = vrot.slane %v2892_v22, %v7460_v29  ;;  %v2918_v4 = vrot.slane %v2911_v27, %v7460_v29 }
 0x1d7   :  { %v2806_v16 = vmul.f32 %v7499_v0, %v2804_v49  ;;  %v2827_v57 = vmul.f32 %v7488_v1, %v2785_v36  ;;  %v2828_v14 = vmul.f32 %v7493_v51, %v2767_v60  ;;  %v2863_v61 = vcombine.high %v2862_v13, %v2862_v13 }
 0x1d8   :  { %v2788_v30 = vadd.f32 %v2787_v56, %v2769_v53  ;;  %v2834_v58 = vmul.f32 %v7499_v0, %v2767_v60  ;;  %v2835_v35 = vmul.f32 %v7508_v8, %v2785_v36  ;;  %v2881_v33 = vcombine.high %v2880_v47, %v2880_v47 }
 0x1d9   :  { %v2829_v40 = vsub.f32 %v2827_v57, %v2828_v14  ;;  %v2830_v32 = vmul.f32 %v7499_v0, %v2823_v12  ;;  %v2841_v41 = vmul.f32 %v7499_v0, %v2785_v36  ;;  %v2842_v43 = vmul.f32 %v7508_v8, %v2767_v60 }
 0x1da   :  { %v2728_v3 = vadd.f32 %v2727_v2, %v2723_v37  ;;  %v2737_v45 = vsub.f32 %v7480_v9, %v2736_v26  ;;  %v7526_v11 = vmul.f32 %v2721_v31, %v6947_v25  ;;  %v7528_v5 = vcombine.high %v2899_v38, %v2899_v38 }
 0x1db   :  { %v2807_v34 = vsub.f32 %v2788_v30, %v2806_v16  ;;  %v2825_v42 = vmul.f32 %v7508_v8, %v2823_v12  ;;  %v2832_v59 = vmul.f32 %v7508_v8, %v2804_v49  ;;  %v2919_v19 = vcombine.high %v2918_v4, %v2918_v4 }
 0x1dc   :  { %v2836_v48 = vadd.f32 %v2835_v35, %v2834_v58  ;;  %v2837_v20 = vmul.f32 %v7488_v1, %v2804_v49  ;;  %v2865_v37 = vmul.f32 %v7488_v1, %v2863_v61  ;;  %v2883_v24 = vmul.f32 %v7493_v51, %v2881_v33 }
 0x1dd   :  { %v2831_v21 = vsub.f32 %v2829_v40, %v2830_v32  ;;  %v2843_v22 = vsub.f32 %v2841_v41, %v2842_v43  ;;  %v2844_v62 = vmul.f32 %v7488_v1, %v2823_v12  ;;  %v2923_v31 = vmul.f32 %v7488_v1, %v2881_v33 }
 0x1de   :  { %v7537_v27 = vadd.f32 %v2739_v18, %v2738_v54  ;;  %v2743_v44 = vsub.f32 %v7483_v39, %v7526_v11  ;;  %v2839_v6 = vmul.f32 %v7493_v51, %v2823_v12  ;;  %v2924_v10 = vmul.f32 %v7493_v51, %v2863_v61 }
 0x1df   :  { %v7543_v15 = vadd.f32 %v2825_v42, %v2807_v34  ;;  %v2846_v2 = vmul.f32 %v7493_v51, %v2804_v49  ;;  %v2930_v9 = vmul.f32 %v7499_v0, %v2863_v61  ;;  %v2931_v13 = vmul.f32 %v7508_v8, %v2881_v33 }
 0x1e0   :  { %v2838_v60 = vadd.f32 %v2837_v20, %v2836_v48  ;;  %v2884_v36 = vadd.f32 %v2883_v24, %v2865_v37  ;;  %v2902_v47 = vmul.f32 %v7499_v0, %v7528_v5  ;;  %v2921_v26 = vmul.f32 %v7508_v8, %v2919_v19 }
 0x1e1   :  { %v7551_v54 = vsub.f32 %v2831_v21, %v2832_v59  ;;  %v2845_v18 = vadd.f32 %v2844_v62, %v2843_v22  ;;  %v2925_v12 = vsub.f32 %v2923_v31, %v2924_v10  ;;  %v2926_v53 = vmul.f32 %v7499_v0, %v2919_v19 }
 0x1e2   :  { %v2933_v49 = vmul.f32 %v7488_v1, %v7528_v5  ;;  %v2937_v56 = vmul.f32 %v7499_v0, %v2881_v33  ;;  %v2951_v38 = vrot.slane %v7452_v50, %v7460_v29  ;;  %v2969_v4 = vrot.slane %v2689_v46, %v7460_v29 }
 0x1e3   :  { %v2932_v16 = vadd.f32 %v2931_v13, %v2930_v9  ;;  %v2938_v57 = vmul.f32 %v7508_v8, %v2863_v61  ;;  %v2988_v14 = vrot.slane %v2728_v3, %v7460_v29  ;;  %v3007_v30 = vrot.slane %v2737_v45, %v7460_v29 }
 0x1e4   :  { %v2903_v58 = vsub.f32 %v2884_v36, %v2902_v47  ;;  %v2928_v35 = vmul.f32 %v7508_v8, %v7528_v5  ;;  %v2958_v33 = vrot.slane %v2951_v38, %v7460_v29  ;;  %v2976_v50 = vrot.slane %v2969_v4, %v7460_v29 }
 0x1e5   :  { %v2935_v40 = vmul.f32 %v7493_v51, %v2919_v19  ;;  %v2995_v28 = vrot.slane %v2988_v14, %v7460_v29  ;;  %v3014_v23 = vrot.slane %v3007_v30, %v7460_v29  ;;  %v3047_v46 = vrot.slane %v7456_v63, %v7460_v29 }
 0x1e6   :  { %v2927_v61 = vsub.f32 %v2925_v12, %v2926_v53  ;;  %v2940_v32 = vmul.f32 %v7488_v1, %v2919_v19  ;;  %v2959_v41 = vcombine.high %v2958_v33, %v2958_v33  ;;  %v2977_v43 = vcombine.high %v2976_v50, %v2976_v50 }
 0x1e7   :  { %v2934_v3 = vadd.f32 %v2933_v49, %v2932_v16  ;;  %v2939_v45 = vsub.f32 %v2937_v56, %v2938_v57  ;;  %v2996_v34 = vcombine.high %v2995_v28, %v2995_v28  ;;  %v3015_v42 = vcombine.high %v3014_v23, %v3014_v23 }
 0x1e8   :  { %v2961_v59 = vmul.f32 %v7488_v1, %v2959_v41  ;;  %v2979_v48 = vmul.f32 %v7493_v51, %v2977_v43  ;;  %v3019_v20 = vmul.f32 %v7488_v1, %v2977_v43  ;;  %v3020_v37 = vmul.f32 %v7493_v51, %v2959_v41 }
 0x1e9   :  { %v7580_v24 = vsub.f32 %v2838_v60, %v2839_v6  ;;  %v7582_v63 = vadd.f32 %v2846_v2, %v2845_v18  ;;  %v3054_v19 = vrot.slane %v3047_v46, %v7460_v29  ;;  %v3065_v21 = vrot.slane %v2695_v55, %v7460_v29 }
 0x1ea   :  { %v7589_v22 = vadd.f32 %v2921_v26, %v2903_v58  ;;  %v3026_v62 = vmul.f32 %v7499_v0, %v2959_v41  ;;  %v3027_v31 = vmul.f32 %v7508_v8, %v2977_v43  ;;  %v3084_v10 = vrot.slane %v7537_v27, %v7460_v29 }
 0x1eb   :  { %v7595_v6 = vsub.f32 %v2927_v61, %v2928_v35  ;;  %v7597_v2 = vsub.f32 %v2934_v3, %v2935_v40  ;;  %v2941_v9 = vadd.f32 %v2940_v32, %v2939_v45  ;;  %v2942_v13 = vmul.f32 %v7493_v51, %v7528_v5  ;;  %v7627_v32 = vld [vmem:[%s9583_s2 + $0x1c] sm:$0x1] }
 0x1ec   :  { %v2980_v60 = vadd.f32 %v2979_v48, %v2961_v59  ;;  %v2998_v17 = vmul.f32 %v7499_v0, %v2996_v34  ;;  %v3021_v52 = vsub.f32 %v3019_v20, %v3020_v37  ;;  %v3022_v55 = vmul.f32 %v7499_v0, %v3015_v42 }
 0x1ed   :  { %v3017_v36 = vmul.f32 %v7508_v8, %v3015_v42  ;;  %v3029_v47 = vmul.f32 %v7488_v1, %v2996_v34  ;;  %v3055_v26 = vcombine.high %v3054_v19, %v3054_v19  ;;  %v3072_v27 = vrot.slane %v3065_v21, %v7460_v29 }
 0x1ee   :  { %v3028_v18 = vadd.f32 %v3027_v31, %v3026_v62  ;;  %v3033_v12 = vmul.f32 %v7499_v0, %v2977_v43  ;;  %v3034_v53 = vmul.f32 %v7508_v8, %v2959_v41  ;;  %v3091_v5 = vrot.slane %v3084_v10, %v7460_v29  ;;  %v7632_v41 = vld [vmem:[%s9583_s2 + $0x1d] sm:$0x1] }
 0x1ef   :  { %v3024_v49 = vmul.f32 %v7508_v8, %v2996_v34  ;;  %v3057_v56 = vmul.f32 %v7488_v1, %v3055_v26  ;;  %v3073_v38 = vcombine.high %v3072_v27, %v3072_v27  ;;  %v3103_v4 = vrot.slane %v2743_v44, %v7460_v29 }
 0x1f0   :  { %v2999_v16 = vsub.f32 %v2980_v60, %v2998_v17  ;;  %v3023_v57 = vsub.f32 %v3021_v52, %v3022_v55  ;;  %v3031_v14 = vmul.f32 %v7493_v51, %v3015_v42  ;;  %v3092_v30 = vcombine.high %v3091_v5, %v3091_v5  ;;  %v7656_v60 = vld [vmem:[%s9583_s2 + $0x1f] sm:$0x1] }
 0x1f1   :  { %v3075_v58 = vmul.f32 %v7493_v51, %v3073_v38  ;;  %v3110_v35 = vrot.slane %v3103_v4, %v7460_v29  ;;  %v3115_v33 = vmul.f32 %v7488_v1, %v3073_v38  ;;  %v3116_v50 = vmul.f32 %v7493_v51, %v3055_v26 }
 0x1f2   :  { %v3030_v40 = vadd.f32 %v3029_v47, %v3028_v18  ;;  %v3035_v28 = vsub.f32 %v3033_v12, %v3034_v53  ;;  %v3036_v23 = vmul.f32 %v7488_v1, %v3015_v42  ;;  %v3122_v39 = vmul.f32 %v7499_v0, %v3055_v26 }
 0x1f3   :  { %v3076_v11 = vadd.f32 %v3075_v58, %v3057_v56  ;;  %v3094_v44 = vmul.f32 %v7499_v0, %v3092_v30  ;;  %v3111_v46 = vcombine.high %v3110_v35, %v3110_v35  ;;  %v3123_v61 = vmul.f32 %v7508_v8, %v3073_v38 }
 0x1f4   :  { %v7634_v43 = vadd.f32 %v2942_v13, %v2941_v9  ;;  %v3018_v3 = vadd.f32 %v3017_v36, %v2999_v16  ;;  %v3025_v45 = vsub.f32 %v3023_v57, %v3024_v49  ;;  %v3038_v42 = vmul.f32 %v7493_v51, %v2996_v34 }
 0x1f5   :  { %v3117_v59 = vsub.f32 %v3115_v33, %v3116_v50  ;;  %v3118_v48 = vmul.f32 %v7499_v0, %v3111_v46  ;;  %v3129_v20 = vmul.f32 %v7499_v0, %v3073_v38  ;;  %v3130_v37 = vmul.f32 %v7508_v8, %v3055_v26  ;;  %v7651_v0 = vld [vmem:[%s9583_s2 + $0x1e] sm:$0x1] }
 0x1f6   :  { %v7640_v19 = vsub.f32 %v3030_v40, %v3031_v14  ;;  %v3037_v21 = vadd.f32 %v3036_v23, %v3035_v28  ;;  %v3144_v62 = vmul.f32 %v7627_v32, %v7543_v15  ;;  %v3145_v31 = vmul.f32 %v7632_v41, %v7551_v54 }
 0x1f7   :  { %v3095_v10 = vsub.f32 %v3076_v11, %v3094_v44  ;;  %v3113_v9 = vmul.f32 %v7508_v8, %v3111_v46  ;;  %v3124_v34 = vadd.f32 %v3123_v61, %v3122_v39  ;;  %v3125_v13 = vmul.f32 %v7488_v1, %v3092_v30 }
 0x1f8   :  { %v3120_v17 = vmul.f32 %v7508_v8, %v3092_v30  ;;  %v3127_v52 = vmul.f32 %v7493_v51, %v3111_v46  ;;  %v3134_v55 = vmul.f32 %v7493_v51, %v3092_v30  ;;  %v3151_v36 = vmul.f32 %v7627_v32, %v7551_v54 }
 0x1f9   :  { %v3119_v47 = vsub.f32 %v3117_v59, %v3118_v48  ;;  %v3131_v26 = vsub.f32 %v3129_v20, %v3130_v37  ;;  %v3132_v27 = vmul.f32 %v7488_v1, %v3111_v46  ;;  %v3152_v18 = vmul.f32 %v7632_v41, %v7543_v15 }
 0x1fa   :  { %v3146_v12 = vadd.f32 %v3145_v31, %v3144_v62  ;;  %v3147_v53 = vmul.f32 %v7651_v0, %v3018_v3  ;;  %v3158_v8 = vmul.f32 %v7651_v0, %v7543_v15  ;;  %v3159_v5 = vmul.f32 %v7656_v60, %v7551_v54 }
 0x1fb   :  { %v3114_v51 = vadd.f32 %v3113_v9, %v3095_v10  ;;  %v3126_v49 = vadd.f32 %v3125_v13, %v3124_v34  ;;  %v3154_v56 = vmul.f32 %v7651_v0, %v3025_v45  ;;  %v3165_v38 = vmul.f32 %v7651_v0, %v7551_v54 }
 0x1fc   :  { %v3153_v1 = vsub.f32 %v3151_v36, %v3152_v18  ;;  %v3160_v4 = vadd.f32 %v3159_v5, %v3158_v8  ;;  %v3161_v16 = vmul.f32 %v7627_v32, %v3018_v3  ;;  %v3166_v57 = vmul.f32 %v7656_v60, %v7543_v15 }
 0x1fd   :  { %v3133_v14 = vadd.f32 %v3132_v27, %v3131_v26  ;;  %v3149_v30 = vmul.f32 %v7656_v60, %v3025_v45  ;;  %v3172_v58 = vmul.f32 %v7627_v32, %v7589_v22  ;;  %v3173_v35 = vmul.f32 %v7632_v41, %v7595_v6 }
 0x1fe   :  { %v3121_v33 = vsub.f32 %v3119_v47, %v3120_v17  ;;  %v3148_v50 = vsub.f32 %v3146_v12, %v3147_v53  ;;  %v3167_v40 = vsub.f32 %v3165_v38, %v3166_v57  ;;  %v3168_v54 = vmul.f32 %v7627_v32, %v3025_v45 }
 0x1ff   :  { %v3156_v28 = vmul.f32 %v7656_v60, %v3018_v3  ;;  %v3163_v23 = vmul.f32 %v7632_v41, %v3025_v45  ;;  %v3174_v39 = vadd.f32 %v3173_v35, %v3172_v58  ;;  %v3175_v15 = vmul.f32 %v7651_v0, %v3114_v51 }
 0x200   :  { %v3155_v11 = vsub.f32 %v3153_v1, %v3154_v56  ;;  %v3162_v44 = vadd.f32 %v3161_v16, %v3160_v4  ;;  %v3179_v46 = vmul.f32 %v7627_v32, %v7595_v6  ;;  %v3180_v61 = vmul.f32 %v7632_v41, %v7589_v22 }
 0x201   :  { %v3039_v59 = vadd.f32 %v3038_v42, %v3037_v21  ;;  %v7690_v48 = vsub.f32 %v3126_v49, %v3127_v52  ;;  %v3186_v20 = vmul.f32 %v7651_v0, %v7589_v22  ;;  %v3187_v45 = vmul.f32 %v7656_v60, %v7595_v6 }
 0x202   :  { %v7696_v37 = vadd.f32 %v3134_v55, %v3133_v14  ;;  %v7698_v62 = vadd.f32 %v3149_v30, %v3148_v50  ;;  %v3169_v31 = vadd.f32 %v3168_v54, %v3167_v40  ;;  %v3170_v10 = vmul.f32 %v7632_v41, %v3018_v3 }
 0x203   :  { %v3176_v9 = vsub.f32 %v3174_v39, %v3175_v15  ;;  %v3177_v34 = vmul.f32 %v7656_v60, %v3121_v33  ;;  %v3193_v42 = vmul.f32 %v7651_v0, %v7595_v6  ;;  %v3194_v21 = vmul.f32 %v7656_v60, %v7589_v22 }
 0x204   :  { %v7706_v13 = vsub.f32 %v3155_v11, %v3156_v28  ;;  %v7708_v17 = vsub.f32 %v3162_v44, %v3163_v23  ;;  %v3181_v52 = vsub.f32 %v3179_v46, %v3180_v61  ;;  %v3182_v55 = vmul.f32 %v7651_v0, %v3121_v33 }
 0x205   :  { %v3188_v36 = vadd.f32 %v3187_v45, %v3186_v20  ;;  %v3189_v47 = vmul.f32 %v7627_v32, %v3114_v51  ;;  %v3200_v3 = vmul.f32 %v7627_v32, %v7580_v24  ;;  %v3201_v26 = vmul.f32 %v7632_v41, %v7582_v63 }
 0x206   :  { %v7716_v6 = vadd.f32 %v3170_v10, %v3169_v31  ;;  %v3184_v22 = vmul.f32 %v7656_v60, %v3114_v51  ;;  %v3207_v27 = vmul.f32 %v7627_v32, %v7582_v63  ;;  %v3208_v18 = vmul.f32 %v7632_v41, %v7580_v24 }
 0x207   :  { %v7723_v12 = vadd.f32 %v3177_v34, %v3176_v9  ;;  %v3191_v53 = vmul.f32 %v7632_v41, %v3121_v33  ;;  %v3195_v8 = vsub.f32 %v3193_v42, %v3194_v21  ;;  %v3196_v5 = vmul.f32 %v7627_v32, %v3121_v33  ;;  %v7767_v42 = vld [vmem:[%s9583_s2 + $0x20] sm:$0x1] }
 0x208   :  { %v3183_v49 = vsub.f32 %v3181_v52, %v3182_v55  ;;  %v3198_v56 = vmul.f32 %v7632_v41, %v3114_v51  ;;  %v3214_v38 = vmul.f32 %v7651_v0, %v7580_v24  ;;  %v3215_v1 = vmul.f32 %v7656_v60, %v7582_v63 }
 0x209   :  { %v3190_v4 = vadd.f32 %v3189_v47, %v3188_v36  ;;  %v3202_v16 = vadd.f32 %v3201_v26, %v3200_v3  ;;  %v3203_v57 = vmul.f32 %v7651_v0, %v7640_v19  ;;  %v3221_v14 = vmul.f32 %v7651_v0, %v7582_v63 }
 0x20a   :  { %v3205_v30 = vmul.f32 %v7656_v60, %v3039_v59  ;;  %v3209_v58 = vsub.f32 %v3207_v27, %v3208_v18  ;;  %v3210_v35 = vmul.f32 %v7651_v0, %v3039_v59  ;;  %v3222_v51 = vmul.f32 %v7656_v60, %v7580_v24 }
 0x20b   :  { %v3197_v33 = vadd.f32 %v3196_v5, %v3195_v8  ;;  %v3212_v50 = vmul.f32 %v7656_v60, %v7640_v19  ;;  %v3228_v40 = vmul.f32 %v7627_v32, %v7597_v2  ;;  %v3229_v54 = vmul.f32 %v7632_v41, %v7634_v43 }
 0x20c   :  { %v3216_v28 = vadd.f32 %v3215_v1, %v3214_v38  ;;  %v3217_v63 = vmul.f32 %v7627_v32, %v7640_v19  ;;  %v3223_v23 = vsub.f32 %v3221_v14, %v3222_v51  ;;  %v3224_v39 = vmul.f32 %v7627_v32, %v3039_v59  ;;  %v7814_v14 = vld [vmem:[%s9583_s2 + $0x23] sm:$0x1] }
 0x20d   :  { %v3230_v15 = vadd.f32 %v3229_v54, %v3228_v40  ;;  %v3231_v24 = vmul.f32 %v7651_v0, %v7690_v48  ;;  %v3235_v11 = vmul.f32 %v7627_v32, %v7634_v43  ;;  %v3236_v44 = vmul.f32 %v7632_v41, %v7597_v2 }
 0x20e   :  { %v3204_v46 = vsub.f32 %v3202_v16, %v3203_v57  ;;  %v3211_v61 = vsub.f32 %v3209_v58, %v3210_v35  ;;  %v3219_v20 = vmul.f32 %v7632_v41, %v3039_v59  ;;  %v3226_v45 = vmul.f32 %v7632_v41, %v7640_v19  ;;  %v7772_v59 = vld [vmem:[%s9583_s2 + $0x21] sm:$0x1] }
 0x20f   :  { %v3237_v31 = vsub.f32 %v3235_v11, %v3236_v44  ;;  %v3238_v10 = vmul.f32 %v7651_v0, %v7696_v37  ;;  %v3242_v9 = vmul.f32 %v7651_v0, %v7597_v2  ;;  %v3243_v34 = vmul.f32 %v7656_v60, %v7634_v43 }
 0x210   :  { %v3218_v19 = vadd.f32 %v3217_v63, %v3216_v28  ;;  %v3225_v21 = vadd.f32 %v3224_v39, %v3223_v23  ;;  %v3233_v52 = vmul.f32 %v7656_v60, %v7696_v37  ;;  %v3245_v55 = vmul.f32 %v7627_v32, %v7690_v48 }
 0x211   :  { %v3232_v36 = vsub.f32 %v3230_v15, %v3231_v24  ;;  %v3244_v47 = vadd.f32 %v3243_v34, %v3242_v9  ;;  %v3249_v3 = vmul.f32 %v7651_v0, %v7634_v43  ;;  %v3250_v26 = vmul.f32 %v7656_v60, %v7597_v2  ;;  %v7797_v2 = vld [vmem:[%s9583_s2 + $0x22] sm:$0x1] }
 0x212   :  { %v3185_v27 = vsub.f32 %v3183_v49, %v3184_v22  ;;  %v7782_v18 = vsub.f32 %v3190_v4, %v3191_v53  ;;  %v3264_v8 = vmul.f32 %v7767_v42, %v7698_v62  ;;  %v3265_v5 = vmul.f32 %v7772_v59, %v7706_v13 }
 0x213   :  { %v7788_v38 = vadd.f32 %v3198_v56, %v3197_v33  ;;  %v7790_v1 = vadd.f32 %v3205_v30, %v3204_v46  ;;  %v3239_v16 = vsub.f32 %v3237_v31, %v3238_v10  ;;  %v3240_v43 = vmul.f32 %v7656_v60, %v7690_v48 }
 0x214   :  { %v7799_v0 = vsub.f32 %v3211_v61, %v3212_v50  ;;  %v7801_v22 = vsub.f32 %v3218_v19, %v3219_v20  ;;  %v3246_v53 = vadd.f32 %v3245_v55, %v3244_v47  ;;  %v3247_v49 = vmul.f32 %v7632_v41, %v7696_v37 }
 0x215   :  { %v7805_v56 = vadd.f32 %v3226_v45, %v3225_v21  ;;  %v7807_v4 = vadd.f32 %v3233_v52, %v3232_v36  ;;  %v3251_v57 = vsub.f32 %v3249_v3, %v3250_v26  ;;  %v3252_v60 = vmul.f32 %v7627_v32, %v7696_v37 }
 0x216   :  { %v3266_v30 = vadd.f32 %v3265_v5, %v3264_v8  ;;  %v3267_v58 = vmul.f32 %v7797_v2, %v7723_v12  ;;  %v3271_v35 = vmul.f32 %v7767_v42, %v7706_v13  ;;  %v3272_v51 = vmul.f32 %v7772_v59, %v7698_v62 }
 0x217   :  { %v7822_v33 = vsub.f32 %v3239_v16, %v3240_v43  ;;  %v3254_v32 = vmul.f32 %v7632_v41, %v7690_v48  ;;  %v3278_v37 = vmul.f32 %v7797_v2, %v7698_v62  ;;  %v3279_v50 = vmul.f32 %v7814_v14, %v7706_v13 }
 0x218   :  { %v7830_v40 = vsub.f32 %v3246_v53, %v3247_v49  ;;  %v3269_v54 = vmul.f32 %v7814_v14, %v3185_v27  ;;  %v3285_v28 = vmul.f32 %v7797_v2, %v7706_v13  ;;  %v3286_v63 = vmul.f32 %v7814_v14, %v7698_v62 }
 0x219   :  { %v3253_v23 = vadd.f32 %v3252_v60, %v3251_v57  ;;  %v3274_v39 = vmul.f32 %v7797_v2, %v3185_v27  ;;  %v3292_v41 = vmul.f32 %v7767_v42, %v7708_v17  ;;  %v3293_v48 = vmul.f32 %v7772_v59, %v7716_v6 }
 0x21a   :  { %v3268_v15 = vsub.f32 %v3266_v30, %v3267_v58  ;;  %v3273_v24 = vsub.f32 %v3271_v35, %v3272_v51  ;;  %v3276_v11 = vmul.f32 %v7814_v14, %v7723_v12  ;;  %v3281_v13 = vmul.f32 %v7767_v42, %v7723_v12 }
 0x21b   :  { %v3280_v44 = vadd.f32 %v3279_v50, %v3278_v37  ;;  %v3283_v62 = vmul.f32 %v7772_v59, %v3185_v27  ;;  %v3299_v46 = vmul.f32 %v7767_v42, %v7716_v6  ;;  %v3300_v61 = vmul.f32 %v7772_v59, %v7708_v17 }
 0x21c   :  { %v3287_v20 = vsub.f32 %v3285_v28, %v3286_v63  ;;  %v3288_v45 = vmul.f32 %v7767_v42, %v3185_v27  ;;  %v3294_v31 = vadd.f32 %v3293_v48, %v3292_v41  ;;  %v3295_v10 = vmul.f32 %v7797_v2, %v7782_v18 }
 0x21d   :  { %v3301_v9 = vsub.f32 %v3299_v46, %v3300_v61  ;;  %v3302_v34 = vmul.f32 %v7797_v2, %v7788_v38  ;;  %v3306_v19 = vmul.f32 %v7797_v2, %v7708_v17  ;;  %v3307_v21 = vmul.f32 %v7814_v14, %v7716_v6 }
 0x21e   :  { %v3275_v52 = vsub.f32 %v3273_v24, %v3274_v39  ;;  %v3290_v55 = vmul.f32 %v7772_v59, %v7723_v12  ;;  %v3309_v36 = vmul.f32 %v7767_v42, %v7782_v18  ;;  %v3313_v47 = vmul.f32 %v7797_v2, %v7716_v6 }
 0x21f   :  { %v3282_v3 = vadd.f32 %v3281_v13, %v3280_v44  ;;  %v3297_v26 = vmul.f32 %v7814_v14, %v7788_v38  ;;  %v3308_v27 = vadd.f32 %v3307_v21, %v3306_v19  ;;  %v3314_v8 = vmul.f32 %v7814_v14, %v7708_v17 }
 0x220   :  { %v3289_v5 = vadd.f32 %v3288_v45, %v3287_v20  ;;  %v3316_v16 = vmul.f32 %v7767_v42, %v7788_v38  ;;  %v3320_v12 = vmul.f32 %v7767_v42, %v7790_v1  ;;  %v3321_v43 = vmul.f32 %v7772_v59, %v7799_v0 }
 0x221   :  { %v3296_v53 = vsub.f32 %v3294_v31, %v3295_v10  ;;  %v3303_v6 = vsub.f32 %v3301_v9, %v3302_v34  ;;  %v3304_v49 = vmul.f32 %v7814_v14, %v7782_v18  ;;  %v3315_v57 = vsub.f32 %v3313_v47, %v3314_v8 }
 0x222   :  { %v3310_v60 = vadd.f32 %v3309_v36, %v3308_v27  ;;  %v3311_v17 = vmul.f32 %v7772_v59, %v7788_v38  ;;  %v7880_v30 = vadd.f32 %v3321_v43, %v3320_v12  ;;  %v7884_v58 = vmul.f32 %v7797_v2, %v7807_v4  ;;  %v7947_v27 = vld [vmem:[%s9583_s2 + $0x24] sm:$0x1] }
 0x223   :  { %v3255_v35 = vadd.f32 %v3254_v32, %v3253_v23  ;;  %v7886_v51 = vadd.f32 %v3269_v54, %v3268_v15  ;;  %v3327_v37 = vmul.f32 %v7767_v42, %v7799_v0  ;;  %v3328_v50 = vmul.f32 %v7772_v59, %v7790_v1 }
 0x224   :  { %v7892_v28 = vsub.f32 %v3275_v52, %v3276_v11  ;;  %v7894_v63 = vsub.f32 %v3282_v3, %v3283_v62  ;;  %v3317_v38 = vadd.f32 %v3316_v16, %v3315_v57  ;;  %v3318_v39 = vmul.f32 %v7772_v59, %v7782_v18 }
 0x225   :  { %v7898_v41 = vadd.f32 %v3290_v55, %v3289_v5  ;;  %v7900_v48 = vadd.f32 %v3297_v26, %v3296_v53  ;;  %v7902_v32 = vsub.f32 %v3303_v6, %v3304_v49  ;;  %v3325_v54 = vmul.f32 %v7814_v14, %v7822_v33 }
 0x226   :  { %v7906_v23 = vsub.f32 %v3310_v60, %v3311_v17  ;;  %v3324_v15 = vsub.f32 %v7880_v30, %v7884_v58  ;;  %v3330_v24 = vmul.f32 %v7797_v2, %v7822_v33  ;;  %v3332_v18 = vmul.f32 %v7814_v14, %v7807_v4 }
 0x227   :  { %v3329_v11 = vsub.f32 %v3327_v37, %v3328_v50  ;;  %v3334_v13 = vmul.f32 %v7797_v2, %v7790_v1  ;;  %v3348_v44 = vmul.f32 %v7767_v42, %v7801_v22  ;;  %v3349_v62 = vmul.f32 %v7772_v59, %v7805_v56 }
 0x228   :  { %v7920_v46 = vadd.f32 %v3318_v39, %v3317_v38  ;;  %v3335_v61 = vmul.f32 %v7814_v14, %v7799_v0  ;;  %v3337_v20 = vmul.f32 %v7767_v42, %v7807_v4  ;;  %v3351_v45 = vmul.f32 %v7797_v2, %v7830_v40 }
 0x229   :  { %v3339_v31 = vmul.f32 %v7772_v59, %v7822_v33  ;;  %v3350_v10 = vadd.f32 %v3349_v62, %v3348_v44  ;;  %v3355_v9 = vmul.f32 %v7767_v42, %v7805_v56  ;;  %v3356_v34 = vmul.f32 %v7772_v59, %v7801_v22 }
 0x22a   :  { %v3341_v19 = vmul.f32 %v7797_v2, %v7799_v0  ;;  %v3353_v21 = vmul.f32 %v7814_v14, %v3255_v35  ;;  %v3358_v52 = vmul.f32 %v7797_v2, %v3255_v35  ;;  %v3360_v55 = vmul.f32 %v7814_v14, %v7830_v40  ;;  %v7952_v0 = vld [vmem:[%s9583_s2 + $0x25] sm:$0x1] }
 0x22b   :  { %v3352_v36 = vsub.f32 %v3350_v10, %v3351_v45  ;;  %v3357_v47 = vsub.f32 %v3355_v9, %v3356_v34  ;;  %v3362_v3 = vmul.f32 %v7797_v2, %v7801_v22  ;;  %v3363_v26 = vmul.f32 %v7814_v14, %v7805_v56 }
 0x22c   :  { %v3336_v8 = vadd.f32 %v3335_v61, %v3334_v13  ;;  %v3342_v5 = vmul.f32 %v7814_v14, %v7790_v1  ;;  %v3365_v16 = vmul.f32 %v7767_v42, %v7830_v40  ;;  %v3369_v12 = vmul.f32 %v7797_v2, %v7805_v56  ;;  %v7973_v56 = vld [vmem:[%s9583_s2 + $0x26] sm:$0x1] }
 0x22d   :  { %v3359_v43 = vsub.f32 %v3357_v47, %v3358_v52  ;;  %v3364_v53 = vadd.f32 %v3363_v26, %v3362_v3  ;;  %v3367_v6 = vmul.f32 %v7772_v59, %v3255_v35  ;;  %v3370_v49 = vmul.f32 %v7814_v14, %v7801_v22  ;;  %v7978_v22 = vld [vmem:[%s9583_s2 + $0x27] sm:$0x1] }
 0x22e   :  { %v3354_v57 = vadd.f32 %v3353_v21, %v3352_v36  ;;  %v3372_v60 = vmul.f32 %v7767_v42, %v3255_v35  ;;  %v3384_v17 = vmul.f32 %v7947_v27, %v7886_v51  ;;  %v3385_v1 = vmul.f32 %v7952_v0, %v7892_v28 }
 0x22f   :  { %v3361_v30 = vsub.f32 %v3359_v43, %v3360_v55  ;;  %v3366_v58 = vadd.f32 %v3365_v16, %v3364_v53  ;;  %v3371_v37 = vsub.f32 %v3369_v12, %v3370_v49  ;;  %v3374_v2 = vmul.f32 %v7772_v59, %v7830_v40 }
 0x230   :  { %v3331_v14 = vsub.f32 %v3329_v11, %v3330_v24  ;;  %v3344_v35 = vmul.f32 %v7767_v42, %v7822_v33  ;;  %v3391_v50 = vmul.f32 %v7947_v27, %v7892_v28  ;;  %v3392_v40 = vmul.f32 %v7952_v0, %v7886_v51 }
 0x231   :  { %v3338_v38 = vadd.f32 %v3337_v20, %v3336_v8  ;;  %v3343_v39 = vsub.f32 %v3341_v19, %v3342_v5  ;;  %v3368_v13 = vsub.f32 %v3366_v58, %v3367_v6  ;;  %v3373_v44 = vadd.f32 %v3372_v60, %v3371_v37 }
 0x232   :  { %v3386_v62 = vadd.f32 %v3385_v1, %v3384_v17  ;;  %v3387_v61 = vmul.f32 %v7973_v56, %v3354_v57  ;;  %v3398_v45 = vmul.f32 %v7973_v56, %v7886_v51  ;;  %v3399_v24 = vmul.f32 %v7978_v22, %v7892_v28 }
 0x233   :  { %v3375_v42 = vadd.f32 %v3374_v2, %v3373_v44  ;;  %v3393_v33 = vsub.f32 %v3391_v50, %v3392_v40  ;;  %v3394_v11 = vmul.f32 %v7973_v56, %v3361_v30  ;;  %v3405_v10 = vmul.f32 %v7973_v56, %v7892_v28 }
 0x234   :  { %v7994_v20 = vadd.f32 %v3325_v54, %v3324_v15  ;;  %v3400_v9 = vadd.f32 %v3399_v24, %v3398_v45  ;;  %v3401_v34 = vmul.f32 %v7947_v27, %v3354_v57  ;;  %v3406_v19 = vmul.f32 %v7978_v22, %v7886_v51 }
 0x235   :  { %v7999_v21 = vsub.f32 %v3331_v14, %v3332_v18  ;;  %v3346_v52 = vmul.f32 %v7772_v59, %v7807_v4  ;;  %v3412_v55 = vmul.f32 %v7947_v27, %v3368_v13  ;;  %v3413_v36 = vmul.f32 %v7952_v0, %v3375_v42 }
 0x236   :  { %v8005_v47 = vsub.f32 %v3338_v38, %v3339_v31  ;;  %v3345_v28 = vadd.f32 %v3344_v35, %v3343_v39  ;;  %v3388_v54 = vsub.f32 %v3386_v62, %v3387_v61  ;;  %v3389_v15 = vmul.f32 %v7978_v22, %v3361_v30 }
 0x237   :  { %v3395_v3 = vsub.f32 %v3393_v33, %v3394_v11  ;;  %v3396_v26 = vmul.f32 %v7978_v22, %v3354_v57  ;;  %v3407_v8 = vsub.f32 %v3405_v10, %v3406_v19  ;;  %v3408_v51 = vmul.f32 %v7947_v27, %v3361_v30 }
 0x238   :  { %v3402_v18 = vadd.f32 %v3401_v34, %v3400_v9  ;;  %v3403_v5 = vmul.f32 %v7952_v0, %v3361_v30  ;;  %v3414_v59 = vadd.f32 %v3413_v36, %v3412_v55  ;;  %v3415_v4 = vmul.f32 %v7973_v56, %v7894_v63 }
 0x239   :  { %v3419_v31 = vmul.f32 %v7947_v27, %v3375_v42  ;;  %v3420_v16 = vmul.f32 %v7952_v0, %v3368_v13  ;;  %v3426_v12 = vmul.f32 %v7973_v56, %v3368_v13  ;;  %v3427_v43 = vmul.f32 %v7978_v22, %v3375_v42 }
 0x23a   :  { %v3347_v53 = vadd.f32 %v3346_v52, %v3345_v28  ;;  %v8017_v6 = vadd.f32 %v3389_v15, %v3388_v54  ;;  %v3410_v49 = vmul.f32 %v7952_v0, %v3354_v57  ;;  %v3433_v60 = vmul.f32 %v7973_v56, %v3375_v42 }
 0x23b   :  { %v8021_v17 = vsub.f32 %v3395_v3, %v3396_v26  ;;  %v3409_v1 = vadd.f32 %v3408_v51, %v3407_v8  ;;  %v3417_v30 = vmul.f32 %v7978_v22, %v7898_v41  ;;  %v3434_v58 = vmul.f32 %v7978_v22, %v3368_v13 }
 0x23c   :  { %v8026_v37 = vsub.f32 %v3402_v18, %v3403_v5  ;;  %v3416_v2 = vsub.f32 %v3414_v59, %v3415_v4  ;;  %v3440_v14 = vmul.f32 %v7947_v27, %v7906_v23  ;;  %v3441_v35 = vmul.f32 %v7952_v0, %v7920_v46 }
 0x23d   :  { %v3421_v57 = vsub.f32 %v3419_v31, %v3420_v16  ;;  %v3422_v50 = vmul.f32 %v7973_v56, %v7898_v41  ;;  %v3428_v40 = vadd.f32 %v3427_v43, %v3426_v12  ;;  %v3429_v38 = vmul.f32 %v7947_v27, %v7894_v63 }
 0x23e   :  { %v3435_v39 = vsub.f32 %v3433_v60, %v3434_v58  ;;  %v3436_v13 = vmul.f32 %v7947_v27, %v7898_v41  ;;  %v3447_v44 = vmul.f32 %v7947_v27, %v7920_v46  ;;  %v3448_v62 = vmul.f32 %v7952_v0, %v7906_v23 }
 0x23f   :  { %v8042_v61 = vadd.f32 %v3410_v49, %v3409_v1  ;;  %v3424_v45 = vmul.f32 %v7978_v22, %v7894_v63  ;;  %v3442_v24 = vadd.f32 %v3441_v35, %v3440_v14  ;;  %v3443_v42 = vmul.f32 %v7973_v56, %v8005_v47 }
 0x240   :  { %v8048_v33 = vadd.f32 %v3417_v30, %v3416_v2  ;;  %v3431_v11 = vmul.f32 %v7952_v0, %v7898_v41  ;;  %v3454_v10 = vmul.f32 %v7973_v56, %v7906_v23  ;;  %v3455_v9 = vmul.f32 %v7978_v22, %v7920_v46 }
 0x241   :  { %v3423_v34 = vsub.f32 %v3421_v57, %v3422_v50  ;;  %v3430_v19 = vadd.f32 %v3429_v38, %v3428_v40  ;;  %v3438_v52 = vmul.f32 %v7952_v0, %v7894_v63  ;;  %v3461_v55 = vmul.f32 %v7973_v56, %v7920_v46  ;;  %v8102_v57 = vld [vmem:[%s9583_s2 + $0x29] sm:$0x1] }
 0x242   :  { %v3437_v36 = vadd.f32 %v3436_v13, %v3435_v39  ;;  %v3449_v28 = vsub.f32 %v3447_v44, %v3448_v62  ;;  %v3450_v54 = vmul.f32 %v7973_v56, %v3347_v53  ;;  %v3462_v41 = vmul.f32 %v7978_v22, %v7906_v23 }
 0x243   :  { %v3444_v15 = vsub.f32 %v3442_v24, %v3443_v42  ;;  %v3445_v3 = vmul.f32 %v7978_v22, %v3347_v53  ;;  %v3456_v26 = vadd.f32 %v3455_v9, %v3454_v10  ;;  %v3457_v8 = vmul.f32 %v7947_v27, %v8005_v47  ;;  %v8121_v42 = vld [vmem:[%s9583_s2 + $0x2a] sm:$0x1] }
 0x244   :  { %v3463_v51 = vsub.f32 %v3461_v55, %v3462_v41  ;;  %v3464_v63 = vmul.f32 %v7947_v27, %v3347_v53  ;;  %v3468_v46 = vmul.f32 %v7947_v27, %v7994_v20  ;;  %v3469_v18 = vmul.f32 %v7952_v0, %v7999_v21 }
 0x245   :  { %v8071_v5 = vsub.f32 %v3423_v34, %v3424_v45  ;;  %v8073_v59 = vsub.f32 %v3430_v19, %v3431_v11  ;;  %v3475_v23 = vmul.f32 %v7947_v27, %v7999_v21  ;;  %v3476_v4 = vmul.f32 %v7952_v0, %v7994_v20  ;;  %v8126_v11 = vld [vmem:[%s9583_s2 + $0x2b] sm:$0x1] }
 0x246   :  { %v8079_v31 = vadd.f32 %v3438_v52, %v3437_v36  ;;  %v3451_v16 = vsub.f32 %v3449_v28, %v3450_v54  ;;  %v3452_v12 = vmul.f32 %v7978_v22, %v8005_v47  ;;  %v3459_v43 = vmul.f32 %v7952_v0, %v3347_v53  ;;  %v8097_v53 = vld [vmem:[%s9583_s2 + $0x28] sm:$0x1] }
 0x247   :  { %v8084_v49 = vadd.f32 %v3445_v3, %v3444_v15  ;;  %v3458_v60 = vadd.f32 %v3457_v8, %v3456_v26  ;;  %v3482_v1 = vmul.f32 %v7973_v56, %v7994_v20  ;;  %v3483_v30 = vmul.f32 %v7978_v22, %v7999_v21 }
 0x248   :  { %v3465_v58 = vadd.f32 %v3464_v63, %v3463_v51  ;;  %v3466_v2 = vmul.f32 %v7952_v0, %v8005_v47  ;;  %v3470_v14 = vadd.f32 %v3469_v18, %v3468_v46  ;;  %v3471_v35 = vmul.f32 %v7973_v56, %v7900_v48 }
 0x249   :  { %v3477_v50 = vsub.f32 %v3475_v23, %v3476_v4  ;;  %v3478_v40 = vmul.f32 %v7973_v56, %v7902_v32  ;;  %v3484_v38 = vadd.f32 %v3483_v30, %v3482_v1  ;;  %v3485_v47 = vmul.f32 %v7947_v27, %v7900_v48 }
 0x24a   :  { %v3453_v39 = vsub.f32 %v3451_v16, %v3452_v12  ;;  %v3473_v13 = vmul.f32 %v7978_v22, %v7902_v32  ;;  %v3489_v44 = vmul.f32 %v7973_v56, %v7999_v21  ;;  %v3490_v62 = vmul.f32 %v7978_v22, %v7994_v20 }
 0x24b   :  { %v8114_v45 = vsub.f32 %v3458_v60, %v3459_v43  ;;  %v3480_v24 = vmul.f32 %v7978_v22, %v7900_v48  ;;  %v3504_v56 = vmul.f32 %v8097_v53, %v8017_v6  ;;  %v3505_v20 = vmul.f32 %v8102_v57, %v8021_v17 }
 0x24c   :  { %v8132_v21 = vadd.f32 %v3466_v2, %v3465_v58  ;;  %v3472_v10 = vsub.f32 %v3470_v14, %v3471_v35  ;;  %v3511_v22 = vmul.f32 %v8097_v53, %v8021_v17  ;;  %v3512_v9 = vmul.f32 %v8102_v57, %v8017_v6 }
 0x24d   :  { %v3479_v34 = vsub.f32 %v3477_v50, %v3478_v40  ;;  %v3486_v19 = vadd.f32 %v3485_v47, %v3484_v38  ;;  %v3487_v52 = vmul.f32 %v7952_v0, %v7902_v32  ;;  %v3492_v55 = vmul.f32 %v7947_v27, %v7902_v32 }
 0x24e   :  { %v3491_v36 = vsub.f32 %v3489_v44, %v3490_v62  ;;  %v3507_v28 = vmul.f32 %v8121_v42, %v8084_v49  ;;  %v3518_v54 = vmul.f32 %v8121_v42, %v8017_v6  ;;  %v3519_v41 = vmul.f32 %v8126_v11, %v8021_v17 }
 0x24f   :  { %v3506_v15 = vadd.f32 %v3505_v20, %v3504_v56  ;;  %v3513_v3 = vsub.f32 %v3511_v22, %v3512_v9  ;;  %v3514_v26 = vmul.f32 %v8121_v42, %v3453_v39  ;;  %v3525_v8 = vmul.f32 %v8121_v42, %v8021_v17 }
 0x250   :  { %v3474_v51 = vadd.f32 %v3473_v13, %v3472_v10  ;;  %v3520_v63 = vadd.f32 %v3519_v41, %v3518_v54  ;;  %v3521_v32 = vmul.f32 %v8097_v53, %v8084_v49  ;;  %v3526_v27 = vmul.f32 %v8126_v11, %v8017_v6 }
 0x251   :  { %v3481_v46 = vsub.f32 %v3479_v34, %v3480_v24  ;;  %v3494_v18 = vmul.f32 %v7952_v0, %v7900_v48  ;;  %v3532_v23 = vmul.f32 %v8097_v53, %v8048_v33  ;;  %v3533_v4 = vmul.f32 %v8102_v57, %v8071_v5 }
 0x252   :  { %v3493_v16 = vadd.f32 %v3492_v55, %v3491_v36  ;;  %v3509_v17 = vmul.f32 %v8126_v11, %v3453_v39  ;;  %v3527_v12 = vsub.f32 %v3525_v8, %v3526_v27  ;;  %v3528_v43 = vmul.f32 %v8097_v53, %v3453_v39 }
 0x253   :  { %v8163_v60 = vsub.f32 %v3486_v19, %v3487_v52  ;;  %v3508_v1 = vsub.f32 %v3506_v15, %v3507_v28  ;;  %v3515_v6 = vsub.f32 %v3513_v3, %v3514_v26  ;;  %v3516_v30 = vmul.f32 %v8126_v11, %v8084_v49 }
 0x254   :  { %v3522_v48 = vadd.f32 %v3521_v32, %v3520_v63  ;;  %v3523_v0 = vmul.f32 %v8102_v57, %v3453_v39  ;;  %v3534_v58 = vadd.f32 %v3533_v4, %v3532_v23  ;;  %v3535_v2 = vmul.f32 %v8121_v42, %v3474_v51 }
 0x255   :  { %v3539_v14 = vmul.f32 %v8097_v53, %v8071_v5  ;;  %v3540_v35 = vmul.f32 %v8102_v57, %v8048_v33  ;;  %v3546_v50 = vmul.f32 %v8121_v42, %v8048_v33  ;;  %v3547_v40 = vmul.f32 %v8126_v11, %v8071_v5 }
 0x256   :  { %v8177_v38 = vadd.f32 %v3494_v18, %v3493_v16  ;;  %v3529_v47 = vadd.f32 %v3528_v43, %v3527_v12  ;;  %v3530_v39 = vmul.f32 %v8102_v57, %v8084_v49  ;;  %v3553_v13 = vmul.f32 %v8121_v42, %v8071_v5 }
 0x257   :  { %v8183_v44 = vadd.f32 %v3509_v17, %v3508_v1  ;;  %v8185_v62 = vsub.f32 %v3515_v6, %v3516_v30  ;;  %v3537_v24 = vmul.f32 %v8126_v11, %v3481_v46  ;;  %v3554_v56 = vmul.f32 %v8126_v11, %v8048_v33 }
 0x258   :  { %v8190_v20 = vsub.f32 %v3522_v48, %v3523_v0  ;;  %v3536_v10 = vsub.f32 %v3534_v58, %v3535_v2  ;;  %v3560_v22 = vmul.f32 %v8097_v53, %v8026_v37  ;;  %v3561_v49 = vmul.f32 %v8102_v57, %v8042_v61 }
 0x259   :  { %v3541_v9 = vsub.f32 %v3539_v14, %v3540_v35  ;;  %v3542_v5 = vmul.f32 %v8121_v42, %v3481_v46  ;;  %v3548_v34 = vadd.f32 %v3547_v40, %v3546_v50  ;;  %v3549_v19 = vmul.f32 %v8097_v53, %v3474_v51 }
 0x25a   :  { %v8198_v52 = vadd.f32 %v3530_v39, %v3529_v47  ;;  %v3544_v55 = vmul.f32 %v8126_v11, %v3474_v51  ;;  %v3555_v33 = vsub.f32 %v3553_v13, %v3554_v56  ;;  %v3556_v36 = vmul.f32 %v8097_v53, %v3481_v46 }
 0x25b   :  { %v3562_v28 = vadd.f32 %v3561_v49, %v3560_v22  ;;  %v3563_v54 = vmul.f32 %v8121_v42, %v8114_v45  ;;  %v3567_v41 = vmul.f32 %v8097_v53, %v8042_v61  ;;  %v3568_v15 = vmul.f32 %v8102_v57, %v8026_v37 }
 0x25c   :  { %v8208_v3 = vadd.f32 %v3537_v24, %v3536_v10  ;;  %v3551_v26 = vmul.f32 %v8102_v57, %v3481_v46  ;;  %v3574_v8 = vmul.f32 %v8121_v42, %v8026_v37  ;;  %v3575_v63 = vmul.f32 %v8126_v11, %v8042_v61 }
 0x25d   :  { %v3543_v32 = vsub.f32 %v3541_v9, %v3542_v5  ;;  %v3550_v27 = vadd.f32 %v3549_v19, %v3548_v34  ;;  %v3558_v18 = vmul.f32 %v8102_v57, %v3474_v51  ;;  %v3581_v23 = vmul.f32 %v8121_v42, %v8042_v61  ;;  %v8259_v9 = vld [vmem:[%s9583_s2 + $0x2c] sm:$0x1]  ;;  %v8264_v5 = vld [vmem:[%s9583_s2 + $0x2d] sm:$0x1] }
 0x25e   :  { %v3557_v4 = vadd.f32 %v3556_v36, %v3555_v33  ;;  %v3565_v16 = vmul.f32 %v8126_v11, %v8132_v21  ;;  %v3570_v46 = vmul.f32 %v8121_v42, %v8132_v21  ;;  %v3582_v17 = vmul.f32 %v8126_v11, %v8026_v37 }
 0x25f   :  { %v3564_v12 = vsub.f32 %v3562_v28, %v3563_v54  ;;  %v3569_v43 = vsub.f32 %v3567_v41, %v3568_v15  ;;  %v3588_v1 = vmul.f32 %v8097_v53, %v8073_v59  ;;  %v3589_v51 = vmul.f32 %v8102_v57, %v8079_v31 }
 0x260   :  { %v3576_v6 = vadd.f32 %v3575_v63, %v3574_v8  ;;  %v3577_v61 = vmul.f32 %v8097_v53, %v8114_v45  ;;  %v3583_v30 = vsub.f32 %v3581_v23, %v3582_v17  ;;  %v3584_v48 = vmul.f32 %v8097_v53, %v8132_v21 }
 0x261   :  { %v3590_v0 = vadd.f32 %v3589_v51, %v3588_v1  ;;  %v3591_v37 = vmul.f32 %v8121_v42, %v8163_v60  ;;  %v3595_v58 = vmul.f32 %v8097_v53, %v8079_v31  ;;  %v3596_v2 = vmul.f32 %v8102_v57, %v8073_v59 }
 0x262   :  { %v8238_v14 = vsub.f32 %v3543_v32, %v3544_v55  ;;  %v8240_v35 = vsub.f32 %v3550_v27, %v3551_v26  ;;  %v8242_v50 = vadd.f32 %v3558_v18, %v3557_v4  ;;  %v3572_v40 = vmul.f32 %v8126_v11, %v8114_v45  ;;  %v8286_v26 = vld [vmem:[%s9583_s2 + $0x2f] sm:$0x1] }
 0x263   :  { %v3597_v47 = vsub.f32 %v3595_v58, %v3596_v2  ;;  %v3598_v39 = vmul.f32 %v8121_v42, %v8177_v38  ;;  %v3602_v13 = vmul.f32 %v8121_v42, %v8073_v59  ;;  %v3603_v24 = vmul.f32 %v8126_v11, %v8079_v31 }
 0x264   :  { %v8252_v56 = vadd.f32 %v3565_v16, %v3564_v12  ;;  %v3571_v10 = vsub.f32 %v3569_v43, %v3570_v46  ;;  %v3578_v22 = vadd.f32 %v3577_v61, %v3576_v6  ;;  %v3579_v49 = vmul.f32 %v8102_v57, %v8132_v21 }
 0x265   :  { %v3585_v34 = vadd.f32 %v3584_v48, %v3583_v30  ;;  %v3586_v19 = vmul.f32 %v8102_v57, %v8114_v45  ;;  %v3592_v55 = vsub.f32 %v3590_v0, %v3591_v37  ;;  %v3593_v33 = vmul.f32 %v8126_v11, %v8177_v38  ;;  %v8281_v45 = vld [vmem:[%s9583_s2 + $0x2e] sm:$0x1] }
 0x266   :  { %v3604_v36 = vadd.f32 %v3603_v24, %v3602_v13  ;;  %v3605_v21 = vmul.f32 %v8097_v53, %v8163_v60  ;;  %v3609_v28 = vmul.f32 %v8121_v42, %v8079_v31  ;;  %v3610_v54 = vmul.f32 %v8126_v11, %v8073_v59 }
 0x267   :  { %v3599_v41 = vsub.f32 %v3597_v47, %v3598_v39  ;;  %v3600_v15 = vmul.f32 %v8126_v11, %v8163_v60  ;;  %v3624_v31 = vmul.f32 %v8259_v9, %v8183_v44  ;;  %v3625_v59 = vmul.f32 %v8264_v5, %v8185_v62 }
 0x268   :  { %v8292_v42 = vsub.f32 %v3571_v10, %v3572_v40  ;;  %v8294_v8 = vsub.f32 %v3578_v22, %v3579_v49  ;;  %v3631_v11 = vmul.f32 %v8259_v9, %v8185_v62  ;;  %v3632_v63 = vmul.f32 %v8264_v5, %v8183_v44 }
 0x269   :  { %v8300_v32 = vadd.f32 %v3586_v19, %v3585_v34  ;;  %v8302_v27 = vadd.f32 %v3593_v33, %v3592_v55  ;;  %v3607_v18 = vmul.f32 %v8102_v57, %v8177_v38  ;;  %v3612_v23 = vmul.f32 %v8097_v53, %v8177_v38 }
 0x26a   :  { %v3606_v4 = vadd.f32 %v3605_v21, %v3604_v36  ;;  %v3611_v16 = vsub.f32 %v3609_v28, %v3610_v54  ;;  %v3638_v46 = vmul.f32 %v8281_v45, %v8183_v44  ;;  %v3639_v17 = vmul.f32 %v8286_v26, %v8185_v62 }
 0x26b   :  { %v8312_v12 = vsub.f32 %v3599_v41, %v3600_v15  ;;  %v3614_v43 = vmul.f32 %v8102_v57, %v8163_v60  ;;  %v3626_v1 = vadd.f32 %v3625_v59, %v3624_v31  ;;  %v3627_v51 = vmul.f32 %v8281_v45, %v8208_v3 }
 0x26c   :  { %v3633_v6 = vsub.f32 %v3631_v11, %v3632_v63  ;;  %v3634_v53 = vmul.f32 %v8281_v45, %v8238_v14  ;;  %v3641_v38 = vmul.f32 %v8259_v9, %v8208_v3  ;;  %v3645_v61 = vmul.f32 %v8281_v45, %v8185_v62 }
 0x26d   :  { %v3640_v30 = vadd.f32 %v3639_v17, %v3638_v46  ;;  %v3646_v48 = vmul.f32 %v8286_v26, %v8183_v44  ;;  %v3652_v57 = vmul.f32 %v8259_v9, %v8190_v20  ;;  %v3653_v60 = vmul.f32 %v8264_v5, %v8198_v52 }
 0x26e   :  { %v8330_v0 = vsub.f32 %v3606_v4, %v3607_v18  ;;  %v3613_v37 = vadd.f32 %v3612_v23, %v3611_v16  ;;  %v3629_v58 = vmul.f32 %v8286_v26, %v8238_v14  ;;  %v3655_v2 = vmul.f32 %v8281_v45, %v8240_v35 }
 0x26f   :  { %v3636_v62 = vmul.f32 %v8286_v26, %v8208_v3  ;;  %v3654_v40 = vadd.f32 %v3653_v60, %v3652_v57  ;;  %v3659_v44 = vmul.f32 %v8259_v9, %v8198_v52  ;;  %v3660_v47 = vmul.f32 %v8264_v5, %v8190_v20 }
 0x270   :  { %v3628_v39 = vsub.f32 %v3626_v1, %v3627_v51  ;;  %v3635_v13 = vsub.f32 %v3633_v6, %v3634_v53  ;;  %v3643_v24 = vmul.f32 %v8264_v5, %v8238_v14  ;;  %v3648_v10 = vmul.f32 %v8259_v9, %v8238_v14 }
 0x271   :  { %v3642_v22 = vadd.f32 %v3641_v38, %v3640_v30  ;;  %v3647_v49 = vsub.f32 %v3645_v61, %v3646_v48  ;;  %v3666_v34 = vmul.f32 %v8281_v45, %v8190_v20  ;;  %v3667_v19 = vmul.f32 %v8286_v26, %v8198_v52 }
 0x272   :  { %v3656_v55 = vsub.f32 %v3654_v40, %v3655_v2  ;;  %v3657_v33 = vmul.f32 %v8286_v26, %v8242_v50  ;;  %v3662_v36 = vmul.f32 %v8281_v45, %v8242_v50  ;;  %v3673_v21 = vmul.f32 %v8281_v45, %v8198_v52 }
 0x273   :  { %v3661_v28 = vsub.f32 %v3659_v44, %v3660_v47  ;;  %v3668_v14 = vadd.f32 %v3667_v19, %v3666_v34  ;;  %v3669_v54 = vmul.f32 %v8259_v9, %v8240_v35  ;;  %v3674_v41 = vmul.f32 %v8286_v26, %v8190_v20 }
 0x274   :  { %v3615_v15 = vadd.f32 %v3614_v43, %v3613_v37  ;;  %v8360_v31 = vadd.f32 %v3629_v58, %v3628_v39  ;;  %v3680_v59 = vmul.f32 %v8259_v9, %v8252_v56  ;;  %v3681_v11 = vmul.f32 %v8264_v5, %v8292_v42 }
 0x275   :  { %v8366_v63 = vsub.f32 %v3635_v13, %v3636_v62  ;;  %v8368_v52 = vsub.f32 %v3642_v22, %v3643_v24  ;;  %v8370_v18 = vadd.f32 %v3648_v10, %v3647_v49  ;;  %v8374_v23 = vmul.f32 %v8264_v5, %v8208_v3 }
 0x276   :  { %v3664_v20 = vmul.f32 %v8286_v26, %v8240_v35  ;;  %v3671_v4 = vmul.f32 %v8264_v5, %v8242_v50  ;;  %v3675_v16 = vsub.f32 %v3673_v21, %v3674_v41  ;;  %v3676_v46 = vmul.f32 %v8259_v9, %v8242_v50 }
 0x277   :  { %v8382_v17 = vadd.f32 %v3657_v33, %v3656_v55  ;;  %v3663_v43 = vsub.f32 %v3661_v28, %v3662_v36  ;;  %v3670_v1 = vadd.f32 %v3669_v54, %v3668_v14  ;;  %v3678_v51 = vmul.f32 %v8264_v5, %v8240_v35 }
 0x278   :  { %v8386_v6 = vadd.f32 %v3681_v11, %v3680_v59  ;;  %v8390_v3 = vmul.f32 %v8281_v45, %v8302_v27  ;;  %v3694_v53 = vmul.f32 %v8281_v45, %v8252_v56  ;;  %v3695_v38 = vmul.f32 %v8286_v26, %v8292_v42 }
 0x279   :  { %v3685_v50 = vmul.f32 %v8286_v26, %v8312_v12  ;;  %v3687_v61 = vmul.f32 %v8259_v9, %v8292_v42  ;;  %v3688_v35 = vmul.f32 %v8264_v5, %v8252_v56  ;;  %v3701_v30 = vmul.f32 %v8281_v45, %v8292_v42 }
 0x27a   :  { %v3677_v48 = vadd.f32 %v3676_v46, %v3675_v16  ;;  %v3696_v57 = vadd.f32 %v3695_v38, %v3694_v53  ;;  %v3697_v60 = vmul.f32 %v8259_v9, %v8302_v27  ;;  %v3702_v37 = vmul.f32 %v8286_v26, %v8252_v56 }
 0x27b   :  { %v3690_v58 = vmul.f32 %v8281_v45, %v8312_v12  ;;  %v3704_v2 = vmul.f32 %v8259_v9, %v8312_v12  ;;  %v3708_v62 = vmul.f32 %v8259_v9, %v8294_v8  ;;  %v3709_v42 = vmul.f32 %v8264_v5, %v8300_v32 }
 0x27c   :  { %v3692_v40 = vmul.f32 %v8286_v26, %v8302_v27  ;;  %v3703_v44 = vsub.f32 %v3701_v30, %v3702_v37  ;;  %v3706_v47 = vmul.f32 %v8264_v5, %v8302_v27  ;;  %v3711_v56 = vmul.f32 %v8281_v45, %v8330_v0 }
 0x27d   :  { %v3699_v39 = vmul.f32 %v8264_v5, %v8312_v12  ;;  %v3710_v13 = vadd.f32 %v3709_v42, %v3708_v62  ;;  %v3715_v24 = vmul.f32 %v8259_v9, %v8300_v32  ;;  %v3716_v10 = vmul.f32 %v8264_v5, %v8294_v8 }
 0x27e   :  { %v3698_v22 = vadd.f32 %v3697_v60, %v3696_v57  ;;  %v3705_v49 = vadd.f32 %v3704_v2, %v3703_v44  ;;  %v3713_v34 = vmul.f32 %v8286_v26, %v3615_v15  ;;  %v3718_v19 = vmul.f32 %v8281_v45, %v3615_v15 }
 0x27f   :  { %v3712_v27 = vsub.f32 %v3710_v13, %v3711_v56  ;;  %v3717_v55 = vsub.f32 %v3715_v24, %v3716_v10  ;;  %v3722_v33 = vmul.f32 %v8281_v45, %v8294_v8  ;;  %v3723_v12 = vmul.f32 %v8286_v26, %v8300_v32 }
 0x280   :  { %v3689_v36 = vsub.f32 %v3687_v61, %v3688_v35  ;;  %v3707_v21 = vadd.f32 %v3706_v47, %v3705_v49  ;;  %v3725_v28 = vmul.f32 %v8259_v9, %v8330_v0  ;;  %v3729_v14 = vmul.f32 %v8281_v45, %v8300_v32 }
 0x281   :  { %v3679_v54 = vadd.f32 %v3678_v51, %v3677_v48  ;;  %v3724_v41 = vadd.f32 %v3723_v12, %v3722_v33  ;;  %v3727_v59 = vmul.f32 %v8264_v5, %v3615_v15  ;;  %v3730_v11 = vmul.f32 %v8286_v26, %v8294_v8 }
 0x282   :  { %v3700_v16 = vsub.f32 %v3698_v22, %v3699_v39  ;;  %v3714_v46 = vadd.f32 %v3713_v34, %v3712_v27  ;;  %v3720_v53 = vmul.f32 %v8286_v26, %v8330_v0  ;;  %v3732_v38 = vmul.f32 %v8259_v9, %v3615_v15 }
 0x283   :  { %v3719_v61 = vsub.f32 %v3717_v55, %v3718_v19  ;;  %v3726_v35 = vadd.f32 %v3725_v28, %v3724_v41  ;;  %v3731_v30 = vsub.f32 %v3729_v14, %v3730_v11  ;;  %v3734_v45 = vmul.f32 %v8264_v5, %v8330_v0 }
 0x284   :  { %v3684_v32 = vsub.f32 %v8386_v6, %v8390_v3  ;;  %v3691_v51 = vsub.f32 %v3689_v36, %v3690_v58  ;;  %v3736_v8 = vmul.f32 %v8360_v31, %v6943_v7  ;;  %v3737_v48 = vmul.f32 %v3707_v21, %v6947_v25 }
 0x285   :  { %v3665_v57 = vsub.f32 %v3663_v43, %v3664_v20  ;;  %v3672_v60 = vsub.f32 %v3670_v1, %v3671_v4  ;;  %v3728_v26 = vsub.f32 %v3726_v35, %v3727_v59  ;;  %v3733_v37 = vadd.f32 %v3732_v38, %v3731_v30 }
 0x286   :  { %v3739_v9 = vmul.f32 %v8366_v63, %v6943_v7  ;;  %v3740_v15 = vmul.f32 %v3700_v16, %v6947_v25  ;;  %v3742_v5 = vmul.f32 %v3700_v16, %v6943_v7  ;;  %v3743_v0 = vmul.f32 %v8366_v63, %v6947_v25 }
 0x287   :  { %v3721_v6 = vsub.f32 %v3719_v61, %v3720_v53  ;;  %v3735_v3 = vadd.f32 %v3734_v45, %v3733_v37  ;;  %v3748_v58 = vmul.f32 %v3714_v46, %v6943_v7  ;;  %v3749_v2 = vmul.f32 %v3679_v54, %v6947_v25 }
 0x288   :  { %v3651_v20 = vadd.f32 %v8374_v23, %v8370_v18  ;;  %v3686_v4 = vadd.f32 %v3685_v50, %v3684_v32  ;;  %v3693_v43 = vsub.f32 %v3691_v51, %v3692_v40  ;;  %v3738_v1 = vadd.f32 %v3737_v48, %v3736_v8 }
 0x289   :  { %v8462_v62 = vmul.f32 %v3707_v21, %v6943_v7  ;;  %v8466_v42 = vmul.f32 %v8360_v31, %v6947_v25  ;;  %v3760_v63 = vmul.f32 %v3728_v26, %v6943_v7  ;;  %v3761_v44 = vmul.f32 %v3665_v57, %v6947_v25 }
 0x28a   :  { %v3741_v47 = vsub.f32 %v3739_v9, %v3740_v15  ;;  %v8470_v56 = vadd.f32 %v3743_v0, %v3742_v5  ;;  %v3763_v39 = vmul.f32 %v3735_v3, %v6943_v7  ;;  %v3764_v18 = vmul.f32 %v8382_v17, %v6947_v25 }
 0x28b   :  { %v3750_v23 = vadd.f32 %v3749_v2, %v3748_v58  ;;  %v3751_v50 = vmul.f32 %v3721_v6, %v6943_v7  ;;  %v3752_v40 = vmul.f32 %v3672_v60, %v6947_v25  ;;  %v3754_v31 = vmul.f32 %v3672_v60, %v6943_v7 }
 0x28c   :  { %v3755_v13 = vmul.f32 %v3721_v6, %v6947_v25  ;;  %v3765_v24 = vsub.f32 %v3763_v39, %v3764_v18  ;;  %v3772_v10 = vmul.f32 %v8368_v52, %v6943_v7  ;;  %v3773_v22 = vmul.f32 %v3693_v43, %v6947_v25 }
 0x28d   :  { %v3757_v49 = vmul.f32 %v3679_v54, %v6943_v7  ;;  %v3762_v34 = vadd.f32 %v3761_v44, %v3760_v63  ;;  %v3775_v19 = vmul.f32 %v3651_v20, %v6943_v7  ;;  %v3776_v27 = vmul.f32 %v3686_v4, %v6947_v25 }
 0x28e   :  { %v3758_v55 = vmul.f32 %v3714_v46, %v6947_v25  ;;  %v3766_v33 = vmul.f32 %v8382_v17, %v6943_v7  ;;  %v3767_v12 = vmul.f32 %v3735_v3, %v6947_v25  ;;  %v3769_v36 = vmul.f32 %v3665_v57, %v6943_v7 }
 0x28f   :  { %v3770_v21 = vmul.f32 %v3728_v26, %v6947_v25  ;;  %v3777_v28 = vsub.f32 %v3775_v19, %v3776_v27  ;;  %v3781_v14 = vmul.f32 %v3693_v43, %v6943_v7  ;;  %v3782_v54 = vmul.f32 %v8368_v52, %v6947_v25 }
 0x290   :  { %v3753_v41 = vsub.f32 %v3751_v50, %v3752_v40  ;;  %v3774_v59 = vadd.f32 %v3773_v22, %v3772_v10  ;;  %v3785_v11 = vrot.slane %v3738_v1, 7  ;;  %v3789_v16 = vrot.slane %v3765_v24, 7 }
 0x291   :  { %v3747_v46 = vsub.f32 %v8462_v62, %v8466_v42  ;;  %v3756_v17 = vadd.f32 %v3755_v13, %v3754_v31  ;;  %v3794_v53 = vrot.slane %v3741_v47, 7  ;;  %v3798_v38 = vrot.slane %v3762_v34, 7 }
 0x292   :  { %v3759_v61 = vsub.f32 %v3757_v49, %v3758_v55  ;;  %v3768_v35 = vadd.f32 %v3767_v12, %v3766_v33  ;;  %v3778_v30 = vmul.f32 %v3686_v4, %v6943_v7  ;;  %v3809_v45 = vrot.slane %v3750_v23, 7 }
 0x293   :  { %v3771_v32 = vsub.f32 %v3769_v36, %v3770_v21  ;;  %v3779_v51 = vmul.f32 %v3651_v20, %v6947_v25  ;;  %v3783_v8 = vsub.f32 %v3781_v14, %v3782_v54  ;;  %v3813_v52 = vrot.slane %v3777_v28, 7 }
 0x294   :  { %v3787_v48 = vmul.f32 %v3785_v11, %v6943_v7  ;;  %v3791_v57 = vmul.f32 %v3789_v16, %v6947_v25  ;;  %v3818_v60 = vrot.slane %v3753_v41, 7  ;;  %v3822_v26 = vrot.slane %v3774_v59, 7 }
 0x295   :  { %v3796_v37 = vmul.f32 %v3794_v53, %v6943_v7  ;;  %v3800_v9 = vmul.f32 %v3798_v38, %v6947_v25  ;;  %v3802_v15 = vmul.f32 %v3798_v38, %v6943_v7  ;;  %v3803_v5 = vmul.f32 %v3794_v53, %v6947_v25 }
 0x296   :  { %v3805_v0 = vmul.f32 %v3789_v16, %v6943_v7  ;;  %v3806_v6 = vmul.f32 %v3785_v11, %v6947_v25  ;;  %v3811_v3 = vmul.f32 %v3809_v45, %v6943_v7  ;;  %v3815_v58 = vmul.f32 %v3813_v52, %v6947_v25 }
 0x297   :  { %v3820_v2 = vmul.f32 %v3818_v60, %v6943_v7  ;;  %v3824_v20 = vmul.f32 %v3822_v26, %v6947_v25  ;;  %v3829_v4 = vmul.f32 %v3813_v52, %v6943_v7  ;;  %v3830_v43 = vmul.f32 %v3809_v45, %v6947_v25 }
 0x298   :  { %v3780_v1 = vadd.f32 %v3779_v51, %v3778_v30  ;;  %v3792_v62 = vadd.f32 %v3791_v57, %v3787_v48  ;;  %v3833_v42 = vrot.slane %v8470_v56, 7  ;;  %v3837_v63 = vrot.slane %v3771_v32, 7 }
 0x299   :  { %v3801_v44 = vsub.f32 %v3796_v37, %v3800_v9  ;;  %v3804_v47 = vadd.f32 %v3803_v5, %v3802_v15  ;;  %v3842_v39 = vrot.slane %v3747_v46, 7  ;;  %v3846_v18 = vrot.slane %v3768_v35, 7 }
 0x29a   :  { %v3807_v23 = vsub.f32 %v3805_v0, %v3806_v6  ;;  %v3816_v50 = vadd.f32 %v3815_v58, %v3811_v3  ;;  %v3826_v40 = vmul.f32 %v3822_v26, %v6943_v7  ;;  %v3827_v31 = vmul.f32 %v3818_v60, %v6947_v25 }
 0x29b   :  { %v3825_v13 = vsub.f32 %v3820_v2, %v3824_v20  ;;  %v3831_v24 = vsub.f32 %v3829_v4, %v3830_v43  ;;  %v3857_v10 = vrot.slane %v3756_v17, 7  ;;  %v3861_v22 = vrot.slane %v3783_v8, 7 }
 0x29c   :  { %v3835_v49 = vmul.f32 %v3833_v42, %v6943_v7  ;;  %v3839_v34 = vmul.f32 %v3837_v63, %v6947_v25  ;;  %v3866_v56 = vrot.slane %v3759_v61, 7  ;;  %v3870_v19 = vrot.slane %v3780_v1, 7 }
 0x29d   :  { %v3844_v27 = vmul.f32 %v3842_v39, %v6943_v7  ;;  %v3848_v55 = vmul.f32 %v3846_v18, %v6947_v25  ;;  %v8520_v33 = vmul.f32 %v3837_v63, %v6943_v7  ;;  %v8523_v12 = vmul.f32 %v3833_v42, %v6947_v25 }
 0x29e   :  { %v3850_v36 = vmul.f32 %v3846_v18, %v6943_v7  ;;  %v3851_v21 = vmul.f32 %v3842_v39, %v6947_v25  ;;  %v3859_v28 = vmul.f32 %v3857_v10, %v6943_v7  ;;  %v3863_v14 = vmul.f32 %v3861_v22, %v6947_v25 }
 0x29f   :  { %v3868_v54 = vmul.f32 %v3866_v56, %v6943_v7  ;;  %v3872_v41 = vmul.f32 %v3870_v19, %v6947_v25  ;;  %v3877_v59 = vmul.f32 %v3861_v22, %v6943_v7  ;;  %v3878_v11 = vmul.f32 %v3857_v10, %v6947_v25 }
 0x2a0   :  { %v3828_v16 = vadd.f32 %v3827_v31, %v3826_v40  ;;  %v3840_v46 = vadd.f32 %v3839_v34, %v3835_v49  ;;  %v3881_v17 = vrot.slane %v3792_v62, 7  ;;  %v3885_v53 = vrot.slane %v3825_v13, 7 }
 0x2a1   :  { %v3849_v38 = vsub.f32 %v3844_v27, %v3848_v55  ;;  %v3855_v61 = vsub.f32 %v8520_v33, %v8523_v12  ;;  %v3890_v35 = vrot.slane %v3801_v44, 7  ;;  %v3894_v30 = vrot.slane %v3816_v50, 7 }
 0x2a2   :  { %v8535_v45 = vadd.f32 %v3851_v21, %v3850_v36  ;;  %v3864_v32 = vadd.f32 %v3863_v14, %v3859_v28  ;;  %v3874_v51 = vmul.f32 %v3870_v19, %v6943_v7  ;;  %v3875_v8 = vmul.f32 %v3866_v56, %v6947_v25 }
 0x2a3   :  { %v3873_v52 = vsub.f32 %v3868_v54, %v3872_v41  ;;  %v3879_v48 = vsub.f32 %v3877_v59, %v3878_v11  ;;  %v3905_v57 = vrot.slane %v3804_v47, 7  ;;  %v3909_v60 = vrot.slane %v3831_v24, 7 }
 0x2a4   :  { %v3883_v26 = vmul.f32 %v3881_v17, %v6943_v7  ;;  %v3887_v37 = vmul.f32 %v3885_v53, %v6947_v25  ;;  %v3914_v9 = vrot.slane %v3807_v23, 7  ;;  %v3918_v15 = vrot.slane %v3828_v16, 7 }
 0x2a5   :  { %v3892_v5 = vmul.f32 %v3890_v35, %v6943_v7  ;;  %v3896_v0 = vmul.f32 %v3894_v30, %v6947_v25  ;;  %v3901_v6 = vmul.f32 %v3885_v53, %v6943_v7  ;;  %v3902_v3 = vmul.f32 %v3881_v17, %v6947_v25 }
 0x2a6   :  { %v3898_v58 = vmul.f32 %v3894_v30, %v6943_v7  ;;  %v3899_v2 = vmul.f32 %v3890_v35, %v6947_v25  ;;  %v3907_v20 = vmul.f32 %v3905_v57, %v6943_v7  ;;  %v3911_v4 = vmul.f32 %v3909_v60, %v6947_v25 }
 0x2a7   :  { %v8550_v43 = vmul.f32 %v3909_v60, %v6943_v7  ;;  %v8553_v1 = vmul.f32 %v3905_v57, %v6947_v25  ;;  %v3929_v62 = vrot.slane %v3840_v46, 7  ;;  %v3933_v42 = vrot.slane %v3873_v52, 7  ;;  %v8599_v52 = vld [vmem:[%s9583_s2 + $0x31] sm:$0x1] }
 0x2a8   :  { %v8556_v63 = vmul.f32 %v3914_v9, %v6943_v7  ;;  %v8559_v44 = vmul.f32 %v3918_v15, %v6947_v25  ;;  %v3938_v47 = vrot.slane %v3849_v38, 7  ;;  %v3942_v39 = vrot.slane %v3864_v32, 7 }
 0x2a9   :  { %v3922_v18 = vmul.f32 %v3918_v15, %v6943_v7  ;;  %v3923_v23 = vmul.f32 %v3914_v9, %v6947_v25  ;;  %v3931_v50 = vmul.f32 %v3929_v62, %v6943_v7  ;;  %v3935_v40 = vmul.f32 %v3933_v42, %v6947_v25 }
 0x2aa   :  { %v3940_v31 = vmul.f32 %v3938_v47, %v6943_v7  ;;  %v3944_v13 = vmul.f32 %v3942_v39, %v6947_v25  ;;  %v3949_v24 = vmul.f32 %v3933_v42, %v6943_v7  ;;  %v3950_v10 = vmul.f32 %v3929_v62, %v6947_v25 }
 0x2ab   :  { %v3888_v22 = vadd.f32 %v3887_v37, %v3883_v26  ;;  %v3897_v49 = vsub.f32 %v3892_v5, %v3896_v0  ;;  %v3946_v34 = vmul.f32 %v3942_v39, %v6943_v7  ;;  %v3947_v56 = vmul.f32 %v3938_v47, %v6947_v25 }
 0x2ac   :  { %v3876_v19 = vadd.f32 %v3875_v8, %v3874_v51  ;;  %v3936_v27 = vadd.f32 %v3935_v40, %v3931_v50  ;;  %v3945_v55 = vsub.f32 %v3940_v31, %v3944_v13  ;;  %v3953_v33 = vrot.slane %v8535_v45, 7  ;;  %v8594_v8 = vld [vmem:[%s9583_s2 + $0x30] sm:$0x1] }
 0x2ad   :  { %v3900_v12 = vadd.f32 %v3899_v2, %v3898_v58  ;;  %v3903_v36 = vsub.f32 %v3901_v6, %v3902_v3  ;;  %v8572_v21 = vadd.f32 %v3911_v4, %v3907_v20  ;;  %v3957_v28 = vrot.slane %v3879_v48, 7  ;;  %v8616_v3 = vld [vmem:[%s9583_s2 + $0x32] sm:$0x1]  ;;  %v8621_v58 = vld [vmem:[%s9583_s2 + $0x33] sm:$0x1] }
 0x2ae   :  { %v3921_v14 = vsub.f32 %v8556_v63, %v8559_v44  ;;  %v8576_v54 = vadd.f32 %v3923_v23, %v3922_v18  ;;  %v3927_v41 = vsub.f32 %v8550_v43, %v8553_v1  ;;  %v3951_v59 = vsub.f32 %v3949_v24, %v3950_v10 }
 0x2af   :  { %v3948_v11 = vadd.f32 %v3947_v56, %v3946_v34  ;;  %v3962_v16 = vrot.slane %v3855_v61, 7  ;;  %v3991_v46 = vrot.slane %v3888_v22, %v7460_v29  ;;  %v4009_v17 = vrot.slane %v3897_v49, %v7460_v29 }
 0x2b0   :  { %v3955_v53 = vmul.f32 %v3953_v33, %v6943_v7  ;;  %v3966_v38 = vrot.slane %v3876_v19, 7  ;;  %v4028_v35 = vrot.slane %v3936_v27, %v7460_v29  ;;  %v4047_v30 = vrot.slane %v3945_v55, %v7460_v29 }
 0x2b1   :  { %v3959_v45 = vmul.f32 %v3957_v28, %v6947_v25  ;;  %v8587_v32 = vmul.f32 %v3957_v28, %v6943_v7  ;;  %v3998_v51 = vrot.slane %v3991_v46, %v7460_v29  ;;  %v4016_v61 = vrot.slane %v4009_v17, %v7460_v29 }
 0x2b2   :  { %v4035_v48 = vrot.slane %v4028_v35, %v7460_v29  ;;  %v4054_v57 = vrot.slane %v4047_v30, %v7460_v29  ;;  %v4087_v60 = vrot.slane %v3900_v12, %v7460_v29  ;;  %v4105_v26 = vrot.slane %v3903_v36, %v7460_v29 }
 0x2b3   :  { %v3999_v37 = vcombine.high %v3998_v51, %v3998_v51  ;;  %v4017_v9 = vcombine.high %v4016_v61, %v4016_v61  ;;  %v4124_v15 = vrot.slane %v3948_v11, %v7460_v29  ;;  %v4143_v5 = vrot.slane %v3951_v59, %v7460_v29 }
 0x2b4   :  { %v8608_v0 = vmul.f32 %v3962_v16, %v6943_v7  ;;  %v8611_v6 = vmul.f32 %v3953_v33, %v6947_v25  ;;  %v4036_v2 = vcombine.high %v4035_v48, %v4035_v48  ;;  %v4055_v20 = vcombine.high %v4054_v57, %v4054_v57 }
 0x2b5   :  { %v4001_v4 = vmul.f32 %v8594_v8, %v3999_v37  ;;  %v4019_v62 = vmul.f32 %v8599_v52, %v4017_v9  ;;  %v4059_v42 = vmul.f32 %v8594_v8, %v4017_v9  ;;  %v4060_v47 = vmul.f32 %v8599_v52, %v3999_v37 }
 0x2b6   :  { %v3968_v39 = vmul.f32 %v3966_v38, %v6947_v25  ;;  %v3970_v18 = vmul.f32 %v3966_v38, %v6943_v7  ;;  %v4094_v23 = vrot.slane %v4087_v60, %v7460_v29  ;;  %v4112_v50 = vrot.slane %v4105_v26, %v7460_v29 }
 0x2b7   :  { %v4066_v40 = vmul.f32 %v8616_v3, %v3999_v37  ;;  %v4067_v31 = vmul.f32 %v8621_v58, %v4017_v9  ;;  %v4131_v13 = vrot.slane %v4124_v15, %v7460_v29  ;;  %v4150_v24 = vrot.slane %v4143_v5, %v7460_v29 }
 0x2b8   :  { %v4020_v10 = vadd.f32 %v4019_v62, %v4001_v4  ;;  %v4038_v22 = vmul.f32 %v8616_v3, %v4036_v2  ;;  %v4061_v49 = vsub.f32 %v4059_v42, %v4060_v47  ;;  %v4062_v34 = vmul.f32 %v8616_v3, %v4055_v20 }
 0x2b9   :  { %v4068_v56 = vadd.f32 %v4067_v31, %v4066_v40  ;;  %v4069_v7 = vmul.f32 %v8594_v8, %v4036_v2  ;;  %v4073_v19 = vmul.f32 %v8616_v3, %v4017_v9  ;;  %v4074_v27 = vmul.f32 %v8621_v58, %v3999_v37 }
 0x2ba   :  { %v3960_v55 = vadd.f32 %v3959_v45, %v3955_v53  ;;  %v3971_v33 = vmul.f32 %v3962_v16, %v6947_v25  ;;  %v4095_v12 = vcombine.high %v4094_v23, %v4094_v23  ;;  %v4113_v36 = vcombine.high %v4112_v50, %v4112_v50 }
 0x2bb   :  { %v4057_v28 = vmul.f32 %v8621_v58, %v4055_v20  ;;  %v4064_v59 = vmul.f32 %v8621_v58, %v4036_v2  ;;  %v4071_v11 = vmul.f32 %v8599_v52, %v4055_v20  ;;  %v8644_v46 = vcombine.high %v4131_v13, %v4131_v13 }
 0x2bc   :  { %v4039_v17 = vsub.f32 %v4020_v10, %v4038_v22  ;;  %v4063_v38 = vsub.f32 %v4061_v49, %v4062_v34  ;;  %v4097_v35 = vmul.f32 %v8594_v8, %v4095_v12  ;;  %v4115_v30 = vmul.f32 %v8599_v52, %v4113_v36 }
 0x2bd   :  { %v4070_v51 = vadd.f32 %v4069_v7, %v4068_v56  ;;  %v4075_v53 = vsub.f32 %v4073_v19, %v4074_v27  ;;  %v4076_v25 = vmul.f32 %v8594_v8, %v4055_v20  ;;  %v4151_v16 = vcombine.high %v4150_v24, %v4150_v24 }
 0x2be   :  { %v3969_v45 = vsub.f32 %v8608_v0, %v3968_v39  ;;  %v3975_v61 = vsub.f32 %v8587_v32, %v8611_v6  ;;  %v4155_v48 = vmul.f32 %v8594_v8, %v4113_v36  ;;  %v4156_v57 = vmul.f32 %v8599_v52, %v4095_v12 }
 0x2bf   :  { %v4116_v60 = vadd.f32 %v4115_v30, %v4097_v35  ;;  %v4134_v26 = vmul.f32 %v8616_v3, %v8644_v46  ;;  %v4162_v37 = vmul.f32 %v8616_v3, %v4095_v12  ;;  %v4163_v9 = vmul.f32 %v8621_v58, %v4113_v36 }
 0x2c0   :  { %v3972_v15 = vadd.f32 %v3971_v33, %v3970_v18  ;;  %v8658_v5 = vadd.f32 %v4057_v28, %v4039_v17  ;;  %v8660_v20 = vsub.f32 %v4063_v38, %v4064_v59  ;;  %v4078_v0 = vmul.f32 %v8599_v52, %v4036_v2 }
 0x2c1   :  { %v8663_v4 = vsub.f32 %v4070_v51, %v4071_v11  ;;  %v4077_v62 = vadd.f32 %v4076_v25, %v4075_v53  ;;  %v4153_v42 = vmul.f32 %v8621_v58, %v4151_v16  ;;  %v4158_v47 = vmul.f32 %v8616_v3, %v4151_v16 }
 0x2c2   :  { %v4157_v39 = vsub.f32 %v4155_v48, %v4156_v57  ;;  %v4160_v23 = vmul.f32 %v8621_v58, %v8644_v46  ;;  %v4183_v18 = vrot.slane %v8572_v21, %v7460_v29  ;;  %v4201_v50 = vrot.slane %v3921_v14, %v7460_v29 }
 0x2c3   :  { %v4135_v2 = vsub.f32 %v4116_v60, %v4134_v26  ;;  %v4164_v40 = vadd.f32 %v4163_v9, %v4162_v37  ;;  %v4165_v31 = vmul.f32 %v8594_v8, %v8644_v46  ;;  %v4220_v13 = vrot.slane %v3960_v55, %v7460_v29 }
 0x2c4   :  { %v4169_v24 = vmul.f32 %v8616_v3, %v4113_v36  ;;  %v4190_v10 = vrot.slane %v4183_v18, %v7460_v29  ;;  %v4208_v22 = vrot.slane %v4201_v50, %v7460_v29  ;;  %v4239_v21 = vrot.slane %v3969_v45, %v7460_v29 }
 0x2c5   :  { %v4170_v49 = vmul.f32 %v8621_v58, %v4095_v12  ;;  %v4227_v63 = vrot.slane %v4220_v13, %v7460_v29  ;;  %v4279_v44 = vrot.slane %v8576_v54, %v7460_v29  ;;  %v4297_v14 = vrot.slane %v3927_v41, %v7460_v29 }
 0x2c6   :  { %v4167_v34 = vmul.f32 %v8599_v52, %v4151_v16  ;;  %v4191_v56 = vcombine.high %v4190_v10, %v4190_v10  ;;  %v4209_v7 = vcombine.high %v4208_v22, %v4208_v22  ;;  %v4246_v19 = vrot.slane %v4239_v21, %v7460_v29 }
 0x2c7   :  { %v4159_v27 = vsub.f32 %v4157_v39, %v4158_v47  ;;  %v4166_v55 = vadd.f32 %v4165_v31, %v4164_v40  ;;  %v4172_v33 = vmul.f32 %v8594_v8, %v4151_v16  ;;  %v4228_v12 = vcombine.high %v4227_v63, %v4227_v63 }
 0x2c8   :  { %v4193_v36 = vmul.f32 %v8594_v8, %v4191_v56  ;;  %v4211_v54 = vmul.f32 %v8599_v52, %v4209_v7  ;;  %v4247_v28 = vcombine.high %v4246_v19, %v4246_v19  ;;  %v4251_v59 = vmul.f32 %v8594_v8, %v4209_v7 }
 0x2c9   :  { %v4171_v43 = vsub.f32 %v4169_v24, %v4170_v49  ;;  %v4252_v1 = vmul.f32 %v8599_v52, %v4191_v56  ;;  %v4286_v41 = vrot.slane %v4279_v44, %v7460_v29  ;;  %v4304_v11 = vrot.slane %v4297_v14, %v7460_v29 }
 0x2ca   :  { %v8699_v17 = vadd.f32 %v4078_v0, %v4077_v62  ;;  %v4258_v38 = vmul.f32 %v8616_v3, %v4191_v56  ;;  %v4259_v35 = vmul.f32 %v8621_v58, %v4209_v7  ;;  %v4316_v30 = vrot.slane %v3972_v15, %v7460_v29 }
 0x2cb   :  { %v8704_v51 = vadd.f32 %v4153_v42, %v4135_v2  ;;  %v8706_v53 = vsub.f32 %v4159_v27, %v4160_v23  ;;  %v8708_v25 = vsub.f32 %v4166_v55, %v4167_v34  ;;  %v4174_v16 = vmul.f32 %v8599_v52, %v8644_v46  ;;  %v8742_v34 = vld [vmem:[%s9583_s2 + $0x35] sm:$0x1] }
 0x2cc   :  { %v4212_v45 = vadd.f32 %v4211_v54, %v4193_v36  ;;  %v4230_v48 = vmul.f32 %v8616_v3, %v4228_v12  ;;  %v4253_v57 = vsub.f32 %v4251_v59, %v4252_v1  ;;  %v4254_v60 = vmul.f32 %v8616_v3, %v4247_v28 }
 0x2cd   :  { %v4173_v26 = vadd.f32 %v4172_v33, %v4171_v43  ;;  %v4261_v37 = vmul.f32 %v8594_v8, %v4228_v12  ;;  %v4287_v9 = vcombine.high %v4286_v41, %v4286_v41  ;;  %v4305_v15 = vcombine.high %v4304_v11, %v4304_v11 }
 0x2ce   :  { %v4260_v0 = vadd.f32 %v4259_v35, %v4258_v38  ;;  %v4265_v62 = vmul.f32 %v8616_v3, %v4209_v7  ;;  %v4266_v42 = vmul.f32 %v8621_v58, %v4191_v56  ;;  %v4323_v47 = vrot.slane %v4316_v30, %v7460_v29  ;;  %v8766_v35 = vld [vmem:[%s9583_s2 + $0x37] sm:$0x1] }
 0x2cf   :  { %v4256_v46 = vmul.f32 %v8621_v58, %v4228_v12  ;;  %v4289_v39 = vmul.f32 %v8594_v8, %v4287_v9  ;;  %v4307_v23 = vmul.f32 %v8599_v52, %v4305_v15  ;;  %v4335_v18 = vrot.slane %v3975_v61, %v7460_v29 }
 0x2d0   :  { %v4231_v50 = vsub.f32 %v4212_v45, %v4230_v48  ;;  %v4249_v2 = vmul.f32 %v8621_v58, %v4247_v28  ;;  %v4255_v40 = vsub.f32 %v4253_v57, %v4254_v60  ;;  %v4324_v31 = vcombine.high %v4323_v47, %v4323_v47 }
 0x2d1   :  { %v4263_v13 = vmul.f32 %v8599_v52, %v4247_v28  ;;  %v4342_v24 = vrot.slane %v4335_v18, %v7460_v29  ;;  %v4347_v10 = vmul.f32 %v8594_v8, %v4305_v15  ;;  %v4348_v22 = vmul.f32 %v8599_v52, %v4287_v9  ;;  %v8737_v29 = vld [vmem:[%s9583_s2 + $0x34] sm:$0x1] }
 0x2d2   :  { %v4262_v21 = vadd.f32 %v4261_v37, %v4260_v0  ;;  %v4267_v49 = vsub.f32 %v4265_v62, %v4266_v42  ;;  %v4268_v63 = vmul.f32 %v8594_v8, %v4247_v28  ;;  %v4308_v44 = vadd.f32 %v4307_v23, %v4289_v39 }
 0x2d3   :  { %v4326_v32 = vmul.f32 %v8616_v3, %v4324_v31  ;;  %v4343_v6 = vcombine.high %v4342_v24, %v4342_v24  ;;  %v4354_v61 = vmul.f32 %v8616_v3, %v4287_v9  ;;  %v4355_v14 = vmul.f32 %v8621_v58, %v4305_v15 }
 0x2d4   :  { %v8744_v56 = vadd.f32 %v4174_v16, %v4173_v26  ;;  %v4250_v7 = vadd.f32 %v4249_v2, %v4231_v50  ;;  %v4257_v19 = vsub.f32 %v4255_v40, %v4256_v46  ;;  %v4270_v27 = vmul.f32 %v8599_v52, %v4228_v12 }
 0x2d5   :  { %v4349_v55 = vsub.f32 %v4347_v10, %v4348_v22  ;;  %v4350_v33 = vmul.f32 %v8616_v3, %v4343_v6  ;;  %v4361_v36 = vmul.f32 %v8616_v3, %v4305_v15  ;;  %v4362_v54 = vmul.f32 %v8621_v58, %v4287_v9  ;;  %v8761_v3 = vld [vmem:[%s9583_s2 + $0x36] sm:$0x1] }
 0x2d6   :  { %v8750_v28 = vsub.f32 %v4262_v21, %v4263_v13  ;;  %v4269_v59 = vadd.f32 %v4268_v63, %v4267_v49  ;;  %v4376_v43 = vmul.f32 %v8737_v29, %v8658_v5  ;;  %v4377_v1 = vmul.f32 %v8742_v34, %v8660_v20 }
 0x2d7   :  { %v4327_v41 = vsub.f32 %v4308_v44, %v4326_v32  ;;  %v4345_v11 = vmul.f32 %v8621_v58, %v4343_v6  ;;  %v4356_v12 = vadd.f32 %v4355_v14, %v4354_v61  ;;  %v4357_v38 = vmul.f32 %v8594_v8, %v4324_v31 }
 0x2d8   :  { %v4352_v30 = vmul.f32 %v8621_v58, %v4324_v31  ;;  %v4359_v16 = vmul.f32 %v8599_v52, %v4343_v6  ;;  %v4366_v45 = vmul.f32 %v8599_v52, %v4324_v31  ;;  %v4383_v48 = vmul.f32 %v8737_v29, %v8660_v20 }
 0x2d9   :  { %v4351_v57 = vsub.f32 %v4349_v55, %v4350_v33  ;;  %v4363_v60 = vsub.f32 %v4361_v36, %v4362_v54  ;;  %v4364_v26 = vmul.f32 %v8594_v8, %v4343_v6  ;;  %v4384_v37 = vmul.f32 %v8742_v34, %v8658_v5 }
 0x2da   :  { %v4378_v9 = vadd.f32 %v4377_v1, %v4376_v43  ;;  %v4379_v15 = vmul.f32 %v8761_v3, %v4250_v7  ;;  %v4390_v58 = vmul.f32 %v8761_v3, %v8658_v5  ;;  %v4391_v0 = vmul.f32 %v8766_v35, %v8660_v20 }
 0x2db   :  { %v4346_v52 = vadd.f32 %v4345_v11, %v4327_v41  ;;  %v4358_v62 = vadd.f32 %v4357_v38, %v4356_v12  ;;  %v4386_v42 = vmul.f32 %v8761_v3, %v4257_v19  ;;  %v4397_v47 = vmul.f32 %v8761_v3, %v8660_v20 }
 0x2dc   :  { %v4385_v8 = vsub.f32 %v4383_v48, %v4384_v37  ;;  %v4392_v46 = vadd.f32 %v4391_v0, %v4390_v58  ;;  %v4393_v39 = vmul.f32 %v8737_v29, %v4250_v7  ;;  %v4398_v23 = vmul.f32 %v8766_v35, %v8658_v5 }
 0x2dd   :  { %v4365_v18 = vadd.f32 %v4364_v26, %v4363_v60  ;;  %v4381_v50 = vmul.f32 %v8766_v35, %v4257_v19  ;;  %v4404_v2 = vmul.f32 %v8737_v29, %v8704_v51  ;;  %v4405_v40 = vmul.f32 %v8742_v34, %v8706_v53 }
 0x2de   :  { %v4353_v31 = vsub.f32 %v4351_v57, %v4352_v30  ;;  %v4380_v13 = vsub.f32 %v4378_v9, %v4379_v15  ;;  %v4399_v24 = vsub.f32 %v4397_v47, %v4398_v23  ;;  %v4400_v20 = vmul.f32 %v8737_v29, %v4257_v19 }
 0x2df   :  { %v4388_v10 = vmul.f32 %v8766_v35, %v4250_v7  ;;  %v4395_v22 = vmul.f32 %v8742_v34, %v4257_v19  ;;  %v4406_v21 = vadd.f32 %v4405_v40, %v4404_v2  ;;  %v4407_v5 = vmul.f32 %v8761_v3, %v4346_v52 }
 0x2e0   :  { %v4387_v49 = vsub.f32 %v4385_v8, %v4386_v42  ;;  %v4394_v63 = vadd.f32 %v4393_v39, %v4392_v46  ;;  %v4411_v44 = vmul.f32 %v8737_v29, %v8706_v53  ;;  %v4412_v32 = vmul.f32 %v8742_v34, %v8704_v51 }
 0x2e1   :  { %v4271_v6 = vadd.f32 %v4270_v27, %v4269_v59  ;;  %v8800_v61 = vsub.f32 %v4358_v62, %v4359_v16  ;;  %v4418_v14 = vmul.f32 %v8761_v3, %v8704_v51  ;;  %v4419_v19 = vmul.f32 %v8766_v35, %v8706_v53 }
 0x2e2   :  { %v8806_v55 = vadd.f32 %v4366_v45, %v4365_v18  ;;  %v8808_v33 = vadd.f32 %v4381_v50, %v4380_v13  ;;  %v4401_v36 = vadd.f32 %v4400_v20, %v4399_v24  ;;  %v4402_v54 = vmul.f32 %v8742_v34, %v4250_v7 }
 0x2e3   :  { %v4408_v43 = vsub.f32 %v4406_v21, %v4407_v5  ;;  %v4409_v1 = vmul.f32 %v8766_v35, %v4353_v31  ;;  %v4425_v27 = vmul.f32 %v8761_v3, %v8706_v53  ;;  %v4426_v59 = vmul.f32 %v8766_v35, %v8704_v51 }
 0x2e4   :  { %v8816_v41 = vsub.f32 %v4387_v49, %v4388_v10  ;;  %v8818_v11 = vsub.f32 %v4394_v63, %v4395_v22  ;;  %v4413_v12 = vsub.f32 %v4411_v44, %v4412_v32  ;;  %v4414_v38 = vmul.f32 %v8761_v3, %v4353_v31 }
 0x2e5   :  { %v4420_v30 = vadd.f32 %v4419_v19, %v4418_v14  ;;  %v4421_v16 = vmul.f32 %v8737_v29, %v4346_v52  ;;  %v4432_v7 = vmul.f32 %v8737_v29, %v8663_v4  ;;  %v4433_v45 = vmul.f32 %v8742_v34, %v8699_v17 }
 0x2e6   :  { %v8826_v53 = vadd.f32 %v4402_v54, %v4401_v36  ;;  %v4416_v51 = vmul.f32 %v8766_v35, %v4346_v52  ;;  %v4439_v48 = vmul.f32 %v8737_v29, %v8699_v17  ;;  %v4440_v57 = vmul.f32 %v8742_v34, %v8663_v4  ;;  %v8877_v54 = vld [vmem:[%s9583_s2 + $0x38] sm:$0x1] }
 0x2e7   :  { %v8833_v60 = vadd.f32 %v4409_v1, %v4408_v43  ;;  %v4423_v26 = vmul.f32 %v8742_v34, %v4353_v31  ;;  %v4427_v37 = vsub.f32 %v4425_v27, %v4426_v59  ;;  %v4428_v9 = vmul.f32 %v8737_v29, %v4353_v31 }
 0x2e8   :  { %v4415_v15 = vsub.f32 %v4413_v12, %v4414_v38  ;;  %v4430_v58 = vmul.f32 %v8742_v34, %v4346_v52  ;;  %v4446_v0 = vmul.f32 %v8761_v3, %v8663_v4  ;;  %v4447_v62 = vmul.f32 %v8766_v35, %v8699_v17 }
 0x2e9   :  { %v4422_v42 = vadd.f32 %v4421_v16, %v4420_v30  ;;  %v4434_v47 = vadd.f32 %v4433_v45, %v4432_v7  ;;  %v4435_v8 = vmul.f32 %v8761_v3, %v8750_v28  ;;  %v4453_v46 = vmul.f32 %v8761_v3, %v8699_v17 }
 0x2ea   :  { %v4437_v39 = vmul.f32 %v8766_v35, %v4271_v6  ;;  %v4441_v23 = vsub.f32 %v4439_v48, %v4440_v57  ;;  %v4442_v18 = vmul.f32 %v8761_v3, %v4271_v6  ;;  %v4454_v52 = vmul.f32 %v8766_v35, %v8663_v4 }
 0x2eb   :  { %v4429_v50 = vadd.f32 %v4428_v9, %v4427_v37  ;;  %v4444_v2 = vmul.f32 %v8766_v35, %v8750_v28  ;;  %v4460_v40 = vmul.f32 %v8737_v29, %v8708_v25  ;;  %v4461_v31 = vmul.f32 %v8742_v34, %v8744_v56 }
 0x2ec   :  { %v4448_v13 = vadd.f32 %v4447_v62, %v4446_v0  ;;  %v4449_v17 = vmul.f32 %v8737_v29, %v8750_v28  ;;  %v4455_v24 = vsub.f32 %v4453_v46, %v4454_v52  ;;  %v4456_v20 = vmul.f32 %v8737_v29, %v4271_v6 }
 0x2ed   :  { %v4462_v10 = vadd.f32 %v4461_v31, %v4460_v40  ;;  %v4463_v4 = vmul.f32 %v8761_v3, %v8800_v61  ;;  %v4467_v22 = vmul.f32 %v8737_v29, %v8744_v56  ;;  %v4468_v21 = vmul.f32 %v8742_v34, %v8708_v25 }
 0x2ee   :  { %v4436_v5 = vsub.f32 %v4434_v47, %v4435_v8  ;;  %v4443_v49 = vsub.f32 %v4441_v23, %v4442_v18  ;;  %v4451_v63 = vmul.f32 %v8742_v34, %v4271_v6  ;;  %v4458_v44 = vmul.f32 %v8742_v34, %v8750_v28  ;;  %v8882_v6 = vld [vmem:[%s9583_s2 + $0x39] sm:$0x1] }
 0x2ef   :  { %v4469_v32 = vsub.f32 %v4467_v22, %v4468_v21  ;;  %v4470_v14 = vmul.f32 %v8761_v3, %v8806_v55  ;;  %v4474_v19 = vmul.f32 %v8761_v3, %v8708_v25  ;;  %v4475_v36 = vmul.f32 %v8766_v35, %v8744_v56 }
 0x2f0   :  { %v4450_v28 = vadd.f32 %v4449_v17, %v4448_v13  ;;  %v4457_v43 = vadd.f32 %v4456_v20, %v4455_v24  ;;  %v4465_v1 = vmul.f32 %v8766_v35, %v8806_v55  ;;  %v4477_v27 = vmul.f32 %v8737_v29, %v8800_v61 }
 0x2f1   :  { %v4464_v59 = vsub.f32 %v4462_v10, %v4463_v4  ;;  %v4476_v12 = vadd.f32 %v4475_v36, %v4474_v19  ;;  %v4481_v38 = vmul.f32 %v8761_v3, %v8744_v56  ;;  %v4482_v30 = vmul.f32 %v8766_v35, %v8708_v25  ;;  %v8907_v25 = vld [vmem:[%s9583_s2 + $0x3a] sm:$0x1] }
 0x2f2   :  { %v4417_v16 = vsub.f32 %v4415_v15, %v4416_v51  ;;  %v8892_v7 = vsub.f32 %v4422_v42, %v4423_v26  ;;  %v4496_v45 = vmul.f32 %v8877_v54, %v8808_v33  ;;  %v4497_v48 = vmul.f32 %v8882_v6, %v8816_v41  ;;  %v8924_v42 = vld [vmem:[%s9583_s2 + $0x3b] sm:$0x1] }
 0x2f3   :  { %v8898_v57 = vadd.f32 %v4430_v58, %v4429_v50  ;;  %v8900_v37 = vadd.f32 %v4437_v39, %v4436_v5  ;;  %v4471_v9 = vsub.f32 %v4469_v32, %v4470_v14  ;;  %v4472_v56 = vmul.f32 %v8766_v35, %v8800_v61 }
 0x2f4   :  { %v8909_v3 = vsub.f32 %v4443_v49, %v4444_v2  ;;  %v8911_v51 = vsub.f32 %v4450_v28, %v4451_v63  ;;  %v4478_v26 = vadd.f32 %v4477_v27, %v4476_v12  ;;  %v4479_v15 = vmul.f32 %v8742_v34, %v8806_v55 }
 0x2f5   :  { %v8915_v58 = vadd.f32 %v4458_v44, %v4457_v43  ;;  %v8917_v0 = vadd.f32 %v4465_v1, %v4464_v59  ;;  %v4483_v62 = vsub.f32 %v4481_v38, %v4482_v30  ;;  %v4484_v35 = vmul.f32 %v8737_v29, %v8806_v55 }
 0x2f6   :  { %v4498_v47 = vadd.f32 %v4497_v48, %v4496_v45  ;;  %v4499_v8 = vmul.f32 %v8907_v25, %v8833_v60  ;;  %v4503_v46 = vmul.f32 %v8877_v54, %v8816_v41  ;;  %v4504_v39 = vmul.f32 %v8882_v6, %v8808_v33 }
 0x2f7   :  { %v8932_v23 = vsub.f32 %v4471_v9, %v4472_v56  ;;  %v4486_v29 = vmul.f32 %v8742_v34, %v8800_v61  ;;  %v4510_v55 = vmul.f32 %v8907_v25, %v8808_v33  ;;  %v4511_v18 = vmul.f32 %v8924_v42, %v8816_v41 }
 0x2f8   :  { %v8940_v52 = vsub.f32 %v4478_v26, %v4479_v15  ;;  %v4501_v50 = vmul.f32 %v8924_v42, %v4417_v16  ;;  %v4517_v2 = vmul.f32 %v8907_v25, %v8816_v41  ;;  %v4518_v40 = vmul.f32 %v8924_v42, %v8808_v33 }
 0x2f9   :  { %v4485_v31 = vadd.f32 %v4484_v35, %v4483_v62  ;;  %v4506_v13 = vmul.f32 %v8907_v25, %v4417_v16  ;;  %v4524_v34 = vmul.f32 %v8877_v54, %v8818_v11  ;;  %v4525_v61 = vmul.f32 %v8882_v6, %v8826_v53 }
 0x2fa   :  { %v4500_v17 = vsub.f32 %v4498_v47, %v4499_v8  ;;  %v4505_v24 = vsub.f32 %v4503_v46, %v4504_v39  ;;  %v4508_v20 = vmul.f32 %v8924_v42, %v8833_v60  ;;  %v4513_v41 = vmul.f32 %v8877_v54, %v8833_v60 }
 0x2fb   :  { %v4512_v10 = vadd.f32 %v4511_v18, %v4510_v55  ;;  %v4515_v33 = vmul.f32 %v8882_v6, %v4417_v16  ;;  %v4531_v4 = vmul.f32 %v8877_v54, %v8826_v53  ;;  %v4532_v22 = vmul.f32 %v8882_v6, %v8818_v11 }
 0x2fc   :  { %v4519_v21 = vsub.f32 %v4517_v2, %v4518_v40  ;;  %v4520_v5 = vmul.f32 %v8877_v54, %v4417_v16  ;;  %v4526_v49 = vadd.f32 %v4525_v61, %v4524_v34  ;;  %v4527_v63 = vmul.f32 %v8907_v25, %v8892_v7 }
 0x2fd   :  { %v4533_v44 = vsub.f32 %v4531_v4, %v4532_v22  ;;  %v4534_v32 = vmul.f32 %v8907_v25, %v8898_v57  ;;  %v4538_v14 = vmul.f32 %v8907_v25, %v8818_v11  ;;  %v4539_v19 = vmul.f32 %v8924_v42, %v8826_v53 }
 0x2fe   :  { %v4507_v36 = vsub.f32 %v4505_v24, %v4506_v13  ;;  %v4522_v28 = vmul.f32 %v8882_v6, %v8833_v60  ;;  %v4541_v43 = vmul.f32 %v8877_v54, %v8892_v7  ;;  %v4545_v1 = vmul.f32 %v8907_v25, %v8826_v53 }
 0x2ff   :  { %v4514_v27 = vadd.f32 %v4513_v41, %v4512_v10  ;;  %v4529_v59 = vmul.f32 %v8924_v42, %v8898_v57  ;;  %v4540_v12 = vadd.f32 %v4539_v19, %v4538_v14  ;;  %v4546_v38 = vmul.f32 %v8924_v42, %v8818_v11 }
 0x300   :  { %v4521_v30 = vadd.f32 %v4520_v5, %v4519_v21  ;;  %v4548_v16 = vmul.f32 %v8877_v54, %v8898_v57  ;;  %v4552_v60 = vmul.f32 %v8877_v54, %v8900_v37  ;;  %v4553_v45 = vmul.f32 %v8882_v6, %v8909_v3 }
 0x301   :  { %v4528_v48 = vsub.f32 %v4526_v49, %v4527_v63  ;;  %v4535_v53 = vsub.f32 %v4533_v44, %v4534_v32  ;;  %v4536_v9 = vmul.f32 %v8924_v42, %v8892_v7  ;;  %v4547_v56 = vsub.f32 %v4545_v1, %v4546_v38  ;;  %v9055_v1 = vld [vmem:[%s9583_s2 + $0x3c] sm:$0x1] }
 0x302   :  { %v4487_v26 = vadd.f32 %v4486_v29, %v4485_v31  ;;  %v8988_v15 = vadd.f32 %v4501_v50, %v4500_v17  ;;  %v4542_v11 = vadd.f32 %v4541_v43, %v4540_v12  ;;  %v4543_v62 = vmul.f32 %v8882_v6, %v8898_v57 }
 0x303   :  { %v8992_v35 = vsub.f32 %v4507_v36, %v4508_v20  ;;  %v8994_v47 = vsub.f32 %v4514_v27, %v4515_v33  ;;  %v8996_v8 = vadd.f32 %v4553_v45, %v4552_v60  ;;  %v9000_v46 = vmul.f32 %v8907_v25, %v8917_v0 }
 0x304   :  { %v4549_v39 = vadd.f32 %v4548_v16, %v4547_v56  ;;  %v4550_v29 = vmul.f32 %v8882_v6, %v8892_v7  ;;  %v4559_v55 = vmul.f32 %v8877_v54, %v8909_v3  ;;  %v4560_v57 = vmul.f32 %v8882_v6, %v8900_v37 }
 0x305   :  { %v9008_v18 = vadd.f32 %v4522_v28, %v4521_v30  ;;  %v9010_v50 = vadd.f32 %v4529_v59, %v4528_v48  ;;  %v9012_v2 = vsub.f32 %v4535_v53, %v4536_v9  ;;  %v4557_v40 = vmul.f32 %v8924_v42, %v8932_v23 }
 0x306   :  { %v9016_v31 = vsub.f32 %v4542_v11, %v4543_v62  ;;  %v4562_v7 = vmul.f32 %v8907_v25, %v8932_v23  ;;  %v4566_v13 = vmul.f32 %v8907_v25, %v8900_v37  ;;  %v4567_v34 = vmul.f32 %v8924_v42, %v8909_v3 }
 0x307   :  { %v4556_v61 = vsub.f32 %v8996_v8, %v9000_v46  ;;  %v4564_v17 = vmul.f32 %v8924_v42, %v8917_v0  ;;  %v4580_v24 = vmul.f32 %v8877_v54, %v8911_v51  ;;  %v4581_v20 = vmul.f32 %v8882_v6, %v8915_v58 }
 0x308   :  { %v9032_v41 = vadd.f32 %v4550_v29, %v4549_v39  ;;  %v4561_v10 = vsub.f32 %v4559_v55, %v4560_v57  ;;  %v4569_v33 = vmul.f32 %v8877_v54, %v8917_v0  ;;  %v4583_v4 = vmul.f32 %v8907_v25, %v8940_v52 }
 0x309   :  { %v4582_v22 = vadd.f32 %v4581_v20, %v4580_v24  ;;  %v4585_v21 = vmul.f32 %v8924_v42, %v4487_v26  ;;  %v4587_v5 = vmul.f32 %v8877_v54, %v8915_v58  ;;  %v4588_v49 = vmul.f32 %v8882_v6, %v8911_v51 }
 0x30a   :  { %v4568_v63 = vadd.f32 %v4567_v34, %v4566_v13  ;;  %v4573_v44 = vmul.f32 %v8907_v25, %v8909_v3  ;;  %v4574_v32 = vmul.f32 %v8924_v42, %v8900_v37  ;;  %v4590_v14 = vmul.f32 %v8907_v25, %v4487_v26  ;;  %v9060_v3 = vld [vmem:[%s9583_s2 + $0x3d] sm:$0x1] }
 0x30b   :  { %v4584_v19 = vsub.f32 %v4582_v22, %v4583_v4  ;;  %v4589_v36 = vsub.f32 %v4587_v5, %v4588_v49  ;;  %v4594_v28 = vmul.f32 %v8907_v25, %v8911_v51  ;;  %v4595_v43 = vmul.f32 %v8924_v42, %v8915_v58 }
 0x30c   :  { %v4592_v37 = vmul.f32 %v8924_v42, %v8940_v52  ;;  %v4597_v27 = vmul.f32 %v8877_v54, %v8940_v52  ;;  %v4599_v59 = vmul.f32 %v8882_v6, %v4487_v26  ;;  %v4601_v12 = vmul.f32 %v8907_v25, %v8915_v58 }
 0x30d   :  { %v4586_v38 = vadd.f32 %v4585_v21, %v4584_v19  ;;  %v4591_v30 = vsub.f32 %v4589_v36, %v4590_v14  ;;  %v4596_v16 = vadd.f32 %v4595_v43, %v4594_v28  ;;  %v4602_v60 = vmul.f32 %v8924_v42, %v8911_v51  ;;  %v9083_v51 = vld [vmem:[%s9583_s2 + $0x3e] sm:$0x1] }
 0x30e   :  { %v4576_v45 = vmul.f32 %v8877_v54, %v8932_v23  ;;  %v4604_v48 = vmul.f32 %v8877_v54, %v4487_v26  ;;  %v4616_v53 = vmul.f32 %v9055_v1, %v8988_v15  ;;  %v4617_v9 = vmul.f32 %v9060_v3, %v8992_v35  ;;  %v9088_v54 = vld [vmem:[%s9583_s2 + $0x3f] sm:$0x1] }
 0x30f   :  { %v4575_v56 = vsub.f32 %v4573_v44, %v4574_v32  ;;  %v4598_v11 = vadd.f32 %v4597_v27, %v4596_v16  ;;  %v4603_v25 = vsub.f32 %v4601_v12, %v4602_v60  ;;  %v4606_v58 = vmul.f32 %v8882_v6, %v8940_v52 }
 0x310   :  { %v4563_v42 = vsub.f32 %v4561_v10, %v4562_v7  ;;  %v4570_v26 = vadd.f32 %v4569_v33, %v4568_v63  ;;  %v4571_v62 = vmul.f32 %v8882_v6, %v8932_v23  ;;  %v4593_v8 = vsub.f32 %v4591_v30, %v4592_v37 }
 0x311   :  { %v4600_v46 = vsub.f32 %v4598_v11, %v4599_v59  ;;  %v4605_v39 = vadd.f32 %v4604_v48, %v4603_v25  ;;  %v4618_v29 = vadd.f32 %v4617_v9, %v4616_v53  ;;  %v4619_v52 = vmul.f32 %v9083_v51, %v4586_v38 }
 0x312   :  { %v4623_v55 = vmul.f32 %v9055_v1, %v8992_v35  ;;  %v4624_v57 = vmul.f32 %v9060_v3, %v8988_v15  ;;  %v4630_v13 = vmul.f32 %v9083_v51, %v8988_v15  ;;  %v4631_v7 = vmul.f32 %v9088_v54, %v8992_v35 }
 0x313   :  { %v9101_v34 = vadd.f32 %v4557_v40, %v4556_v61  ;;  %v4577_v23 = vadd.f32 %v4576_v45, %v4575_v56  ;;  %v4578_v24 = vmul.f32 %v8882_v6, %v8917_v0  ;;  %v4607_v20 = vadd.f32 %v4606_v58, %v4605_v39 }
 0x314   :  { %v9105_v10 = vsub.f32 %v4563_v42, %v4564_v17  ;;  %v9107_v33 = vsub.f32 %v4570_v26, %v4571_v62  ;;  %v4637_v4 = vmul.f32 %v9083_v51, %v8992_v35  ;;  %v4638_v22 = vmul.f32 %v9088_v54, %v8988_v15 }
 0x315   :  { %v4621_v21 = vmul.f32 %v9088_v54, %v4593_v8  ;;  %v4626_v40 = vmul.f32 %v9083_v51, %v4593_v8  ;;  %v4644_v61 = vmul.f32 %v9055_v1, %v4600_v46  ;;  %v4645_v5 = vmul.f32 %v9060_v3, %v4607_v20 }
 0x316   :  { %v4620_v6 = vsub.f32 %v4618_v29, %v4619_v52  ;;  %v4625_v0 = vsub.f32 %v4623_v55, %v4624_v57  ;;  %v4632_v17 = vadd.f32 %v4631_v7, %v4630_v13  ;;  %v4633_v49 = vmul.f32 %v9055_v1, %v4586_v38 }
 0x317   :  { %v9118_v63 = vadd.f32 %v4578_v24, %v4577_v23  ;;  %v4628_v35 = vmul.f32 %v9088_v54, %v4586_v38  ;;  %v4651_v44 = vmul.f32 %v9055_v1, %v4607_v20  ;;  %v4652_v15 = vmul.f32 %v9060_v3, %v4600_v46 }
 0x318   :  { %v4639_v32 = vsub.f32 %v4637_v4, %v4638_v22  ;;  %v4640_v14 = vmul.f32 %v9055_v1, %v4593_v8  ;;  %v4646_v19 = vadd.f32 %v4645_v5, %v4644_v61  ;;  %v4647_v36 = vmul.f32 %v9083_v51, %v8994_v47 }
 0x319   :  { %v4653_v28 = vsub.f32 %v4651_v44, %v4652_v15  ;;  %v4654_v43 = vmul.f32 %v9083_v51, %v9008_v18  ;;  %v4658_v37 = vmul.f32 %v9083_v51, %v4600_v46  ;;  %v4659_v27 = vmul.f32 %v9088_v54, %v4607_v20 }
 0x31a   :  { %v9130_v59 = vadd.f32 %v4621_v21, %v4620_v6  ;;  %v4627_v12 = vsub.f32 %v4625_v0, %v4626_v40  ;;  %v4634_v30 = vadd.f32 %v4633_v49, %v4632_v17  ;;  %v4635_v16 = vmul.f32 %v9060_v3, %v4593_v8 }
 0x31b   :  { %v4660_v60 = vadd.f32 %v4659_v27, %v4658_v37  ;;  %v4661_v45 = vmul.f32 %v9055_v1, %v8994_v47  ;;  %v4665_v48 = vmul.f32 %v9083_v51, %v4607_v20  ;;  %v4666_v53 = vmul.f32 %v9088_v54, %v4600_v46 }
 0x31c   :  { %v4642_v9 = vmul.f32 %v9060_v3, %v4586_v38  ;;  %v4649_v56 = vmul.f32 %v9088_v54, %v9008_v18  ;;  %v4672_v11 = vmul.f32 %v9055_v1, %v9016_v31  ;;  %v4673_v25 = vmul.f32 %v9060_v3, %v9032_v41 }
 0x31d   :  { %v4641_v58 = vadd.f32 %v4640_v14, %v4639_v32  ;;  %v4648_v42 = vsub.f32 %v4646_v19, %v4647_v36  ;;  %v4655_v26 = vsub.f32 %v4653_v28, %v4654_v43  ;;  %v4656_v62 = vmul.f32 %v9088_v54, %v8994_v47 }
 0x31e   :  { %v9146_v8 = vsub.f32 %v4627_v12, %v4628_v35  ;;  %v9148_v46 = vsub.f32 %v4634_v30, %v4635_v16  ;;  %v4679_v38 = vmul.f32 %v9055_v1, %v9032_v41  ;;  %v4680_v39 = vmul.f32 %v9060_v3, %v9016_v31  ;;  %v9207_v16 = vld [vmem:[%s9583_s2 + $0x40] sm:$0x1] }
 0x31f   :  { %v4662_v29 = vadd.f32 %v4661_v45, %v4660_v60  ;;  %v4663_v52 = vmul.f32 %v9060_v3, %v9008_v18  ;;  %v4667_v55 = vsub.f32 %v4665_v48, %v4666_v53  ;;  %v4668_v57 = vmul.f32 %v9055_v1, %v9008_v18  ;;  %v9212_v60 = vld [vmem:[%s9583_s2 + $0x41] sm:$0x1] }
 0x320   :  { %v4674_v13 = vadd.f32 %v4673_v25, %v4672_v11  ;;  %v4675_v7 = vmul.f32 %v9083_v51, %v9107_v33  ;;  %v4686_v23 = vmul.f32 %v9083_v51, %v9016_v31  ;;  %v4687_v24 = vmul.f32 %v9088_v54, %v9032_v41 }
 0x321   :  { %v9164_v20 = vadd.f32 %v4642_v9, %v4641_v58  ;;  %v9166_v4 = vadd.f32 %v4649_v56, %v4648_v42  ;;  %v9168_v22 = vsub.f32 %v4655_v26, %v4656_v62  ;;  %v4670_v21 = vmul.f32 %v9060_v3, %v8994_v47 }
 0x322   :  { %v4681_v18 = vsub.f32 %v4679_v38, %v4680_v39  ;;  %v4682_v40 = vmul.f32 %v9083_v51, %v9118_v63  ;;  %v4689_v61 = vmul.f32 %v9055_v1, %v9107_v33  ;;  %v4693_v5 = vmul.f32 %v9083_v51, %v9032_v41 }
 0x323   :  { %v4688_v6 = vadd.f32 %v4687_v24, %v4686_v23  ;;  %v4694_v0 = vmul.f32 %v9088_v54, %v9016_v31  ;;  %v4700_v17 = vmul.f32 %v9055_v1, %v9101_v34  ;;  %v4701_v47 = vmul.f32 %v9060_v3, %v9105_v10  ;;  %v9254_v23 = vld [vmem:[%s9583_s2 + $0x43] sm:$0x1] }
 0x324   :  { %v9184_v49 = vsub.f32 %v4662_v29, %v4663_v52  ;;  %v4669_v35 = vadd.f32 %v4668_v57, %v4667_v55  ;;  %v4676_v44 = vsub.f32 %v4674_v13, %v4675_v7  ;;  %v4677_v15 = vmul.f32 %v9088_v54, %v9118_v63 }
 0x325   :  { %v4702_v32 = vadd.f32 %v4701_v47, %v4700_v17  ;;  %v4703_v41 = vmul.f32 %v9083_v51, %v9010_v50  ;;  %v4707_v31 = vmul.f32 %v9055_v1, %v9105_v10  ;;  %v4708_v14 = vmul.f32 %v9060_v3, %v9101_v34 }
 0x326   :  { %v4683_v19 = vsub.f32 %v4681_v18, %v4682_v40  ;;  %v4684_v36 = vmul.f32 %v9088_v54, %v9107_v33  ;;  %v4691_v28 = vmul.f32 %v9060_v3, %v9118_v63  ;;  %v4696_v43 = vmul.f32 %v9055_v1, %v9118_v63 }
 0x327   :  { %v4690_v37 = vadd.f32 %v4689_v61, %v4688_v6  ;;  %v4695_v27 = vsub.f32 %v4693_v5, %v4694_v0  ;;  %v4714_v12 = vmul.f32 %v9083_v51, %v9101_v34  ;;  %v4715_v30 = vmul.f32 %v9088_v54, %v9105_v10 }
 0x328   :  { %v9214_v45 = vadd.f32 %v4670_v21, %v4669_v35  ;;  %v4678_v63 = vadd.f32 %v4677_v15, %v4676_v44  ;;  %v4705_v48 = vmul.f32 %v9088_v54, %v9012_v2  ;;  %v4710_v53 = vmul.f32 %v9083_v51, %v9012_v2 }
 0x329   :  { %v4704_v9 = vsub.f32 %v4702_v32, %v4703_v41  ;;  %v4709_v56 = vsub.f32 %v4707_v31, %v4708_v14  ;;  %v4721_v11 = vmul.f32 %v9083_v51, %v9105_v10  ;;  %v4722_v25 = vmul.f32 %v9088_v54, %v9101_v34 }
 0x32a   :  { %v4685_v58 = vsub.f32 %v4683_v19, %v4684_v36  ;;  %v4698_v42 = vmul.f32 %v9060_v3, %v9107_v33  ;;  %v4736_v26 = vmul.f32 %v9207_v16, %v9130_v59  ;;  %v4737_v62 = vmul.f32 %v9212_v60, %v9146_v8 }
 0x32b   :  { %v9230_v38 = vsub.f32 %v4690_v37, %v4691_v28  ;;  %v4697_v39 = vadd.f32 %v4696_v43, %v4695_v27  ;;  %v4716_v29 = vadd.f32 %v4715_v30, %v4714_v12  ;;  %v4717_v51 = vmul.f32 %v9055_v1, %v9010_v50 }
 0x32c   :  { %v4712_v34 = vmul.f32 %v9088_v54, %v9010_v50  ;;  %v4719_v10 = vmul.f32 %v9060_v3, %v9012_v2  ;;  %v4743_v33 = vmul.f32 %v9207_v16, %v9146_v8  ;;  %v4744_v52 = vmul.f32 %v9212_v60, %v9130_v59  ;;  %v9249_v54 = vld [vmem:[%s9583_s2 + $0x42] sm:$0x1] }
 0x32d   :  { %v9242_v55 = vadd.f32 %v4705_v48, %v4704_v9  ;;  %v4711_v57 = vsub.f32 %v4709_v56, %v4710_v53  ;;  %v4723_v13 = vsub.f32 %v4721_v11, %v4722_v25  ;;  %v4724_v7 = vmul.f32 %v9055_v1, %v9012_v2 }
 0x32e   :  { %v4738_v24 = vadd.f32 %v4737_v62, %v4736_v26  ;;  %v4739_v21 = vmul.f32 %v9249_v54, %v4678_v63  ;;  %v4750_v18 = vmul.f32 %v9249_v54, %v9130_v59  ;;  %v4751_v40 = vmul.f32 %v9254_v23, %v9146_v8 }
 0x32f   :  { %v4718_v2 = vadd.f32 %v4717_v51, %v4716_v29  ;;  %v4726_v1 = vmul.f32 %v9060_v3, %v9010_v50  ;;  %v4746_v61 = vmul.f32 %v9249_v54, %v4685_v58  ;;  %v4757_v5 = vmul.f32 %v9249_v54, %v9146_v8 }
 0x330   :  { %v4745_v6 = vsub.f32 %v4743_v33, %v4744_v52  ;;  %v4752_v0 = vadd.f32 %v4751_v40, %v4750_v18  ;;  %v4753_v17 = vmul.f32 %v9207_v16, %v4678_v63  ;;  %v4758_v47 = vmul.f32 %v9254_v23, %v9130_v59 }
 0x331   :  { %v4741_v35 = vmul.f32 %v9254_v23, %v4685_v58  ;;  %v4760_v44 = vmul.f32 %v9207_v16, %v4685_v58  ;;  %v4764_v15 = vmul.f32 %v9207_v16, %v9166_v4  ;;  %v4765_v50 = vmul.f32 %v9212_v60, %v9168_v22 }
 0x332   :  { %v4725_v3 = vadd.f32 %v4724_v7, %v4723_v13  ;;  %v4740_v32 = vsub.f32 %v4738_v24, %v4739_v21  ;;  %v4759_v8 = vsub.f32 %v4757_v5, %v4758_v47  ;;  %v4767_v41 = vmul.f32 %v9249_v54, %v9242_v55 }
 0x333   :  { %v4699_v31 = vadd.f32 %v4698_v42, %v4697_v39  ;;  %v4713_v14 = vsub.f32 %v4711_v57, %v4712_v34  ;;  %v9277_v19 = vsub.f32 %v4718_v2, %v4719_v10  ;;  %v4766_v59 = vadd.f32 %v4765_v50, %v4764_v15 }
 0x334   :  { %v4747_v36 = vsub.f32 %v4745_v6, %v4746_v61  ;;  %v4748_v28 = vmul.f32 %v9254_v23, %v4678_v63  ;;  %v4754_v43 = vadd.f32 %v4753_v17, %v4752_v0  ;;  %v4755_v37 = vmul.f32 %v9212_v60, %v4685_v58 }
 0x335   :  { %v4761_v27 = vadd.f32 %v4760_v44, %v4759_v8  ;;  %v4762_v12 = vmul.f32 %v9212_v60, %v4678_v63  ;;  %v4771_v30 = vmul.f32 %v9207_v16, %v9168_v22  ;;  %v4772_v48 = vmul.f32 %v9212_v60, %v9166_v4 }
 0x336   :  { %v9286_v53 = vadd.f32 %v4726_v1, %v4725_v3  ;;  %v9288_v9 = vadd.f32 %v4741_v35, %v4740_v32  ;;  %v4768_v56 = vsub.f32 %v4766_v59, %v4767_v41  ;;  %v4769_v11 = vmul.f32 %v9254_v23, %v4713_v14 }
 0x337   :  { %v4778_v25 = vmul.f32 %v9249_v54, %v9166_v4  ;;  %v4779_v58 = vmul.f32 %v9254_v23, %v9168_v22  ;;  %v4785_v63 = vmul.f32 %v9249_v54, %v9168_v22  ;;  %v4786_v42 = vmul.f32 %v9254_v23, %v9166_v4 }
 0x338   :  { %v9299_v26 = vsub.f32 %v4747_v36, %v4748_v28  ;;  %v9301_v62 = vsub.f32 %v4754_v43, %v4755_v37  ;;  %v4792_v39 = vmul.f32 %v9207_v16, %v9148_v46  ;;  %v4793_v29 = vmul.f32 %v9212_v60, %v9164_v20 }
 0x339   :  { %v9307_v51 = vadd.f32 %v4762_v12, %v4761_v27  ;;  %v4773_v34 = vsub.f32 %v4771_v30, %v4772_v48  ;;  %v4774_v10 = vmul.f32 %v9249_v54, %v4713_v14  ;;  %v4776_v22 = vmul.f32 %v9254_v23, %v9242_v55 }
 0x33a   :  { %v4781_v4 = vmul.f32 %v9207_v16, %v9242_v55  ;;  %v4783_v33 = vmul.f32 %v9212_v60, %v4713_v14  ;;  %v4799_v52 = vmul.f32 %v9207_v16, %v9164_v20  ;;  %v4800_v57 = vmul.f32 %v9212_v60, %v9148_v46 }
 0x33b   :  { %v9319_v13 = vadd.f32 %v4769_v11, %v4768_v56  ;;  %v4780_v7 = vadd.f32 %v4779_v58, %v4778_v25  ;;  %v4787_v24 = vsub.f32 %v4785_v63, %v4786_v42  ;;  %v4788_v21 = vmul.f32 %v9207_v16, %v4713_v14  ;;  %v9369_v63 = vld [vmem:[%s9583_s2 + $0x44] sm:$0x1]  ;;  %v9374_v42 = vld [vmem:[%s9583_s2 + $0x45] sm:$0x1] }
 0x33c   :  { %v4794_v18 = vadd.f32 %v4793_v29, %v4792_v39  ;;  %v4795_v40 = vmul.f32 %v9249_v54, %v9230_v38  ;;  %v4806_v2 = vmul.f32 %v9249_v54, %v9148_v46  ;;  %v4807_v1 = vmul.f32 %v9254_v23, %v9164_v20 }
 0x33d   :  { %v4775_v61 = vsub.f32 %v4773_v34, %v4774_v10  ;;  %v4790_v5 = vmul.f32 %v9212_v60, %v9242_v55  ;;  %v4802_v6 = vmul.f32 %v9249_v54, %v4699_v31  ;;  %v4813_v0 = vmul.f32 %v9249_v54, %v9164_v20 }
 0x33e   :  { %v4801_v17 = vsub.f32 %v4799_v52, %v4800_v57  ;;  %v4808_v47 = vadd.f32 %v4807_v1, %v4806_v2  ;;  %v4809_v35 = vmul.f32 %v9207_v16, %v9230_v38  ;;  %v4814_v44 = vmul.f32 %v9254_v23, %v9148_v46 }
 0x33f   :  { %v4782_v15 = vadd.f32 %v4781_v4, %v4780_v7  ;;  %v4797_v50 = vmul.f32 %v9254_v23, %v4699_v31  ;;  %v4820_v3 = vmul.f32 %v9207_v16, %v9184_v49  ;;  %v4821_v55 = vmul.f32 %v9212_v60, %v9214_v45 }
 0x340   :  { %v4789_v32 = vadd.f32 %v4788_v21, %v4787_v24  ;;  %v4796_v8 = vsub.f32 %v4794_v18, %v4795_v40  ;;  %v4804_v20 = vmul.f32 %v9254_v23, %v9230_v38  ;;  %v4811_v41 = vmul.f32 %v9212_v60, %v4699_v31  ;;  %v9397_v24 = vld [vmem:[%s9583_s2 + $0x46] sm:$0x1] }
 0x341   :  { %v4815_v14 = vsub.f32 %v4813_v0, %v4814_v44  ;;  %v4816_v59 = vmul.f32 %v9207_v16, %v4699_v31  ;;  %v4827_v46 = vmul.f32 %v9207_v16, %v9214_v45  ;;  %v4828_v36 = vmul.f32 %v9212_v60, %v9184_v49 }
 0x342   :  { %v4803_v28 = vsub.f32 %v4801_v17, %v4802_v6  ;;  %v4810_v43 = vadd.f32 %v4809_v35, %v4808_v47  ;;  %v4822_v37 = vadd.f32 %v4821_v55, %v4820_v3  ;;  %v4823_v27 = vmul.f32 %v9249_v54, %v9277_v19 }
 0x343   :  { %v4777_v12 = vsub.f32 %v4775_v61, %v4776_v22  ;;  %v9352_v30 = vsub.f32 %v4782_v15, %v4783_v33  ;;  %v4834_v48 = vmul.f32 %v9249_v54, %v9184_v49  ;;  %v4835_v31 = vmul.f32 %v9254_v23, %v9214_v45  ;;  %v9412_v61 = vld [vmem:[%s9583_s2 + $0x47] sm:$0x1]  ;;  %s5295_s2 = smov [#allocation2]  }
 0x344   :  { %v9358_v56 = vadd.f32 %v4790_v5, %v4789_v32  ;;  %v9360_v11 = vadd.f32 %v4797_v50, %v4796_v8  ;;  %v4818_v25 = vmul.f32 %v9212_v60, %v9230_v38  ;;  %v4841_v58 = vmul.f32 %v9249_v54, %v9214_v45  ;;  %s5008_s29 = sshll.u32 %s5295_s2, 4  ;;  %s5009_s29 = int_to_ptr.vmem [resolvable:$true] %s5008_s29 }
 0x345   :  { %v4817_v39 = vadd.f32 %v4816_v59, %v4815_v14  ;;  %v4829_v29 = vsub.f32 %v4827_v46, %v4828_v36  ;;  %v4830_v34 = vmul.f32 %v9249_v54, %v9286_v53  ;;  %v4842_v38 = vmul.f32 %v9254_v23, %v9184_v49  ;;  %s5264_s0 = scalar_lea.vmem %s5009_s29, 16  ;;  %s5268_s30 = scalar_lea.vmem %s5009_s29, 32 }
 0x346   :  { %v9380_v10 = vsub.f32 %v4803_v28, %v4804_v20  ;;  %v9382_v45 = vsub.f32 %v4810_v43, %v4811_v41  ;;  %v4824_v22 = vsub.f32 %v4822_v37, %v4823_v27  ;;  %v4825_v4 = vmul.f32 %v9254_v23, %v9286_v53  ;;  %p5265_p0 = scmp.ne.s32.totalorder %s5009_s29, %s5264_s0  ;;  %p5269_p1 = scmp.lt.s32.totalorder %s5009_s29, %s5009_s29 }
 0x347   :  { %v4836_v33 = vadd.f32 %v4835_v31, %v4834_v48  ;;  %v4837_v52 = vmul.f32 %v9207_v16, %v9277_v19  ;;  %v4856_v57 = vmul.f32 %v9369_v63, %v9288_v9  ;;  %v4857_v54 = vmul.f32 %v9374_v42, %v9299_v26  ;;  %p5270_p2 = scmp.lt.s32.totalorder %s5268_s30, %s5264_s0 }
 0x348   :  { %v4843_v7 = vsub.f32 %v4841_v58, %v4842_v38  ;;  %v4844_v49 = vmul.f32 %v9207_v16, %v9286_v53  ;;  %v4863_v21 = vmul.f32 %v9369_v63, %v9299_v26  ;;  %v4864_v18 = vmul.f32 %v9374_v42, %v9288_v9 }
 0x349   :  { %v9403_v40 = vadd.f32 %v4818_v25, %v4817_v39  ;;  %v4831_v2 = vsub.f32 %v4829_v29, %v4830_v34  ;;  %v4832_v1 = vmul.f32 %v9254_v23, %v9277_v19  ;;  %v4839_v16 = vmul.f32 %v9212_v60, %v9286_v53  ;;  %p5271_p3 = por %p5270_p2, %p5269_p1 }
 0x34a   :  { %v9414_v5 = vadd.f32 %v4825_v4, %v4824_v22  ;;  %v4846_v6 = vmul.f32 %v9212_v60, %v9277_v19  ;;  %v4870_v0 = vmul.f32 %v9397_v24, %v9288_v9  ;;  %v4871_v17 = vmul.f32 %v9412_v61, %v9299_v26 }
 0x34b   :  { %v4838_v23 = vadd.f32 %v4837_v52, %v4836_v33  ;;  %v4858_v47 = vadd.f32 %v4857_v54, %v4856_v57  ;;  %v4859_v53 = vmul.f32 %v9397_v24, %v9319_v13  ;;  %v4877_v35 = vmul.f32 %v9397_v24, %v9299_v26  ;;  %p5272_p4 = pnand %p5271_p3, %p5265_p0 }
 0x34c   :  { %v4845_v44 = vadd.f32 %v4844_v49, %v4843_v7  ;;  %v4865_v15 = vsub.f32 %v4863_v21, %v4864_v18  ;;  %v4866_v50 = vmul.f32 %v9397_v24, %v4777_v12  ;;  %v4878_v60 = vmul.f32 %v9412_v61, %v9288_v9 }
 0x34d   :  { %v4833_v19 = vsub.f32 %v4831_v2, %v4832_v1  ;;  %v4861_v3 = vmul.f32 %v9412_v61, %v4777_v12  ;;  %v4872_v55 = vadd.f32 %v4871_v17, %v4870_v0  ;;  %v4873_v32 = vmul.f32 %v9369_v63, %v9319_v13 }
 0x34e   :  { %v4879_v8 = vsub.f32 %v4877_v35, %v4878_v60  ;;  %v4880_v20 = vmul.f32 %v9369_v63, %v4777_v12  ;;  %v4884_v26 = vmul.f32 %v9369_v63, %v9301_v62  ;;  %v4885_v41 = vmul.f32 %v9374_v42, %v9307_v51 }
 0x34f   :  { %v9437_v14 = vsub.f32 %v4838_v23, %v4839_v16  ;;  %v4860_v59 = vsub.f32 %v4858_v47, %v4859_v53  ;;  %v4891_v9 = vmul.f32 %v9369_v63, %v9307_v51  ;;  %v4892_v46 = vmul.f32 %v9374_v42, %v9301_v62 }
 0x350   :  { %v9443_v36 = vadd.f32 %v4846_v6, %v4845_v44  ;;  %v4867_v28 = vsub.f32 %v4865_v15, %v4866_v50  ;;  %v4868_v43 = vmul.f32 %v9412_v61, %v9319_v13  ;;  %v4875_v37 = vmul.f32 %v9374_v42, %v4777_v12 }
 0x351   :  { %v4874_v27 = vadd.f32 %v4873_v32, %v4872_v55  ;;  %v4882_v48 = vmul.f32 %v9374_v42, %v9319_v13  ;;  %v4898_v31 = vmul.f32 %v9397_v24, %v9301_v62  ;;  %v4899_v25 = vmul.f32 %v9412_v61, %v9307_v51 }
 0x352   :  { %v4881_v58 = vadd.f32 %v4880_v20, %v4879_v8  ;;  %v9454_v39 = vadd.f32 %v4885_v41, %v4884_v26  ;;  %v9458_v29 = vmul.f32 %v9397_v24, %v9352_v30  ;;  %v4905_v12 = vmul.f32 %v9397_v24, %v9307_v51 }
 0x353   :  { %v4862_v34 = vadd.f32 %v4861_v3, %v4860_v59  ;;  %v4893_v38 = vsub.f32 %v4891_v9, %v4892_v46  ;;  %v4894_v13 = vmul.f32 %v9397_v24, %v9358_v56  ;;  %v4906_v22 = vmul.f32 %v9412_v61, %v9301_v62 }
 0x354   :  { %v4869_v4 = vsub.f32 %v4867_v28, %v4868_v43  ;;  %v9468_v33 = vmul.f32 %v9412_v61, %v9358_v56  ;;  %v4900_v52 = vadd.f32 %v4899_v25, %v4898_v31  ;;  %v4901_v57 = vmul.f32 %v9369_v63, %v9352_v30 }
 0x355   :  { %v9472_v54 = vsub.f32 %v4874_v27, %v4875_v37  ;;  %v9476_v51 = vmul.f32 %v9412_v61, %v9352_v30  ;;  %v4912_v7 = vmul.f32 %v9369_v63, %v9360_v11  ;;  %v4913_v62 = vmul.f32 %v9374_v42, %v9380_v10 }
 0x356   :  { %v9482_v49 = vadd.f32 %v4882_v48, %v4881_v58  ;;  %v4888_v21 = vsub.f32 %v9454_v39, %v9458_v29  ;;  %v4907_v18 = vsub.f32 %v4905_v12, %v4906_v22  ;;  %v4908_v2 = vmul.f32 %v9369_v63, %v9358_v56 }
 0x357   :  { %v9488_v1 = vsub.f32 %v4893_v38, %v4894_v13  ;;  %v4903_v16 = vmul.f32 %v9374_v42, %v9358_v56  ;;  %v4919_v6 = vmul.f32 %v9369_v63, %v9380_v10  ;;  %v4920_v0 = vmul.f32 %v9374_v42, %v9360_v11 }
 0x358   :  { %v4902_v17 = vadd.f32 %v4901_v57, %v4900_v52  ;;  %v4910_v23 = vmul.f32 %v9374_v42, %v9352_v30  ;;  %v4926_v47 = vmul.f32 %v9397_v24, %v9360_v11  ;;  %v4927_v53 = vmul.f32 %v9412_v61, %v9380_v10 }
 0x359   :  { %v9502_v35 = vadd.f32 %v4913_v62, %v4912_v7  ;;  %v9506_v56 = vmul.f32 %v9397_v24, %v9414_v5  ;;  %v9509_v44 = vmul.f32 %v9412_v61, %v4833_v19  ;;  %v4933_v15 = vmul.f32 %v9397_v24, %v9380_v10 }
 0x35a   :  { %v4909_v50 = vadd.f32 %v4908_v2, %v4907_v18  ;;  %v4928_v30 = vadd.f32 %v4927_v53, %v4926_v47  ;;  %v4929_v60 = vmul.f32 %v9369_v63, %v9414_v5  ;;  %v4934_v3 = vmul.f32 %v9412_v61, %v9360_v11 }
 0x35b   :  { %v4921_v55 = vsub.f32 %v4919_v6, %v4920_v0  ;;  %v4922_v32 = vmul.f32 %v9397_v24, %v4833_v19  ;;  %v4940_v8 = vmul.f32 %v9369_v63, %v9382_v45  ;;  %v4941_v20 = vmul.f32 %v9374_v42, %v9403_v40 }
 0x35c   :  { %v4931_v26 = vmul.f32 %v9374_v42, %v4833_v19  ;;  %v4935_v10 = vsub.f32 %v4933_v15, %v4934_v3  ;;  %v4936_v41 = vmul.f32 %v9369_v63, %v4833_v19  ;;  %v4943_v59 = vmul.f32 %v9397_v24, %v9437_v14 }
 0x35d   :  { %v4942_v9 = vadd.f32 %v4941_v20, %v4940_v8  ;;  %v4945_v11 = vmul.f32 %v9412_v61, %v9443_v36  ;;  %v4947_v46 = vmul.f32 %v9369_v63, %v9403_v40  ;;  %v4948_v28 = vmul.f32 %v9374_v42, %v9382_v45 }
 0x35e   :  { %v4930_v43 = vadd.f32 %v4929_v60, %v4928_v30  ;;  %v4938_v37 = vmul.f32 %v9374_v42, %v9414_v5  ;;  %v4950_v19 = vmul.f32 %v9397_v24, %v9443_v36  ;;  %v4952_v27 = vmul.f32 %v9412_v61, %v9437_v14 }
 0x35f   :  { %v4944_v48 = vsub.f32 %v4942_v9, %v4943_v59  ;;  %v4949_v31 = vsub.f32 %v4947_v46, %v4948_v28  ;;  %v4954_v25 = vmul.f32 %v9397_v24, %v9382_v45  ;;  %v4955_v58 = vmul.f32 %v9412_v61, %v9403_v40 }
 0x360   :  { %v4937_v12 = vadd.f32 %v4936_v41, %v4935_v10  ;;  %v4957_v38 = vmul.f32 %v9369_v63, %v9437_v14  ;;  %v4959_v13 = vmul.f32 %v9374_v42, %v9443_v36  ;;  %v4961_v22 = vmul.f32 %v9397_v24, %v9403_v40 }
 0x361   :  { %v4946_v52 = vadd.f32 %v4945_v11, %v4944_v48  ;;  %v4951_v57 = vsub.f32 %v4949_v31, %v4950_v19  ;;  %v4956_v7 = vadd.f32 %v4955_v58, %v4954_v25  ;;  %v4962_v62 = vmul.f32 %v9412_v61, %v9382_v45 }
 0x362   :  { %v4964_v18 = vmul.f32 %v9369_v63, %v9443_v36  ;;  %v4966_v2 = vmul.f32 %v9374_v42, %v9437_v14  ;;  %v4968_v6 = vmul.f32 %v4862_v34, %v4862_v34  ;;  %v4969_v0 = vmul.f32 %v4869_v4, %v4869_v4 }
 0x363   :  { %v4953_v47 = vsub.f32 %v4951_v57, %v4952_v27  ;;  %v4958_v53 = vadd.f32 %v4957_v38, %v4956_v7  ;;  %v4963_v15 = vsub.f32 %v4961_v22, %v4962_v62  ;;  %v4972_v30 = vmul.f32 %v4946_v52, %v4946_v52 }
 0x364   :  { %v4904_v60 = vsub.f32 %v4902_v17, %v4903_v16  ;;  %v4924_v24 = vmul.f32 %v9412_v61, %v9414_v5  ;;  %v4932_v40 = vsub.f32 %v4930_v43, %v4931_v26  ;;  %v4939_v3 = vadd.f32 %v4938_v37, %v4937_v12 }
 0x365   :  { %v4960_v8 = vsub.f32 %v4958_v53, %v4959_v13  ;;  %v4965_v45 = vadd.f32 %v4964_v18, %v4963_v15  ;;  %v4970_v20 = vadd.f32 %v4969_v0, %v4968_v6  ;;  %v4973_v10 = vmul.f32 %v4953_v47, %v4953_v47 }
 0x366   :  { %v4911_v63 = vadd.f32 %v4910_v23, %v4909_v50  ;;  %v4916_v42 = vsub.f32 %v9502_v35, %v9506_v56  ;;  %v4923_v14 = vsub.f32 %v4921_v55, %v4922_v32  ;;  %v4980_v36 = vmul.f32 %v9472_v54, %v9472_v54 }
 0x367   :  { %v4967_v34 = vadd.f32 %v4966_v2, %v4965_v45  ;;  %v4974_v4 = vadd.f32 %v4973_v10, %v4972_v30  ;;  %v4976_v16 = vmul.f32 %v4960_v8, %v4960_v8  ;;  %v4981_v61 = vmul.f32 %v9482_v49, %v9482_v49 }
 0x368   :  { %v4890_v5 = vadd.f32 %v9468_v33, %v4888_v21  ;;  %v4897_v17 = vsub.f32 %v9488_v1, %v9476_v51  ;;  %v4984_v56 = vmul.f32 %v4932_v40, %v4932_v40  ;;  %v4985_v50 = vmul.f32 %v4939_v3, %v4939_v3 }
 0x369   :  { %v4975_v23 = vadd.f32 %v4974_v4, %v4970_v20  ;;  %v4977_v35 = vmul.f32 %v4967_v34, %v4967_v34  ;;  %v4918_v54 = vadd.f32 %v9509_v44, %v4916_v42  ;;  %v4925_v55 = vsub.f32 %v4923_v14, %v4924_v24 }
 0x36a   :  { %v4982_v26 = vadd.f32 %v4981_v61, %v4980_v36  ;;  %v4988_v41 = vmul.f32 %v4904_v60, %v4904_v60  ;;  %v4989_v59 = vmul.f32 %v4911_v63, %v4911_v63  ;;  %v4986_v9 = vadd.f32 %v4985_v50, %v4984_v56 }
 0x36b   :  { %v4978_v32 = vadd.f32 %v4977_v35, %v4976_v16  ;;  %v4992_v11 = vmul.f32 %v4890_v5, %v4890_v5  ;;  %v4993_v39 = vmul.f32 %v4897_v17, %v4897_v17  ;;  %v4996_v21 = vmul.f32 %v4918_v54, %v4918_v54 }
 0x36c   :  { %v4990_v33 = vadd.f32 %v4989_v59, %v4988_v41  ;;  %v4997_v46 = vmul.f32 %v4925_v55, %v4925_v55 }
 0x36d   :  { %v4979_v49 = vadd.f32 %v4978_v32, %v4975_v23  ;;  %v4994_v1 = vadd.f32 %v4993_v39, %v4992_v11 }
 0x36e   :  { %v4998_v43 = vadd.f32 %v4997_v46, %v4996_v21 }
 0x36f   :  { %v4983_v29 = vadd.f32 %v4982_v26, %v4979_v49 }
 0x371   :  { %v4987_v51 = vsub.f32 %v4983_v29, %v4986_v9 }
 0x373   :  { %v4991_v28 = vsub.f32 %v4987_v51, %v4990_v33 }
 0x375   :  { %v4995_v44 = vsub.f32 %v4991_v28, %v4994_v1 }
 0x377   :  { %v4999_v37 = vsub.f32 %v4995_v44, %v4998_v43 }
 0x379   :  { %5001 = vst.msk [vmem:[#allocation2] sm:$0x1] %vm5000_vm4, %v4999_v37 }
 0x37a   :  { %5275 = shalt.err (!%p5272_p4)
}
 0x37b   :  { %s5276_s6 = scalar_lea.hbm %s9584_s3, 16 }
 0x37c   :  { %p5277_p5 = scmp.ne.s32.totalorder %s9584_s3, %s5276_s6  ;;  %p5280_p6 = scmp.lt.u32.totalorder %s5276_s6, %s9584_s3 }
 0x37e   :  { %p5282_p7 = pnand %p5280_p6, %p5277_p5 }
 0x380   :  { %5285 = shalt.err (!%p5282_p7)
}
 0x381   :  { %5011 = dma.vmem_to_hbm [thread:$0]  %s5009_s29, 16, %s9584_s3, [#allocation3]  }
 0x382   :  { %5286 = dma.done.wait [#allocation3], 16  }
 0x383   :  { %5287 = vsyncadd [#allocation3], 4294967280 }
 0x384   :  { %5015 = vsyncpa [#allocation3], 1 }

</bundles_post_ra>
